<compile_context>
chip_gen: v5e
topology: v5e:2x2
jax: 0.10.0
libtpu: 0.0.40
codegen_flags: <defaults>
</compile_context>

<pallas_src>
from functools import partial

import numpy as np
import jax
import jax.numpy as jnp
from jax.experimental import pallas as pl
from jax.experimental.pallas import tpu as pltpu


# ------------------------------ helpers -------------------------------------

def _round_up(x, m):
    return ((x + m - 1) // m) * m


def _cparams(*sems):
    return pltpu.CompilerParams(
        dimension_semantics=tuple(sems),
        vmem_limit_bytes=32 * 1024 * 1024,
    )


def _bn_scale_shift(gamma, beta, ch_sum, ch_sumsq, count, eps=1e-5):
    """Fold batch statistics + affine into per-channel scale/shift (JAX glue)."""
    mean = ch_sum / count
    var = jnp.maximum(ch_sumsq / count - mean * mean, 0.0)  # biased var (training BN)
    inv = jax.lax.rsqrt(var + eps)
    scale = gamma * inv
    shift = beta - mean * scale
    return (scale.reshape(1, -1).astype(jnp.float32),
            shift.reshape(1, -1).astype(jnp.float32))


# ----------------------------- Pallas kernels --------------------------------

def _stem_matmul_kernel(x_ref, w_ref, o_ref, s_ref, ss_ref):
    # bf16 x bf16 -> f32 MXU matmul tile; epilogue: partial sums for the BN
    # that follows the stem conv.
    acc = jnp.dot(x_ref[...], w_ref[...], preferred_element_type=jnp.float32)
    o_ref[...] = acc
    s_ref[...] = jnp.sum(acc, axis=0, keepdims=True)
    ss_ref[...] = jnp.sum(acc * acc, axis=0, keepdims=True)


def _bn_relu_maxpool_kernel(p00_ref, p01_ref, p10_ref, p11_ref,
                            m00_ref, m01_ref, m10_ref, m11_ref,
                            scale_ref, shift_ref, o_ref, *, Ho, Wo):
    # Fused stem BN(batch stats)+ReLU + 3x3/s2/p1 maxpool over phase-split
    # inputs: 9 offset loads, masked so zero-padded taps never win the max.
    xr = {(0, 0): p00_ref, (0, 1): p01_ref, (1, 0): p10_ref, (1, 1): p11_ref}
    mr = {(0, 0): m00_ref, (0, 1): m01_ref, (1, 0): m10_ref, (1, 1): m11_ref}
    scale = scale_ref[...]
    shift = shift_ref[...]
    res = None
    for dh in range(3):
        for dw in range(3):
            r = xr[(dh % 2, dw % 2)]
            m = mr[(dh % 2, dw % 2)]
            oh, ow = dh // 2, dw // 2
            t = r[pl.ds(oh, Ho), pl.ds(ow, Wo), :]
            mk = m[pl.ds(oh, Ho), pl.ds(ow, Wo), :]
            v = jnp.maximum(t * scale + shift, 0.0) * mk   # >= 0, padding -> 0
            res = v if res is None else jnp.maximum(res, v)
    o_ref[...] = res


def _dense_block_kernel(mask_ref, feat0_ref, gamma_ref, beta_ref, w_ref,
                        feat_out_ref, sum_ref, sumsq_ref, feat_ref,
                        *, Wp, S, R_out, inv_count, eps):
    # One whole dense block.  Grid axis = layer index; the growing feature
    # map lives in the VMEM scratch `feat_ref` (N, R_buf, Cf) across steps.
    # gamma/beta/weights are zero-padded to the final channel width Cf, so
    # channels not yet produced contribute exactly zero.
    l = pl.program_id(0)

    @pl.when(l == 0)
    def _():
        feat_ref[...] = feat0_ref[...]

    # Batch statistics of all channels produced so far (padding rows and
    # not-yet-produced channels are zero, so a full-buffer sum is exact).
    x = feat_ref[...]
    mean = jnp.sum(jnp.sum(x, axis=0), axis=0, keepdims=True) * inv_count
    ex2 = jnp.sum(jnp.sum(x * x, axis=0), axis=0, keepdims=True) * inv_count
    var = jnp.maximum(ex2 - mean * mean, 0.0)
    scale = gamma_ref[...] * jax.lax.rsqrt(var + eps)     # (1, Cf)
    shift = beta_ref[...] - mean * scale

    row0 = S + Wp + 1                                     # 8-aligned by layout
    mo = mask_ref[pl.ds(row0, R_out), :]                  # output-validity mask
    n_batch = feat_ref.shape[0]
    for n in range(n_batch):
        acc = jnp.zeros((R_out, feat_ref.shape[2]), jnp.float32)
        for dh in range(3):
            for dw in range(3):
                k = S + dh * Wp + dw
                xk = feat_ref[n, pl.ds(k, R_out), :]
                mk = mask_ref[pl.ds(k, R_out), :]
                a = jnp.maximum(xk * scale + shift, 0.0) * mk   # masked BN+ReLU
                acc = acc + jnp.dot(a.astype(jnp.bfloat16), w_ref[dh * 3 + dw],
                                    preferred_element_type=jnp.float32)
        # New channels (weights are zero elsewhere) accumulated into the
        # resident feature buffer; existing channels receive exact +0.
        feat_ref[n, pl.ds(row0, R_out), :] = (
            feat_ref[n, pl.ds(row0, R_out), :] + acc * mo)

    @pl.when(l == pl.num_programs(0) - 1)
    def _():
        xf = feat_ref[...]
        feat_out_ref[...] = xf
        # Block-output BN stats for the transition / norm5 that follows.
        sum_ref[...] = jnp.sum(jnp.sum(xf, axis=0), axis=0, keepdims=True)
        sumsq_ref[...] = jnp.sum(jnp.sum(xf * xf, axis=0), axis=0, keepdims=True)


def _transition_kernel(x_ref, scale_ref, shift_ref, w_ref, o_ref):
    # Fused BN+ReLU + 2x2 avgpool + 1x1 conv (pool commutes with the 1x1 conv).
    #   x_ref : (4, M2, Cin) f32 -- the 4 taps of each disjoint 2x2 window
    scale = scale_ref[...]
    shift = shift_ref[...]
    p = jnp.zeros(x_ref.shape[1:], jnp.float32)
    for t in range(4):
        p = p + jnp.maximum(x_ref[t] * scale + shift, 0.0)
    p = p * 0.25
    o_ref[...] = jnp.dot(p.astype(jnp.bfloat16), w_ref[...],
                         preferred_element_type=jnp.float32)


def _head_kernel(x_ref, scale_ref, shift_ref, w_ref, b_ref, o_ref, *, inv_count):
    # Fused norm5 + ReLU + global average pool + classifier.
    a = jnp.maximum(x_ref[...] * scale_ref[...] + shift_ref[...], 0.0)
    g = jnp.sum(a, axis=0, keepdims=True) * inv_count
    o_ref[...] = jnp.dot(g, w_ref[...],
                         preferred_element_type=jnp.float32) + b_ref[...]


# ----------------------------- call wrappers ---------------------------------

def stem_conv_matmul(cols, w, tm):
    Mp, K = cols.shape
    C = w.shape[1]
    n_tiles = Mp // tm
    out, s, ss = pl.pallas_call(
        _stem_matmul_kernel,
        out_shape=(
            jax.ShapeDtypeStruct((Mp, C), jnp.float32),
            jax.ShapeDtypeStruct((n_tiles, 1, C), jnp.float32),
            jax.ShapeDtypeStruct((n_tiles, 1, C), jnp.float32),
        ),
        grid=(n_tiles,),
        in_specs=[
            pl.BlockSpec((tm, K), lambda i: (i, 0)),
            pl.BlockSpec((K, C), lambda i: (0, 0)),
        ],
        out_specs=(
            pl.BlockSpec((tm, C), lambda i: (i, 0)),
            pl.BlockSpec((None, 1, C), lambda i: (i, 0, 0)),
            pl.BlockSpec((None, 1, C), lambda i: (i, 0, 0)),
        ),
        compiler_params=_cparams("parallel"),
    )(cols, w)
    return out, jnp.sum(s, axis=(0, 1)), jnp.sum(ss, axis=(0, 1))


def bn_relu_maxpool(y, scale, shift):
    """y: raw stem conv output (N, H, W, C); BN+ReLU fused into the pool."""
    N, H, W, C = y.shape
    Ho = (H + 2 - 3) // 2 + 1
    Wo = (W + 2 - 3) // 2 + 1
    yp = jnp.pad(y, ((0, 0), (1, 1), (1, 1), (0, 0)))
    mp = jnp.pad(jnp.ones((1, H, W, 1), jnp.float32),
                 ((0, 0), (1, 1), (1, 1), (0, 0)))
    phases, mphases = [], []
    for ph in range(2):
        for pw in range(2):
            pcur = yp[:, ph::2, pw::2, :][:, :Ho + 1, :Wo + 1, :]
            mcur = mp[:, ph::2, pw::2, :][:, :Ho + 1, :Wo + 1, :]
            pad_h = Ho + 1 - pcur.shape[1]
            pad_w = Wo + 1 - pcur.shape[2]
            if pad_h or pad_w:
                pcur = jnp.pad(pcur, ((0, 0), (0, pad_h), (0, pad_w), (0, 0)))
                mcur = jnp.pad(mcur, ((0, 0), (0, pad_h), (0, pad_w), (0, 0)))
            phases.append(pcur)
            mphases.append(mcur)
    pooled = pl.pallas_call(
        partial(_bn_relu_maxpool_kernel, Ho=Ho, Wo=Wo),
        out_shape=jax.ShapeDtypeStruct((N, Ho, Wo, C), jnp.float32),
        grid=(N,),
        in_specs=(
            [pl.BlockSpec((None, Ho + 1, Wo + 1, C), lambda n: (n, 0, 0, 0))] * 4
            + [pl.BlockSpec((None, Ho + 1, Wo + 1, 1), lambda n: (0, 0, 0, 0))] * 4
            + [pl.BlockSpec((1, C), lambda n: (0, 0)),
               pl.BlockSpec((1, C), lambda n: (0, 0))]),
        out_specs=pl.BlockSpec((None, Ho, Wo, C), lambda n: (n, 0, 0, 0)),
        compiler_params=_cparams("parallel"),
    )(*phases, *mphases, scale, shift)
    return pooled


def dense_block(feat0_rows, mask_rows, gammas, betas, w9, H, W, count):
    N, R_buf, Cf = feat0_rows.shape
    L = gammas.shape[0]
    Wp = W + 2
    S = (-(Wp + 1)) % 8
    R_out = H * Wp
    feat, bsum, bsumsq = pl.pallas_call(
        partial(_dense_block_kernel, Wp=Wp, S=S, R_out=R_out,
                inv_count=1.0 / count, eps=1e-5),
        out_shape=(
            jax.ShapeDtypeStruct((N, R_buf, Cf), jnp.float32),
            jax.ShapeDtypeStruct((1, Cf), jnp.float32),
            jax.ShapeDtypeStruct((1, Cf), jnp.float32),
        ),
        grid=(L,),
        in_specs=[
            pl.BlockSpec((R_buf, 1), lambda l: (0, 0)),
            pl.BlockSpec((N, R_buf, Cf), lambda l: (0, 0, 0)),
            pl.BlockSpec((None, 1, Cf), lambda l: (l, 0, 0)),
            pl.BlockSpec((None, 1, Cf), lambda l: (l, 0, 0)),
            pl.BlockSpec((None, 9, Cf, Cf), lambda l: (l, 0, 0, 0)),
        ],
        out_specs=(
            pl.BlockSpec((N, R_buf, Cf), lambda l: (0, 0, 0)),
            pl.BlockSpec((1, Cf), lambda l: (0, 0)),
            pl.BlockSpec((1, Cf), lambda l: (0, 0)),
        ),
        scratch_shapes=[pltpu.VMEM((N, R_buf, Cf), jnp.float32)],
        compiler_params=_cparams("arbitrary"),
    )(mask_rows, feat0_rows, gammas, betas, w9)
    return feat, bsum.reshape(-1), bsumsq.reshape(-1)


def transition(xw, scale, shift, w):
    N, _, M2, Cin = xw.shape
    Cout = w.shape[-1]
    out = pl.pallas_call(
        _transition_kernel,
        out_shape=jax.ShapeDtypeStruct((N, M2, Cout), jnp.float32),
        grid=(N,),
        in_specs=[
            pl.BlockSpec((None, 4, M2, Cin), lambda n: (n, 0, 0, 0)),
            pl.BlockSpec((1, Cin), lambda n: (0, 0)),
            pl.BlockSpec((1, Cin), lambda n: (0, 0)),
            pl.BlockSpec((Cin, Cout), lambda n: (0, 0)),
        ],
        out_specs=pl.BlockSpec((None, M2, Cout), lambda n: (n, 0, 0)),
        compiler_params=_cparams("parallel"),
    )(xw, scale, shift, w)
    return out


def head(x_rows, scale, shift, w, b):
    N, M_sp, C = x_rows.shape
    NC = w.shape[-1]
    out = pl.pallas_call(
        partial(_head_kernel, inv_count=1.0 / M_sp),
        out_shape=jax.ShapeDtypeStruct((N, 1, NC), jnp.float32),
        grid=(N,),
        in_specs=[
            pl.BlockSpec((None, M_sp, C), lambda n: (n, 0, 0)),
            pl.BlockSpec((1, C), lambda n: (0, 0)),
            pl.BlockSpec((1, C), lambda n: (0, 0)),
            pl.BlockSpec((C, NC), lambda n: (0, 0)),
            pl.BlockSpec((1, NC), lambda n: (0, 0)),
        ],
        out_specs=pl.BlockSpec((None, 1, NC), lambda n: (n, 0, 0)),
        compiler_params=_cparams("parallel"),
    )(x_rows, scale, shift, w, b)
    return out[:, 0, :]


# --------------------------------- glue --------------------------------------

def _im2col(x, kh, kw, stride, pad):
    """NHWC -> (N*Ho*Wo, kh*kw*C). Only used for the small 7x7/s2 stem conv."""
    # TODO(synk): fuse the strided 7x7 gather into the stem kernel as well.
    N, H, W, C = x.shape
    xp = jnp.pad(x, ((0, 0), (pad, pad), (pad, pad), (0, 0)))
    Ho = (H + 2 * pad - kh) // stride + 1
    Wo = (W + 2 * pad - kw) // stride + 1
    taps = []
    for di in range(kh):
        for dj in range(kw):
            taps.append(xp[:, di:di + (Ho - 1) * stride + 1:stride,
                            dj:dj + (Wo - 1) * stride + 1:stride, :])
    patches = jnp.stack(taps, axis=3)  # (N, Ho, Wo, kh*kw, C)
    return patches.reshape(N * Ho * Wo, kh * kw * C), (N, Ho, Wo)


def _row_layout(H, W):
    """Padded row-flattened layout; S chosen so the conv write is 8-aligned."""
    Hp, Wp = H + 2, W + 2
    S = (-(Wp + 1)) % 8
    R_buf = _round_up(S + Hp * Wp + 8, 8)
    return Hp, Wp, S, R_buf


def _to_padded_rows(x, S, R_buf):
    """(N, H, W, C) -> (N, R_buf, C) spatially zero-padded, row-flattened."""
    N, H, W, C = x.shape
    xp = jnp.pad(x, ((0, 0), (1, 1), (1, 1), (0, 0)))
    rows = xp.reshape(N, (H + 2) * (W + 2), C)
    return jnp.pad(rows, ((0, 0), (S, R_buf - S - rows.shape[1]), (0, 0)))


def _make_mask_rows(H, W, S, R_buf):
    Hp, Wp = H + 2, W + 2
    r = np.arange(R_buf) - S
    h, w = r // Wp, r % Wp
    valid = (r >= 0) & (r < Hp * Wp) & (h >= 1) & (h <= H) & (w >= 1) & (w <= W)
    return jnp.asarray(valid.astype(np.float32).reshape(R_buf, 1))


def _rows_to_nhwc(feat_rows, N, H, W, S):
    Hp, Wp = H + 2, W + 2
    C = feat_rows.shape[-1]
    return feat_rows[:, S:S + Hp * Wp, :].reshape(N, Hp, Wp, C)[:, 1:H + 1, 1:W + 1, :]


# ------------------------------ parameters -----------------------------------

def init_densenet_params(key, num_classes, num_init_features, growth_rate,
                         block_config):
    keys = iter(jax.random.split(key, 512))
    nk = lambda: next(keys)

    def conv_w(cout, cin, kh, kw):
        fan_in = cin * kh * kw
        return jax.random.normal(nk(), (cout, cin, kh, kw), jnp.float32) / jnp.sqrt(
            float(fan_in))

    def bn(c):
        return dict(
            g=1.0 + 0.1 * jax.random.normal(nk(), (c,), jnp.float32),
            b=0.1 * jax.random.normal(nk(), (c,), jnp.float32),
        )

    params = {
        "stem_conv": conv_w(num_init_features, 3, 7, 7),
        "stem_bn": bn(num_init_features),
        "blocks": [],
    }
    nf = num_init_features
    for i, num_layers in enumerate(block_config):
        layers = []
        for l in range(num_layers):
            cin = nf + l * growth_rate
            layers.append(dict(bn=bn(cin), conv=conv_w(growth_rate, cin, 3, 3)))
        nf += num_layers * growth_rate
        trans = None
        if i != len(block_config) - 1:
            trans = dict(bn=bn(nf), conv=conv_w(nf // 2, nf, 1, 1))
            nf = nf // 2
        params["blocks"].append(dict(layers=layers, trans=trans))
    params["norm5"] = bn(nf)
    params["fc_w"] = jax.random.normal(nk(), (num_classes, nf), jnp.float32) / jnp.sqrt(
        float(nf))
    params["fc_b"] = 0.1 * jax.random.normal(nk(), (num_classes,), jnp.float32)
    return params


def prep_params(params):
    """One-time layout/dtype prep: kernel-friendly weight layouts, bf16 cast.

    Dense-layer gamma/beta/weights are zero-padded to the block's final channel
    width so every layer in a block uses identical (aligned) shapes and the
    fused block kernel never slices the lane dimension.
    """
    p = {}
    sw = params["stem_conv"]  # (C0, 3, 7, 7)
    p["stem_w"] = jnp.transpose(sw, (2, 3, 1, 0)).reshape(-1, sw.shape[0]).astype(
        jnp.bfloat16)
    p["stem_bn"] = (params["stem_bn"]["g"], params["stem_bn"]["b"])
    blocks = []
    for blk in params["blocks"]:
        layers = blk["layers"]
        L = len(layers)
        cin0 = layers[0]["conv"].shape[1]
        g = layers[0]["conv"].shape[0]
        Cf = cin0 + L * g
        gammas = jnp.zeros((L, 1, Cf), jnp.float32)
        betas = jnp.zeros((L, 1, Cf), jnp.float32)
        w9 = jnp.zeros((L, 9, Cf, Cf), jnp.float32)
        for l, layer in enumerate(layers):
            cin = cin0 + l * g
            gammas = gammas.at[l, 0, :cin].set(layer["bn"]["g"])
            betas = betas.at[l, 0, :cin].set(layer["bn"]["b"])
            wt = jnp.transpose(layer["conv"], (2, 3, 1, 0)).reshape(9, cin, g)
            w9 = w9.at[l, :, :cin, cin:cin + g].set(wt)
        trans = None
        if blk["trans"] is not None:
            tw = blk["trans"]["conv"]  # (cout, cin, 1, 1)
            trans = dict(gamma=blk["trans"]["bn"]["g"], beta=blk["trans"]["bn"]["b"],
                         w=jnp.transpose(tw[:, :, 0, 0], (1, 0)).astype(jnp.bfloat16))
        blocks.append(dict(gammas=gammas, betas=betas,
                           w9=w9.astype(jnp.bfloat16), trans=trans))
    p["blocks"] = blocks
    p["norm5"] = (params["norm5"]["g"], params["norm5"]["b"])
    p["fc_w"] = params["fc_w"].T.astype(jnp.float32)          # (nf, num_classes)
    p["fc_b"] = params["fc_b"].reshape(1, -1).astype(jnp.float32)
    return p


# -------------------------------- forward ------------------------------------

def densenet_forward(p, x_nchw):
    x = jnp.transpose(x_nchw, (0, 2, 3, 1)).astype(jnp.float32)  # NHWC
    N = x.shape[0]

    # ---- stem: conv7x7/s2/p3 (+stats epilogue) -> fused BN+ReLU+maxpool
    cols, (_, Ho, Wo) = _im2col(x, 7, 7, 2, 3)
    cols = cols.astype(jnp.bfloat16)
    M = N * Ho * Wo
    tm = min(256, _round_up(M, 8))
    Mp = _round_up(M, tm)
    cols = jnp.pad(cols, ((0, Mp - M), (0, 0)))
    y, ssum, ssumsq = stem_conv_matmul(cols, p["stem_w"], tm)
    y = y[:M].reshape(N, Ho, Wo, -1)
    scale, shift = _bn_scale_shift(p["stem_bn"][0], p["stem_bn"][1],
                                   ssum, ssumsq, float(M))
    x0 = bn_relu_maxpool(y, scale, shift)                  # (N, 8, 8, C0)
    H, W = x0.shape[1], x0.shape[2]

    final_rows = None
    final_sum = final_sumsq = None
    final_count = 1.0
    for blk in p["blocks"]:
        Cf = blk["gammas"].shape[-1]
        C0 = x0.shape[-1]
        _, Wp, S, R_buf = _row_layout(H, W)
        count = float(N * H * W)
        x0p = jnp.pad(x0, ((0, 0), (0, 0), (0, 0), (0, Cf - C0)))
        feat0_rows = _to_padded_rows(x0p, S, R_buf)        # (N, R_buf, Cf) f32
        mask_rows = _make_mask_rows(H, W, S, R_buf)

        # Whole dense block in one kernel: layers iterate on the grid, the
        # growing feature map stays VMEM-resident, BN stats computed in-kernel.
        feat_rows, bsum, bsumsq = dense_block(
            feat0_rows, mask_rows, blk["gammas"], blk["betas"], blk["w9"],
            H, W, count)

        if blk["trans"] is not None:
            tscale, tshift = _bn_scale_shift(blk["trans"]["gamma"],
                                             blk["trans"]["beta"],
                                             bsum, bsumsq, count)
            xfull = _rows_to_nhwc(feat_rows, N, H, W, S)   # (N, H, W, Cf)
            Ho2, Wo2 = H // 2, W // 2
            xw = jnp.transpose(
                xfull.reshape(N, Ho2, 2, Wo2, 2, Cf), (0, 2, 4, 1, 3, 5)
            ).reshape(N, 4, Ho2 * Wo2, Cf)
            yv = transition(xw, tscale, tshift, blk["trans"]["w"])
            x0 = yv.reshape(N, Ho2, Wo2, -1)
            H, W = Ho2, Wo2
        else:
            final_rows = _rows_to_nhwc(feat_rows, N, H, W, S).reshape(N, H * W, Cf)
            final_sum, final_sumsq, final_count = bsum, bsumsq, count

    # norm5 + ReLU + adaptive_avg_pool2d((1,1)) + classifier, fused.
    scale5, shift5 = _bn_scale_shift(p["norm5"][0], p["norm5"][1],
                                     final_sum, final_sumsq, final_count)
    logits = head(final_rows, scale5, shift5, p["fc_w"], p["fc_b"])
    return logits
    # TODO(synk): BN running-stats buffer updates (training-mode side effect)
    # are not reproduced; they do not affect the forward output.


# ---------------------------------- main --------------------------------------

if __name__ == "__main__":
    NUM_CLASSES = 10
    NUM_INIT_FEATURES = 32
    GROWTH_RATE = 16
    BLOCK_CONFIG = (2, 2)

    key = jax.random.PRNGKey(0)
    pkey, xkey = jax.random.split(key)
    raw_params = init_densenet_params(
        pkey, NUM_CLASSES, NUM_INIT_FEATURES, GROWTH_RATE, BLOCK_CONFIG
    )
    params = prep_params(raw_params)

    # Input: NCHW, batch=2, 3 channels, 32x32 spatial.
    x = jax.random.normal(xkey, (2, 3, 32, 32), jnp.float32)

    fwd = jax.jit(densenet_forward)
    out = fwd(params, x)
    out = jax.block_until_ready(out)
    assert out.shape == (2, NUM_CLASSES), out.shape
    assert bool(jnp.all(jnp.isfinite(out)))
    print("KERNEL_OK")
</pallas_src>

<mosaic_0001>
module attributes {stable_mosaic.version = 11 : i64} {
  func.func @_stem_matmul_kernel(%arg0: i32, %arg1: memref<256x147xbf16, #tpu.memory_space<vmem>>, %arg2: memref<147x32xbf16, #tpu.memory_space<vmem>>, %arg3: memref<256x32xf32, #tpu.memory_space<vmem>>, %arg4: memref<1x1x32xf32, #tpu.memory_space<vmem>>, %arg5: memref<1x1x32xf32, #tpu.memory_space<vmem>>) attributes {dimension_semantics = [#tpu.dimension_semantics<parallel>], iteration_bounds = array<i64: 2>, scalar_prefetch = 0 : i64, scratch_operands = 0 : i64, tpu.core_type = #tpu.core_type<tc>, window_params = [{transform_indices = @transform_0, window_bounds = array<i64: 256, 147>}, {pipeline_mode = #tpu.pipeline_mode<synchronous>, transform_indices = @transform_1, window_bounds = array<i64: 147, 32>}, {transform_indices = @transform_2, window_bounds = array<i64: 256, 32>}, {transform_indices = @transform_3, window_bounds = array<i64: 1, 1, 32>}, {transform_indices = @transform_4, window_bounds = array<i64: 1, 1, 32>}]} {
    %c0 = arith.constant 0 : index
    %c0_0 = arith.constant 0 : index
    %0 = vector.load %arg1[%c0, %c0_0] : memref<256x147xbf16, #tpu.memory_space<vmem>>, vector<256x147xbf16>
    %c0_1 = arith.constant 0 : index
    %c0_2 = arith.constant 0 : index
    %1 = vector.load %arg2[%c0_1, %c0_2] : memref<147x32xbf16, #tpu.memory_space<vmem>>, vector<147x32xbf16>
    %cst = arith.constant dense<0.000000e+00> : vector<256x32xf32>
    %2 = tpu.matmul %0, %1, %cst {dimension_numbers = #tpu.dot_dimension_numbers<[1], [0], [0], [1], [0, 0, 1, 1], [], []>} : vector<256x147xbf16>, vector<147x32xbf16>, vector<256x32xf32> -> vector<256x32xf32>
    %c0_3 = arith.constant 0 : index
    %c0_4 = arith.constant 0 : index
    %3 = vector.load %arg3[%c0_3, %c0_4] : memref<256x32xf32, #tpu.memory_space<vmem>>, vector<256x32xf32>
    tpu.vector_store %arg3[%c0_3, %c0_4], %2 {strides = array<i32>} : memref<256x32xf32, #tpu.memory_space<vmem>>, vector<256x32xf32>,
    %cst_5 = arith.constant dense<0.000000e+00> : vector<32xf32>
    %4 = vector.multi_reduction <add>, %2, %cst_5 [0] : vector<256x32xf32> to vector<32xf32>
    %5 = vector.shape_cast %4 : vector<32xf32> to vector<1x32xf32>
    %c0_6 = arith.constant 0 : index
    %c0_7 = arith.constant 0 : index
    %c0_8 = arith.constant 0 : index
    %6 = vector.load %arg4[%c0_6, %c0_7, %c0_8] : memref<1x1x32xf32, #tpu.memory_space<vmem>>, vector<1x1x32xf32>
    %7 = vector.shape_cast %6 : vector<1x1x32xf32> to vector<1x32xf32>
    %8 = vector.shape_cast %5 : vector<1x32xf32> to vector<1x1x32xf32>
    tpu.vector_store %arg4[%c0_6, %c0_7, %c0_8], %8 {strides = array<i32>} : memref<1x1x32xf32, #tpu.memory_space<vmem>>, vector<1x1x32xf32>,
    %9 = arith.mulf %2, %2 : vector<256x32xf32>
    %cst_9 = arith.constant dense<0.000000e+00> : vector<32xf32>
    %10 = vector.multi_reduction <add>, %9, %cst_9 [0] : vector<256x32xf32> to vector<32xf32>
    %11 = vector.shape_cast %10 : vector<32xf32> to vector<1x32xf32>
    %c0_10 = arith.constant 0 : index
    %c0_11 = arith.constant 0 : index
    %c0_12 = arith.constant 0 : index
    %12 = vector.load %arg5[%c0_10, %c0_11, %c0_12] : memref<1x1x32xf32, #tpu.memory_space<vmem>>, vector<1x1x32xf32>
    %13 = vector.shape_cast %12 : vector<1x1x32xf32> to vector<1x32xf32>
    %14 = vector.shape_cast %11 : vector<1x32xf32> to vector<1x1x32xf32>
    tpu.vector_store %arg5[%c0_10, %c0_11, %c0_12], %14 {strides = array<i32>} : memref<1x1x32xf32, #tpu.memory_space<vmem>>, vector<1x1x32xf32>,
    return
  }
  func.func @transform_0(%arg0: i32) -> (i32, i32) {
    %c0_i32 = arith.constant 0 : i32
    %c0_i32_0 = arith.constant 0 : i32
    return %arg0, %c0_i32 : i32, i32
  }
  func.func @transform_1(%arg0: i32) -> (i32, i32) {
    %c0_i32 = arith.constant 0 : i32
    %c0_i32_0 = arith.constant 0 : i32
    %c0_i32_1 = arith.constant 0 : i32
    return %c0_i32, %c0_i32_0 : i32, i32
  }
  func.func @transform_2(%arg0: i32) -> (i32, i32) {
    %c0_i32 = arith.constant 0 : i32
    %c0_i32_0 = arith.constant 0 : i32
    return %arg0, %c0_i32 : i32, i32
  }
  func.func @transform_3(%arg0: i32) -> (i32, i32, i32) {
    %c0_i32 = arith.constant 0 : i32
    %c0_i32_0 = arith.constant 0 : i32
    %c0_i32_1 = arith.constant 0 : i32
    return %arg0, %c0_i32, %c0_i32_0 : i32, i32, i32
  }
  func.func @transform_4(%arg0: i32) -> (i32, i32, i32) {
    %c0_i32 = arith.constant 0 : i32
    %c0_i32_0 = arith.constant 0 : i32
    %c0_i32_1 = arith.constant 0 : i32
    return %arg0, %c0_i32, %c0_i32_0 : i32, i32, i32
  }
}

module attributes {stable_mosaic.version = 11 : i64} {
  func.func @_bn_relu_maxpool_kernel(%arg0: i32, %arg1: memref<1x9x9x32xf32, #tpu.memory_space<vmem>>, %arg2: memref<1x9x9x32xf32, #tpu.memory_space<vmem>>, %arg3: memref<1x9x9x32xf32, #tpu.memory_space<vmem>>, %arg4: memref<1x9x9x32xf32, #tpu.memory_space<vmem>>, %arg5: memref<1x9x9x1xf32, #tpu.memory_space<vmem>>, %arg6: memref<1x9x9x1xf32, #tpu.memory_space<vmem>>, %arg7: memref<1x9x9x1xf32, #tpu.memory_space<vmem>>, %arg8: memref<1x9x9x1xf32, #tpu.memory_space<vmem>>, %arg9: memref<1x32xf32, #tpu.memory_space<vmem>>, %arg10: memref<1x32xf32, #tpu.memory_space<vmem>>, %arg11: memref<1x8x8x32xf32, #tpu.memory_space<vmem>>) attributes {dimension_semantics = [#tpu.dimension_semantics<parallel>], iteration_bounds = array<i64: 2>, scalar_prefetch = 0 : i64, scratch_operands = 0 : i64, tpu.core_type = #tpu.core_type<tc>, window_params = [{transform_indices = @transform_0, window_bounds = array<i64: 1, 9, 9, 32>}, {transform_indices = @transform_1, window_bounds = array<i64: 1, 9, 9, 32>}, {transform_indices = @transform_2, window_bounds = array<i64: 1, 9, 9, 32>}, {transform_indices = @transform_3, window_bounds = array<i64: 1, 9, 9, 32>}, {pipeline_mode = #tpu.pipeline_mode<synchronous>, transform_indices = @transform_4, window_bounds = array<i64: 1, 9, 9, 1>}, {pipeline_mode = #tpu.pipeline_mode<synchronous>, transform_indices = @transform_5, window_bounds = array<i64: 1, 9, 9, 1>}, {pipeline_mode = #tpu.pipeline_mode<synchronous>, transform_indices = @transform_6, window_bounds = array<i64: 1, 9, 9, 1>}, {pipeline_mode = #tpu.pipeline_mode<synchronous>, transform_indices = @transform_7, window_bounds = array<i64: 1, 9, 9, 1>}, {pipeline_mode = #tpu.pipeline_mode<synchronous>, transform_indices = @transform_8, window_bounds = array<i64: 1, 32>}, {pipeline_mode = #tpu.pipeline_mode<synchronous>, transform_indices = @transform_9, window_bounds = array<i64: 1, 32>}, {transform_indices = @transform_10, window_bounds = array<i64: 1, 8, 8, 32>}]} {
    %c0 = arith.constant 0 : index
    %c0_0 = arith.constant 0 : index
    %0 = vector.load %arg9[%c0, %c0_0] : memref<1x32xf32, #tpu.memory_space<vmem>>, vector<1x32xf32>
    %c0_1 = arith.constant 0 : index
    %c0_2 = arith.constant 0 : index
    %1 = vector.load %arg10[%c0_1, %c0_2] : memref<1x32xf32, #tpu.memory_space<vmem>>, vector<1x32xf32>
    %c0_3 = arith.constant 0 : index
    %c0_4 = arith.constant 0 : index
    %c0_5 = arith.constant 0 : index
    %c0_6 = arith.constant 0 : index
    %2 = vector.load %arg1[%c0_3, %c0_4, %c0_5, %c0_6] : memref<1x9x9x32xf32, #tpu.memory_space<vmem>>, vector<1x8x8x32xf32>
    %3 = vector.shape_cast %2 : vector<1x8x8x32xf32> to vector<8x8x32xf32>
    %c0_7 = arith.constant 0 : index
    %c0_8 = arith.constant 0 : index
    %c0_9 = arith.constant 0 : index
    %c0_10 = arith.constant 0 : index
    %4 = vector.load %arg5[%c0_7, %c0_8, %c0_9, %c0_10] : memref<1x9x9x1xf32, #tpu.memory_space<vmem>>, vector<1x8x8x1xf32>
    %5 = vector.shape_cast %4 : vector<1x8x8x1xf32> to vector<8x8x1xf32>
    %6 = vector.shape_cast %0 : vector<1x32xf32> to vector<1x1x32xf32>
    %7 = vector.broadcast %6 : vector<1x1x32xf32> to vector<8x8x32xf32>
    %8 = arith.mulf %3, %7 : vector<8x8x32xf32>
    %9 = vector.shape_cast %1 : vector<1x32xf32> to vector<1x1x32xf32>
    %10 = vector.broadcast %9 : vector<1x1x32xf32> to vector<8x8x32xf32>
    %11 = arith.addf %8, %10 : vector<8x8x32xf32>
    %cst = arith.constant 0.000000e+00 : f32
    %12 = vector.broadcast %cst : f32 to vector<8x8x32xf32>
    %13 = arith.maximumf %11, %12 : vector<8x8x32xf32>
    %14 = vector.broadcast %5 : vector<8x8x1xf32> to vector<8x8x32xf32>
    %15 = arith.mulf %13, %14 : vector<8x8x32xf32>
    %c0_11 = arith.constant 0 : index
    %c0_12 = arith.constant 0 : index
    %c0_13 = arith.constant 0 : index
    %c0_14 = arith.constant 0 : index
    %16 = vector.load %arg2[%c0_11, %c0_12, %c0_13, %c0_14] : memref<1x9x9x32xf32, #tpu.memory_space<vmem>>, vector<1x8x8x32xf32>
    %17 = vector.shape_cast %16 : vector<1x8x8x32xf32> to vector<8x8x32xf32>
    %c0_15 = arith.constant 0 : index
    %c0_16 = arith.constant 0 : index
    %c0_17 = arith.constant 0 : index
    %c0_18 = arith.constant 0 : index
    %18 = vector.load %arg6[%c0_15, %c0_16, %c0_17, %c0_18] : memref<1x9x9x1xf32, #tpu.memory_space<vmem>>, vector<1x8x8x1xf32>
    %19 = vector.shape_cast %18 : vector<1x8x8x1xf32> to vector<8x8x1xf32>
    %20 = vector.shape_cast %0 : vector<1x32xf32> to vector<1x1x32xf32>
    %21 = vector.broadcast %20 : vector<1x1x32xf32> to vector<8x8x32xf32>
    %22 = arith.mulf %17, %21 : vector<8x8x32xf32>
    %23 = vector.shape_cast %1 : vector<1x32xf32> to vector<1x1x32xf32>
    %24 = vector.broadcast %23 : vector<1x1x32xf32> to vector<8x8x32xf32>
    %25 = arith.addf %22, %24 : vector<8x8x32xf32>
    %cst_19 = arith.constant 0.000000e+00 : f32
    %26 = vector.broadcast %cst_19 : f32 to vector<8x8x32xf32>
    %27 = arith.maximumf %25, %26 : vector<8x8x32xf32>
    %28 = vector.broadcast %19 : vector<8x8x1xf32> to vector<8x8x32xf32>
    %29 = arith.mulf %27, %28 : vector<8x8x32xf32>
    %30 = arith.maximumf %15, %29 : vector<8x8x32xf32>
    %c0_20 = arith.constant 0 : index
    %c0_21 = arith.constant 0 : index
    %c1 = arith.constant 1 : index
    %c0_22 = arith.constant 0 : index
    %31 = vector.load %arg1[%c0_20, %c0_21, %c1, %c0_22] : memref<1x9x9x32xf32, #tpu.memory_space<vmem>>, vector<1x8x8x32xf32>
    %32 = vector.shape_cast %31 : vector<1x8x8x32xf32> to vector<8x8x32xf32>
    %c0_23 = arith.constant 0 : index
    %c0_24 = arith.constant 0 : index
    %c1_25 = arith.constant 1 : index
    %c0_26 = arith.constant 0 : index
    %33 = vector.load %arg5[%c0_23, %c0_24, %c1_25, %c0_26] : memref<1x9x9x1xf32, #tpu.memory_space<vmem>>, vector<1x8x8x1xf32>
    %34 = vector.shape_cast %33 : vector<1x8x8x1xf32> to vector<8x8x1xf32>
    %35 = vector.shape_cast %0 : vector<1x32xf32> to vector<1x1x32xf32>
    %36 = vector.broadcast %35 : vector<1x1x32xf32> to vector<8x8x32xf32>
    %37 = arith.mulf %32, %36 : vector<8x8x32xf32>
    %38 = vector.shape_cast %1 : vector<1x32xf32> to vector<1x1x32xf32>
    %39 = vector.broadcast %38 : vector<1x1x32xf32> to vector<8x8x32xf32>
    %40 = arith.addf %37, %39 : vector<8x8x32xf32>
    %cst_27 = arith.constant 0.000000e+00 : f32
    %41 = vector.broadcast %cst_27 : f32 to vector<8x8x32xf32>
    %42 = arith.maximumf %40, %41 : vector<8x8x32xf32>
    %43 = vector.broadcast %34 : vector<8x8x1xf32> to vector<8x8x32xf32>
    %44 = arith.mulf %42, %43 : vector<8x8x32xf32>
    %45 = arith.maximumf %30, %44 : vector<8x8x32xf32>
    %c0_28 = arith.constant 0 : index
    %c0_29 = arith.constant 0 : index
    %c0_30 = arith.constant 0 : index
    %c0_31 = arith.constant 0 : index
    %46 = vector.load %arg3[%c0_28, %c0_29, %c0_30, %c0_31] : memref<1x9x9x32xf32, #tpu.memory_space<vmem>>, vector<1x8x8x32xf32>
    %47 = vector.shape_cast %46 : vector<1x8x8x32xf32> to vector<8x8x32xf32>
    %c0_32 = arith.constant 0 : index
    %c0_33 = arith.constant 0 : index
    %c0_34 = arith.constant 0 : index
    %c0_35 = arith.constant 0 : index
    %48 = vector.load %arg7[%c0_32, %c0_33, %c0_34, %c0_35] : memref<1x9x9x1xf32, #tpu.memory_space<vmem>>, vector<1x8x8x1xf32>
    %49 = vector.shape_cast %48 : vector<1x8x8x1xf32> to vector<8x8x1xf32>
    %50 = vector.shape_cast %0 : vector<1x32xf32> to vector<1x1x32xf32>
    %51 = vector.broadcast %50 : vector<1x1x32xf32> to vector<8x8x32xf32>
    %52 = arith.mulf %47, %51 : vector<8x8x32xf32>
    %53 = vector.shape_cast %1 : vector<1x32xf32> to vector<1x1x32xf32>
    %54 = vector.broadcast %53 : vector<1x1x32xf32> to vector<8x8x32xf32>
    %55 = arith.addf %52, %54 : vector<8x8x32xf32>
    %cst_36 = arith.constant 0.000000e+00 : f32
    %56 = vector.broadcast %cst_36 : f32 to vector<8x8x32xf32>
    %57 = arith.maximumf %55, %56 : vector<8x8x32xf32>
    %58 = vector.broadcast %49 : vector<8x8x1xf32> to vector<8x8x32xf32>
    %59 = arith.mulf %57, %58 : vector<8x8x32xf32>
    %60 = arith.maximumf %45, %59 : vector<8x8x32xf32>
    %c0_37 = arith.constant 0 : index
    %c0_38 = arith.constant 0 : index
    %c0_39 = arith.constant 0 : index
    %c0_40 = arith.constant 0 : index
    %61 = vector.load %arg4[%c0_37, %c0_38, %c0_39, %c0_40] : memref<1x9x9x32xf32, #tpu.memory_space<vmem>>, vector<1x8x8x32xf32>
    %62 = vector.shape_cast %61 : vector<1x8x8x32xf32> to vector<8x8x32xf32>
    %c0_41 = arith.constant 0 : index
    %c0_42 = arith.constant 0 : index
    %c0_43 = arith.constant 0 : index
    %c0_44 = arith.constant 0 : index
    %63 = vector.load %arg8[%c0_41, %c0_42, %c0_43, %c0_44] : memref<1x9x9x1xf32, #tpu.memory_space<vmem>>, vector<1x8x8x1xf32>
    %64 = vector.shape_cast %63 : vector<1x8x8x1xf32> to vector<8x8x1xf32>
    %65 = vector.shape_cast %0 : vector<1x32xf32> to vector<1x1x32xf32>
    %66 = vector.broadcast %65 : vector<1x1x32xf32> to vector<8x8x32xf32>
    %67 = arith.mulf %62, %66 : vector<8x8x32xf32>
    %68 = vector.shape_cast %1 : vector<1x32xf32> to vector<1x1x32xf32>
    %69 = vector.broadcast %68 : vector<1x1x32xf32> to vector<8x8x32xf32>
    %70 = arith.addf %67, %69 : vector<8x8x32xf32>
    %cst_45 = arith.constant 0.000000e+00 : f32
    %71 = vector.broadcast %cst_45 : f32 to vector<8x8x32xf32>
    %72 = arith.maximumf %70, %71 : vector<8x8x32xf32>
    %73 = vector.broadcast %64 : vector<8x8x1xf32> to vector<8x8x32xf32>
    %74 = arith.mulf %72, %73 : vector<8x8x32xf32>
    %75 = arith.maximumf %60, %74 : vector<8x8x32xf32>
    %c0_46 = arith.constant 0 : index
    %c0_47 = arith.constant 0 : index
    %c1_48 = arith.constant 1 : index
    %c0_49 = arith.constant 0 : index
    %76 = vector.load %arg3[%c0_46, %c0_47, %c1_48, %c0_49] : memref<1x9x9x32xf32, #tpu.memory_space<vmem>>, vector<1x8x8x32xf32>
    %77 = vector.shape_cast %76 : vector<1x8x8x32xf32> to vector<8x8x32xf32>
    %c0_50 = arith.constant 0 : index
    %c0_51 = arith.constant 0 : index
    %c1_52 = arith.constant 1 : index
    %c0_53 = arith.constant 0 : index
    %78 = vector.load %arg7[%c0_50, %c0_51, %c1_52, %c0_53] : memref<1x9x9x1xf32, #tpu.memory_space<vmem>>, vector<1x8x8x1xf32>
    %79 = vector.shape_cast %78 : vector<1x8x8x1xf32> to vector<8x8x1xf32>
    %80 = vector.shape_cast %0 : vector<1x32xf32> to vector<1x1x32xf32>
    %81 = vector.broadcast %80 : vector<1x1x32xf32> to vector<8x8x32xf32>
    %82 = arith.mulf %77, %81 : vector<8x8x32xf32>
    %83 = vector.shape_cast %1 : vector<1x32xf32> to vector<1x1x32xf32>
    %84 = vector.broadcast %83 : vector<1x1x32xf32> to vector<8x8x32xf32>
    %85 = arith.addf %82, %84 : vector<8x8x32xf32>
    %cst_54 = arith.constant 0.000000e+00 : f32
    %86 = vector.broadcast %cst_54 : f32 to vector<8x8x32xf32>
    %87 = arith.maximumf %85, %86 : vector<8x8x32xf32>
    %88 = vector.broadcast %79 : vector<8x8x1xf32> to vector<8x8x32xf32>
    %89 = arith.mulf %87, %88 : vector<8x8x32xf32>
    %90 = arith.maximumf %75, %89 : vector<8x8x32xf32>
    %c0_55 = arith.constant 0 : index
    %c1_56 = arith.constant 1 : index
    %c0_57 = arith.constant 0 : index
    %c0_58 = arith.constant 0 : index
    %91 = vector.load %arg1[%c0_55, %c1_56, %c0_57, %c0_58] : memref<1x9x9x32xf32, #tpu.memory_space<vmem>>, vector<1x8x8x32xf32>
    %92 = vector.shape_cast %91 : vector<1x8x8x32xf32> to vector<8x8x32xf32>
    %c0_59 = arith.constant 0 : index
    %c1_60 = arith.constant 1 : index
    %c0_61 = arith.constant 0 : index
    %c0_62 = arith.constant 0 : index
    %93 = vector.load %arg5[%c0_59, %c1_60, %c0_61, %c0_62] : memref<1x9x9x1xf32, #tpu.memory_space<vmem>>, vector<1x8x8x1xf32>
    %94 = vector.shape_cast %93 : vector<1x8x8x1xf32> to vector<8x8x1xf32>
    %95 = vector.shape_cast %0 : vector<1x32xf32> to vector<1x1x32xf32>
    %96 = vector.broadcast %95 : vector<1x1x32xf32> to vector<8x8x32xf32>
    %97 = arith.mulf %92, %96 : vector<8x8x32xf32>
    %98 = vector.shape_cast %1 : vector<1x32xf32> to vector<1x1x32xf32>
    %99 = vector.broadcast %98 : vector<1x1x32xf32> to vector<8x8x32xf32>
    %100 = arith.addf %97, %99 : vector<8x8x32xf32>
    %cst_63 = arith.constant 0.000000e+00 : f32
    %101 = vector.broadcast %cst_63 : f32 to vector<8x8x32xf32>
    %102 = arith.maximumf %100, %101 : vector<8x8x32xf32>
    %103 = vector.broadcast %94 : vector<8x8x1xf32> to vector<8x8x32xf32>
    %104 = arith.mulf %102, %103 : vector<8x8x32xf32>
    %105 = arith.maximumf %90, %104 : vector<8x8x32xf32>
    %c0_64 = arith.constant 0 : index
    %c1_65 = arith.constant 1 : index
    %c0_66 = arith.constant 0 : index
    %c0_67 = arith.constant 0 : index
    %106 = vector.load %arg2[%c0_64, %c1_65, %c0_66, %c0_67] : memref<1x9x9x32xf32, #tpu.memory_space<vmem>>, vector<1x8x8x32xf32>
    %107 = vector.shape_cast %106 : vector<1x8x8x32xf32> to vector<8x8x32xf32>
    %c0_68 = arith.constant 0 : index
    %c1_69 = arith.constant 1 : index
    %c0_70 = arith.constant 0 : index
    %c0_71 = arith.constant 0 : index
    %108 = vector.load %arg6[%c0_68, %c1_69, %c0_70, %c0_71] : memref<1x9x9x1xf32, #tpu.memory_space<vmem>>, vector<1x8x8x1xf32>
    %109 = vector.shape_cast %108 : vector<1x8x8x1xf32> to vector<8x8x1xf32>
    %110 = vector.shape_cast %0 : vector<1x32xf32> to vector<1x1x32xf32>
    %111 = vector.broadcast %110 : vector<1x1x32xf32> to vector<8x8x32xf32>
    %112 = arith.mulf %107, %111 : vector<8x8x32xf32>
    %113 = vector.shape_cast %1 : vector<1x32xf32> to vector<1x1x32xf32>
    %114 = vector.broadcast %113 : vector<1x1x32xf32> to vector<8x8x32xf32>
    %115 = arith.addf %112, %114 : vector<8x8x32xf32>
    %cst_72 = arith.constant 0.000000e+00 : f32
    %116 = vector.broadcast %cst_72 : f32 to vector<8x8x32xf32>
    %117 = arith.maximumf %115, %116 : vector<8x8x32xf32>
    %118 = vector.broadcast %109 : vector<8x8x1xf32> to vector<8x8x32xf32>
    %119 = arith.mulf %117, %118 : vector<8x8x32xf32>
    %120 = arith.maximumf %105, %119 : vector<8x8x32xf32>
    %c0_73 = arith.constant 0 : index
    %c1_74 = arith.constant 1 : index
    %c1_75 = arith.constant 1 : index
    %c0_76 = arith.constant 0 : index
    %121 = vector.load %arg1[%c0_73, %c1_74, %c1_75, %c0_76] : memref<1x9x9x32xf32, #tpu.memory_space<vmem>>, vector<1x8x8x32xf32>
    %122 = vector.shape_cast %121 : vector<1x8x8x32xf32> to vector<8x8x32xf32>
    %c0_77 = arith.constant 0 : index
    %c1_78 = arith.constant 1 : index
    %c1_79 = arith.constant 1 : index
    %c0_80 = arith.constant 0 : index
    %123 = vector.load %arg5[%c0_77, %c1_78, %c1_79, %c0_80] : memref<1x9x9x1xf32, #tpu.memory_space<vmem>>, vector<1x8x8x1xf32>
    %124 = vector.shape_cast %123 : vector<1x8x8x1xf32> to vector<8x8x1xf32>
    %125 = vector.shape_cast %0 : vector<1x32xf32> to vector<1x1x32xf32>
    %126 = vector.broadcast %125 : vector<1x1x32xf32> to vector<8x8x32xf32>
    %127 = arith.mulf %122, %126 : vector<8x8x32xf32>
    %128 = vector.shape_cast %1 : vector<1x32xf32> to vector<1x1x32xf32>
    %129 = vector.broadcast %128 : vector<1x1x32xf32> to vector<8x8x32xf32>
    %130 = arith.addf %127, %129 : vector<8x8x32xf32>
    %cst_81 = arith.constant 0.000000e+00 : f32
    %131 = vector.broadcast %cst_81 : f32 to vector<8x8x32xf32>
    %132 = arith.maximumf %130, %131 : vector<8x8x32xf32>
    %133 = vector.broadcast %124 : vector<8x8x1xf32> to vector<8x8x32xf32>
    %134 = arith.mulf %132, %133 : vector<8x8x32xf32>
    %135 = arith.maximumf %120, %134 : vector<8x8x32xf32>
    %c0_82 = arith.constant 0 : index
    %c0_83 = arith.constant 0 : index
    %c0_84 = arith.constant 0 : index
    %c0_85 = arith.constant 0 : index
    %136 = vector.load %arg11[%c0_82, %c0_83, %c0_84, %c0_85] : memref<1x8x8x32xf32, #tpu.memory_space<vmem>>, vector<1x8x8x32xf32>
    %137 = vector.shape_cast %136 : vector<1x8x8x32xf32> to vector<8x8x32xf32>
    %138 = vector.shape_cast %135 : vector<8x8x32xf32> to vector<1x8x8x32xf32>
    tpu.vector_store %arg11[%c0_82, %c0_83, %c0_84, %c0_85], %138 {strides = array<i32>} : memref<1x8x8x32xf32, #tpu.memory_space<vmem>>, vector<1x8x8x32xf32>,
    return
  }
  func.func @transform_0(%arg0: i32) -> (i32, i32, i32, i32) {
    %c0_i32 = arith.constant 0 : i32
    %c0_i32_0 = arith.constant 0 : i32
    %c0_i32_1 = arith.constant 0 : i32
    %c0_i32_2 = arith.constant 0 : i32
    return %arg0, %c0_i32, %c0_i32_0, %c0_i32_1 : i32, i32, i32, i32
  }
  func.func @transform_1(%arg0: i32) -> (i32, i32, i32, i32) {
    %c0_i32 = arith.constant 0 : i32
    %c0_i32_0 = arith.constant 0 : i32
    %c0_i32_1 = arith.constant 0 : i32
    %c0_i32_2 = arith.constant 0 : i32
    return %arg0, %c0_i32, %c0_i32_0, %c0_i32_1 : i32, i32, i32, i32
  }
  func.func @transform_2(%arg0: i32) -> (i32, i32, i32, i32) {
    %c0_i32 = arith.constant 0 : i32
    %c0_i32_0 = arith.constant 0 : i32
    %c0_i32_1 = arith.constant 0 : i32
    %c0_i32_2 = arith.constant 0 : i32
    return %arg0, %c0_i32, %c0_i32_0, %c0_i32_1 : i32, i32, i32, i32
  }
  func.func @transform_3(%arg0: i32) -> (i32, i32, i32, i32) {
    %c0_i32 = arith.constant 0 : i32
    %c0_i32_0 = arith.constant 0 : i32
    %c0_i32_1 = arith.constant 0 : i32
    %c0_i32_2 = arith.constant 0 : i32
    return %arg0, %c0_i32, %c0_i32_0, %c0_i32_1 : i32, i32, i32, i32
  }
  func.func @transform_4(%arg0: i32) -> (i32, i32, i32, i32) {
    %c0_i32 = arith.constant 0 : i32
    %c0_i32_0 = arith.constant 0 : i32
    %c0_i32_1 = arith.constant 0 : i32
    %c0_i32_2 = arith.constant 0 : i32
    %c0_i32_3 = arith.constant 0 : i32
    return %c0_i32, %c0_i32_0, %c0_i32_1, %c0_i32_2 : i32, i32, i32, i32
  }
  func.func @transform_5(%arg0: i32) -> (i32, i32, i32, i32) {
    %c0_i32 = arith.constant 0 : i32
    %c0_i32_0 = arith.constant 0 : i32
    %c0_i32_1 = arith.constant 0 : i32
    %c0_i32_2 = arith.constant 0 : i32
    %c0_i32_3 = arith.constant 0 : i32
    return %c0_i32, %c0_i32_0, %c0_i32_1, %c0_i32_2 : i32, i32, i32, i32
  }
  func.func @transform_6(%arg0: i32) -> (i32, i32, i32, i32) {
    %c0_i32 = arith.constant 0 : i32
    %c0_i32_0 = arith.constant 0 : i32
    %c0_i32_1 = arith.constant 0 : i32
    %c0_i32_2 = arith.constant 0 : i32
    %c0_i32_3 = arith.constant 0 : i32
    return %c0_i32, %c0_i32_0, %c0_i32_1, %c0_i32_2 : i32, i32, i32, i32
  }
  func.func @transform_7(%arg0: i32) -> (i32, i32, i32, i32) {
    %c0_i32 = arith.constant 0 : i32
    %c0_i32_0 = arith.constant 0 : i32
    %c0_i32_1 = arith.constant 0 : i32
    %c0_i32_2 = arith.constant 0 : i32
    %c0_i32_3 = arith.constant 0 : i32
    return %c0_i32, %c0_i32_0, %c0_i32_1, %c0_i32_2 : i32, i32, i32, i32
  }
  func.func @transform_8(%arg0: i32) -> (i32, i32) {
    %c0_i32 = arith.constant 0 : i32
    %c0_i32_0 = arith.constant 0 : i32
    %c0_i32_1 = arith.constant 0 : i32
    return %c0_i32, %c0_i32_0 : i32, i32
  }
  func.func @transform_9(%arg0: i32) -> (i32, i32) {
    %c0_i32 = arith.constant 0 : i32
    %c0_i32_0 = arith.constant 0 : i32
    %c0_i32_1 = arith.constant 0 : i32
    return %c0_i32, %c0_i32_0 : i32, i32
  }
  func.func @transform_10(%arg0: i32) -> (i32, i32, i32, i32) {
    %c0_i32 = arith.constant 0 : i32
    %c0_i32_0 = arith.constant 0 : i32
    %c0_i32_1 = arith.constant 0 : i32
    %c0_i32_2 = arith.constant 0 : i32
    return %arg0, %c0_i32, %c0_i32_0, %c0_i32_1 : i32, i32, i32, i32
  }
}

module attributes {stable_mosaic.version = 11 : i64} {
  func.func @_dense_block_kernel(%arg0: i32, %arg1: memref<120x1xf32, #tpu.memory_space<vmem>>, %arg2: memref<2x120x64xf32, #tpu.memory_space<vmem>>, %arg3: memref<1x1x64xf32, #tpu.memory_space<vmem>>, %arg4: memref<1x1x64xf32, #tpu.memory_space<vmem>>, %arg5: memref<1x9x64x64xbf16, #tpu.memory_space<vmem>>, %arg6: memref<2x120x64xf32, #tpu.memory_space<vmem>>, %arg7: memref<1x64xf32, #tpu.memory_space<vmem>>, %arg8: memref<1x64xf32, #tpu.memory_space<vmem>>, %arg9: memref<2x120x64xf32, #tpu.memory_space<vmem>>) attributes {dimension_semantics = [#tpu.dimension_semantics<arbitrary>], iteration_bounds = array<i64: 2>, scalar_prefetch = 0 : i64, scratch_operands = 1 : i64, tpu.core_type = #tpu.core_type<tc>, window_params = [{pipeline_mode = #tpu.pipeline_mode<synchronous>, transform_indices = @transform_0, window_bounds = array<i64: 120, 1>}, {pipeline_mode = #tpu.pipeline_mode<synchronous>, transform_indices = @transform_1, window_bounds = array<i64: 2, 120, 64>}, {transform_indices = @transform_2, window_bounds = array<i64: 1, 1, 64>}, {transform_indices = @transform_3, window_bounds = array<i64: 1, 1, 64>}, {transform_indices = @transform_4, window_bounds = array<i64: 1, 9, 64, 64>}, {pipeline_mode = #tpu.pipeline_mode<synchronous>, transform_indices = @transform_5, window_bounds = array<i64: 2, 120, 64>}, {pipeline_mode = #tpu.pipeline_mode<synchronous>, transform_indices = @transform_6, window_bounds = array<i64: 1, 64>}, {pipeline_mode = #tpu.pipeline_mode<synchronous>, transform_indices = @transform_7, window_bounds = array<i64: 1, 64>}]} {
    %c0_i32 = arith.constant 0 : i32
    %0 = arith.cmpi eq, %arg0, %c0_i32 : i32
    %1 = arith.extui %0 : i1 to i32
    %c0_i32_0 = arith.constant 0 : i32
    %2 = arith.cmpi ne, %1, %c0_i32_0 : i32
    scf.if %2 {
      %c0_217 = arith.constant 0 : index
      %c0_218 = arith.constant 0 : index
      %c0_219 = arith.constant 0 : index
      %339 = vector.load %arg2[%c0_217, %c0_218, %c0_219] : memref<2x120x64xf32, #tpu.memory_space<vmem>>, vector<2x120x64xf32>
      %c0_220 = arith.constant 0 : index
      %c0_221 = arith.constant 0 : index
      %c0_222 = arith.constant 0 : index
      %340 = vector.load %arg9[%c0_220, %c0_221, %c0_222] : memref<2x120x64xf32, #tpu.memory_space<vmem>>, vector<2x120x64xf32>
      tpu.vector_store %arg9[%c0_220, %c0_221, %c0_222], %339 {strides = array<i32>} : memref<2x120x64xf32, #tpu.memory_space<vmem>>, vector<2x120x64xf32>,
    } else {
    }
    %c0 = arith.constant 0 : index
    %c0_1 = arith.constant 0 : index
    %c0_2 = arith.constant 0 : index
    %3 = vector.load %arg9[%c0, %c0_1, %c0_2] : memref<2x120x64xf32, #tpu.memory_space<vmem>>, vector<2x120x64xf32>
    %cst = arith.constant dense<0.000000e+00> : vector<120x64xf32>
    %4 = vector.multi_reduction <add>, %3, %cst [0] : vector<2x120x64xf32> to vector<120x64xf32>
    %cst_3 = arith.constant dense<0.000000e+00> : vector<64xf32>
    %5 = vector.multi_reduction <add>, %4, %cst_3 [0] : vector<120x64xf32> to vector<64xf32>
    %6 = vector.shape_cast %5 : vector<64xf32> to vector<1x64xf32>
    %cst_4 = arith.constant 7.812500e-03 : f32
    %7 = vector.broadcast %cst_4 : f32 to vector<1x64xf32>
    %8 = arith.mulf %6, %7 : vector<1x64xf32>
    %9 = arith.mulf %3, %3 : vector<2x120x64xf32>
    %cst_5 = arith.constant dense<0.000000e+00> : vector<120x64xf32>
    %10 = vector.multi_reduction <add>, %9, %cst_5 [0] : vector<2x120x64xf32> to vector<120x64xf32>
    %cst_6 = arith.constant dense<0.000000e+00> : vector<64xf32>
    %11 = vector.multi_reduction <add>, %10, %cst_6 [0] : vector<120x64xf32> to vector<64xf32>
    %12 = vector.shape_cast %11 : vector<64xf32> to vector<1x64xf32>
    %cst_7 = arith.constant 7.812500e-03 : f32
    %13 = vector.broadcast %cst_7 : f32 to vector<1x64xf32>
    %14 = arith.mulf %12, %13 : vector<1x64xf32>
    %15 = arith.mulf %8, %8 : vector<1x64xf32>
    %16 = arith.subf %14, %15 : vector<1x64xf32>
    %cst_8 = arith.constant 0.000000e+00 : f32
    %17 = vector.broadcast %cst_8 : f32 to vector<1x64xf32>
    %18 = arith.maximumf %16, %17 : vector<1x64xf32>
    %c0_9 = arith.constant 0 : index
    %c0_10 = arith.constant 0 : index
    %c0_11 = arith.constant 0 : index
    %19 = vector.load %arg3[%c0_9, %c0_10, %c0_11] : memref<1x1x64xf32, #tpu.memory_space<vmem>>, vector<1x1x64xf32>
    %20 = vector.shape_cast %19 : vector<1x1x64xf32> to vector<1x64xf32>
    %cst_12 = arith.constant 9.99999974E-6 : f32
    %21 = vector.broadcast %cst_12 : f32 to vector<1x64xf32>
    %22 = arith.addf %18, %21 : vector<1x64xf32>
    %23 = math.rsqrt %22 : vector<1x64xf32>
    %24 = arith.mulf %20, %23 : vector<1x64xf32>
    %c0_13 = arith.constant 0 : index
    %c0_14 = arith.constant 0 : index
    %c0_15 = arith.constant 0 : index
    %25 = vector.load %arg4[%c0_13, %c0_14, %c0_15] : memref<1x1x64xf32, #tpu.memory_space<vmem>>, vector<1x1x64xf32>
    %26 = vector.shape_cast %25 : vector<1x1x64xf32> to vector<1x64xf32>
    %27 = arith.mulf %8, %24 : vector<1x64xf32>
    %28 = arith.subf %26, %27 : vector<1x64xf32>
    %c16 = arith.constant 16 : index
    %c0_16 = arith.constant 0 : index
    %29 = vector.load %arg1[%c16, %c0_16] : memref<120x1xf32, #tpu.memory_space<vmem>>, vector<80x1xf32>
    %cst_17 = arith.constant 0.000000e+00 : f32
    %30 = vector.broadcast %cst_17 : f32 to vector<80x64xf32>
    %c0_18 = arith.constant 0 : index
    %c5 = arith.constant 5 : index
    %c0_19 = arith.constant 0 : index
    %31 = vector.load %arg9[%c0_18, %c5, %c0_19] : memref<2x120x64xf32, #tpu.memory_space<vmem>>, vector<1x80x64xf32>
    %32 = vector.shape_cast %31 : vector<1x80x64xf32> to vector<80x64xf32>
    %c5_20 = arith.constant 5 : index
    %c0_21 = arith.constant 0 : index
    %33 = vector.load %arg1[%c5_20, %c0_21] : memref<120x1xf32, #tpu.memory_space<vmem>>, vector<80x1xf32>
    %34 = vector.broadcast %24 : vector<1x64xf32> to vector<80x64xf32>
    %35 = arith.mulf %32, %34 : vector<80x64xf32>
    %36 = vector.broadcast %28 : vector<1x64xf32> to vector<80x64xf32>
    %37 = arith.addf %35, %36 : vector<80x64xf32>
    %cst_22 = arith.constant 0.000000e+00 : f32
    %38 = vector.broadcast %cst_22 : f32 to vector<80x64xf32>
    %39 = arith.maximumf %37, %38 : vector<80x64xf32>
    %40 = vector.broadcast %33 : vector<80x1xf32> to vector<80x64xf32>
    %41 = arith.mulf %39, %40 : vector<80x64xf32>
    %42 = arith.truncf %41 : vector<80x64xf32> to vector<80x64xbf16>
    %c0_23 = arith.constant 0 : index
    %c0_24 = arith.constant 0 : index
    %c0_25 = arith.constant 0 : index
    %c0_26 = arith.constant 0 : index
    %43 = vector.load %arg5[%c0_23, %c0_24, %c0_25, %c0_26] : memref<1x9x64x64xbf16, #tpu.memory_space<vmem>>, vector<1x1x64x64xbf16>
    %44 = vector.shape_cast %43 : vector<1x1x64x64xbf16> to vector<64x64xbf16>
    %cst_27 = arith.constant dense<0.000000e+00> : vector<80x64xf32>
    %45 = tpu.matmul %42, %44, %cst_27 {dimension_numbers = #tpu.dot_dimension_numbers<[1], [0], [0], [1], [0, 0, 1, 1], [], []>} : vector<80x64xbf16>, vector<64x64xbf16>, vector<80x64xf32> -> vector<80x64xf32>
    %46 = arith.addf %30, %45 : vector<80x64xf32>
    %c0_28 = arith.constant 0 : index
    %c6 = arith.constant 6 : index
    %c0_29 = arith.constant 0 : index
    %47 = vector.load %arg9[%c0_28, %c6, %c0_29] : memref<2x120x64xf32, #tpu.memory_space<vmem>>, vector<1x80x64xf32>
    %48 = vector.shape_cast %47 : vector<1x80x64xf32> to vector<80x64xf32>
    %c6_30 = arith.constant 6 : index
    %c0_31 = arith.constant 0 : index
    %49 = vector.load %arg1[%c6_30, %c0_31] : memref<120x1xf32, #tpu.memory_space<vmem>>, vector<80x1xf32>
    %50 = vector.broadcast %24 : vector<1x64xf32> to vector<80x64xf32>
    %51 = arith.mulf %48, %50 : vector<80x64xf32>
    %52 = vector.broadcast %28 : vector<1x64xf32> to vector<80x64xf32>
    %53 = arith.addf %51, %52 : vector<80x64xf32>
    %cst_32 = arith.constant 0.000000e+00 : f32
    %54 = vector.broadcast %cst_32 : f32 to vector<80x64xf32>
    %55 = arith.maximumf %53, %54 : vector<80x64xf32>
    %56 = vector.broadcast %49 : vector<80x1xf32> to vector<80x64xf32>
    %57 = arith.mulf %55, %56 : vector<80x64xf32>
    %58 = arith.truncf %57 : vector<80x64xf32> to vector<80x64xbf16>
    %c0_33 = arith.constant 0 : index
    %c1 = arith.constant 1 : index
    %c0_34 = arith.constant 0 : index
    %c0_35 = arith.constant 0 : index
    %59 = vector.load %arg5[%c0_33, %c1, %c0_34, %c0_35] : memref<1x9x64x64xbf16, #tpu.memory_space<vmem>>, vector<1x1x64x64xbf16>
    %60 = vector.shape_cast %59 : vector<1x1x64x64xbf16> to vector<64x64xbf16>
    %cst_36 = arith.constant dense<0.000000e+00> : vector<80x64xf32>
    %61 = tpu.matmul %58, %60, %cst_36 {dimension_numbers = #tpu.dot_dimension_numbers<[1], [0], [0], [1], [0, 0, 1, 1], [], []>} : vector<80x64xbf16>, vector<64x64xbf16>, vector<80x64xf32> -> vector<80x64xf32>
    %62 = arith.addf %46, %61 : vector<80x64xf32>
    %c0_37 = arith.constant 0 : index
    %c7 = arith.constant 7 : index
    %c0_38 = arith.constant 0 : index
    %63 = vector.load %arg9[%c0_37, %c7, %c0_38] : memref<2x120x64xf32, #tpu.memory_space<vmem>>, vector<1x80x64xf32>
    %64 = vector.shape_cast %63 : vector<1x80x64xf32> to vector<80x64xf32>
    %c7_39 = arith.constant 7 : index
    %c0_40 = arith.constant 0 : index
    %65 = vector.load %arg1[%c7_39, %c0_40] : memref<120x1xf32, #tpu.memory_space<vmem>>, vector<80x1xf32>
    %66 = vector.broadcast %24 : vector<1x64xf32> to vector<80x64xf32>
    %67 = arith.mulf %64, %66 : vector<80x64xf32>
    %68 = vector.broadcast %28 : vector<1x64xf32> to vector<80x64xf32>
    %69 = arith.addf %67, %68 : vector<80x64xf32>
    %cst_41 = arith.constant 0.000000e+00 : f32
    %70 = vector.broadcast %cst_41 : f32 to vector<80x64xf32>
    %71 = arith.maximumf %69, %70 : vector<80x64xf32>
    %72 = vector.broadcast %65 : vector<80x1xf32> to vector<80x64xf32>
    %73 = arith.mulf %71, %72 : vector<80x64xf32>
    %74 = arith.truncf %73 : vector<80x64xf32> to vector<80x64xbf16>
    %c0_42 = arith.constant 0 : index
    %c2 = arith.constant 2 : index
    %c0_43 = arith.constant 0 : index
    %c0_44 = arith.constant 0 : index
    %75 = vector.load %arg5[%c0_42, %c2, %c0_43, %c0_44] : memref<1x9x64x64xbf16, #tpu.memory_space<vmem>>, vector<1x1x64x64xbf16>
    %76 = vector.shape_cast %75 : vector<1x1x64x64xbf16> to vector<64x64xbf16>
    %cst_45 = arith.constant dense<0.000000e+00> : vector<80x64xf32>
    %77 = tpu.matmul %74, %76, %cst_45 {dimension_numbers = #tpu.dot_dimension_numbers<[1], [0], [0], [1], [0, 0, 1, 1], [], []>} : vector<80x64xbf16>, vector<64x64xbf16>, vector<80x64xf32> -> vector<80x64xf32>
    %78 = arith.addf %62, %77 : vector<80x64xf32>
    %c0_46 = arith.constant 0 : index
    %c15 = arith.constant 15 : index
    %c0_47 = arith.constant 0 : index
    %79 = vector.load %arg9[%c0_46, %c15, %c0_47] : memref<2x120x64xf32, #tpu.memory_space<vmem>>, vector<1x80x64xf32>
    %80 = vector.shape_cast %79 : vector<1x80x64xf32> to vector<80x64xf32>
    %c15_48 = arith.constant 15 : index
    %c0_49 = arith.constant 0 : index
    %81 = vector.load %arg1[%c15_48, %c0_49] : memref<120x1xf32, #tpu.memory_space<vmem>>, vector<80x1xf32>
    %82 = vector.broadcast %24 : vector<1x64xf32> to vector<80x64xf32>
    %83 = arith.mulf %80, %82 : vector<80x64xf32>
    %84 = vector.broadcast %28 : vector<1x64xf32> to vector<80x64xf32>
    %85 = arith.addf %83, %84 : vector<80x64xf32>
    %cst_50 = arith.constant 0.000000e+00 : f32
    %86 = vector.broadcast %cst_50 : f32 to vector<80x64xf32>
    %87 = arith.maximumf %85, %86 : vector<80x64xf32>
    %88 = vector.broadcast %81 : vector<80x1xf32> to vector<80x64xf32>
    %89 = arith.mulf %87, %88 : vector<80x64xf32>
    %90 = arith.truncf %89 : vector<80x64xf32> to vector<80x64xbf16>
    %c0_51 = arith.constant 0 : index
    %c3 = arith.constant 3 : index
    %c0_52 = arith.constant 0 : index
    %c0_53 = arith.constant 0 : index
    %91 = vector.load %arg5[%c0_51, %c3, %c0_52, %c0_53] : memref<1x9x64x64xbf16, #tpu.memory_space<vmem>>, vector<1x1x64x64xbf16>
    %92 = vector.shape_cast %91 : vector<1x1x64x64xbf16> to vector<64x64xbf16>
    %cst_54 = arith.constant dense<0.000000e+00> : vector<80x64xf32>
    %93 = tpu.matmul %90, %92, %cst_54 {dimension_numbers = #tpu.dot_dimension_numbers<[1], [0], [0], [1], [0, 0, 1, 1], [], []>} : vector<80x64xbf16>, vector<64x64xbf16>, vector<80x64xf32> -> vector<80x64xf32>
    %94 = arith.addf %78, %93 : vector<80x64xf32>
    %c0_55 = arith.constant 0 : index
    %c16_56 = arith.constant 16 : index
    %c0_57 = arith.constant 0 : index
    %95 = vector.load %arg9[%c0_55, %c16_56, %c0_57] : memref<2x120x64xf32, #tpu.memory_space<vmem>>, vector<1x80x64xf32>
    %96 = vector.shape_cast %95 : vector<1x80x64xf32> to vector<80x64xf32>
    %c16_58 = arith.constant 16 : index
    %c0_59 = arith.constant 0 : index
    %97 = vector.load %arg1[%c16_58, %c0_59] : memref<120x1xf32, #tpu.memory_space<vmem>>, vector<80x1xf32>
    %98 = vector.broadcast %24 : vector<1x64xf32> to vector<80x64xf32>
    %99 = arith.mulf %96, %98 : vector<80x64xf32>
    %100 = vector.broadcast %28 : vector<1x64xf32> to vector<80x64xf32>
    %101 = arith.addf %99, %100 : vector<80x64xf32>
    %cst_60 = arith.constant 0.000000e+00 : f32
    %102 = vector.broadcast %cst_60 : f32 to vector<80x64xf32>
    %103 = arith.maximumf %101, %102 : vector<80x64xf32>
    %104 = vector.broadcast %97 : vector<80x1xf32> to vector<80x64xf32>
    %105 = arith.mulf %103, %104 : vector<80x64xf32>
    %106 = arith.truncf %105 : vector<80x64xf32> to vector<80x64xbf16>
    %c0_61 = arith.constant 0 : index
    %c4 = arith.constant 4 : index
    %c0_62 = arith.constant 0 : index
    %c0_63 = arith.constant 0 : index
    %107 = vector.load %arg5[%c0_61, %c4, %c0_62, %c0_63] : memref<1x9x64x64xbf16, #tpu.memory_space<vmem>>, vector<1x1x64x64xbf16>
    %108 = vector.shape_cast %107 : vector<1x1x64x64xbf16> to vector<64x64xbf16>
    %cst_64 = arith.constant dense<0.000000e+00> : vector<80x64xf32>
    %109 = tpu.matmul %106, %108, %cst_64 {dimension_numbers = #tpu.dot_dimension_numbers<[1], [0], [0], [1], [0, 0, 1, 1], [], []>} : vector<80x64xbf16>, vector<64x64xbf16>, vector<80x64xf32> -> vector<80x64xf32>
    %110 = arith.addf %94, %109 : vector<80x64xf32>
    %c0_65 = arith.constant 0 : index
    %c17 = arith.constant 17 : index
    %c0_66 = arith.constant 0 : index
    %111 = vector.load %arg9[%c0_65, %c17, %c0_66] : memref<2x120x64xf32, #tpu.memory_space<vmem>>, vector<1x80x64xf32>
    %112 = vector.shape_cast %111 : vector<1x80x64xf32> to vector<80x64xf32>
    %c17_67 = arith.constant 17 : index
    %c0_68 = arith.constant 0 : index
    %113 = vector.load %arg1[%c17_67, %c0_68] : memref<120x1xf32, #tpu.memory_space<vmem>>, vector<80x1xf32>
    %114 = vector.broadcast %24 : vector<1x64xf32> to vector<80x64xf32>
    %115 = arith.mulf %112, %114 : vector<80x64xf32>
    %116 = vector.broadcast %28 : vector<1x64xf32> to vector<80x64xf32>
    %117 = arith.addf %115, %116 : vector<80x64xf32>
    %cst_69 = arith.constant 0.000000e+00 : f32
    %118 = vector.broadcast %cst_69 : f32 to vector<80x64xf32>
    %119 = arith.maximumf %117, %118 : vector<80x64xf32>
    %120 = vector.broadcast %113 : vector<80x1xf32> to vector<80x64xf32>
    %121 = arith.mulf %119, %120 : vector<80x64xf32>
    %122 = arith.truncf %121 : vector<80x64xf32> to vector<80x64xbf16>
    %c0_70 = arith.constant 0 : index
    %c5_71 = arith.constant 5 : index
    %c0_72 = arith.constant 0 : index
    %c0_73 = arith.constant 0 : index
    %123 = vector.load %arg5[%c0_70, %c5_71, %c0_72, %c0_73] : memref<1x9x64x64xbf16, #tpu.memory_space<vmem>>, vector<1x1x64x64xbf16>
    %124 = vector.shape_cast %123 : vector<1x1x64x64xbf16> to vector<64x64xbf16>
    %cst_74 = arith.constant dense<0.000000e+00> : vector<80x64xf32>
    %125 = tpu.matmul %122, %124, %cst_74 {dimension_numbers = #tpu.dot_dimension_numbers<[1], [0], [0], [1], [0, 0, 1, 1], [], []>} : vector<80x64xbf16>, vector<64x64xbf16>, vector<80x64xf32> -> vector<80x64xf32>
    %126 = arith.addf %110, %125 : vector<80x64xf32>
    %c0_75 = arith.constant 0 : index
    %c25 = arith.constant 25 : index
    %c0_76 = arith.constant 0 : index
    %127 = vector.load %arg9[%c0_75, %c25, %c0_76] : memref<2x120x64xf32, #tpu.memory_space<vmem>>, vector<1x80x64xf32>
    %128 = vector.shape_cast %127 : vector<1x80x64xf32> to vector<80x64xf32>
    %c25_77 = arith.constant 25 : index
    %c0_78 = arith.constant 0 : index
    %129 = vector.load %arg1[%c25_77, %c0_78] : memref<120x1xf32, #tpu.memory_space<vmem>>, vector<80x1xf32>
    %130 = vector.broadcast %24 : vector<1x64xf32> to vector<80x64xf32>
    %131 = arith.mulf %128, %130 : vector<80x64xf32>
    %132 = vector.broadcast %28 : vector<1x64xf32> to vector<80x64xf32>
    %133 = arith.addf %131, %132 : vector<80x64xf32>
    %cst_79 = arith.constant 0.000000e+00 : f32
    %134 = vector.broadcast %cst_79 : f32 to vector<80x64xf32>
    %135 = arith.maximumf %133, %134 : vector<80x64xf32>
    %136 = vector.broadcast %129 : vector<80x1xf32> to vector<80x64xf32>
    %137 = arith.mulf %135, %136 : vector<80x64xf32>
    %138 = arith.truncf %137 : vector<80x64xf32> to vector<80x64xbf16>
    %c0_80 = arith.constant 0 : index
    %c6_81 = arith.constant 6 : index
    %c0_82 = arith.constant 0 : index
    %c0_83 = arith.constant 0 : index
    %139 = vector.load %arg5[%c0_80, %c6_81, %c0_82, %c0_83] : memref<1x9x64x64xbf16, #tpu.memory_space<vmem>>, vector<1x1x64x64xbf16>
    %140 = vector.shape_cast %139 : vector<1x1x64x64xbf16> to vector<64x64xbf16>
    %cst_84 = arith.constant dense<0.000000e+00> : vector<80x64xf32>
    %141 = tpu.matmul %138, %140, %cst_84 {dimension_numbers = #tpu.dot_dimension_numbers<[1], [0], [0], [1], [0, 0, 1, 1], [], []>} : vector<80x64xbf16>, vector<64x64xbf16>, vector<80x64xf32> -> vector<80x64xf32>
    %142 = arith.addf %126, %141 : vector<80x64xf32>
    %c0_85 = arith.constant 0 : index
    %c26 = arith.constant 26 : index
    %c0_86 = arith.constant 0 : index
    %143 = vector.load %arg9[%c0_85, %c26, %c0_86] : memref<2x120x64xf32, #tpu.memory_space<vmem>>, vector<1x80x64xf32>
    %144 = vector.shape_cast %143 : vector<1x80x64xf32> to vector<80x64xf32>
    %c26_87 = arith.constant 26 : index
    %c0_88 = arith.constant 0 : index
    %145 = vector.load %arg1[%c26_87, %c0_88] : memref<120x1xf32, #tpu.memory_space<vmem>>, vector<80x1xf32>
    %146 = vector.broadcast %24 : vector<1x64xf32> to vector<80x64xf32>
    %147 = arith.mulf %144, %146 : vector<80x64xf32>
    %148 = vector.broadcast %28 : vector<1x64xf32> to vector<80x64xf32>
    %149 = arith.addf %147, %148 : vector<80x64xf32>
    %cst_89 = arith.constant 0.000000e+00 : f32
    %150 = vector.broadcast %cst_89 : f32 to vector<80x64xf32>
    %151 = arith.maximumf %149, %150 : vector<80x64xf32>
    %152 = vector.broadcast %145 : vector<80x1xf32> to vector<80x64xf32>
    %153 = arith.mulf %151, %152 : vector<80x64xf32>
    %154 = arith.truncf %153 : vector<80x64xf32> to vector<80x64xbf16>
    %c0_90 = arith.constant 0 : index
    %c7_91 = arith.constant 7 : index
    %c0_92 = arith.constant 0 : index
    %c0_93 = arith.constant 0 : index
    %155 = vector.load %arg5[%c0_90, %c7_91, %c0_92, %c0_93] : memref<1x9x64x64xbf16, #tpu.memory_space<vmem>>, vector<1x1x64x64xbf16>
    %156 = vector.shape_cast %155 : vector<1x1x64x64xbf16> to vector<64x64xbf16>
    %cst_94 = arith.constant dense<0.000000e+00> : vector<80x64xf32>
    %157 = tpu.matmul %154, %156, %cst_94 {dimension_numbers = #tpu.dot_dimension_numbers<[1], [0], [0], [1], [0, 0, 1, 1], [], []>} : vector<80x64xbf16>, vector<64x64xbf16>, vector<80x64xf32> -> vector<80x64xf32>
    %158 = arith.addf %142, %157 : vector<80x64xf32>
    %c0_95 = arith.constant 0 : index
    %c27 = arith.constant 27 : index
    %c0_96 = arith.constant 0 : index
    %159 = vector.load %arg9[%c0_95, %c27, %c0_96] : memref<2x120x64xf32, #tpu.memory_space<vmem>>, vector<1x80x64xf32>
    %160 = vector.shape_cast %159 : vector<1x80x64xf32> to vector<80x64xf32>
    %c27_97 = arith.constant 27 : index
    %c0_98 = arith.constant 0 : index
    %161 = vector.load %arg1[%c27_97, %c0_98] : memref<120x1xf32, #tpu.memory_space<vmem>>, vector<80x1xf32>
    %162 = vector.broadcast %24 : vector<1x64xf32> to vector<80x64xf32>
    %163 = arith.mulf %160, %162 : vector<80x64xf32>
    %164 = vector.broadcast %28 : vector<1x64xf32> to vector<80x64xf32>
    %165 = arith.addf %163, %164 : vector<80x64xf32>
    %cst_99 = arith.constant 0.000000e+00 : f32
    %166 = vector.broadcast %cst_99 : f32 to vector<80x64xf32>
    %167 = arith.maximumf %165, %166 : vector<80x64xf32>
    %168 = vector.broadcast %161 : vector<80x1xf32> to vector<80x64xf32>
    %169 = arith.mulf %167, %168 : vector<80x64xf32>
    %170 = arith.truncf %169 : vector<80x64xf32> to vector<80x64xbf16>
    %c0_100 = arith.constant 0 : index
    %c8 = arith.constant 8 : index
    %c0_101 = arith.constant 0 : index
    %c0_102 = arith.constant 0 : index
    %171 = vector.load %arg5[%c0_100, %c8, %c0_101, %c0_102] : memref<1x9x64x64xbf16, #tpu.memory_space<vmem>>, vector<1x1x64x64xbf16>
    %172 = vector.shape_cast %171 : vector<1x1x64x64xbf16> to vector<64x64xbf16>
    %cst_103 = arith.constant dense<0.000000e+00> : vector<80x64xf32>
    %173 = tpu.matmul %170, %172, %cst_103 {dimension_numbers = #tpu.dot_dimension_numbers<[1], [0], [0], [1], [0, 0, 1, 1], [], []>} : vector<80x64xbf16>, vector<64x64xbf16>, vector<80x64xf32> -> vector<80x64xf32>
    %174 = arith.addf %158, %173 : vector<80x64xf32>
    %c0_104 = arith.constant 0 : index
    %c16_105 = arith.constant 16 : index
    %c0_106 = arith.constant 0 : index
    %175 = vector.load %arg9[%c0_104, %c16_105, %c0_106] : memref<2x120x64xf32, #tpu.memory_space<vmem>>, vector<1x80x64xf32>
    %176 = vector.shape_cast %175 : vector<1x80x64xf32> to vector<80x64xf32>
    %177 = vector.broadcast %29 : vector<80x1xf32> to vector<80x64xf32>
    %178 = arith.mulf %174, %177 : vector<80x64xf32>
    %179 = arith.addf %176, %178 : vector<80x64xf32>
    %c0_107 = arith.constant 0 : index
    %c16_108 = arith.constant 16 : index
    %c0_109 = arith.constant 0 : index
    %180 = vector.load %arg9[%c0_107, %c16_108, %c0_109] : memref<2x120x64xf32, #tpu.memory_space<vmem>>, vector<1x80x64xf32>
    %181 = vector.shape_cast %180 : vector<1x80x64xf32> to vector<80x64xf32>
    %182 = vector.shape_cast %179 : vector<80x64xf32> to vector<1x80x64xf32>
    tpu.vector_store %arg9[%c0_107, %c16_108, %c0_109], %182 {strides = array<i32>} : memref<2x120x64xf32, #tpu.memory_space<vmem>>, vector<1x80x64xf32>,
    %cst_110 = arith.constant 0.000000e+00 : f32
    %183 = vector.broadcast %cst_110 : f32 to vector<80x64xf32>
    %c1_111 = arith.constant 1 : index
    %c5_112 = arith.constant 5 : index
    %c0_113 = arith.constant 0 : index
    %184 = vector.load %arg9[%c1_111, %c5_112, %c0_113] : memref<2x120x64xf32, #tpu.memory_space<vmem>>, vector<1x80x64xf32>
    %185 = vector.shape_cast %184 : vector<1x80x64xf32> to vector<80x64xf32>
    %c5_114 = arith.constant 5 : index
    %c0_115 = arith.constant 0 : index
    %186 = vector.load %arg1[%c5_114, %c0_115] : memref<120x1xf32, #tpu.memory_space<vmem>>, vector<80x1xf32>
    %187 = vector.broadcast %24 : vector<1x64xf32> to vector<80x64xf32>
    %188 = arith.mulf %185, %187 : vector<80x64xf32>
    %189 = vector.broadcast %28 : vector<1x64xf32> to vector<80x64xf32>
    %190 = arith.addf %188, %189 : vector<80x64xf32>
    %cst_116 = arith.constant 0.000000e+00 : f32
    %191 = vector.broadcast %cst_116 : f32 to vector<80x64xf32>
    %192 = arith.maximumf %190, %191 : vector<80x64xf32>
    %193 = vector.broadcast %186 : vector<80x1xf32> to vector<80x64xf32>
    %194 = arith.mulf %192, %193 : vector<80x64xf32>
    %195 = arith.truncf %194 : vector<80x64xf32> to vector<80x64xbf16>
    %c0_117 = arith.constant 0 : index
    %c0_118 = arith.constant 0 : index
    %c0_119 = arith.constant 0 : index
    %c0_120 = arith.constant 0 : index
    %196 = vector.load %arg5[%c0_117, %c0_118, %c0_119, %c0_120] : memref<1x9x64x64xbf16, #tpu.memory_space<vmem>>, vector<1x1x64x64xbf16>
    %197 = vector.shape_cast %196 : vector<1x1x64x64xbf16> to vector<64x64xbf16>
    %cst_121 = arith.constant dense<0.000000e+00> : vector<80x64xf32>
    %198 = tpu.matmul %195, %197, %cst_121 {dimension_numbers = #tpu.dot_dimension_numbers<[1], [0], [0], [1], [0, 0, 1, 1], [], []>} : vector<80x64xbf16>, vector<64x64xbf16>, vector<80x64xf32> -> vector<80x64xf32>
    %199 = arith.addf %183, %198 : vector<80x64xf32>
    %c1_122 = arith.constant 1 : index
    %c6_123 = arith.constant 6 : index
    %c0_124 = arith.constant 0 : index
    %200 = vector.load %arg9[%c1_122, %c6_123, %c0_124] : memref<2x120x64xf32, #tpu.memory_space<vmem>>, vector<1x80x64xf32>
    %201 = vector.shape_cast %200 : vector<1x80x64xf32> to vector<80x64xf32>
    %c6_125 = arith.constant 6 : index
    %c0_126 = arith.constant 0 : index
    %202 = vector.load %arg1[%c6_125, %c0_126] : memref<120x1xf32, #tpu.memory_space<vmem>>, vector<80x1xf32>
    %203 = vector.broadcast %24 : vector<1x64xf32> to vector<80x64xf32>
    %204 = arith.mulf %201, %203 : vector<80x64xf32>
    %205 = vector.broadcast %28 : vector<1x64xf32> to vector<80x64xf32>
    %206 = arith.addf %204, %205 : vector<80x64xf32>
    %cst_127 = arith.constant 0.000000e+00 : f32
    %207 = vector.broadcast %cst_127 : f32 to vector<80x64xf32>
    %208 = arith.maximumf %206, %207 : vector<80x64xf32>
    %209 = vector.broadcast %202 : vector<80x1xf32> to vector<80x64xf32>
    %210 = arith.mulf %208, %209 : vector<80x64xf32>
    %211 = arith.truncf %210 : vector<80x64xf32> to vector<80x64xbf16>
    %c0_128 = arith.constant 0 : index
    %c1_129 = arith.constant 1 : index
    %c0_130 = arith.constant 0 : index
    %c0_131 = arith.constant 0 : index
    %212 = vector.load %arg5[%c0_128, %c1_129, %c0_130, %c0_131] : memref<1x9x64x64xbf16, #tpu.memory_space<vmem>>, vector<1x1x64x64xbf16>
    %213 = vector.shape_cast %212 : vector<1x1x64x64xbf16> to vector<64x64xbf16>
    %cst_132 = arith.constant dense<0.000000e+00> : vector<80x64xf32>
    %214 = tpu.matmul %211, %213, %cst_132 {dimension_numbers = #tpu.dot_dimension_numbers<[1], [0], [0], [1], [0, 0, 1, 1], [], []>} : vector<80x64xbf16>, vector<64x64xbf16>, vector<80x64xf32> -> vector<80x64xf32>
    %215 = arith.addf %199, %214 : vector<80x64xf32>
    %c1_133 = arith.constant 1 : index
    %c7_134 = arith.constant 7 : index
    %c0_135 = arith.constant 0 : index
    %216 = vector.load %arg9[%c1_133, %c7_134, %c0_135] : memref<2x120x64xf32, #tpu.memory_space<vmem>>, vector<1x80x64xf32>
    %217 = vector.shape_cast %216 : vector<1x80x64xf32> to vector<80x64xf32>
    %c7_136 = arith.constant 7 : index
    %c0_137 = arith.constant 0 : index
    %218 = vector.load %arg1[%c7_136, %c0_137] : memref<120x1xf32, #tpu.memory_space<vmem>>, vector<80x1xf32>
    %219 = vector.broadcast %24 : vector<1x64xf32> to vector<80x64xf32>
    %220 = arith.mulf %217, %219 : vector<80x64xf32>
    %221 = vector.broadcast %28 : vector<1x64xf32> to vector<80x64xf32>
    %222 = arith.addf %220, %221 : vector<80x64xf32>
    %cst_138 = arith.constant 0.000000e+00 : f32
    %223 = vector.broadcast %cst_138 : f32 to vector<80x64xf32>
    %224 = arith.maximumf %222, %223 : vector<80x64xf32>
    %225 = vector.broadcast %218 : vector<80x1xf32> to vector<80x64xf32>
    %226 = arith.mulf %224, %225 : vector<80x64xf32>
    %227 = arith.truncf %226 : vector<80x64xf32> to vector<80x64xbf16>
    %c0_139 = arith.constant 0 : index
    %c2_140 = arith.constant 2 : index
    %c0_141 = arith.constant 0 : index
    %c0_142 = arith.constant 0 : index
    %228 = vector.load %arg5[%c0_139, %c2_140, %c0_141, %c0_142] : memref<1x9x64x64xbf16, #tpu.memory_space<vmem>>, vector<1x1x64x64xbf16>
    %229 = vector.shape_cast %228 : vector<1x1x64x64xbf16> to vector<64x64xbf16>
    %cst_143 = arith.constant dense<0.000000e+00> : vector<80x64xf32>
    %230 = tpu.matmul %227, %229, %cst_143 {dimension_numbers = #tpu.dot_dimension_numbers<[1], [0], [0], [1], [0, 0, 1, 1], [], []>} : vector<80x64xbf16>, vector<64x64xbf16>, vector<80x64xf32> -> vector<80x64xf32>
    %231 = arith.addf %215, %230 : vector<80x64xf32>
    %c1_144 = arith.constant 1 : index
    %c15_145 = arith.constant 15 : index
    %c0_146 = arith.constant 0 : index
    %232 = vector.load %arg9[%c1_144, %c15_145, %c0_146] : memref<2x120x64xf32, #tpu.memory_space<vmem>>, vector<1x80x64xf32>
    %233 = vector.shape_cast %232 : vector<1x80x64xf32> to vector<80x64xf32>
    %c15_147 = arith.constant 15 : index
    %c0_148 = arith.constant 0 : index
    %234 = vector.load %arg1[%c15_147, %c0_148] : memref<120x1xf32, #tpu.memory_space<vmem>>, vector<80x1xf32>
    %235 = vector.broadcast %24 : vector<1x64xf32> to vector<80x64xf32>
    %236 = arith.mulf %233, %235 : vector<80x64xf32>
    %237 = vector.broadcast %28 : vector<1x64xf32> to vector<80x64xf32>
    %238 = arith.addf %236, %237 : vector<80x64xf32>
    %cst_149 = arith.constant 0.000000e+00 : f32
    %239 = vector.broadcast %cst_149 : f32 to vector<80x64xf32>
    %240 = arith.maximumf %238, %239 : vector<80x64xf32>
    %241 = vector.broadcast %234 : vector<80x1xf32> to vector<80x64xf32>
    %242 = arith.mulf %240, %241 : vector<80x64xf32>
    %243 = arith.truncf %242 : vector<80x64xf32> to vector<80x64xbf16>
    %c0_150 = arith.constant 0 : index
    %c3_151 = arith.constant 3 : index
    %c0_152 = arith.constant 0 : index
    %c0_153 = arith.constant 0 : index
    %244 = vector.load %arg5[%c0_150, %c3_151, %c0_152, %c0_153] : memref<1x9x64x64xbf16, #tpu.memory_space<vmem>>, vector<1x1x64x64xbf16>
    %245 = vector.shape_cast %244 : vector<1x1x64x64xbf16> to vector<64x64xbf16>
    %cst_154 = arith.constant dense<0.000000e+00> : vector<80x64xf32>
    %246 = tpu.matmul %243, %245, %cst_154 {dimension_numbers = #tpu.dot_dimension_numbers<[1], [0], [0], [1], [0, 0, 1, 1], [], []>} : vector<80x64xbf16>, vector<64x64xbf16>, vector<80x64xf32> -> vector<80x64xf32>
    %247 = arith.addf %231, %246 : vector<80x64xf32>
    %c1_155 = arith.constant 1 : index
    %c16_156 = arith.constant 16 : index
    %c0_157 = arith.constant 0 : index
    %248 = vector.load %arg9[%c1_155, %c16_156, %c0_157] : memref<2x120x64xf32, #tpu.memory_space<vmem>>, vector<1x80x64xf32>
    %249 = vector.shape_cast %248 : vector<1x80x64xf32> to vector<80x64xf32>
    %c16_158 = arith.constant 16 : index
    %c0_159 = arith.constant 0 : index
    %250 = vector.load %arg1[%c16_158, %c0_159] : memref<120x1xf32, #tpu.memory_space<vmem>>, vector<80x1xf32>
    %251 = vector.broadcast %24 : vector<1x64xf32> to vector<80x64xf32>
    %252 = arith.mulf %249, %251 : vector<80x64xf32>
    %253 = vector.broadcast %28 : vector<1x64xf32> to vector<80x64xf32>
    %254 = arith.addf %252, %253 : vector<80x64xf32>
    %cst_160 = arith.constant 0.000000e+00 : f32
    %255 = vector.broadcast %cst_160 : f32 to vector<80x64xf32>
    %256 = arith.maximumf %254, %255 : vector<80x64xf32>
    %257 = vector.broadcast %250 : vector<80x1xf32> to vector<80x64xf32>
    %258 = arith.mulf %256, %257 : vector<80x64xf32>
    %259 = arith.truncf %258 : vector<80x64xf32> to vector<80x64xbf16>
    %c0_161 = arith.constant 0 : index
    %c4_162 = arith.constant 4 : index
    %c0_163 = arith.constant 0 : index
    %c0_164 = arith.constant 0 : index
    %260 = vector.load %arg5[%c0_161, %c4_162, %c0_163, %c0_164] : memref<1x9x64x64xbf16, #tpu.memory_space<vmem>>, vector<1x1x64x64xbf16>
    %261 = vector.shape_cast %260 : vector<1x1x64x64xbf16> to vector<64x64xbf16>
    %cst_165 = arith.constant dense<0.000000e+00> : vector<80x64xf32>
    %262 = tpu.matmul %259, %261, %cst_165 {dimension_numbers = #tpu.dot_dimension_numbers<[1], [0], [0], [1], [0, 0, 1, 1], [], []>} : vector<80x64xbf16>, vector<64x64xbf16>, vector<80x64xf32> -> vector<80x64xf32>
    %263 = arith.addf %247, %262 : vector<80x64xf32>
    %c1_166 = arith.constant 1 : index
    %c17_167 = arith.constant 17 : index
    %c0_168 = arith.constant 0 : index
    %264 = vector.load %arg9[%c1_166, %c17_167, %c0_168] : memref<2x120x64xf32, #tpu.memory_space<vmem>>, vector<1x80x64xf32>
    %265 = vector.shape_cast %264 : vector<1x80x64xf32> to vector<80x64xf32>
    %c17_169 = arith.constant 17 : index
    %c0_170 = arith.constant 0 : index
    %266 = vector.load %arg1[%c17_169, %c0_170] : memref<120x1xf32, #tpu.memory_space<vmem>>, vector<80x1xf32>
    %267 = vector.broadcast %24 : vector<1x64xf32> to vector<80x64xf32>
    %268 = arith.mulf %265, %267 : vector<80x64xf32>
    %269 = vector.broadcast %28 : vector<1x64xf32> to vector<80x64xf32>
    %270 = arith.addf %268, %269 : vector<80x64xf32>
    %cst_171 = arith.constant 0.000000e+00 : f32
    %271 = vector.broadcast %cst_171 : f32 to vector<80x64xf32>
    %272 = arith.maximumf %270, %271 : vector<80x64xf32>
    %273 = vector.broadcast %266 : vector<80x1xf32> to vector<80x64xf32>
    %274 = arith.mulf %272, %273 : vector<80x64xf32>
    %275 = arith.truncf %274 : vector<80x64xf32> to vector<80x64xbf16>
    %c0_172 = arith.constant 0 : index
    %c5_173 = arith.constant 5 : index
    %c0_174 = arith.constant 0 : index
    %c0_175 = arith.constant 0 : index
    %276 = vector.load %arg5[%c0_172, %c5_173, %c0_174, %c0_175] : memref<1x9x64x64xbf16, #tpu.memory_space<vmem>>, vector<1x1x64x64xbf16>
    %277 = vector.shape_cast %276 : vector<1x1x64x64xbf16> to vector<64x64xbf16>
    %cst_176 = arith.constant dense<0.000000e+00> : vector<80x64xf32>
    %278 = tpu.matmul %275, %277, %cst_176 {dimension_numbers = #tpu.dot_dimension_numbers<[1], [0], [0], [1], [0, 0, 1, 1], [], []>} : vector<80x64xbf16>, vector<64x64xbf16>, vector<80x64xf32> -> vector<80x64xf32>
    %279 = arith.addf %263, %278 : vector<80x64xf32>
    %c1_177 = arith.constant 1 : index
    %c25_178 = arith.constant 25 : index
    %c0_179 = arith.constant 0 : index
    %280 = vector.load %arg9[%c1_177, %c25_178, %c0_179] : memref<2x120x64xf32, #tpu.memory_space<vmem>>, vector<1x80x64xf32>
    %281 = vector.shape_cast %280 : vector<1x80x64xf32> to vector<80x64xf32>
    %c25_180 = arith.constant 25 : index
    %c0_181 = arith.constant 0 : index
    %282 = vector.load %arg1[%c25_180, %c0_181] : memref<120x1xf32, #tpu.memory_space<vmem>>, vector<80x1xf32>
    %283 = vector.broadcast %24 : vector<1x64xf32> to vector<80x64xf32>
    %284 = arith.mulf %281, %283 : vector<80x64xf32>
    %285 = vector.broadcast %28 : vector<1x64xf32> to vector<80x64xf32>
    %286 = arith.addf %284, %285 : vector<80x64xf32>
    %cst_182 = arith.constant 0.000000e+00 : f32
    %287 = vector.broadcast %cst_182 : f32 to vector<80x64xf32>
    %288 = arith.maximumf %286, %287 : vector<80x64xf32>
    %289 = vector.broadcast %282 : vector<80x1xf32> to vector<80x64xf32>
    %290 = arith.mulf %288, %289 : vector<80x64xf32>
    %291 = arith.truncf %290 : vector<80x64xf32> to vector<80x64xbf16>
    %c0_183 = arith.constant 0 : index
    %c6_184 = arith.constant 6 : index
    %c0_185 = arith.constant 0 : index
    %c0_186 = arith.constant 0 : index
    %292 = vector.load %arg5[%c0_183, %c6_184, %c0_185, %c0_186] : memref<1x9x64x64xbf16, #tpu.memory_space<vmem>>, vector<1x1x64x64xbf16>
    %293 = vector.shape_cast %292 : vector<1x1x64x64xbf16> to vector<64x64xbf16>
    %cst_187 = arith.constant dense<0.000000e+00> : vector<80x64xf32>
    %294 = tpu.matmul %291, %293, %cst_187 {dimension_numbers = #tpu.dot_dimension_numbers<[1], [0], [0], [1], [0, 0, 1, 1], [], []>} : vector<80x64xbf16>, vector<64x64xbf16>, vector<80x64xf32> -> vector<80x64xf32>
    %295 = arith.addf %279, %294 : vector<80x64xf32>
    %c1_188 = arith.constant 1 : index
    %c26_189 = arith.constant 26 : index
    %c0_190 = arith.constant 0 : index
    %296 = vector.load %arg9[%c1_188, %c26_189, %c0_190] : memref<2x120x64xf32, #tpu.memory_space<vmem>>, vector<1x80x64xf32>
    %297 = vector.shape_cast %296 : vector<1x80x64xf32> to vector<80x64xf32>
    %c26_191 = arith.constant 26 : index
    %c0_192 = arith.constant 0 : index
    %298 = vector.load %arg1[%c26_191, %c0_192] : memref<120x1xf32, #tpu.memory_space<vmem>>, vector<80x1xf32>
    %299 = vector.broadcast %24 : vector<1x64xf32> to vector<80x64xf32>
    %300 = arith.mulf %297, %299 : vector<80x64xf32>
    %301 = vector.broadcast %28 : vector<1x64xf32> to vector<80x64xf32>
    %302 = arith.addf %300, %301 : vector<80x64xf32>
    %cst_193 = arith.constant 0.000000e+00 : f32
    %303 = vector.broadcast %cst_193 : f32 to vector<80x64xf32>
    %304 = arith.maximumf %302, %303 : vector<80x64xf32>
    %305 = vector.broadcast %298 : vector<80x1xf32> to vector<80x64xf32>
    %306 = arith.mulf %304, %305 : vector<80x64xf32>
    %307 = arith.truncf %306 : vector<80x64xf32> to vector<80x64xbf16>
    %c0_194 = arith.constant 0 : index
    %c7_195 = arith.constant 7 : index
    %c0_196 = arith.constant 0 : index
    %c0_197 = arith.constant 0 : index
    %308 = vector.load %arg5[%c0_194, %c7_195, %c0_196, %c0_197] : memref<1x9x64x64xbf16, #tpu.memory_space<vmem>>, vector<1x1x64x64xbf16>
    %309 = vector.shape_cast %308 : vector<1x1x64x64xbf16> to vector<64x64xbf16>
    %cst_198 = arith.constant dense<0.000000e+00> : vector<80x64xf32>
    %310 = tpu.matmul %307, %309, %cst_198 {dimension_numbers = #tpu.dot_dimension_numbers<[1], [0], [0], [1], [0, 0, 1, 1], [], []>} : vector<80x64xbf16>, vector<64x64xbf16>, vector<80x64xf32> -> vector<80x64xf32>
    %311 = arith.addf %295, %310 : vector<80x64xf32>
    %c1_199 = arith.constant 1 : index
    %c27_200 = arith.constant 27 : index
    %c0_201 = arith.constant 0 : index
    %312 = vector.load %arg9[%c1_199, %c27_200, %c0_201] : memref<2x120x64xf32, #tpu.memory_space<vmem>>, vector<1x80x64xf32>
    %313 = vector.shape_cast %312 : vector<1x80x64xf32> to vector<80x64xf32>
    %c27_202 = arith.constant 27 : index
    %c0_203 = arith.constant 0 : index
    %314 = vector.load %arg1[%c27_202, %c0_203] : memref<120x1xf32, #tpu.memory_space<vmem>>, vector<80x1xf32>
    %315 = vector.broadcast %24 : vector<1x64xf32> to vector<80x64xf32>
    %316 = arith.mulf %313, %315 : vector<80x64xf32>
    %317 = vector.broadcast %28 : vector<1x64xf32> to vector<80x64xf32>
    %318 = arith.addf %316, %317 : vector<80x64xf32>
    %cst_204 = arith.constant 0.000000e+00 : f32
    %319 = vector.broadcast %cst_204 : f32 to vector<80x64xf32>
    %320 = arith.maximumf %318, %319 : vector<80x64xf32>
    %321 = vector.broadcast %314 : vector<80x1xf32> to vector<80x64xf32>
    %322 = arith.mulf %320, %321 : vector<80x64xf32>
    %323 = arith.truncf %322 : vector<80x64xf32> to vector<80x64xbf16>
    %c0_205 = arith.constant 0 : index
    %c8_206 = arith.constant 8 : index
    %c0_207 = arith.constant 0 : index
    %c0_208 = arith.constant 0 : index
    %324 = vector.load %arg5[%c0_205, %c8_206, %c0_207, %c0_208] : memref<1x9x64x64xbf16, #tpu.memory_space<vmem>>, vector<1x1x64x64xbf16>
    %325 = vector.shape_cast %324 : vector<1x1x64x64xbf16> to vector<64x64xbf16>
    %cst_209 = arith.constant dense<0.000000e+00> : vector<80x64xf32>
    %326 = tpu.matmul %323, %325, %cst_209 {dimension_numbers = #tpu.dot_dimension_numbers<[1], [0], [0], [1], [0, 0, 1, 1], [], []>} : vector<80x64xbf16>, vector<64x64xbf16>, vector<80x64xf32> -> vector<80x64xf32>
    %327 = arith.addf %311, %326 : vector<80x64xf32>
    %c1_210 = arith.constant 1 : index
    %c16_211 = arith.constant 16 : index
    %c0_212 = arith.constant 0 : index
    %328 = vector.load %arg9[%c1_210, %c16_211, %c0_212] : memref<2x120x64xf32, #tpu.memory_space<vmem>>, vector<1x80x64xf32>
    %329 = vector.shape_cast %328 : vector<1x80x64xf32> to vector<80x64xf32>
    %330 = vector.broadcast %29 : vector<80x1xf32> to vector<80x64xf32>
    %331 = arith.mulf %327, %330 : vector<80x64xf32>
    %332 = arith.addf %329, %331 : vector<80x64xf32>
    %c1_213 = arith.constant 1 : index
    %c16_214 = arith.constant 16 : index
    %c0_215 = arith.constant 0 : index
    %333 = vector.load %arg9[%c1_213, %c16_214, %c0_215] : memref<2x120x64xf32, #tpu.memory_space<vmem>>, vector<1x80x64xf32>
    %334 = vector.shape_cast %333 : vector<1x80x64xf32> to vector<80x64xf32>
    %335 = vector.shape_cast %332 : vector<80x64xf32> to vector<1x80x64xf32>
    tpu.vector_store %arg9[%c1_213, %c16_214, %c0_215], %335 {strides = array<i32>} : memref<2x120x64xf32, #tpu.memory_space<vmem>>, vector<1x80x64xf32>,
    %c1_i32 = arith.constant 1 : i32
    %336 = arith.cmpi eq, %arg0, %c1_i32 : i32
    %337 = arith.extui %336 : i1 to i32
    %c0_i32_216 = arith.constant 0 : i32
    %338 = arith.cmpi ne, %337, %c0_i32_216 : i32
    scf.if %338 {
      %c0_217 = arith.constant 0 : index
      %c0_218 = arith.constant 0 : index
      %c0_219 = arith.constant 0 : index
      %339 = vector.load %arg9[%c0_217, %c0_218, %c0_219] : memref<2x120x64xf32, #tpu.memory_space<vmem>>, vector<2x120x64xf32>
      %c0_220 = arith.constant 0 : index
      %c0_221 = arith.constant 0 : index
      %c0_222 = arith.constant 0 : index
      %340 = vector.load %arg6[%c0_220, %c0_221, %c0_222] : memref<2x120x64xf32, #tpu.memory_space<vmem>>, vector<2x120x64xf32>
      tpu.vector_store %arg6[%c0_220, %c0_221, %c0_222], %339 {strides = array<i32>} : memref<2x120x64xf32, #tpu.memory_space<vmem>>, vector<2x120x64xf32>,
      %cst_223 = arith.constant dense<0.000000e+00> : vector<120x64xf32>
      %341 = vector.multi_reduction <add>, %339, %cst_223 [0] : vector<2x120x64xf32> to vector<120x64xf32>
      %cst_224 = arith.constant dense<0.000000e+00> : vector<64xf32>
      %342 = vector.multi_reduction <add>, %341, %cst_224 [0] : vector<120x64xf32> to vector<64xf32>
      %343 = vector.shape_cast %342 : vector<64xf32> to vector<1x64xf32>
      %c0_225 = arith.constant 0 : index
      %c0_226 = arith.constant 0 : index
      %344 = vector.load %arg7[%c0_225, %c0_226] : memref<1x64xf32, #tpu.memory_space<vmem>>, vector<1x64xf32>
      tpu.vector_store %arg7[%c0_225, %c0_226], %343 {strides = array<i32>} : memref<1x64xf32, #tpu.memory_space<vmem>>, vector<1x64xf32>,
      %345 = arith.mulf %339, %339 : vector<2x120x64xf32>
      %cst_227 = arith.constant dense<0.000000e+00> : vector<120x64xf32>
      %346 = vector.multi_reduction <add>, %345, %cst_227 [0] : vector<2x120x64xf32> to vector<120x64xf32>
      %cst_228 = arith.constant dense<0.000000e+00> : vector<64xf32>
      %347 = vector.multi_reduction <add>, %346, %cst_228 [0] : vector<120x64xf32> to vector<64xf32>
      %348 = vector.shape_cast %347 : vector<64xf32> to vector<1x64xf32>
      %c0_229 = arith.constant 0 : index
      %c0_230 = arith.constant 0 : index
      %349 = vector.load %arg8[%c0_229, %c0_230] : memref<1x64xf32, #tpu.memory_space<vmem>>, vector<1x64xf32>
      tpu.vector_store %arg8[%c0_229, %c0_230], %348 {strides = array<i32>} : memref<1x64xf32, #tpu.memory_space<vmem>>, vector<1x64xf32>,
    } else {
    }
    return
  }
  func.func @transform_0(%arg0: i32) -> (i32, i32) {
    %c0_i32 = arith.constant 0 : i32
    %c0_i32_0 = arith.constant 0 : i32
    %c0_i32_1 = arith.constant 0 : i32
    return %c0_i32, %c0_i32_0 : i32, i32
  }
  func.func @transform_1(%arg0: i32) -> (i32, i32, i32) {
    %c0_i32 = arith.constant 0 : i32
    %c0_i32_0 = arith.constant 0 : i32
    %c0_i32_1 = arith.constant 0 : i32
    %c0_i32_2 = arith.constant 0 : i32
    return %c0_i32, %c0_i32_0, %c0_i32_1 : i32, i32, i32
  }
  func.func @transform_2(%arg0: i32) -> (i32, i32, i32) {
    %c0_i32 = arith.constant 0 : i32
    %c0_i32_0 = arith.constant 0 : i32
    %c0_i32_1 = arith.constant 0 : i32
    return %arg0, %c0_i32, %c0_i32_0 : i32, i32, i32
  }
  func.func @transform_3(%arg0: i32) -> (i32, i32, i32) {
    %c0_i32 = arith.constant 0 : i32
    %c0_i32_0 = arith.constant 0 : i32
    %c0_i32_1 = arith.constant 0 : i32
    return %arg0, %c0_i32, %c0_i32_0 : i32, i32, i32
  }
  func.func @transform_4(%arg0: i32) -> (i32, i32, i32, i32) {
    %c0_i32 = arith.constant 0 : i32
    %c0_i32_0 = arith.constant 0 : i32
    %c0_i32_1 = arith.constant 0 : i32
    %c0_i32_2 = arith.constant 0 : i32
    return %arg0, %c0_i32, %c0_i32_0, %c0_i32_1 : i32, i32, i32, i32
  }
  func.func @transform_5(%arg0: i32) -> (i32, i32, i32) {
    %c0_i32 = arith.constant 0 : i32
    %c0_i32_0 = arith.constant 0 : i32
    %c0_i32_1 = arith.constant 0 : i32
    %c0_i32_2 = arith.constant 0 : i32
    return %c0_i32, %c0_i32_0, %c0_i32_1 : i32, i32, i32
  }
  func.func @transform_6(%arg0: i32) -> (i32, i32) {
    %c0_i32 = arith.constant 0 : i32
    %c0_i32_0 = arith.constant 0 : i32
    %c0_i32_1 = arith.constant 0 : i32
    return %c0_i32, %c0_i32_0 : i32, i32
  }
  func.func @transform_7(%arg0: i32) -> (i32, i32) {
    %c0_i32 = arith.constant 0 : i32
    %c0_i32_0 = arith.constant 0 : i32
    %c0_i32_1 = arith.constant 0 : i32
    return %c0_i32, %c0_i32_0 : i32, i32
  }
}

module attributes {stable_mosaic.version = 11 : i64} {
  func.func @_transition_kernel(%arg0: i32, %arg1: memref<1x4x16x64xf32, #tpu.memory_space<vmem>>, %arg2: memref<1x64xf32, #tpu.memory_space<vmem>>, %arg3: memref<1x64xf32, #tpu.memory_space<vmem>>, %arg4: memref<64x32xbf16, #tpu.memory_space<vmem>>, %arg5: memref<1x16x32xf32, #tpu.memory_space<vmem>>) attributes {dimension_semantics = [#tpu.dimension_semantics<parallel>], iteration_bounds = array<i64: 2>, scalar_prefetch = 0 : i64, scratch_operands = 0 : i64, tpu.core_type = #tpu.core_type<tc>, window_params = [{transform_indices = @transform_0, window_bounds = array<i64: 1, 4, 16, 64>}, {pipeline_mode = #tpu.pipeline_mode<synchronous>, transform_indices = @transform_1, window_bounds = array<i64: 1, 64>}, {pipeline_mode = #tpu.pipeline_mode<synchronous>, transform_indices = @transform_2, window_bounds = array<i64: 1, 64>}, {pipeline_mode = #tpu.pipeline_mode<synchronous>, transform_indices = @transform_3, window_bounds = array<i64: 64, 32>}, {transform_indices = @transform_4, window_bounds = array<i64: 1, 16, 32>}]} {
    %c0 = arith.constant 0 : index
    %c0_0 = arith.constant 0 : index
    %0 = vector.load %arg2[%c0, %c0_0] : memref<1x64xf32, #tpu.memory_space<vmem>>, vector<1x64xf32>
    %c0_1 = arith.constant 0 : index
    %c0_2 = arith.constant 0 : index
    %1 = vector.load %arg3[%c0_1, %c0_2] : memref<1x64xf32, #tpu.memory_space<vmem>>, vector<1x64xf32>
    %cst = arith.constant 0.000000e+00 : f32
    %2 = vector.broadcast %cst : f32 to vector<16x64xf32>
    %c0_3 = arith.constant 0 : index
    %c0_4 = arith.constant 0 : index
    %c0_5 = arith.constant 0 : index
    %c0_6 = arith.constant 0 : index
    %3 = vector.load %arg1[%c0_3, %c0_4, %c0_5, %c0_6] : memref<1x4x16x64xf32, #tpu.memory_space<vmem>>, vector<1x1x16x64xf32>
    %4 = vector.shape_cast %3 : vector<1x1x16x64xf32> to vector<16x64xf32>
    %5 = vector.broadcast %0 : vector<1x64xf32> to vector<16x64xf32>
    %6 = arith.mulf %4, %5 : vector<16x64xf32>
    %7 = vector.broadcast %1 : vector<1x64xf32> to vector<16x64xf32>
    %8 = arith.addf %6, %7 : vector<16x64xf32>
    %cst_7 = arith.constant 0.000000e+00 : f32
    %9 = vector.broadcast %cst_7 : f32 to vector<16x64xf32>
    %10 = arith.maximumf %8, %9 : vector<16x64xf32>
    %11 = arith.addf %2, %10 : vector<16x64xf32>
    %c0_8 = arith.constant 0 : index
    %c1 = arith.constant 1 : index
    %c0_9 = arith.constant 0 : index
    %c0_10 = arith.constant 0 : index
    %12 = vector.load %arg1[%c0_8, %c1, %c0_9, %c0_10] : memref<1x4x16x64xf32, #tpu.memory_space<vmem>>, vector<1x1x16x64xf32>
    %13 = vector.shape_cast %12 : vector<1x1x16x64xf32> to vector<16x64xf32>
    %14 = vector.broadcast %0 : vector<1x64xf32> to vector<16x64xf32>
    %15 = arith.mulf %13, %14 : vector<16x64xf32>
    %16 = vector.broadcast %1 : vector<1x64xf32> to vector<16x64xf32>
    %17 = arith.addf %15, %16 : vector<16x64xf32>
    %cst_11 = arith.constant 0.000000e+00 : f32
    %18 = vector.broadcast %cst_11 : f32 to vector<16x64xf32>
    %19 = arith.maximumf %17, %18 : vector<16x64xf32>
    %20 = arith.addf %11, %19 : vector<16x64xf32>
    %c0_12 = arith.constant 0 : index
    %c2 = arith.constant 2 : index
    %c0_13 = arith.constant 0 : index
    %c0_14 = arith.constant 0 : index
    %21 = vector.load %arg1[%c0_12, %c2, %c0_13, %c0_14] : memref<1x4x16x64xf32, #tpu.memory_space<vmem>>, vector<1x1x16x64xf32>
    %22 = vector.shape_cast %21 : vector<1x1x16x64xf32> to vector<16x64xf32>
    %23 = vector.broadcast %0 : vector<1x64xf32> to vector<16x64xf32>
    %24 = arith.mulf %22, %23 : vector<16x64xf32>
    %25 = vector.broadcast %1 : vector<1x64xf32> to vector<16x64xf32>
    %26 = arith.addf %24, %25 : vector<16x64xf32>
    %cst_15 = arith.constant 0.000000e+00 : f32
    %27 = vector.broadcast %cst_15 : f32 to vector<16x64xf32>
    %28 = arith.maximumf %26, %27 : vector<16x64xf32>
    %29 = arith.addf %20, %28 : vector<16x64xf32>
    %c0_16 = arith.constant 0 : index
    %c3 = arith.constant 3 : index
    %c0_17 = arith.constant 0 : index
    %c0_18 = arith.constant 0 : index
    %30 = vector.load %arg1[%c0_16, %c3, %c0_17, %c0_18] : memref<1x4x16x64xf32, #tpu.memory_space<vmem>>, vector<1x1x16x64xf32>
    %31 = vector.shape_cast %30 : vector<1x1x16x64xf32> to vector<16x64xf32>
    %32 = vector.broadcast %0 : vector<1x64xf32> to vector<16x64xf32>
    %33 = arith.mulf %31, %32 : vector<16x64xf32>
    %34 = vector.broadcast %1 : vector<1x64xf32> to vector<16x64xf32>
    %35 = arith.addf %33, %34 : vector<16x64xf32>
    %cst_19 = arith.constant 0.000000e+00 : f32
    %36 = vector.broadcast %cst_19 : f32 to vector<16x64xf32>
    %37 = arith.maximumf %35, %36 : vector<16x64xf32>
    %38 = arith.addf %29, %37 : vector<16x64xf32>
    %cst_20 = arith.constant 2.500000e-01 : f32
    %39 = vector.broadcast %cst_20 : f32 to vector<16x64xf32>
    %40 = arith.mulf %38, %39 : vector<16x64xf32>
    %41 = arith.truncf %40 : vector<16x64xf32> to vector<16x64xbf16>
    %c0_21 = arith.constant 0 : index
    %c0_22 = arith.constant 0 : index
    %42 = vector.load %arg4[%c0_21, %c0_22] : memref<64x32xbf16, #tpu.memory_space<vmem>>, vector<64x32xbf16>
    %cst_23 = arith.constant dense<0.000000e+00> : vector<16x32xf32>
    %43 = tpu.matmul %41, %42, %cst_23 {dimension_numbers = #tpu.dot_dimension_numbers<[1], [0], [0], [1], [0, 0, 1, 1], [], []>} : vector<16x64xbf16>, vector<64x32xbf16>, vector<16x32xf32> -> vector<16x32xf32>
    %c0_24 = arith.constant 0 : index
    %c0_25 = arith.constant 0 : index
    %c0_26 = arith.constant 0 : index
    %44 = vector.load %arg5[%c0_24, %c0_25, %c0_26] : memref<1x16x32xf32, #tpu.memory_space<vmem>>, vector<1x16x32xf32>
    %45 = vector.shape_cast %44 : vector<1x16x32xf32> to vector<16x32xf32>
    %46 = vector.shape_cast %43 : vector<16x32xf32> to vector<1x16x32xf32>
    tpu.vector_store %arg5[%c0_24, %c0_25, %c0_26], %46 {strides = array<i32>} : memref<1x16x32xf32, #tpu.memory_space<vmem>>, vector<1x16x32xf32>,
    return
  }
  func.func @transform_0(%arg0: i32) -> (i32, i32, i32, i32) {
    %c0_i32 = arith.constant 0 : i32
    %c0_i32_0 = arith.constant 0 : i32
    %c0_i32_1 = arith.constant 0 : i32
    %c0_i32_2 = arith.constant 0 : i32
    return %arg0, %c0_i32, %c0_i32_0, %c0_i32_1 : i32, i32, i32, i32
  }
  func.func @transform_1(%arg0: i32) -> (i32, i32) {
    %c0_i32 = arith.constant 0 : i32
    %c0_i32_0 = arith.constant 0 : i32
    %c0_i32_1 = arith.constant 0 : i32
    return %c0_i32, %c0_i32_0 : i32, i32
  }
  func.func @transform_2(%arg0: i32) -> (i32, i32) {
    %c0_i32 = arith.constant 0 : i32
    %c0_i32_0 = arith.constant 0 : i32
    %c0_i32_1 = arith.constant 0 : i32
    return %c0_i32, %c0_i32_0 : i32, i32
  }
  func.func @transform_3(%arg0: i32) -> (i32, i32) {
    %c0_i32 = arith.constant 0 : i32
    %c0_i32_0 = arith.constant 0 : i32
    %c0_i32_1 = arith.constant 0 : i32
    return %c0_i32, %c0_i32_0 : i32, i32
  }
  func.func @transform_4(%arg0: i32) -> (i32, i32, i32) {
    %c0_i32 = arith.constant 0 : i32
    %c0_i32_0 = arith.constant 0 : i32
    %c0_i32_1 = arith.constant 0 : i32
    return %arg0, %c0_i32, %c0_i32_0 : i32, i32, i32
  }
}

module attributes {stable_mosaic.version = 11 : i64} {
  func.func @_dense_block_kernel(%arg0: i32, %arg1: memref<48x1xf32, #tpu.memory_space<vmem>>, %arg2: memref<2x48x64xf32, #tpu.memory_space<vmem>>, %arg3: memref<1x1x64xf32, #tpu.memory_space<vmem>>, %arg4: memref<1x1x64xf32, #tpu.memory_space<vmem>>, %arg5: memref<1x9x64x64xbf16, #tpu.memory_space<vmem>>, %arg6: memref<2x48x64xf32, #tpu.memory_space<vmem>>, %arg7: memref<1x64xf32, #tpu.memory_space<vmem>>, %arg8: memref<1x64xf32, #tpu.memory_space<vmem>>, %arg9: memref<2x48x64xf32, #tpu.memory_space<vmem>>) attributes {dimension_semantics = [#tpu.dimension_semantics<arbitrary>], iteration_bounds = array<i64: 2>, scalar_prefetch = 0 : i64, scratch_operands = 1 : i64, tpu.core_type = #tpu.core_type<tc>, window_params = [{pipeline_mode = #tpu.pipeline_mode<synchronous>, transform_indices = @transform_0, window_bounds = array<i64: 48, 1>}, {pipeline_mode = #tpu.pipeline_mode<synchronous>, transform_indices = @transform_1, window_bounds = array<i64: 2, 48, 64>}, {transform_indices = @transform_2, window_bounds = array<i64: 1, 1, 64>}, {transform_indices = @transform_3, window_bounds = array<i64: 1, 1, 64>}, {transform_indices = @transform_4, window_bounds = array<i64: 1, 9, 64, 64>}, {pipeline_mode = #tpu.pipeline_mode<synchronous>, transform_indices = @transform_5, window_bounds = array<i64: 2, 48, 64>}, {pipeline_mode = #tpu.pipeline_mode<synchronous>, transform_indices = @transform_6, window_bounds = array<i64: 1, 64>}, {pipeline_mode = #tpu.pipeline_mode<synchronous>, transform_indices = @transform_7, window_bounds = array<i64: 1, 64>}]} {
    %c0_i32 = arith.constant 0 : i32
    %0 = arith.cmpi eq, %arg0, %c0_i32 : i32
    %1 = arith.extui %0 : i1 to i32
    %c0_i32_0 = arith.constant 0 : i32
    %2 = arith.cmpi ne, %1, %c0_i32_0 : i32
    scf.if %2 {
      %c0_219 = arith.constant 0 : index
      %c0_220 = arith.constant 0 : index
      %c0_221 = arith.constant 0 : index
      %339 = vector.load %arg2[%c0_219, %c0_220, %c0_221] : memref<2x48x64xf32, #tpu.memory_space<vmem>>, vector<2x48x64xf32>
      %c0_222 = arith.constant 0 : index
      %c0_223 = arith.constant 0 : index
      %c0_224 = arith.constant 0 : index
      %340 = vector.load %arg9[%c0_222, %c0_223, %c0_224] : memref<2x48x64xf32, #tpu.memory_space<vmem>>, vector<2x48x64xf32>
      tpu.vector_store %arg9[%c0_222, %c0_223, %c0_224], %339 {strides = array<i32>} : memref<2x48x64xf32, #tpu.memory_space<vmem>>, vector<2x48x64xf32>,
    } else {
    }
    %c0 = arith.constant 0 : index
    %c0_1 = arith.constant 0 : index
    %c0_2 = arith.constant 0 : index
    %3 = vector.load %arg9[%c0, %c0_1, %c0_2] : memref<2x48x64xf32, #tpu.memory_space<vmem>>, vector<2x48x64xf32>
    %cst = arith.constant dense<0.000000e+00> : vector<48x64xf32>
    %4 = vector.multi_reduction <add>, %3, %cst [0] : vector<2x48x64xf32> to vector<48x64xf32>
    %cst_3 = arith.constant dense<0.000000e+00> : vector<64xf32>
    %5 = vector.multi_reduction <add>, %4, %cst_3 [0] : vector<48x64xf32> to vector<64xf32>
    %6 = vector.shape_cast %5 : vector<64xf32> to vector<1x64xf32>
    %cst_4 = arith.constant 3.125000e-02 : f32
    %7 = vector.broadcast %cst_4 : f32 to vector<1x64xf32>
    %8 = arith.mulf %6, %7 : vector<1x64xf32>
    %9 = arith.mulf %3, %3 : vector<2x48x64xf32>
    %cst_5 = arith.constant dense<0.000000e+00> : vector<48x64xf32>
    %10 = vector.multi_reduction <add>, %9, %cst_5 [0] : vector<2x48x64xf32> to vector<48x64xf32>
    %cst_6 = arith.constant dense<0.000000e+00> : vector<64xf32>
    %11 = vector.multi_reduction <add>, %10, %cst_6 [0] : vector<48x64xf32> to vector<64xf32>
    %12 = vector.shape_cast %11 : vector<64xf32> to vector<1x64xf32>
    %cst_7 = arith.constant 3.125000e-02 : f32
    %13 = vector.broadcast %cst_7 : f32 to vector<1x64xf32>
    %14 = arith.mulf %12, %13 : vector<1x64xf32>
    %15 = arith.mulf %8, %8 : vector<1x64xf32>
    %16 = arith.subf %14, %15 : vector<1x64xf32>
    %cst_8 = arith.constant 0.000000e+00 : f32
    %17 = vector.broadcast %cst_8 : f32 to vector<1x64xf32>
    %18 = arith.maximumf %16, %17 : vector<1x64xf32>
    %c0_9 = arith.constant 0 : index
    %c0_10 = arith.constant 0 : index
    %c0_11 = arith.constant 0 : index
    %19 = vector.load %arg3[%c0_9, %c0_10, %c0_11] : memref<1x1x64xf32, #tpu.memory_space<vmem>>, vector<1x1x64xf32>
    %20 = vector.shape_cast %19 : vector<1x1x64xf32> to vector<1x64xf32>
    %cst_12 = arith.constant 9.99999974E-6 : f32
    %21 = vector.broadcast %cst_12 : f32 to vector<1x64xf32>
    %22 = arith.addf %18, %21 : vector<1x64xf32>
    %23 = math.rsqrt %22 : vector<1x64xf32>
    %24 = arith.mulf %20, %23 : vector<1x64xf32>
    %c0_13 = arith.constant 0 : index
    %c0_14 = arith.constant 0 : index
    %c0_15 = arith.constant 0 : index
    %25 = vector.load %arg4[%c0_13, %c0_14, %c0_15] : memref<1x1x64xf32, #tpu.memory_space<vmem>>, vector<1x1x64xf32>
    %26 = vector.shape_cast %25 : vector<1x1x64xf32> to vector<1x64xf32>
    %27 = arith.mulf %8, %24 : vector<1x64xf32>
    %28 = arith.subf %26, %27 : vector<1x64xf32>
    %c8 = arith.constant 8 : index
    %c0_16 = arith.constant 0 : index
    %29 = vector.load %arg1[%c8, %c0_16] : memref<48x1xf32, #tpu.memory_space<vmem>>, vector<24x1xf32>
    %cst_17 = arith.constant 0.000000e+00 : f32
    %30 = vector.broadcast %cst_17 : f32 to vector<24x64xf32>
    %c0_18 = arith.constant 0 : index
    %c1 = arith.constant 1 : index
    %c0_19 = arith.constant 0 : index
    %31 = vector.load %arg9[%c0_18, %c1, %c0_19] : memref<2x48x64xf32, #tpu.memory_space<vmem>>, vector<1x24x64xf32>
    %32 = vector.shape_cast %31 : vector<1x24x64xf32> to vector<24x64xf32>
    %c1_20 = arith.constant 1 : index
    %c0_21 = arith.constant 0 : index
    %33 = vector.load %arg1[%c1_20, %c0_21] : memref<48x1xf32, #tpu.memory_space<vmem>>, vector<24x1xf32>
    %34 = vector.broadcast %24 : vector<1x64xf32> to vector<24x64xf32>
    %35 = arith.mulf %32, %34 : vector<24x64xf32>
    %36 = vector.broadcast %28 : vector<1x64xf32> to vector<24x64xf32>
    %37 = arith.addf %35, %36 : vector<24x64xf32>
    %cst_22 = arith.constant 0.000000e+00 : f32
    %38 = vector.broadcast %cst_22 : f32 to vector<24x64xf32>
    %39 = arith.maximumf %37, %38 : vector<24x64xf32>
    %40 = vector.broadcast %33 : vector<24x1xf32> to vector<24x64xf32>
    %41 = arith.mulf %39, %40 : vector<24x64xf32>
    %42 = arith.truncf %41 : vector<24x64xf32> to vector<24x64xbf16>
    %c0_23 = arith.constant 0 : index
    %c0_24 = arith.constant 0 : index
    %c0_25 = arith.constant 0 : index
    %c0_26 = arith.constant 0 : index
    %43 = vector.load %arg5[%c0_23, %c0_24, %c0_25, %c0_26] : memref<1x9x64x64xbf16, #tpu.memory_space<vmem>>, vector<1x1x64x64xbf16>
    %44 = vector.shape_cast %43 : vector<1x1x64x64xbf16> to vector<64x64xbf16>
    %cst_27 = arith.constant dense<0.000000e+00> : vector<24x64xf32>
    %45 = tpu.matmul %42, %44, %cst_27 {dimension_numbers = #tpu.dot_dimension_numbers<[1], [0], [0], [1], [0, 0, 1, 1], [], []>} : vector<24x64xbf16>, vector<64x64xbf16>, vector<24x64xf32> -> vector<24x64xf32>
    %46 = arith.addf %30, %45 : vector<24x64xf32>
    %c0_28 = arith.constant 0 : index
    %c2 = arith.constant 2 : index
    %c0_29 = arith.constant 0 : index
    %47 = vector.load %arg9[%c0_28, %c2, %c0_29] : memref<2x48x64xf32, #tpu.memory_space<vmem>>, vector<1x24x64xf32>
    %48 = vector.shape_cast %47 : vector<1x24x64xf32> to vector<24x64xf32>
    %c2_30 = arith.constant 2 : index
    %c0_31 = arith.constant 0 : index
    %49 = vector.load %arg1[%c2_30, %c0_31] : memref<48x1xf32, #tpu.memory_space<vmem>>, vector<24x1xf32>
    %50 = vector.broadcast %24 : vector<1x64xf32> to vector<24x64xf32>
    %51 = arith.mulf %48, %50 : vector<24x64xf32>
    %52 = vector.broadcast %28 : vector<1x64xf32> to vector<24x64xf32>
    %53 = arith.addf %51, %52 : vector<24x64xf32>
    %cst_32 = arith.constant 0.000000e+00 : f32
    %54 = vector.broadcast %cst_32 : f32 to vector<24x64xf32>
    %55 = arith.maximumf %53, %54 : vector<24x64xf32>
    %56 = vector.broadcast %49 : vector<24x1xf32> to vector<24x64xf32>
    %57 = arith.mulf %55, %56 : vector<24x64xf32>
    %58 = arith.truncf %57 : vector<24x64xf32> to vector<24x64xbf16>
    %c0_33 = arith.constant 0 : index
    %c1_34 = arith.constant 1 : index
    %c0_35 = arith.constant 0 : index
    %c0_36 = arith.constant 0 : index
    %59 = vector.load %arg5[%c0_33, %c1_34, %c0_35, %c0_36] : memref<1x9x64x64xbf16, #tpu.memory_space<vmem>>, vector<1x1x64x64xbf16>
    %60 = vector.shape_cast %59 : vector<1x1x64x64xbf16> to vector<64x64xbf16>
    %cst_37 = arith.constant dense<0.000000e+00> : vector<24x64xf32>
    %61 = tpu.matmul %58, %60, %cst_37 {dimension_numbers = #tpu.dot_dimension_numbers<[1], [0], [0], [1], [0, 0, 1, 1], [], []>} : vector<24x64xbf16>, vector<64x64xbf16>, vector<24x64xf32> -> vector<24x64xf32>
    %62 = arith.addf %46, %61 : vector<24x64xf32>
    %c0_38 = arith.constant 0 : index
    %c3 = arith.constant 3 : index
    %c0_39 = arith.constant 0 : index
    %63 = vector.load %arg9[%c0_38, %c3, %c0_39] : memref<2x48x64xf32, #tpu.memory_space<vmem>>, vector<1x24x64xf32>
    %64 = vector.shape_cast %63 : vector<1x24x64xf32> to vector<24x64xf32>
    %c3_40 = arith.constant 3 : index
    %c0_41 = arith.constant 0 : index
    %65 = vector.load %arg1[%c3_40, %c0_41] : memref<48x1xf32, #tpu.memory_space<vmem>>, vector<24x1xf32>
    %66 = vector.broadcast %24 : vector<1x64xf32> to vector<24x64xf32>
    %67 = arith.mulf %64, %66 : vector<24x64xf32>
    %68 = vector.broadcast %28 : vector<1x64xf32> to vector<24x64xf32>
    %69 = arith.addf %67, %68 : vector<24x64xf32>
    %cst_42 = arith.constant 0.000000e+00 : f32
    %70 = vector.broadcast %cst_42 : f32 to vector<24x64xf32>
    %71 = arith.maximumf %69, %70 : vector<24x64xf32>
    %72 = vector.broadcast %65 : vector<24x1xf32> to vector<24x64xf32>
    %73 = arith.mulf %71, %72 : vector<24x64xf32>
    %74 = arith.truncf %73 : vector<24x64xf32> to vector<24x64xbf16>
    %c0_43 = arith.constant 0 : index
    %c2_44 = arith.constant 2 : index
    %c0_45 = arith.constant 0 : index
    %c0_46 = arith.constant 0 : index
    %75 = vector.load %arg5[%c0_43, %c2_44, %c0_45, %c0_46] : memref<1x9x64x64xbf16, #tpu.memory_space<vmem>>, vector<1x1x64x64xbf16>
    %76 = vector.shape_cast %75 : vector<1x1x64x64xbf16> to vector<64x64xbf16>
    %cst_47 = arith.constant dense<0.000000e+00> : vector<24x64xf32>
    %77 = tpu.matmul %74, %76, %cst_47 {dimension_numbers = #tpu.dot_dimension_numbers<[1], [0], [0], [1], [0, 0, 1, 1], [], []>} : vector<24x64xbf16>, vector<64x64xbf16>, vector<24x64xf32> -> vector<24x64xf32>
    %78 = arith.addf %62, %77 : vector<24x64xf32>
    %c0_48 = arith.constant 0 : index
    %c7 = arith.constant 7 : index
    %c0_49 = arith.constant 0 : index
    %79 = vector.load %arg9[%c0_48, %c7, %c0_49] : memref<2x48x64xf32, #tpu.memory_space<vmem>>, vector<1x24x64xf32>
    %80 = vector.shape_cast %79 : vector<1x24x64xf32> to vector<24x64xf32>
    %c7_50 = arith.constant 7 : index
    %c0_51 = arith.constant 0 : index
    %81 = vector.load %arg1[%c7_50, %c0_51] : memref<48x1xf32, #tpu.memory_space<vmem>>, vector<24x1xf32>
    %82 = vector.broadcast %24 : vector<1x64xf32> to vector<24x64xf32>
    %83 = arith.mulf %80, %82 : vector<24x64xf32>
    %84 = vector.broadcast %28 : vector<1x64xf32> to vector<24x64xf32>
    %85 = arith.addf %83, %84 : vector<24x64xf32>
    %cst_52 = arith.constant 0.000000e+00 : f32
    %86 = vector.broadcast %cst_52 : f32 to vector<24x64xf32>
    %87 = arith.maximumf %85, %86 : vector<24x64xf32>
    %88 = vector.broadcast %81 : vector<24x1xf32> to vector<24x64xf32>
    %89 = arith.mulf %87, %88 : vector<24x64xf32>
    %90 = arith.truncf %89 : vector<24x64xf32> to vector<24x64xbf16>
    %c0_53 = arith.constant 0 : index
    %c3_54 = arith.constant 3 : index
    %c0_55 = arith.constant 0 : index
    %c0_56 = arith.constant 0 : index
    %91 = vector.load %arg5[%c0_53, %c3_54, %c0_55, %c0_56] : memref<1x9x64x64xbf16, #tpu.memory_space<vmem>>, vector<1x1x64x64xbf16>
    %92 = vector.shape_cast %91 : vector<1x1x64x64xbf16> to vector<64x64xbf16>
    %cst_57 = arith.constant dense<0.000000e+00> : vector<24x64xf32>
    %93 = tpu.matmul %90, %92, %cst_57 {dimension_numbers = #tpu.dot_dimension_numbers<[1], [0], [0], [1], [0, 0, 1, 1], [], []>} : vector<24x64xbf16>, vector<64x64xbf16>, vector<24x64xf32> -> vector<24x64xf32>
    %94 = arith.addf %78, %93 : vector<24x64xf32>
    %c0_58 = arith.constant 0 : index
    %c8_59 = arith.constant 8 : index
    %c0_60 = arith.constant 0 : index
    %95 = vector.load %arg9[%c0_58, %c8_59, %c0_60] : memref<2x48x64xf32, #tpu.memory_space<vmem>>, vector<1x24x64xf32>
    %96 = vector.shape_cast %95 : vector<1x24x64xf32> to vector<24x64xf32>
    %c8_61 = arith.constant 8 : index
    %c0_62 = arith.constant 0 : index
    %97 = vector.load %arg1[%c8_61, %c0_62] : memref<48x1xf32, #tpu.memory_space<vmem>>, vector<24x1xf32>
    %98 = vector.broadcast %24 : vector<1x64xf32> to vector<24x64xf32>
    %99 = arith.mulf %96, %98 : vector<24x64xf32>
    %100 = vector.broadcast %28 : vector<1x64xf32> to vector<24x64xf32>
    %101 = arith.addf %99, %100 : vector<24x64xf32>
    %cst_63 = arith.constant 0.000000e+00 : f32
    %102 = vector.broadcast %cst_63 : f32 to vector<24x64xf32>
    %103 = arith.maximumf %101, %102 : vector<24x64xf32>
    %104 = vector.broadcast %97 : vector<24x1xf32> to vector<24x64xf32>
    %105 = arith.mulf %103, %104 : vector<24x64xf32>
    %106 = arith.truncf %105 : vector<24x64xf32> to vector<24x64xbf16>
    %c0_64 = arith.constant 0 : index
    %c4 = arith.constant 4 : index
    %c0_65 = arith.constant 0 : index
    %c0_66 = arith.constant 0 : index
    %107 = vector.load %arg5[%c0_64, %c4, %c0_65, %c0_66] : memref<1x9x64x64xbf16, #tpu.memory_space<vmem>>, vector<1x1x64x64xbf16>
    %108 = vector.shape_cast %107 : vector<1x1x64x64xbf16> to vector<64x64xbf16>
    %cst_67 = arith.constant dense<0.000000e+00> : vector<24x64xf32>
    %109 = tpu.matmul %106, %108, %cst_67 {dimension_numbers = #tpu.dot_dimension_numbers<[1], [0], [0], [1], [0, 0, 1, 1], [], []>} : vector<24x64xbf16>, vector<64x64xbf16>, vector<24x64xf32> -> vector<24x64xf32>
    %110 = arith.addf %94, %109 : vector<24x64xf32>
    %c0_68 = arith.constant 0 : index
    %c9 = arith.constant 9 : index
    %c0_69 = arith.constant 0 : index
    %111 = vector.load %arg9[%c0_68, %c9, %c0_69] : memref<2x48x64xf32, #tpu.memory_space<vmem>>, vector<1x24x64xf32>
    %112 = vector.shape_cast %111 : vector<1x24x64xf32> to vector<24x64xf32>
    %c9_70 = arith.constant 9 : index
    %c0_71 = arith.constant 0 : index
    %113 = vector.load %arg1[%c9_70, %c0_71] : memref<48x1xf32, #tpu.memory_space<vmem>>, vector<24x1xf32>
    %114 = vector.broadcast %24 : vector<1x64xf32> to vector<24x64xf32>
    %115 = arith.mulf %112, %114 : vector<24x64xf32>
    %116 = vector.broadcast %28 : vector<1x64xf32> to vector<24x64xf32>
    %117 = arith.addf %115, %116 : vector<24x64xf32>
    %cst_72 = arith.constant 0.000000e+00 : f32
    %118 = vector.broadcast %cst_72 : f32 to vector<24x64xf32>
    %119 = arith.maximumf %117, %118 : vector<24x64xf32>
    %120 = vector.broadcast %113 : vector<24x1xf32> to vector<24x64xf32>
    %121 = arith.mulf %119, %120 : vector<24x64xf32>
    %122 = arith.truncf %121 : vector<24x64xf32> to vector<24x64xbf16>
    %c0_73 = arith.constant 0 : index
    %c5 = arith.constant 5 : index
    %c0_74 = arith.constant 0 : index
    %c0_75 = arith.constant 0 : index
    %123 = vector.load %arg5[%c0_73, %c5, %c0_74, %c0_75] : memref<1x9x64x64xbf16, #tpu.memory_space<vmem>>, vector<1x1x64x64xbf16>
    %124 = vector.shape_cast %123 : vector<1x1x64x64xbf16> to vector<64x64xbf16>
    %cst_76 = arith.constant dense<0.000000e+00> : vector<24x64xf32>
    %125 = tpu.matmul %122, %124, %cst_76 {dimension_numbers = #tpu.dot_dimension_numbers<[1], [0], [0], [1], [0, 0, 1, 1], [], []>} : vector<24x64xbf16>, vector<64x64xbf16>, vector<24x64xf32> -> vector<24x64xf32>
    %126 = arith.addf %110, %125 : vector<24x64xf32>
    %c0_77 = arith.constant 0 : index
    %c13 = arith.constant 13 : index
    %c0_78 = arith.constant 0 : index
    %127 = vector.load %arg9[%c0_77, %c13, %c0_78] : memref<2x48x64xf32, #tpu.memory_space<vmem>>, vector<1x24x64xf32>
    %128 = vector.shape_cast %127 : vector<1x24x64xf32> to vector<24x64xf32>
    %c13_79 = arith.constant 13 : index
    %c0_80 = arith.constant 0 : index
    %129 = vector.load %arg1[%c13_79, %c0_80] : memref<48x1xf32, #tpu.memory_space<vmem>>, vector<24x1xf32>
    %130 = vector.broadcast %24 : vector<1x64xf32> to vector<24x64xf32>
    %131 = arith.mulf %128, %130 : vector<24x64xf32>
    %132 = vector.broadcast %28 : vector<1x64xf32> to vector<24x64xf32>
    %133 = arith.addf %131, %132 : vector<24x64xf32>
    %cst_81 = arith.constant 0.000000e+00 : f32
    %134 = vector.broadcast %cst_81 : f32 to vector<24x64xf32>
    %135 = arith.maximumf %133, %134 : vector<24x64xf32>
    %136 = vector.broadcast %129 : vector<24x1xf32> to vector<24x64xf32>
    %137 = arith.mulf %135, %136 : vector<24x64xf32>
    %138 = arith.truncf %137 : vector<24x64xf32> to vector<24x64xbf16>
    %c0_82 = arith.constant 0 : index
    %c6 = arith.constant 6 : index
    %c0_83 = arith.constant 0 : index
    %c0_84 = arith.constant 0 : index
    %139 = vector.load %arg5[%c0_82, %c6, %c0_83, %c0_84] : memref<1x9x64x64xbf16, #tpu.memory_space<vmem>>, vector<1x1x64x64xbf16>
    %140 = vector.shape_cast %139 : vector<1x1x64x64xbf16> to vector<64x64xbf16>
    %cst_85 = arith.constant dense<0.000000e+00> : vector<24x64xf32>
    %141 = tpu.matmul %138, %140, %cst_85 {dimension_numbers = #tpu.dot_dimension_numbers<[1], [0], [0], [1], [0, 0, 1, 1], [], []>} : vector<24x64xbf16>, vector<64x64xbf16>, vector<24x64xf32> -> vector<24x64xf32>
    %142 = arith.addf %126, %141 : vector<24x64xf32>
    %c0_86 = arith.constant 0 : index
    %c14 = arith.constant 14 : index
    %c0_87 = arith.constant 0 : index
    %143 = vector.load %arg9[%c0_86, %c14, %c0_87] : memref<2x48x64xf32, #tpu.memory_space<vmem>>, vector<1x24x64xf32>
    %144 = vector.shape_cast %143 : vector<1x24x64xf32> to vector<24x64xf32>
    %c14_88 = arith.constant 14 : index
    %c0_89 = arith.constant 0 : index
    %145 = vector.load %arg1[%c14_88, %c0_89] : memref<48x1xf32, #tpu.memory_space<vmem>>, vector<24x1xf32>
    %146 = vector.broadcast %24 : vector<1x64xf32> to vector<24x64xf32>
    %147 = arith.mulf %144, %146 : vector<24x64xf32>
    %148 = vector.broadcast %28 : vector<1x64xf32> to vector<24x64xf32>
    %149 = arith.addf %147, %148 : vector<24x64xf32>
    %cst_90 = arith.constant 0.000000e+00 : f32
    %150 = vector.broadcast %cst_90 : f32 to vector<24x64xf32>
    %151 = arith.maximumf %149, %150 : vector<24x64xf32>
    %152 = vector.broadcast %145 : vector<24x1xf32> to vector<24x64xf32>
    %153 = arith.mulf %151, %152 : vector<24x64xf32>
    %154 = arith.truncf %153 : vector<24x64xf32> to vector<24x64xbf16>
    %c0_91 = arith.constant 0 : index
    %c7_92 = arith.constant 7 : index
    %c0_93 = arith.constant 0 : index
    %c0_94 = arith.constant 0 : index
    %155 = vector.load %arg5[%c0_91, %c7_92, %c0_93, %c0_94] : memref<1x9x64x64xbf16, #tpu.memory_space<vmem>>, vector<1x1x64x64xbf16>
    %156 = vector.shape_cast %155 : vector<1x1x64x64xbf16> to vector<64x64xbf16>
    %cst_95 = arith.constant dense<0.000000e+00> : vector<24x64xf32>
    %157 = tpu.matmul %154, %156, %cst_95 {dimension_numbers = #tpu.dot_dimension_numbers<[1], [0], [0], [1], [0, 0, 1, 1], [], []>} : vector<24x64xbf16>, vector<64x64xbf16>, vector<24x64xf32> -> vector<24x64xf32>
    %158 = arith.addf %142, %157 : vector<24x64xf32>
    %c0_96 = arith.constant 0 : index
    %c15 = arith.constant 15 : index
    %c0_97 = arith.constant 0 : index
    %159 = vector.load %arg9[%c0_96, %c15, %c0_97] : memref<2x48x64xf32, #tpu.memory_space<vmem>>, vector<1x24x64xf32>
    %160 = vector.shape_cast %159 : vector<1x24x64xf32> to vector<24x64xf32>
    %c15_98 = arith.constant 15 : index
    %c0_99 = arith.constant 0 : index
    %161 = vector.load %arg1[%c15_98, %c0_99] : memref<48x1xf32, #tpu.memory_space<vmem>>, vector<24x1xf32>
    %162 = vector.broadcast %24 : vector<1x64xf32> to vector<24x64xf32>
    %163 = arith.mulf %160, %162 : vector<24x64xf32>
    %164 = vector.broadcast %28 : vector<1x64xf32> to vector<24x64xf32>
    %165 = arith.addf %163, %164 : vector<24x64xf32>
    %cst_100 = arith.constant 0.000000e+00 : f32
    %166 = vector.broadcast %cst_100 : f32 to vector<24x64xf32>
    %167 = arith.maximumf %165, %166 : vector<24x64xf32>
    %168 = vector.broadcast %161 : vector<24x1xf32> to vector<24x64xf32>
    %169 = arith.mulf %167, %168 : vector<24x64xf32>
    %170 = arith.truncf %169 : vector<24x64xf32> to vector<24x64xbf16>
    %c0_101 = arith.constant 0 : index
    %c8_102 = arith.constant 8 : index
    %c0_103 = arith.constant 0 : index
    %c0_104 = arith.constant 0 : index
    %171 = vector.load %arg5[%c0_101, %c8_102, %c0_103, %c0_104] : memref<1x9x64x64xbf16, #tpu.memory_space<vmem>>, vector<1x1x64x64xbf16>
    %172 = vector.shape_cast %171 : vector<1x1x64x64xbf16> to vector<64x64xbf16>
    %cst_105 = arith.constant dense<0.000000e+00> : vector<24x64xf32>
    %173 = tpu.matmul %170, %172, %cst_105 {dimension_numbers = #tpu.dot_dimension_numbers<[1], [0], [0], [1], [0, 0, 1, 1], [], []>} : vector<24x64xbf16>, vector<64x64xbf16>, vector<24x64xf32> -> vector<24x64xf32>
    %174 = arith.addf %158, %173 : vector<24x64xf32>
    %c0_106 = arith.constant 0 : index
    %c8_107 = arith.constant 8 : index
    %c0_108 = arith.constant 0 : index
    %175 = vector.load %arg9[%c0_106, %c8_107, %c0_108] : memref<2x48x64xf32, #tpu.memory_space<vmem>>, vector<1x24x64xf32>
    %176 = vector.shape_cast %175 : vector<1x24x64xf32> to vector<24x64xf32>
    %177 = vector.broadcast %29 : vector<24x1xf32> to vector<24x64xf32>
    %178 = arith.mulf %174, %177 : vector<24x64xf32>
    %179 = arith.addf %176, %178 : vector<24x64xf32>
    %c0_109 = arith.constant 0 : index
    %c8_110 = arith.constant 8 : index
    %c0_111 = arith.constant 0 : index
    %180 = vector.load %arg9[%c0_109, %c8_110, %c0_111] : memref<2x48x64xf32, #tpu.memory_space<vmem>>, vector<1x24x64xf32>
    %181 = vector.shape_cast %180 : vector<1x24x64xf32> to vector<24x64xf32>
    %182 = vector.shape_cast %179 : vector<24x64xf32> to vector<1x24x64xf32>
    tpu.vector_store %arg9[%c0_109, %c8_110, %c0_111], %182 {strides = array<i32>} : memref<2x48x64xf32, #tpu.memory_space<vmem>>, vector<1x24x64xf32>,
    %cst_112 = arith.constant 0.000000e+00 : f32
    %183 = vector.broadcast %cst_112 : f32 to vector<24x64xf32>
    %c1_113 = arith.constant 1 : index
    %c1_114 = arith.constant 1 : index
    %c0_115 = arith.constant 0 : index
    %184 = vector.load %arg9[%c1_113, %c1_114, %c0_115] : memref<2x48x64xf32, #tpu.memory_space<vmem>>, vector<1x24x64xf32>
    %185 = vector.shape_cast %184 : vector<1x24x64xf32> to vector<24x64xf32>
    %c1_116 = arith.constant 1 : index
    %c0_117 = arith.constant 0 : index
    %186 = vector.load %arg1[%c1_116, %c0_117] : memref<48x1xf32, #tpu.memory_space<vmem>>, vector<24x1xf32>
    %187 = vector.broadcast %24 : vector<1x64xf32> to vector<24x64xf32>
    %188 = arith.mulf %185, %187 : vector<24x64xf32>
    %189 = vector.broadcast %28 : vector<1x64xf32> to vector<24x64xf32>
    %190 = arith.addf %188, %189 : vector<24x64xf32>
    %cst_118 = arith.constant 0.000000e+00 : f32
    %191 = vector.broadcast %cst_118 : f32 to vector<24x64xf32>
    %192 = arith.maximumf %190, %191 : vector<24x64xf32>
    %193 = vector.broadcast %186 : vector<24x1xf32> to vector<24x64xf32>
    %194 = arith.mulf %192, %193 : vector<24x64xf32>
    %195 = arith.truncf %194 : vector<24x64xf32> to vector<24x64xbf16>
    %c0_119 = arith.constant 0 : index
    %c0_120 = arith.constant 0 : index
    %c0_121 = arith.constant 0 : index
    %c0_122 = arith.constant 0 : index
    %196 = vector.load %arg5[%c0_119, %c0_120, %c0_121, %c0_122] : memref<1x9x64x64xbf16, #tpu.memory_space<vmem>>, vector<1x1x64x64xbf16>
    %197 = vector.shape_cast %196 : vector<1x1x64x64xbf16> to vector<64x64xbf16>
    %cst_123 = arith.constant dense<0.000000e+00> : vector<24x64xf32>
    %198 = tpu.matmul %195, %197, %cst_123 {dimension_numbers = #tpu.dot_dimension_numbers<[1], [0], [0], [1], [0, 0, 1, 1], [], []>} : vector<24x64xbf16>, vector<64x64xbf16>, vector<24x64xf32> -> vector<24x64xf32>
    %199 = arith.addf %183, %198 : vector<24x64xf32>
    %c1_124 = arith.constant 1 : index
    %c2_125 = arith.constant 2 : index
    %c0_126 = arith.constant 0 : index
    %200 = vector.load %arg9[%c1_124, %c2_125, %c0_126] : memref<2x48x64xf32, #tpu.memory_space<vmem>>, vector<1x24x64xf32>
    %201 = vector.shape_cast %200 : vector<1x24x64xf32> to vector<24x64xf32>
    %c2_127 = arith.constant 2 : index
    %c0_128 = arith.constant 0 : index
    %202 = vector.load %arg1[%c2_127, %c0_128] : memref<48x1xf32, #tpu.memory_space<vmem>>, vector<24x1xf32>
    %203 = vector.broadcast %24 : vector<1x64xf32> to vector<24x64xf32>
    %204 = arith.mulf %201, %203 : vector<24x64xf32>
    %205 = vector.broadcast %28 : vector<1x64xf32> to vector<24x64xf32>
    %206 = arith.addf %204, %205 : vector<24x64xf32>
    %cst_129 = arith.constant 0.000000e+00 : f32
    %207 = vector.broadcast %cst_129 : f32 to vector<24x64xf32>
    %208 = arith.maximumf %206, %207 : vector<24x64xf32>
    %209 = vector.broadcast %202 : vector<24x1xf32> to vector<24x64xf32>
    %210 = arith.mulf %208, %209 : vector<24x64xf32>
    %211 = arith.truncf %210 : vector<24x64xf32> to vector<24x64xbf16>
    %c0_130 = arith.constant 0 : index
    %c1_131 = arith.constant 1 : index
    %c0_132 = arith.constant 0 : index
    %c0_133 = arith.constant 0 : index
    %212 = vector.load %arg5[%c0_130, %c1_131, %c0_132, %c0_133] : memref<1x9x64x64xbf16, #tpu.memory_space<vmem>>, vector<1x1x64x64xbf16>
    %213 = vector.shape_cast %212 : vector<1x1x64x64xbf16> to vector<64x64xbf16>
    %cst_134 = arith.constant dense<0.000000e+00> : vector<24x64xf32>
    %214 = tpu.matmul %211, %213, %cst_134 {dimension_numbers = #tpu.dot_dimension_numbers<[1], [0], [0], [1], [0, 0, 1, 1], [], []>} : vector<24x64xbf16>, vector<64x64xbf16>, vector<24x64xf32> -> vector<24x64xf32>
    %215 = arith.addf %199, %214 : vector<24x64xf32>
    %c1_135 = arith.constant 1 : index
    %c3_136 = arith.constant 3 : index
    %c0_137 = arith.constant 0 : index
    %216 = vector.load %arg9[%c1_135, %c3_136, %c0_137] : memref<2x48x64xf32, #tpu.memory_space<vmem>>, vector<1x24x64xf32>
    %217 = vector.shape_cast %216 : vector<1x24x64xf32> to vector<24x64xf32>
    %c3_138 = arith.constant 3 : index
    %c0_139 = arith.constant 0 : index
    %218 = vector.load %arg1[%c3_138, %c0_139] : memref<48x1xf32, #tpu.memory_space<vmem>>, vector<24x1xf32>
    %219 = vector.broadcast %24 : vector<1x64xf32> to vector<24x64xf32>
    %220 = arith.mulf %217, %219 : vector<24x64xf32>
    %221 = vector.broadcast %28 : vector<1x64xf32> to vector<24x64xf32>
    %222 = arith.addf %220, %221 : vector<24x64xf32>
    %cst_140 = arith.constant 0.000000e+00 : f32
    %223 = vector.broadcast %cst_140 : f32 to vector<24x64xf32>
    %224 = arith.maximumf %222, %223 : vector<24x64xf32>
    %225 = vector.broadcast %218 : vector<24x1xf32> to vector<24x64xf32>
    %226 = arith.mulf %224, %225 : vector<24x64xf32>
    %227 = arith.truncf %226 : vector<24x64xf32> to vector<24x64xbf16>
    %c0_141 = arith.constant 0 : index
    %c2_142 = arith.constant 2 : index
    %c0_143 = arith.constant 0 : index
    %c0_144 = arith.constant 0 : index
    %228 = vector.load %arg5[%c0_141, %c2_142, %c0_143, %c0_144] : memref<1x9x64x64xbf16, #tpu.memory_space<vmem>>, vector<1x1x64x64xbf16>
    %229 = vector.shape_cast %228 : vector<1x1x64x64xbf16> to vector<64x64xbf16>
    %cst_145 = arith.constant dense<0.000000e+00> : vector<24x64xf32>
    %230 = tpu.matmul %227, %229, %cst_145 {dimension_numbers = #tpu.dot_dimension_numbers<[1], [0], [0], [1], [0, 0, 1, 1], [], []>} : vector<24x64xbf16>, vector<64x64xbf16>, vector<24x64xf32> -> vector<24x64xf32>
    %231 = arith.addf %215, %230 : vector<24x64xf32>
    %c1_146 = arith.constant 1 : index
    %c7_147 = arith.constant 7 : index
    %c0_148 = arith.constant 0 : index
    %232 = vector.load %arg9[%c1_146, %c7_147, %c0_148] : memref<2x48x64xf32, #tpu.memory_space<vmem>>, vector<1x24x64xf32>
    %233 = vector.shape_cast %232 : vector<1x24x64xf32> to vector<24x64xf32>
    %c7_149 = arith.constant 7 : index
    %c0_150 = arith.constant 0 : index
    %234 = vector.load %arg1[%c7_149, %c0_150] : memref<48x1xf32, #tpu.memory_space<vmem>>, vector<24x1xf32>
    %235 = vector.broadcast %24 : vector<1x64xf32> to vector<24x64xf32>
    %236 = arith.mulf %233, %235 : vector<24x64xf32>
    %237 = vector.broadcast %28 : vector<1x64xf32> to vector<24x64xf32>
    %238 = arith.addf %236, %237 : vector<24x64xf32>
    %cst_151 = arith.constant 0.000000e+00 : f32
    %239 = vector.broadcast %cst_151 : f32 to vector<24x64xf32>
    %240 = arith.maximumf %238, %239 : vector<24x64xf32>
    %241 = vector.broadcast %234 : vector<24x1xf32> to vector<24x64xf32>
    %242 = arith.mulf %240, %241 : vector<24x64xf32>
    %243 = arith.truncf %242 : vector<24x64xf32> to vector<24x64xbf16>
    %c0_152 = arith.constant 0 : index
    %c3_153 = arith.constant 3 : index
    %c0_154 = arith.constant 0 : index
    %c0_155 = arith.constant 0 : index
    %244 = vector.load %arg5[%c0_152, %c3_153, %c0_154, %c0_155] : memref<1x9x64x64xbf16, #tpu.memory_space<vmem>>, vector<1x1x64x64xbf16>
    %245 = vector.shape_cast %244 : vector<1x1x64x64xbf16> to vector<64x64xbf16>
    %cst_156 = arith.constant dense<0.000000e+00> : vector<24x64xf32>
    %246 = tpu.matmul %243, %245, %cst_156 {dimension_numbers = #tpu.dot_dimension_numbers<[1], [0], [0], [1], [0, 0, 1, 1], [], []>} : vector<24x64xbf16>, vector<64x64xbf16>, vector<24x64xf32> -> vector<24x64xf32>
    %247 = arith.addf %231, %246 : vector<24x64xf32>
    %c1_157 = arith.constant 1 : index
    %c8_158 = arith.constant 8 : index
    %c0_159 = arith.constant 0 : index
    %248 = vector.load %arg9[%c1_157, %c8_158, %c0_159] : memref<2x48x64xf32, #tpu.memory_space<vmem>>, vector<1x24x64xf32>
    %249 = vector.shape_cast %248 : vector<1x24x64xf32> to vector<24x64xf32>
    %c8_160 = arith.constant 8 : index
    %c0_161 = arith.constant 0 : index
    %250 = vector.load %arg1[%c8_160, %c0_161] : memref<48x1xf32, #tpu.memory_space<vmem>>, vector<24x1xf32>
    %251 = vector.broadcast %24 : vector<1x64xf32> to vector<24x64xf32>
    %252 = arith.mulf %249, %251 : vector<24x64xf32>
    %253 = vector.broadcast %28 : vector<1x64xf32> to vector<24x64xf32>
    %254 = arith.addf %252, %253 : vector<24x64xf32>
    %cst_162 = arith.constant 0.000000e+00 : f32
    %255 = vector.broadcast %cst_162 : f32 to vector<24x64xf32>
    %256 = arith.maximumf %254, %255 : vector<24x64xf32>
    %257 = vector.broadcast %250 : vector<24x1xf32> to vector<24x64xf32>
    %258 = arith.mulf %256, %257 : vector<24x64xf32>
    %259 = arith.truncf %258 : vector<24x64xf32> to vector<24x64xbf16>
    %c0_163 = arith.constant 0 : index
    %c4_164 = arith.constant 4 : index
    %c0_165 = arith.constant 0 : index
    %c0_166 = arith.constant 0 : index
    %260 = vector.load %arg5[%c0_163, %c4_164, %c0_165, %c0_166] : memref<1x9x64x64xbf16, #tpu.memory_space<vmem>>, vector<1x1x64x64xbf16>
    %261 = vector.shape_cast %260 : vector<1x1x64x64xbf16> to vector<64x64xbf16>
    %cst_167 = arith.constant dense<0.000000e+00> : vector<24x64xf32>
    %262 = tpu.matmul %259, %261, %cst_167 {dimension_numbers = #tpu.dot_dimension_numbers<[1], [0], [0], [1], [0, 0, 1, 1], [], []>} : vector<24x64xbf16>, vector<64x64xbf16>, vector<24x64xf32> -> vector<24x64xf32>
    %263 = arith.addf %247, %262 : vector<24x64xf32>
    %c1_168 = arith.constant 1 : index
    %c9_169 = arith.constant 9 : index
    %c0_170 = arith.constant 0 : index
    %264 = vector.load %arg9[%c1_168, %c9_169, %c0_170] : memref<2x48x64xf32, #tpu.memory_space<vmem>>, vector<1x24x64xf32>
    %265 = vector.shape_cast %264 : vector<1x24x64xf32> to vector<24x64xf32>
    %c9_171 = arith.constant 9 : index
    %c0_172 = arith.constant 0 : index
    %266 = vector.load %arg1[%c9_171, %c0_172] : memref<48x1xf32, #tpu.memory_space<vmem>>, vector<24x1xf32>
    %267 = vector.broadcast %24 : vector<1x64xf32> to vector<24x64xf32>
    %268 = arith.mulf %265, %267 : vector<24x64xf32>
    %269 = vector.broadcast %28 : vector<1x64xf32> to vector<24x64xf32>
    %270 = arith.addf %268, %269 : vector<24x64xf32>
    %cst_173 = arith.constant 0.000000e+00 : f32
    %271 = vector.broadcast %cst_173 : f32 to vector<24x64xf32>
    %272 = arith.maximumf %270, %271 : vector<24x64xf32>
    %273 = vector.broadcast %266 : vector<24x1xf32> to vector<24x64xf32>
    %274 = arith.mulf %272, %273 : vector<24x64xf32>
    %275 = arith.truncf %274 : vector<24x64xf32> to vector<24x64xbf16>
    %c0_174 = arith.constant 0 : index
    %c5_175 = arith.constant 5 : index
    %c0_176 = arith.constant 0 : index
    %c0_177 = arith.constant 0 : index
    %276 = vector.load %arg5[%c0_174, %c5_175, %c0_176, %c0_177] : memref<1x9x64x64xbf16, #tpu.memory_space<vmem>>, vector<1x1x64x64xbf16>
    %277 = vector.shape_cast %276 : vector<1x1x64x64xbf16> to vector<64x64xbf16>
    %cst_178 = arith.constant dense<0.000000e+00> : vector<24x64xf32>
    %278 = tpu.matmul %275, %277, %cst_178 {dimension_numbers = #tpu.dot_dimension_numbers<[1], [0], [0], [1], [0, 0, 1, 1], [], []>} : vector<24x64xbf16>, vector<64x64xbf16>, vector<24x64xf32> -> vector<24x64xf32>
    %279 = arith.addf %263, %278 : vector<24x64xf32>
    %c1_179 = arith.constant 1 : index
    %c13_180 = arith.constant 13 : index
    %c0_181 = arith.constant 0 : index
    %280 = vector.load %arg9[%c1_179, %c13_180, %c0_181] : memref<2x48x64xf32, #tpu.memory_space<vmem>>, vector<1x24x64xf32>
    %281 = vector.shape_cast %280 : vector<1x24x64xf32> to vector<24x64xf32>
    %c13_182 = arith.constant 13 : index
    %c0_183 = arith.constant 0 : index
    %282 = vector.load %arg1[%c13_182, %c0_183] : memref<48x1xf32, #tpu.memory_space<vmem>>, vector<24x1xf32>
    %283 = vector.broadcast %24 : vector<1x64xf32> to vector<24x64xf32>
    %284 = arith.mulf %281, %283 : vector<24x64xf32>
    %285 = vector.broadcast %28 : vector<1x64xf32> to vector<24x64xf32>
    %286 = arith.addf %284, %285 : vector<24x64xf32>
    %cst_184 = arith.constant 0.000000e+00 : f32
    %287 = vector.broadcast %cst_184 : f32 to vector<24x64xf32>
    %288 = arith.maximumf %286, %287 : vector<24x64xf32>
    %289 = vector.broadcast %282 : vector<24x1xf32> to vector<24x64xf32>
    %290 = arith.mulf %288, %289 : vector<24x64xf32>
    %291 = arith.truncf %290 : vector<24x64xf32> to vector<24x64xbf16>
    %c0_185 = arith.constant 0 : index
    %c6_186 = arith.constant 6 : index
    %c0_187 = arith.constant 0 : index
    %c0_188 = arith.constant 0 : index
    %292 = vector.load %arg5[%c0_185, %c6_186, %c0_187, %c0_188] : memref<1x9x64x64xbf16, #tpu.memory_space<vmem>>, vector<1x1x64x64xbf16>
    %293 = vector.shape_cast %292 : vector<1x1x64x64xbf16> to vector<64x64xbf16>
    %cst_189 = arith.constant dense<0.000000e+00> : vector<24x64xf32>
    %294 = tpu.matmul %291, %293, %cst_189 {dimension_numbers = #tpu.dot_dimension_numbers<[1], [0], [0], [1], [0, 0, 1, 1], [], []>} : vector<24x64xbf16>, vector<64x64xbf16>, vector<24x64xf32> -> vector<24x64xf32>
    %295 = arith.addf %279, %294 : vector<24x64xf32>
    %c1_190 = arith.constant 1 : index
    %c14_191 = arith.constant 14 : index
    %c0_192 = arith.constant 0 : index
    %296 = vector.load %arg9[%c1_190, %c14_191, %c0_192] : memref<2x48x64xf32, #tpu.memory_space<vmem>>, vector<1x24x64xf32>
    %297 = vector.shape_cast %296 : vector<1x24x64xf32> to vector<24x64xf32>
    %c14_193 = arith.constant 14 : index
    %c0_194 = arith.constant 0 : index
    %298 = vector.load %arg1[%c14_193, %c0_194] : memref<48x1xf32, #tpu.memory_space<vmem>>, vector<24x1xf32>
    %299 = vector.broadcast %24 : vector<1x64xf32> to vector<24x64xf32>
    %300 = arith.mulf %297, %299 : vector<24x64xf32>
    %301 = vector.broadcast %28 : vector<1x64xf32> to vector<24x64xf32>
    %302 = arith.addf %300, %301 : vector<24x64xf32>
    %cst_195 = arith.constant 0.000000e+00 : f32
    %303 = vector.broadcast %cst_195 : f32 to vector<24x64xf32>
    %304 = arith.maximumf %302, %303 : vector<24x64xf32>
    %305 = vector.broadcast %298 : vector<24x1xf32> to vector<24x64xf32>
    %306 = arith.mulf %304, %305 : vector<24x64xf32>
    %307 = arith.truncf %306 : vector<24x64xf32> to vector<24x64xbf16>
    %c0_196 = arith.constant 0 : index
    %c7_197 = arith.constant 7 : index
    %c0_198 = arith.constant 0 : index
    %c0_199 = arith.constant 0 : index
    %308 = vector.load %arg5[%c0_196, %c7_197, %c0_198, %c0_199] : memref<1x9x64x64xbf16, #tpu.memory_space<vmem>>, vector<1x1x64x64xbf16>
    %309 = vector.shape_cast %308 : vector<1x1x64x64xbf16> to vector<64x64xbf16>
    %cst_200 = arith.constant dense<0.000000e+00> : vector<24x64xf32>
    %310 = tpu.matmul %307, %309, %cst_200 {dimension_numbers = #tpu.dot_dimension_numbers<[1], [0], [0], [1], [0, 0, 1, 1], [], []>} : vector<24x64xbf16>, vector<64x64xbf16>, vector<24x64xf32> -> vector<24x64xf32>
    %311 = arith.addf %295, %310 : vector<24x64xf32>
    %c1_201 = arith.constant 1 : index
    %c15_202 = arith.constant 15 : index
    %c0_203 = arith.constant 0 : index
    %312 = vector.load %arg9[%c1_201, %c15_202, %c0_203] : memref<2x48x64xf32, #tpu.memory_space<vmem>>, vector<1x24x64xf32>
    %313 = vector.shape_cast %312 : vector<1x24x64xf32> to vector<24x64xf32>
    %c15_204 = arith.constant 15 : index
    %c0_205 = arith.constant 0 : index
    %314 = vector.load %arg1[%c15_204, %c0_205] : memref<48x1xf32, #tpu.memory_space<vmem>>, vector<24x1xf32>
    %315 = vector.broadcast %24 : vector<1x64xf32> to vector<24x64xf32>
    %316 = arith.mulf %313, %315 : vector<24x64xf32>
    %317 = vector.broadcast %28 : vector<1x64xf32> to vector<24x64xf32>
    %318 = arith.addf %316, %317 : vector<24x64xf32>
    %cst_206 = arith.constant 0.000000e+00 : f32
    %319 = vector.broadcast %cst_206 : f32 to vector<24x64xf32>
    %320 = arith.maximumf %318, %319 : vector<24x64xf32>
    %321 = vector.broadcast %314 : vector<24x1xf32> to vector<24x64xf32>
    %322 = arith.mulf %320, %321 : vector<24x64xf32>
    %323 = arith.truncf %322 : vector<24x64xf32> to vector<24x64xbf16>
    %c0_207 = arith.constant 0 : index
    %c8_208 = arith.constant 8 : index
    %c0_209 = arith.constant 0 : index
    %c0_210 = arith.constant 0 : index
    %324 = vector.load %arg5[%c0_207, %c8_208, %c0_209, %c0_210] : memref<1x9x64x64xbf16, #tpu.memory_space<vmem>>, vector<1x1x64x64xbf16>
    %325 = vector.shape_cast %324 : vector<1x1x64x64xbf16> to vector<64x64xbf16>
    %cst_211 = arith.constant dense<0.000000e+00> : vector<24x64xf32>
    %326 = tpu.matmul %323, %325, %cst_211 {dimension_numbers = #tpu.dot_dimension_numbers<[1], [0], [0], [1], [0, 0, 1, 1], [], []>} : vector<24x64xbf16>, vector<64x64xbf16>, vector<24x64xf32> -> vector<24x64xf32>
    %327 = arith.addf %311, %326 : vector<24x64xf32>
    %c1_212 = arith.constant 1 : index
    %c8_213 = arith.constant 8 : index
    %c0_214 = arith.constant 0 : index
    %328 = vector.load %arg9[%c1_212, %c8_213, %c0_214] : memref<2x48x64xf32, #tpu.memory_space<vmem>>, vector<1x24x64xf32>
    %329 = vector.shape_cast %328 : vector<1x24x64xf32> to vector<24x64xf32>
    %330 = vector.broadcast %29 : vector<24x1xf32> to vector<24x64xf32>
    %331 = arith.mulf %327, %330 : vector<24x64xf32>
    %332 = arith.addf %329, %331 : vector<24x64xf32>
    %c1_215 = arith.constant 1 : index
    %c8_216 = arith.constant 8 : index
    %c0_217 = arith.constant 0 : index
    %333 = vector.load %arg9[%c1_215, %c8_216, %c0_217] : memref<2x48x64xf32, #tpu.memory_space<vmem>>, vector<1x24x64xf32>
    %334 = vector.shape_cast %333 : vector<1x24x64xf32> to vector<24x64xf32>
    %335 = vector.shape_cast %332 : vector<24x64xf32> to vector<1x24x64xf32>
    tpu.vector_store %arg9[%c1_215, %c8_216, %c0_217], %335 {strides = array<i32>} : memref<2x48x64xf32, #tpu.memory_space<vmem>>, vector<1x24x64xf32>,
    %c1_i32 = arith.constant 1 : i32
    %336 = arith.cmpi eq, %arg0, %c1_i32 : i32
    %337 = arith.extui %336 : i1 to i32
    %c0_i32_218 = arith.constant 0 : i32
    %338 = arith.cmpi ne, %337, %c0_i32_218 : i32
    scf.if %338 {
      %c0_219 = arith.constant 0 : index
      %c0_220 = arith.constant 0 : index
      %c0_221 = arith.constant 0 : index
      %339 = vector.load %arg9[%c0_219, %c0_220, %c0_221] : memref<2x48x64xf32, #tpu.memory_space<vmem>>, vector<2x48x64xf32>
      %c0_222 = arith.constant 0 : index
      %c0_223 = arith.constant 0 : index
      %c0_224 = arith.constant 0 : index
      %340 = vector.load %arg6[%c0_222, %c0_223, %c0_224] : memref<2x48x64xf32, #tpu.memory_space<vmem>>, vector<2x48x64xf32>
      tpu.vector_store %arg6[%c0_222, %c0_223, %c0_224], %339 {strides = array<i32>} : memref<2x48x64xf32, #tpu.memory_space<vmem>>, vector<2x48x64xf32>,
      %cst_225 = arith.constant dense<0.000000e+00> : vector<48x64xf32>
      %341 = vector.multi_reduction <add>, %339, %cst_225 [0] : vector<2x48x64xf32> to vector<48x64xf32>
      %cst_226 = arith.constant dense<0.000000e+00> : vector<64xf32>
      %342 = vector.multi_reduction <add>, %341, %cst_226 [0] : vector<48x64xf32> to vector<64xf32>
      %343 = vector.shape_cast %342 : vector<64xf32> to vector<1x64xf32>
      %c0_227 = arith.constant 0 : index
      %c0_228 = arith.constant 0 : index
      %344 = vector.load %arg7[%c0_227, %c0_228] : memref<1x64xf32, #tpu.memory_space<vmem>>, vector<1x64xf32>
      tpu.vector_store %arg7[%c0_227, %c0_228], %343 {strides = array<i32>} : memref<1x64xf32, #tpu.memory_space<vmem>>, vector<1x64xf32>,
      %345 = arith.mulf %339, %339 : vector<2x48x64xf32>
      %cst_229 = arith.constant dense<0.000000e+00> : vector<48x64xf32>
      %346 = vector.multi_reduction <add>, %345, %cst_229 [0] : vector<2x48x64xf32> to vector<48x64xf32>
      %cst_230 = arith.constant dense<0.000000e+00> : vector<64xf32>
      %347 = vector.multi_reduction <add>, %346, %cst_230 [0] : vector<48x64xf32> to vector<64xf32>
      %348 = vector.shape_cast %347 : vector<64xf32> to vector<1x64xf32>
      %c0_231 = arith.constant 0 : index
      %c0_232 = arith.constant 0 : index
      %349 = vector.load %arg8[%c0_231, %c0_232] : memref<1x64xf32, #tpu.memory_space<vmem>>, vector<1x64xf32>
      tpu.vector_store %arg8[%c0_231, %c0_232], %348 {strides = array<i32>} : memref<1x64xf32, #tpu.memory_space<vmem>>, vector<1x64xf32>,
    } else {
    }
    return
  }
  func.func @transform_0(%arg0: i32) -> (i32, i32) {
    %c0_i32 = arith.constant 0 : i32
    %c0_i32_0 = arith.constant 0 : i32
    %c0_i32_1 = arith.constant 0 : i32
    return %c0_i32, %c0_i32_0 : i32, i32
  }
  func.func @transform_1(%arg0: i32) -> (i32, i32, i32) {
    %c0_i32 = arith.constant 0 : i32
    %c0_i32_0 = arith.constant 0 : i32
    %c0_i32_1 = arith.constant 0 : i32
    %c0_i32_2 = arith.constant 0 : i32
    return %c0_i32, %c0_i32_0, %c0_i32_1 : i32, i32, i32
  }
  func.func @transform_2(%arg0: i32) -> (i32, i32, i32) {
    %c0_i32 = arith.constant 0 : i32
    %c0_i32_0 = arith.constant 0 : i32
    %c0_i32_1 = arith.constant 0 : i32
    return %arg0, %c0_i32, %c0_i32_0 : i32, i32, i32
  }
  func.func @transform_3(%arg0: i32) -> (i32, i32, i32) {
    %c0_i32 = arith.constant 0 : i32
    %c0_i32_0 = arith.constant 0 : i32
    %c0_i32_1 = arith.constant 0 : i32
    return %arg0, %c0_i32, %c0_i32_0 : i32, i32, i32
  }
  func.func @transform_4(%arg0: i32) -> (i32, i32, i32, i32) {
    %c0_i32 = arith.constant 0 : i32
    %c0_i32_0 = arith.constant 0 : i32
    %c0_i32_1 = arith.constant 0 : i32
    %c0_i32_2 = arith.constant 0 : i32
    return %arg0, %c0_i32, %c0_i32_0, %c0_i32_1 : i32, i32, i32, i32
  }
  func.func @transform_5(%arg0: i32) -> (i32, i32, i32) {
    %c0_i32 = arith.constant 0 : i32
    %c0_i32_0 = arith.constant 0 : i32
    %c0_i32_1 = arith.constant 0 : i32
    %c0_i32_2 = arith.constant 0 : i32
    return %c0_i32, %c0_i32_0, %c0_i32_1 : i32, i32, i32
  }
  func.func @transform_6(%arg0: i32) -> (i32, i32) {
    %c0_i32 = arith.constant 0 : i32
    %c0_i32_0 = arith.constant 0 : i32
    %c0_i32_1 = arith.constant 0 : i32
    return %c0_i32, %c0_i32_0 : i32, i32
  }
  func.func @transform_7(%arg0: i32) -> (i32, i32) {
    %c0_i32 = arith.constant 0 : i32
    %c0_i32_0 = arith.constant 0 : i32
    %c0_i32_1 = arith.constant 0 : i32
    return %c0_i32, %c0_i32_0 : i32, i32
  }
}

module attributes {stable_mosaic.version = 11 : i64} {
  func.func @_head_kernel(%arg0: i32, %arg1: memref<1x16x64xf32, #tpu.memory_space<vmem>>, %arg2: memref<1x64xf32, #tpu.memory_space<vmem>>, %arg3: memref<1x64xf32, #tpu.memory_space<vmem>>, %arg4: memref<64x10xf32, #tpu.memory_space<vmem>>, %arg5: memref<1x10xf32, #tpu.memory_space<vmem>>, %arg6: memref<1x1x10xf32, #tpu.memory_space<vmem>>) attributes {dimension_semantics = [#tpu.dimension_semantics<parallel>], iteration_bounds = array<i64: 2>, scalar_prefetch = 0 : i64, scratch_operands = 0 : i64, tpu.core_type = #tpu.core_type<tc>, window_params = [{transform_indices = @transform_0, window_bounds = array<i64: 1, 16, 64>}, {pipeline_mode = #tpu.pipeline_mode<synchronous>, transform_indices = @transform_1, window_bounds = array<i64: 1, 64>}, {pipeline_mode = #tpu.pipeline_mode<synchronous>, transform_indices = @transform_2, window_bounds = array<i64: 1, 64>}, {pipeline_mode = #tpu.pipeline_mode<synchronous>, transform_indices = @transform_3, window_bounds = array<i64: 64, 10>}, {pipeline_mode = #tpu.pipeline_mode<synchronous>, transform_indices = @transform_4, window_bounds = array<i64: 1, 10>}, {transform_indices = @transform_5, window_bounds = array<i64: 1, 1, 10>}]} {
    %c0 = arith.constant 0 : index
    %c0_0 = arith.constant 0 : index
    %c0_1 = arith.constant 0 : index
    %0 = vector.load %arg1[%c0, %c0_0, %c0_1] : memref<1x16x64xf32, #tpu.memory_space<vmem>>, vector<1x16x64xf32>
    %1 = vector.shape_cast %0 : vector<1x16x64xf32> to vector<16x64xf32>
    %c0_2 = arith.constant 0 : index
    %c0_3 = arith.constant 0 : index
    %2 = vector.load %arg2[%c0_2, %c0_3] : memref<1x64xf32, #tpu.memory_space<vmem>>, vector<1x64xf32>
    %3 = vector.broadcast %2 : vector<1x64xf32> to vector<16x64xf32>
    %4 = arith.mulf %1, %3 : vector<16x64xf32>
    %c0_4 = arith.constant 0 : index
    %c0_5 = arith.constant 0 : index
    %5 = vector.load %arg3[%c0_4, %c0_5] : memref<1x64xf32, #tpu.memory_space<vmem>>, vector<1x64xf32>
    %6 = vector.broadcast %5 : vector<1x64xf32> to vector<16x64xf32>
    %7 = arith.addf %4, %6 : vector<16x64xf32>
    %cst = arith.constant 0.000000e+00 : f32
    %8 = vector.broadcast %cst : f32 to vector<16x64xf32>
    %9 = arith.maximumf %7, %8 : vector<16x64xf32>
    %cst_6 = arith.constant dense<0.000000e+00> : vector<64xf32>
    %10 = vector.multi_reduction <add>, %9, %cst_6 [0] : vector<16x64xf32> to vector<64xf32>
    %11 = vector.shape_cast %10 : vector<64xf32> to vector<1x64xf32>
    %cst_7 = arith.constant 6.250000e-02 : f32
    %12 = vector.broadcast %cst_7 : f32 to vector<1x64xf32>
    %13 = arith.mulf %11, %12 : vector<1x64xf32>
    %c0_8 = arith.constant 0 : index
    %c0_9 = arith.constant 0 : index
    %14 = vector.load %arg4[%c0_8, %c0_9] : memref<64x10xf32, #tpu.memory_space<vmem>>, vector<64x10xf32>
    %cst_10 = arith.constant dense<0.000000e+00> : vector<1x10xf32>
    %15 = tpu.matmul %13, %14, %cst_10 {dimension_numbers = #tpu.dot_dimension_numbers<[1], [0], [0], [1], [0, 0, 1, 1], [], []>} : vector<1x64xf32>, vector<64x10xf32>, vector<1x10xf32> -> vector<1x10xf32>
    %c0_11 = arith.constant 0 : index
    %c0_12 = arith.constant 0 : index
    %16 = vector.load %arg5[%c0_11, %c0_12] : memref<1x10xf32, #tpu.memory_space<vmem>>, vector<1x10xf32>
    %17 = arith.addf %15, %16 : vector<1x10xf32>
    %c0_13 = arith.constant 0 : index
    %c0_14 = arith.constant 0 : index
    %c0_15 = arith.constant 0 : index
    %18 = vector.load %arg6[%c0_13, %c0_14, %c0_15] : memref<1x1x10xf32, #tpu.memory_space<vmem>>, vector<1x1x10xf32>
    %19 = vector.shape_cast %18 : vector<1x1x10xf32> to vector<1x10xf32>
    %20 = vector.shape_cast %17 : vector<1x10xf32> to vector<1x1x10xf32>
    tpu.vector_store %arg6[%c0_13, %c0_14, %c0_15], %20 {strides = array<i32>} : memref<1x1x10xf32, #tpu.memory_space<vmem>>, vector<1x1x10xf32>,
    return
  }
  func.func @transform_0(%arg0: i32) -> (i32, i32, i32) {
    %c0_i32 = arith.constant 0 : i32
    %c0_i32_0 = arith.constant 0 : i32
    %c0_i32_1 = arith.constant 0 : i32
    return %arg0, %c0_i32, %c0_i32_0 : i32, i32, i32
  }
  func.func @transform_1(%arg0: i32) -> (i32, i32) {
    %c0_i32 = arith.constant 0 : i32
    %c0_i32_0 = arith.constant 0 : i32
    %c0_i32_1 = arith.constant 0 : i32
    return %c0_i32, %c0_i32_0 : i32, i32
  }
  func.func @transform_2(%arg0: i32) -> (i32, i32) {
    %c0_i32 = arith.constant 0 : i32
    %c0_i32_0 = arith.constant 0 : i32
    %c0_i32_1 = arith.constant 0 : i32
    return %c0_i32, %c0_i32_0 : i32, i32
  }
  func.func @transform_3(%arg0: i32) -> (i32, i32) {
    %c0_i32 = arith.constant 0 : i32
    %c0_i32_0 = arith.constant 0 : i32
    %c0_i32_1 = arith.constant 0 : i32
    return %c0_i32, %c0_i32_0 : i32, i32
  }
  func.func @transform_4(%arg0: i32) -> (i32, i32) {
    %c0_i32 = arith.constant 0 : i32
    %c0_i32_0 = arith.constant 0 : i32
    %c0_i32_1 = arith.constant 0 : i32
    return %c0_i32, %c0_i32_0 : i32, i32
  }
  func.func @transform_5(%arg0: i32) -> (i32, i32, i32) {
    %c0_i32 = arith.constant 0 : i32
    %c0_i32_0 = arith.constant 0 : i32
    %c0_i32_1 = arith.constant 0 : i32
    return %arg0, %c0_i32, %c0_i32_0 : i32, i32, i32
  }
}

</mosaic_0001>

<bundles_post_ra>
// kernel: densenet_forward.6
= control target key start
LH: loop header
LB: loop body
LE: loop exit
PB: predicated region body
PF: predicated region fallthrough
CT: control target
= control target key end

     0   :  { %s1307_s15 = smov 0   ;;  %s1683_s0 = inlined_call_operand.vmem [shape: bf16[512,147], index: 0, kind: input, shape index: {}]   ;;  %s1684_s1 = inlined_call_operand.vmem [shape: bf16[147,32], index: 1, kind: input, shape index: {}]   ;;  %s1685_s2 = inlined_call_operand.vmem [shape: f32[512,32], index: 2, kind: output, shape index: {0}]   ;;  %s1686_s3 = inlined_call_operand.vmem [shape: f32[2,1,32], index: 3, kind: output, shape index: {1}]   ;;  %s1687_s4 = inlined_call_operand.vmem [shape: f32[2,1,32], index: 4, kind: output, shape index: {2}]  }
   0x1 LB: > { %s1313_s16 = sadd.s32 4294967295, %s1279_s15   ;;  %p1024_p0 = scmp.ge.s32.totalorder %s1279_s15, 1  ;;  %s1279_s15 = sphi %s1307_s15, %s15_s15  }
   0x2   : > { %p169_p1 = scmp.lt.s32.totalorder %s1279_s15, 3 }
   0x4   : > { %p170_p2 = pnand %p1024_p0, %p169_p1 }
   0x5   : > { %s1025_s21 = sshll.u32 (!%p170_p2), %s1313_s16, 5  ;;  %p215_p4 = scmp.lt.s32.totalorder (!%p170_p2), %s1313_s16, 1 }
   0x6   : > { %173 = sbr.rel (%p170_p2) target bundleno = 341 (0x155), region = 28  ;;  %p203_p3 = scmp.lt.s32.totalorder (!%p170_p2), %s1025_s21, 63 }
   0xb   : > { %v1252_v0 = vld [vmem:[%s1684_s1 + $0x38] sm:$0xff]  ;;  %v272_v1 = vld [vmem:[%s1684_s1 + $0x48] sm:$0x3]  ;;  %vm523_vm0 = vcmask 1040384   ;;  %vm524_vm1 = vcmask 1041408   ;;  %v1251_v3 = vld [vmem:[%s1684_s1 + $0x30] sm:$0xff] }
   0xc   : > { %v454_v2 = vunpack.c.l.b16 %v272_v1  ;;  %530 = vmatpush.bf16.msra.mxu0 %v1252_v0  ;;  %v1281_v4 = vmov 65535   ;;  %1254 = vmatpush.bf16.msra.mxu2 %v1252_v0  ;;  %s1689_s21 = smov (!%p203_p3, %s1025_s21), 63  ;;  %v1250_v9 = vld [vmem:[%s1684_s1 + $0x28] sm:$0xff]  ;;  %v1253_v10 = vld [vmem:[%s1684_s1 + $0x40] sm:$0xff]  ;;  %vm474_vm2 = vcmask 154624   ;;  %v1248_v15 = vld [vmem:[%s1684_s1 + $0x18] sm:$0xff] }
   0xd   : > { %v525_v5 = vsel %vm523_vm0, 4294967295, %v1281_v4  ;;  %s1212_s26 = sshll.u32 %s1689_s21, 3  ;;  %v1249_v14 = vld [vmem:[%s1684_s1 + $0x20] sm:$0xff]  ;;  %v1247_v16 = vld [vmem:[%s1684_s1 + $0x10] sm:$0xff]  ;;  %v1246_v17 = vld [vmem:[%s1684_s1 + $0x8] sm:$0xff]  ;;  %vm708_vm3 = vcmask 261120  }
   0xe   : > { %v464_v6 = vpack.c.b16 %v454_v2, %v454_v2  ;;  %v526_v7 = vsel %vm524_vm1, %v525_v5, 0  ;;  %s1341_s5 = scalar_lea.vmem %s1683_s0, %s1212_s26  ;;  %v1245_v21 = vld [vmem:[%s1684_s1] sm:$0xff]  ;;  %s1443_s20 = scalar_lea.vmem %s1685_s2, %s1212_s26  ;;  %vm810_vm4 = vcmask 253952  }
   0xf   : > { %v1213_v11 = vld [vmem:[%s1341_s5 + $0x4] sm:$0xf]  ;;  %v1034_v12 = vld [vmem:[%s1341_s5 + $0x8] sm:$0xf0]  ;;  %v1215_v18 = vld [vmem:[%s1341_s5 + $0x14] sm:$0xf] }
  0x10   : > { %v528_v8 = vand.u32 %v526_v7, %v464_v6  ;;  %531 = vmatpush.bf16.msra.mxu0 %v1251_v3  ;;  %1255 = vmatpush.bf16.msra.mxu2 %v1251_v3  ;;  %v1037_v13 = vor.u32 %v1213_v11, %v1034_v12  ;;  %v1042_v19 = vld [vmem:[%s1341_s5 + $0x18] sm:$0xf0]  ;;  %v1032_v22 = vld [vmem:[%s1341_s5] sm:$0xf]  ;;  %v1214_v23 = vld [vmem:[%s1341_s5 + $0x4] sm:$0xf0] }
  0x11   : > { %v1045_v20 = vor.u32 %v1215_v18, %v1042_v19  ;;  %v1096_v24 = vld [vmem:[%s1341_s5 + $0x80] sm:$0xf]  ;;  %v1230_v25 = vld [vmem:[%s1341_s5 + $0x84] sm:$0xf0]  ;;  %v1033_v26 = vor.u32 %v1214_v23, %v1032_v22  ;;  %v1231_v28 = vld [vmem:[%s1341_s5 + $0x94] sm:$0xf] }
  0x12   : > { %625 = vmatpush.bf16.msra.mxu1 %v528_v8  ;;  %1262 = vmatpush.bf16.msra.mxu3 %v528_v8  ;;  %v1097_v27 = vor.u32 %v1230_v25, %v1096_v24  ;;  %v1106_v29 = vld [vmem:[%s1341_s5 + $0x98] sm:$0xf0]  ;;  %v1217_v31 = vld [vmem:[%s1341_s5 + $0x24] sm:$0xf]  ;;  %v1050_v32 = vld [vmem:[%s1341_s5 + $0x28] sm:$0xf0] }
  0x13   : > { %v1109_v30 = vor.u32 %v1231_v28, %v1106_v29  ;;  %v1053_v33 = vor.u32 %v1217_v31, %v1050_v32  ;;  %v1040_v34 = vld [vmem:[%s1341_s5 + $0x10] sm:$0xf]  ;;  %v1216_v35 = vld [vmem:[%s1341_s5 + $0x14] sm:$0xf0]  ;;  %v1233_v40 = vld [vmem:[%s1341_s5 + $0xa4] sm:$0xf] }
  0x14   : > { %532 = vmatpush.bf16.msra.mxu0 %v1250_v9  ;;  %1256 = vmatpush.bf16.msra.mxu2 %v1250_v9  ;;  %v1104_v36 = vld [vmem:[%s1341_s5 + $0x90] sm:$0xf]  ;;  %v1232_v37 = vld [vmem:[%s1341_s5 + $0x94] sm:$0xf0]  ;;  %v1041_v38 = vor.u32 %v1216_v35, %v1040_v34  ;;  %v1114_v41 = vld [vmem:[%s1341_s5 + $0xa8] sm:$0xf0] }
  0x15   : > { %v1105_v39 = vor.u32 %v1232_v37, %v1104_v36  ;;  %v1117_v42 = vor.u32 %v1233_v40, %v1114_v41  ;;  %v1219_v43 = vld [vmem:[%s1341_s5 + $0x34] sm:$0xf]  ;;  %v1058_v44 = vld [vmem:[%s1341_s5 + $0x38] sm:$0xf0]  ;;  %v1048_v46 = vld [vmem:[%s1341_s5 + $0x20] sm:$0xf] }
  0x16   : > { %626 = vmatpush.bf16.msra.mxu1 %v1253_v10  ;;  %1263 = vmatpush.bf16.msra.mxu3 %v1253_v10  ;;  %v1061_v45 = vor.u32 %v1219_v43, %v1058_v44  ;;  %v1218_v47 = vld [vmem:[%s1341_s5 + $0x24] sm:$0xf0]  ;;  %v1112_v48 = vld [vmem:[%s1341_s5 + $0xa0] sm:$0xf]  ;;  %v1235_v52 = vld [vmem:[%s1341_s5 + $0xb4] sm:$0xf] }
  0x17   : > { %v1234_v49 = vld [vmem:[%s1341_s5 + $0xa4] sm:$0xf0]  ;;  %v1049_v50 = vor.u32 %v1218_v47, %v1048_v46  ;;  %v1122_v53 = vld [vmem:[%s1341_s5 + $0xb8] sm:$0xf0]  ;;  %v1221_v55 = vld [vmem:[%s1341_s5 + $0x44] sm:$0xf] }
  0x18   : > { %533 = vmatpush.bf16.msra.mxu0 %v1249_v14  ;;  %1257 = vmatpush.bf16.msra.mxu2 %v1249_v14  ;;  %v1113_v51 = vor.u32 %v1234_v49, %v1112_v48  ;;  %v1125_v54 = vor.u32 %v1235_v52, %v1122_v53  ;;  %v1066_v56 = vld [vmem:[%s1341_s5 + $0x48] sm:$0xf0]  ;;  %v1056_v58 = vld [vmem:[%s1341_s5 + $0x30] sm:$0xf]  ;;  %v1220_v59 = vld [vmem:[%s1341_s5 + $0x34] sm:$0xf0] }
  0x19   : > { %1194 = vmatmul.msk.bf16.vlgmr.msra.gmra.mxu1 %vm474_vm2, %v1037_v13  ;;  %1203 = vmatmul.msk.bf16.vlgmr.msra.gmra.mxu3 %vm474_vm2, %v1109_v30  ;;  %v1069_v57 = vor.u32 %v1221_v55, %v1066_v56  ;;  %v1120_v60 = vld [vmem:[%s1341_s5 + $0xb0] sm:$0xf]  ;;  %v1236_v61 = vld [vmem:[%s1341_s5 + $0xb4] sm:$0xf0]  ;;  %v1057_v62 = vor.u32 %v1220_v59, %v1056_v58  ;;  %v1237_v0 = vld [vmem:[%s1341_s5 + $0xc4] sm:$0xf] }
  0x1a   : > { %v1121_v63 = vor.u32 %v1236_v61, %v1120_v60  ;;  %v1130_v1 = vld [vmem:[%s1341_s5 + $0xc8] sm:$0xf0]  ;;  %v1223_v3 = vld [vmem:[%s1341_s5 + $0x54] sm:$0xf]  ;;  %v1074_v4 = vld [vmem:[%s1341_s5 + $0x58] sm:$0xf0] }
  0x1b   : > { %v1133_v2 = vor.u32 %v1237_v0, %v1130_v1  ;;  %v1077_v5 = vor.u32 %v1223_v3, %v1074_v4  ;;  %v1064_v6 = vld [vmem:[%s1341_s5 + $0x40] sm:$0xf]  ;;  %v1222_v7 = vld [vmem:[%s1341_s5 + $0x44] sm:$0xf0]  ;;  %v1239_v12 = vld [vmem:[%s1341_s5 + $0xd4] sm:$0xf] }
  0x1c   : > { %534 = vmatpush.bf16.msra.mxu0 %v1248_v15  ;;  %1258 = vmatpush.bf16.msra.mxu2 %v1248_v15  ;;  %v1128_v8 = vld [vmem:[%s1341_s5 + $0xc0] sm:$0xf]  ;;  %v1238_v9 = vld [vmem:[%s1341_s5 + $0xc4] sm:$0xf0]  ;;  %v1065_v10 = vor.u32 %v1222_v7, %v1064_v6  ;;  %v1138_v13 = vld [vmem:[%s1341_s5 + $0xd8] sm:$0xf0] }
  0x1d   : > { %v1129_v11 = vor.u32 %v1238_v9, %v1128_v8  ;;  %v1141_v14 = vor.u32 %v1239_v12, %v1138_v13  ;;  %v1225_v15 = vld [vmem:[%s1341_s5 + $0x64] sm:$0xf]  ;;  %v1072_v18 = vld [vmem:[%s1341_s5 + $0x50] sm:$0xf]  ;;  %v1224_v19 = vld [vmem:[%s1341_s5 + $0x54] sm:$0xf0] }
  0x1e   : > { %v1073_v22 = vor.u32 %v1224_v19, %v1072_v18  ;;  %v1241_v24 = vld [vmem:[%s1341_s5 + $0xe4] sm:$0xf]  ;;  %v1146_v25 = vld [vmem:[%s1341_s5 + $0xe8] sm:$0xf0]  ;;  %v1090_v28 = vld [vmem:[%s1341_s5 + $0x78] sm:$0xf0] }
  0x1f   : > { %v1080_v30 = vld [vmem:[%s1341_s5 + $0x60] sm:$0xf]  ;;  %v1226_v31 = vld [vmem:[%s1341_s5 + $0x64] sm:$0xf0]  ;;  %v1243_v36 = vld [vmem:[%s1341_s5 + $0xf4] sm:$0xf] }
  0x20   : > { %535 = vmatpush.bf16.msra.mxu0 %v1247_v16  ;;  %1259 = vmatpush.bf16.msra.mxu2 %v1247_v16  ;;  %v1082_v16 = vld [vmem:[%s1341_s5 + $0x68] sm:$0xf0]  ;;  %v1144_v32 = vld [vmem:[%s1341_s5 + $0xe0] sm:$0xf]  ;;  %v1081_v34 = vor.u32 %v1226_v31, %v1080_v30  ;;  %v1154_v37 = vld [vmem:[%s1341_s5 + $0xf8] sm:$0xf0] }
  0x21   : > { %v1098_v40 = vld [vmem:[%s1341_s5 + $0x88] sm:$0xf0]  ;;  %v1228_v43 = vld [vmem:[%s1341_s5 + $0x74] sm:$0xf0]  ;;  %s1691_s16 = smov (!%p215_p4, %s1313_s16), 1 }
  0x22   : > { %v1244_v46 = vld [vmem:[%s1341_s5 + $0xf4] sm:$0xf0]  ;;  %s217_s23 = scalar_lea.vmem %s1686_s3, %s1691_s16  ;;  %s220_s26 = scalar_lea.vmem %s1687_s4, %s1691_s16 }
  0x24   : > { %536 = vmatpush.bf16.msra.mxu0 %v1246_v17  ;;  %1260 = vmatpush.bf16.msra.mxu2 %v1246_v17  ;;  %v1085_v17 = vor.u32 %v1225_v15, %v1082_v16 }
  0x28   : > { %537 = vmatpush.bf16.msra.mxu0 %v1245_v21  ;;  %1261 = vmatpush.bf16.msra.mxu2 %v1245_v21  ;;  %v1240_v21 = vld [vmem:[%s1341_s5 + $0xd4] sm:$0xf0] }
  0x29   : > { %1195 = vmatmul.msk.bf16.gmra.mxu1 %vm474_vm2, %v1045_v20  ;;  %1204 = vmatmul.msk.bf16.gmra.mxu3 %vm474_vm2, %v1117_v42  ;;  %v1136_v20 = vld [vmem:[%s1341_s5 + $0xd0] sm:$0xf] }
  0x2a   : > { %v1137_v23 = vor.u32 %v1240_v21, %v1136_v20  ;;  %v1088_v42 = vld [vmem:[%s1341_s5 + $0x70] sm:$0xf] }
  0x2b   : > { %538 = vmatmul.bf16.vlgmr.msra.gmra.mxu0 %v1033_v26  ;;  %578 = vmatmul.bf16.vlgmr.msra.gmra.mxu2 %v1097_v27  ;;  %v1149_v26 = vor.u32 %v1241_v24, %v1146_v25  ;;  %v1227_v27 = vld [vmem:[%s1341_s5 + $0x74] sm:$0xf]  ;;  %v1089_v47 = vor.u32 %v1228_v43, %v1088_v42 }
  0x2c   : > { %v1093_v29 = vor.u32 %v1227_v27, %v1090_v28 }
  0x39   : > { %1196 = vmatmul.msk.bf16.gmra.mxu1 %vm474_vm2, %v1053_v33  ;;  %1205 = vmatmul.msk.bf16.gmra.mxu3 %vm474_vm2, %v1125_v54  ;;  %v1242_v33 = vld [vmem:[%s1341_s5 + $0xe4] sm:$0xf0] }
  0x3a   : > { %v1145_v35 = vor.u32 %v1242_v33, %v1144_v32 }
  0x3b   : > { %543 = vmatmul.bf16.gmra.mxu0 %v1041_v38  ;;  %583 = vmatmul.bf16.gmra.mxu2 %v1105_v39  ;;  %v1157_v38 = vor.u32 %v1243_v36, %v1154_v37  ;;  %v1229_v39 = vld [vmem:[%s1341_s5 + $0x84] sm:$0xf] }
  0x3c   : > { %v1101_v41 = vor.u32 %v1229_v39, %v1098_v40 }
  0x49   : > { %1197 = vmatmul.msk.bf16.gmra.mxu1 %vm474_vm2, %v1061_v45  ;;  %1206 = vmatmul.msk.bf16.gmra.mxu3 %vm474_vm2, %v1133_v2  ;;  %v1152_v45 = vld [vmem:[%s1341_s5 + $0xf0] sm:$0xf] }
  0x4a   : > { %v1153_v48 = vor.u32 %v1244_v46, %v1152_v45 }
  0x4b   : > { %548 = vmatmul.bf16.gmra.mxu0 %v1049_v50  ;;  %588 = vmatmul.bf16.gmra.mxu2 %v1113_v51 }
  0x59   : > { %1198 = vmatmul.msk.bf16.gmra.mxu1 %vm474_vm2, %v1069_v57  ;;  %1207 = vmatmul.msk.bf16.gmra.mxu3 %vm474_vm2, %v1141_v14 }
  0x5b   : > { %553 = vmatmul.bf16.gmra.mxu0 %v1057_v62  ;;  %593 = vmatmul.bf16.gmra.mxu2 %v1121_v63 }
  0x69   : > { %1199 = vmatmul.msk.bf16.gmra.mxu1 %vm474_vm2, %v1077_v5  ;;  %1208 = vmatmul.msk.bf16.gmra.mxu3 %vm474_vm2, %v1149_v26 }
  0x6b   : > { %558 = vmatmul.bf16.gmra.mxu0 %v1065_v10  ;;  %598 = vmatmul.bf16.gmra.mxu2 %v1129_v11 }
  0x79   : > { %1200 = vmatmul.msk.bf16.gmra.mxu1 %vm474_vm2, %v1085_v17  ;;  %1209 = vmatmul.msk.bf16.gmra.mxu3 %vm474_vm2, %v1157_v38 }
  0x7b   : > { %563 = vmatmul.bf16.gmra.mxu0 %v1073_v22  ;;  %603 = vmatmul.bf16.gmra.mxu2 %v1137_v23 }
  0x89   : > { %1201 = vmatmul.msk.bf16.gmra.mxu1 %vm474_vm2, %v1093_v29 }
  0x8b   : > { %568 = vmatmul.bf16.gmra.mxu0 %v1081_v34  ;;  %608 = vmatmul.bf16.gmra.mxu2 %v1145_v35 }
  0x96   : > { %v628_v44 = vpop.f32.mrf.mxu1 }
  0x99   : > { %1202 = vmatmul.msk.bf16.gmra.mxu1 %vm474_vm2, %v1101_v41 }
  0x9b   : > { %573 = vmatmul.bf16.gmra.mxu0 %v1089_v47  ;;  %613 = vmatmul.bf16.gmra.mxu2 %v1153_v48 }
  0x9c   : > { %v673_v58 = vpop.f32.mrf.mxu3 }
  0x9e   : > { %v630_v49 = vpop.f32.mrf.mxu1 }
  0xa4   : > { %v675_v6 = vpop.f32.mrf.mxu3 }
  0xa6   : > { %v633_v50 = vpop.f32.mrf.mxu1 }
  0xa8   : > { %v539_v51 = vpop.f32.mrf.mxu0 }
  0xa9   : > { %v629_v52 = vadd.f32 %v628_v44, %v539_v51 }
  0xab   : > { %709 = vst.msk [vmem:[%s1443_s20] sm:$0xff] %vm708_vm3, %v629_v52  ;;  %v812_v56 = vmul.f32 %v629_v52, %v629_v52  ;;  %v741_v59 = vsel %vm708_vm3, %v629_v52, 0.0 }
  0xac   : > { %v678_v17 = vpop.f32.mrf.mxu3 }
  0xad   : > { %v844_v63 = vsel %vm708_vm3, %v812_v56, 0.0 }
  0xae   : > { %v635_v53 = vpop.f32.mrf.mxu1  ;;  %v1447_v54 = vpop.f32.mrf.mxu2 }
  0xb0   : > { %v541_v55 = vpop.f32.mrf.mxu0 }
  0xb1   : > { %v631_v57 = vadd.f32 %v630_v49, %v541_v55 }
  0xb3   : > { %710 = vst.msk [vmem:[%s1443_s20 + $0x8] sm:$0xff] %vm708_vm3, %v631_v57  ;;  %v742_v60 = vsel %vm708_vm3, %v631_v57, 0.0  ;;  %v813_v61 = vmul.f32 %v631_v57, %v631_v57 }
  0xb4   : > { %v743_v62 = vadd.f32 %v742_v60, %v741_v59  ;;  %v680_v28 = vpop.f32.mrf.mxu3 }
  0xb5   : > { %v845_v0 = vsel %vm708_vm3, %v813_v61, 0.0 }
  0xb6   : > { %v638_v1 = vpop.f32.mrf.mxu1  ;;  %v846_v2 = vadd.f32 %v845_v0, %v844_v63  ;;  %v1455_v3 = vpop.f32.mrf.mxu2 }
  0xb8   : > { %v544_v4 = vpop.f32.mrf.mxu0 }
  0xb9   : > { %v634_v5 = vadd.f32 %v633_v50, %v544_v4 }
  0xbb   : > { %711 = vst.msk [vmem:[%s1443_s20 + $0x10] sm:$0xff] %vm708_vm3, %v634_v5  ;;  %v744_v7 = vsel %vm708_vm3, %v634_v5, 0.0  ;;  %v814_v8 = vmul.f32 %v634_v5, %v634_v5 }
  0xbc   : > { %v745_v9 = vadd.f32 %v744_v7, %v743_v62  ;;  %v683_v39 = vpop.f32.mrf.mxu3 }
  0xbd   : > { %v847_v10 = vsel %vm708_vm3, %v814_v8, 0.0 }
  0xbe   : > { %v640_v11 = vpop.f32.mrf.mxu1  ;;  %v848_v12 = vadd.f32 %v847_v10, %v846_v2  ;;  %v584_v13 = vpop.f32.mrf.mxu2 }
  0xbf   : > { %v1461_v15 = vadd.f32 %v673_v58, %v584_v13 }
  0xc0   : > { %v546_v14 = vpop.f32.mrf.mxu0 }
  0xc1   : > { %v636_v16 = vadd.f32 %v635_v53, %v546_v14  ;;  %727 = vst.msk [vmem:[%s1443_s20 + $0x90] sm:$0xff] %vm708_vm3, %v1461_v15 }
  0xc3   : > { %712 = vst.msk [vmem:[%s1443_s20 + $0x18] sm:$0xff] %vm708_vm3, %v636_v16  ;;  %v746_v18 = vsel %vm708_vm3, %v636_v16, 0.0  ;;  %v815_v19 = vmul.f32 %v636_v16, %v636_v16 }
  0xc4   : > { %v747_v20 = vadd.f32 %v746_v18, %v745_v9  ;;  %v685_v45 = vpop.f32.mrf.mxu3 }
  0xc5   : > { %v849_v21 = vsel %vm708_vm3, %v815_v19, 0.0 }
  0xc6   : > { %v643_v22 = vpop.f32.mrf.mxu1  ;;  %v850_v23 = vadd.f32 %v849_v21, %v848_v12  ;;  %v586_v24 = vpop.f32.mrf.mxu2 }
  0xc7   : > { %v1470_v26 = vadd.f32 %v675_v6, %v586_v24 }
  0xc8   : > { %v549_v25 = vpop.f32.mrf.mxu0 }
  0xc9   : > { %v639_v27 = vadd.f32 %v638_v1, %v549_v25  ;;  %728 = vst.msk [vmem:[%s1443_s20 + $0x98] sm:$0xff] %vm708_vm3, %v1470_v26 }
  0xcb   : > { %713 = vst.msk [vmem:[%s1443_s20 + $0x20] sm:$0xff] %vm708_vm3, %v639_v27  ;;  %v748_v29 = vsel %vm708_vm3, %v639_v27, 0.0  ;;  %v816_v30 = vmul.f32 %v639_v27, %v639_v27 }
  0xcc   : > { %v1478_v31 = vadd.f32 %v748_v29, %v747_v20  ;;  %v688_v51 = vpop.f32.mrf.mxu3 }
  0xcd   : > { %v851_v32 = vsel %vm708_vm3, %v816_v30, 0.0 }
  0xce   : > { %v645_v33 = vpop.f32.mrf.mxu1  ;;  %v1481_v34 = vadd.f32 %v851_v32, %v850_v23  ;;  %v589_v35 = vpop.f32.mrf.mxu2 }
  0xcf   : > { %v1483_v37 = vadd.f32 %v678_v17, %v589_v35 }
  0xd0   : > { %v551_v36 = vpop.f32.mrf.mxu0 }
  0xd1   : > { %v641_v38 = vadd.f32 %v640_v11, %v551_v36  ;;  %729 = vst.msk [vmem:[%s1443_s20 + $0xa0] sm:$0xff] %vm708_vm3, %v1483_v37 }
  0xd3   : > { %714 = vst.msk [vmem:[%s1443_s20 + $0x28] sm:$0xff] %vm708_vm3, %v641_v38  ;;  %v817_v20 = vmul.f32 %v641_v38, %v641_v38  ;;  %v750_v21 = vsel %vm708_vm3, %v641_v38, 0.0 }
  0xd4   : > { %v690_v58 = vpop.f32.mrf.mxu3  ;;  %v751_v29 = vadd.f32 %v750_v21, %v1478_v31 }
  0xd5   : > { %v853_v24 = vsel %vm708_vm3, %v817_v20, 0.0 }
  0xd6   : > { %v648_v40 = vpop.f32.mrf.mxu1  ;;  %v591_v41 = vpop.f32.mrf.mxu2 }
  0xd7   : > { %v1490_v43 = vadd.f32 %v680_v28, %v591_v41 }
  0xd8   : > { %v554_v42 = vpop.f32.mrf.mxu0 }
  0xd9   : > { %v644_v44 = vadd.f32 %v643_v22, %v554_v42  ;;  %730 = vst.msk [vmem:[%s1443_s20 + $0xa8] sm:$0xff] %vm708_vm3, %v1490_v43 }
  0xdb   : > { %715 = vst.msk [vmem:[%s1443_s20 + $0x30] sm:$0xff] %vm708_vm3, %v644_v44  ;;  %v818_v22 = vmul.f32 %v644_v44, %v644_v44  ;;  %v752_v25 = vsel %vm708_vm3, %v644_v44, 0.0 }
  0xdc   : > { %v693_v0 = vpop.f32.mrf.mxu3  ;;  %v753_v41 = vadd.f32 %v752_v25, %v751_v29 }
  0xde   : > { %v650_v46 = vpop.f32.mrf.mxu1  ;;  %v594_v47 = vpop.f32.mrf.mxu2 }
  0xdf   : > { %v1497_v49 = vadd.f32 %v683_v39, %v594_v47 }
  0xe0   : > { %v556_v48 = vpop.f32.mrf.mxu0 }
  0xe1   : > { %v646_v50 = vadd.f32 %v645_v33, %v556_v48  ;;  %731 = vst.msk [vmem:[%s1443_s20 + $0xb0] sm:$0xff] %vm708_vm3, %v1497_v49  ;;  %v855_v33 = vsel %vm708_vm3, %v818_v22, 0.0 }
  0xe3   : > { %716 = vst.msk [vmem:[%s1443_s20 + $0x38] sm:$0xff] %vm708_vm3, %v646_v50  ;;  %v819_v27 = vmul.f32 %v646_v50, %v646_v50  ;;  %v754_v35 = vsel %vm708_vm3, %v646_v50, 0.0 }
  0xe4   : > { %v695_v8 = vpop.f32.mrf.mxu3 }
  0xe5   : > { %v857_v42 = vsel %vm708_vm3, %v819_v27, 0.0 }
  0xe6   : > { %v653_v52 = vpop.f32.mrf.mxu1  ;;  %v596_v53 = vpop.f32.mrf.mxu2 }
  0xe7   : > { %v1504_v56 = vadd.f32 %v685_v45, %v596_v53 }
  0xe8   : > { %v559_v55 = vpop.f32.mrf.mxu0 }
  0xe9   : > { %v649_v57 = vadd.f32 %v648_v40, %v559_v55  ;;  %732 = vst.msk [vmem:[%s1443_s20 + $0xb8] sm:$0xff] %vm708_vm3, %v1504_v56  ;;  %v854_v40 = vadd.f32 %v853_v24, %v1481_v34 }
  0xeb   : > { %717 = vst.msk [vmem:[%s1443_s20 + $0x40] sm:$0xff] %vm708_vm3, %v649_v57  ;;  %v820_v36 = vmul.f32 %v649_v57, %v649_v57  ;;  %v756_v31 = vsel %vm708_vm3, %v649_v57, 0.0  ;;  %v856_v45 = vadd.f32 %v855_v33, %v854_v40 }
  0xec   : > { %v698_v16 = vpop.f32.mrf.mxu3 }
  0xed   : > { %v859_v47 = vsel %vm708_vm3, %v820_v36, 0.0 }
  0xee   : > { %v655_v59 = vpop.f32.mrf.mxu1  ;;  %v599_v60 = vpop.f32.mrf.mxu2 }
  0xef   : > { %v1511_v62 = vadd.f32 %v688_v51, %v599_v60  ;;  %v858_v51 = vadd.f32 %v857_v42, %v856_v45 }
  0xf0   : > { %v561_v61 = vpop.f32.mrf.mxu0 }
  0xf1   : > { %v651_v63 = vadd.f32 %v650_v46, %v561_v61  ;;  %733 = vst.msk [vmem:[%s1443_s20 + $0xc0] sm:$0xff] %vm708_vm3, %v1511_v62  ;;  %v755_v46 = vadd.f32 %v754_v35, %v753_v41  ;;  %v860_v60 = vadd.f32 %v859_v47, %v858_v51 }
  0xf3   : > { %718 = vst.msk [vmem:[%s1443_s20 + $0x48] sm:$0xff] %vm708_vm3, %v651_v63  ;;  %v821_v44 = vmul.f32 %v651_v63, %v651_v63  ;;  %v758_v48 = vsel %vm708_vm3, %v651_v63, 0.0 }
  0xf4   : > { %v700_v39 = vpop.f32.mrf.mxu3 }
  0xf5   : > { %v861_v55 = vsel %vm708_vm3, %v821_v44, 0.0 }
  0xf6   : > { %v658_v1 = vpop.f32.mrf.mxu1  ;;  %v601_v2 = vpop.f32.mrf.mxu2 }
  0xf7   : > { %v1518_v5 = vadd.f32 %v690_v58, %v601_v2 }
  0xf8   : > { %v564_v4 = vpop.f32.mrf.mxu0 }
  0xf9   : > { %v654_v6 = vadd.f32 %v653_v52, %v564_v4  ;;  %734 = vst.msk [vmem:[%s1443_s20 + $0xc8] sm:$0xff] %vm708_vm3, %v1518_v5  ;;  %v757_v52 = vadd.f32 %v756_v31, %v755_v46 }
  0xfb   : > { %719 = vst.msk [vmem:[%s1443_s20 + $0x50] sm:$0xff] %vm708_vm3, %v654_v6  ;;  %v822_v50 = vmul.f32 %v654_v6, %v654_v6  ;;  %v760_v57 = vsel %vm708_vm3, %v654_v6, 0.0  ;;  %v759_v61 = vadd.f32 %v758_v48, %v757_v52 }
  0xfe   : > { %v660_v7 = vpop.f32.mrf.mxu1  ;;  %v604_v9 = vpop.f32.mrf.mxu2 }
  0xff   : > { %v1525_v11 = vadd.f32 %v693_v0, %v604_v9 }
 0x100   : > { %v566_v10 = vpop.f32.mrf.mxu0 }
 0x101   : > { %v656_v12 = vadd.f32 %v655_v59, %v566_v10  ;;  %735 = vst.msk [vmem:[%s1443_s20 + $0xd0] sm:$0xff] %vm708_vm3, %v1525_v11 }
 0x103   : > { %720 = vst.msk [vmem:[%s1443_s20 + $0x58] sm:$0xff] %vm708_vm3, %v656_v12  ;;  %v823_v58 = vmul.f32 %v656_v12, %v656_v12  ;;  %v762_v2 = vsel %vm708_vm3, %v656_v12, 0.0 }
 0x105   : > { %v865_v6 = vsel %vm708_vm3, %v823_v58, 0.0 }
 0x106   : > { %v663_v13 = vpop.f32.mrf.mxu1  ;;  %v606_v14 = vpop.f32.mrf.mxu2 }
 0x107   : > { %v1532_v18 = vadd.f32 %v695_v8, %v606_v14  ;;  %v761_v8 = vadd.f32 %v760_v57, %v759_v61  ;;  %v703_v14 = vpop.f32.mrf.mxu3 }
 0x108   : > { %v569_v17 = vpop.f32.mrf.mxu0 }
 0x109   : > { %v659_v19 = vadd.f32 %v658_v1, %v569_v17  ;;  %736 = vst.msk [vmem:[%s1443_s20 + $0xd8] sm:$0xff] %vm708_vm3, %v1532_v18  ;;  %v863_v1 = vsel %vm708_vm3, %v822_v50, 0.0  ;;  %v763_v17 = vadd.f32 %v762_v2, %v761_v8 }
 0x10b   : > { %721 = vst.msk [vmem:[%s1443_s20 + $0x60] sm:$0xff] %vm708_vm3, %v659_v19  ;;  %v764_v9 = vsel %vm708_vm3, %v659_v19, 0.0 }
 0x10c   : > { %v765_v24 = vadd.f32 %v764_v9, %v763_v17  ;;  %v833_v9 = vmul.f32 %v1490_v43, %v1490_v43  ;;  %v834_v17 = vmul.f32 %v1497_v49, %v1497_v49 }
 0x10e   : > { %v1540_v23 = vpop.f32.mrf.mxu1  ;;  %v609_v28 = vpop.f32.mrf.mxu2 }
 0x10f   : > { %v1545_v32 = vadd.f32 %v698_v16, %v609_v28 }
 0x110   : > { %v571_v30 = vpop.f32.mrf.mxu0 }
 0x111   : > { %v661_v38 = vadd.f32 %v660_v7, %v571_v30  ;;  %737 = vst.msk [vmem:[%s1443_s20 + $0xe0] sm:$0xff] %vm708_vm3, %v1545_v32  ;;  %v862_v7 = vadd.f32 %v861_v55, %v860_v60  ;;  %v831_v60 = vmul.f32 %v1470_v26, %v1470_v26 }
 0x113   : > { %722 = vst.msk [vmem:[%s1443_s20 + $0x68] sm:$0xff] %vm708_vm3, %v661_v38  ;;  %v825_v10 = vmul.f32 %v661_v38, %v661_v38  ;;  %v864_v16 = vadd.f32 %v863_v1, %v862_v7  ;;  %v881_v8 = vsel %vm708_vm3, %v831_v60, 0.0 }
 0x115   : > { %v866_v22 = vadd.f32 %v865_v6, %v864_v16  ;;  %v780_v6 = vsel %vm708_vm3, %v1483_v37, 0.0 }
 0x116   : > { %v668_v34 = vpop.f32.mrf.mxu1  ;;  %v611_v59 = vpop.f32.mrf.mxu2 }
 0x117   : > { %v669_v53 = vadd.f32 %v668_v34, %v1447_v54  ;;  %v1564_v63 = vadd.f32 %v700_v39, %v611_v59  ;;  %v824_v54 = vmul.f32 %v659_v19, %v659_v19  ;;  %v869_v19 = vsel %vm708_vm3, %v825_v10, 0.0 }
 0x118   : > { %v574_v0 = vpop.f32.mrf.mxu0  ;;  %v830_v34 = vmul.f32 %v1461_v15, %v1461_v15 }
 0x119   : > { %725 = vst.msk [vmem:[%s1443_s20 + $0x80] sm:$0xff] %vm708_vm3, %v669_v53  ;;  %v664_v4 = vadd.f32 %v663_v13, %v574_v0  ;;  %v867_v12 = vsel %vm708_vm3, %v824_v54, 0.0  ;;  %v766_v13 = vsel %vm708_vm3, %v661_v38, 0.0  ;;  %v772_v45 = vsel %vm708_vm3, %v669_v53, 0.0 }
 0x11a   : > { %738 = vst.msk [vmem:[%s1443_s20 + $0xe8] sm:$0xff] %vm708_vm3, %v1564_v63  ;;  %v868_v29 = vadd.f32 %v867_v12, %v866_v22  ;;  %v767_v30 = vadd.f32 %v766_v13, %v765_v24  ;;  %v879_v2 = vsel %vm708_vm3, %v830_v34, 0.0  ;;  %v778_v54 = vsel %vm708_vm3, %v1470_v26, 0.0 }
 0x11b   : > { %723 = vst.msk [vmem:[%s1443_s20 + $0x70] sm:$0xff] %vm708_vm3, %v664_v4  ;;  %v826_v20 = vmul.f32 %v664_v4, %v664_v4  ;;  %v768_v27 = vsel %vm708_vm3, %v664_v4, 0.0  ;;  %v832_v4 = vmul.f32 %v1483_v37, %v1483_v37  ;;  %v782_v26 = vsel %vm708_vm3, %v1490_v43, 0.0 }
 0x11c   : > { %v870_v39 = vadd.f32 %v869_v19, %v868_v29  ;;  %v769_v40 = vadd.f32 %v768_v27, %v767_v30  ;;  %v784_v37 = vsel %vm708_vm3, %v1497_v49, 0.0  ;;  %v786_v43 = vsel %vm708_vm3, %v1504_v56, 0.0 }
 0x11d   : > { %v871_v36 = vsel %vm708_vm3, %v826_v20, 0.0  ;;  %v883_v16 = vsel %vm708_vm3, %v832_v4, 0.0  ;;  %v885_v20 = vsel %vm708_vm3, %v833_v9, 0.0  ;;  %v836_v19 = vmul.f32 %v1511_v62, %v1511_v62 }
 0x11e   : > { %v670_v21 = vpop.f32.mrf.mxu1  ;;  %v614_v28 = vpop.f32.mrf.mxu2  ;;  %v872_v31 = vadd.f32 %v871_v36, %v870_v39  ;;  %v788_v49 = vsel %vm708_vm3, %v1511_v62, 0.0  ;;  %v837_v30 = vmul.f32 %v1518_v5, %v1518_v5  ;;  %v838_v39 = vmul.f32 %v1525_v11, %v1525_v11 }
 0x11f   : > { %v671_v25 = vadd.f32 %v670_v21, %v1455_v3  ;;  %v1582_v35 = vadd.f32 %v703_v14, %v614_v28  ;;  %v828_v3 = vmul.f32 %v669_v53, %v669_v53  ;;  %v776_v53 = vsel %vm708_vm3, %v1461_v15, 0.0 }
 0x120   : > { %v576_v33 = vpop.f32.mrf.mxu0  ;;  %v835_v21 = vmul.f32 %v1504_v56, %v1504_v56  ;;  %v790_v56 = vsel %vm708_vm3, %v1518_v5, 0.0  ;;  %v792_v62 = vsel %vm708_vm3, %v1525_v11, 0.0  ;;  %v794_v5 = vsel %vm708_vm3, %v1532_v18, 0.0 }
 0x121   : > { %726 = vst.msk [vmem:[%s1443_s20 + $0x88] sm:$0xff] %vm708_vm3, %v671_v25  ;;  %v666_v38 = vadd.f32 %v1540_v23, %v576_v33  ;;  %v829_v46 = vmul.f32 %v671_v25, %v671_v25  ;;  %v705_v23 = vpop.f32.mrf.mxu3  ;;  %v875_v51 = vsel %vm708_vm3, %v828_v3, 0.0  ;;  %v774_v52 = vsel %vm708_vm3, %v671_v25, 0.0 }
 0x122   : > { %739 = vst.msk [vmem:[%s1443_s20 + $0xf0] sm:$0xff] %vm708_vm3, %v1582_v35  ;;  %v887_v25 = vsel %vm708_vm3, %v834_v17, 0.0  ;;  %v889_v29 = vsel %vm708_vm3, %v835_v21, 0.0  ;;  %v796_v11 = vsel %vm708_vm3, %v1545_v32, 0.0 }
 0x123   : > { %724 = vst.msk [vmem:[%s1443_s20 + $0x78] sm:$0xff] %vm708_vm3, %v666_v38  ;;  %v770_v41 = vsel %vm708_vm3, %v666_v38, 0.0  ;;  %v827_v42 = vmul.f32 %v666_v38, %v666_v38  ;;  %v877_v61 = vsel %vm708_vm3, %v829_v46, 0.0  ;;  %v891_v38 = vsel %vm708_vm3, %v836_v19, 0.0 }
 0x124   : > { %v771_v44 = vadd.f32 %v770_v41, %v769_v40  ;;  %v893_v41 = vsel %vm708_vm3, %v837_v30, 0.0  ;;  %v840_v46 = vmul.f32 %v1545_v32, %v1545_v32  ;;  %v800_v32 = vsel %vm708_vm3, %v1582_v35, 0.0 }
 0x125   : > { %v873_v47 = vsel %vm708_vm3, %v827_v42, 0.0  ;;  %v839_v42 = vmul.f32 %v1532_v18, %v1532_v18  ;;  %v798_v18 = vsel %vm708_vm3, %v1564_v63, 0.0 }
 0x126   : > { %v773_v48 = vadd.f32 %v772_v45, %v771_v44  ;;  %v874_v50 = vadd.f32 %v873_v47, %v872_v31  ;;  %v616_v55 = vpop.f32.mrf.mxu2  ;;  %v895_v45 = vsel %vm708_vm3, %v838_v39, 0.0 }
 0x127   : > { %v1598_v59 = vadd.f32 %v705_v23, %v616_v55  ;;  %v842_v55 = vmul.f32 %v1582_v35, %v1582_v35 }
 0x128   : > { %v775_v57 = vadd.f32 %v774_v52, %v773_v48  ;;  %v876_v58 = vadd.f32 %v875_v51, %v874_v50  ;;  %v897_v48 = vsel %vm708_vm3, %v839_v42, 0.0  ;;  %v841_v50 = vmul.f32 %v1564_v63, %v1564_v63 }
 0x129   : > { %740 = vst.msk [vmem:[%s1443_s20 + $0xf8] sm:$0xff] %vm708_vm3, %v1598_v59  ;;  %v899_v52 = vsel %vm708_vm3, %v840_v46, 0.0  ;;  %v843_v60 = vmul.f32 %v1598_v59, %v1598_v59  ;;  %v802_v63 = vsel %vm708_vm3, %v1598_v59, 0.0 }
 0x12a   : > { %v777_v0 = vadd.f32 %v776_v53, %v775_v57  ;;  %v878_v1 = vadd.f32 %v877_v61, %v876_v58  ;;  %v901_v53 = vsel %vm708_vm3, %v841_v50, 0.0 }
 0x12b   : > { %v905_v4 = vsel %vm708_vm3, %v843_v60, 0.0 }
 0x12c   : > { %v779_v7 = vadd.f32 %v778_v54, %v777_v0  ;;  %v880_v15 = vadd.f32 %v879_v2, %v878_v1  ;;  %v903_v1 = vsel %vm708_vm3, %v842_v55, 0.0 }
 0x12e   : > { %v781_v10 = vadd.f32 %v780_v6, %v779_v7  ;;  %v882_v14 = vadd.f32 %v881_v8, %v880_v15 }
 0x130   : > { %v783_v12 = vadd.f32 %v782_v26, %v781_v10  ;;  %v884_v13 = vadd.f32 %v883_v16, %v882_v14 }
 0x132   : > { %v886_v22 = vadd.f32 %v885_v20, %v884_v13  ;;  %v785_v24 = vadd.f32 %v784_v37, %v783_v12 }
 0x134   : > { %v787_v27 = vadd.f32 %v786_v43, %v785_v24  ;;  %v888_v28 = vadd.f32 %v887_v25, %v886_v22 }
 0x136   : > { %v789_v33 = vadd.f32 %v788_v49, %v787_v27  ;;  %v890_v36 = vadd.f32 %v889_v29, %v888_v28 }
 0x138   : > { %v791_v40 = vadd.f32 %v790_v56, %v789_v33  ;;  %v892_v3 = vadd.f32 %v891_v38, %v890_v36 }
 0x13a   : > { %v793_v31 = vadd.f32 %v792_v62, %v791_v40  ;;  %v894_v44 = vadd.f32 %v893_v41, %v892_v3 }
 0x13c   : > { %v795_v47 = vadd.f32 %v794_v5, %v793_v31  ;;  %v896_v23 = vadd.f32 %v895_v45, %v894_v44 }
 0x13e   : > { %v797_v34 = vadd.f32 %v796_v11, %v795_v47  ;;  %v898_v51 = vadd.f32 %v897_v48, %v896_v23 }
 0x140   : > { %v900_v57 = vadd.f32 %v899_v52, %v898_v51  ;;  %v799_v58 = vadd.f32 %v798_v18, %v797_v34 }
 0x142   : > { %v902_v61 = vadd.f32 %v901_v53, %v900_v57  ;;  %v801_v0 = vadd.f32 %v800_v32, %v799_v58 }
 0x144   : > { %v904_v2 = vadd.f32 %v903_v1, %v902_v61  ;;  %v803_v54 = vadd.f32 %v802_v63, %v801_v0 }
 0x146   : > { %v804_v7 = vrot.slane %v803_v54, 4  ;;  %v906_v15 = vadd.f32 %v905_v4, %v904_v2 }
 0x148   : > { %v805_v8 = vadd.f32 %v804_v7, %v803_v54  ;;  %v907_v35 = vrot.slane %v906_v15, 4 }
 0x14a   : > { %v806_v6 = vrot.slane %v805_v8, 2  ;;  %v908_v9 = vadd.f32 %v907_v35, %v906_v15 }
 0x14c   : > { %v807_v10 = vadd.f32 %v806_v6, %v805_v8  ;;  %v909_v14 = vrot.slane %v908_v9, 2 }
 0x14e   : > { %v808_v16 = vrot.slane %v807_v10, 1  ;;  %v910_v26 = vadd.f32 %v909_v14, %v908_v9 }
 0x150   : > { %v809_v59 = vadd.f32 %v808_v16, %v807_v10  ;;  %v911_v17 = vrot.slane %v910_v26, 1 }
 0x152   : > { %811 = vst.msk [vmem:[%s217_s23] sm:$0x1] %vm810_vm4, %v809_v59  ;;  %v912_v12 = vadd.f32 %v911_v17, %v910_v26 }
 0x154   : > { %913 = vst.msk [vmem:[%s220_s26] sm:$0x1] %vm810_vm4, %v912_v12 }
 0x155 PF: > { %s15_s15 = sadd.s32 1, %s1279_s15  }
 0x156   : > { %p12_p5 = scmp.ge.s32.totalorder %s15_s15, 4  }
 0x158   :  { %14 = sbr.rel (!%p12_p5) target bundleno = 1 (0x1), region = 82 }

// kernel: densenet_forward.7
= control target key start
LH: loop header
LB: loop body
LE: loop exit
PB: predicated region body
PF: predicated region fallthrough
CT: control target
= control target key end

     0   :  { %s1529_s13 = smov 0   ;;  %s2328_s0 = inlined_call_operand.vmem [shape: f32[2,9,9,32], index: 0, kind: input, shape index: {}]   ;;  %s2329_s1 = inlined_call_operand.vmem [shape: f32[2,9,9,32], index: 1, kind: input, shape index: {}]   ;;  %s2330_s2 = inlined_call_operand.vmem [shape: f32[2,9,9,32], index: 2, kind: input, shape index: {}]   ;;  %s2331_s3 = inlined_call_operand.vmem [shape: f32[2,9,9,32], index: 3, kind: input, shape index: {}]   ;;  %s2332_s4 = inlined_call_operand.vmem [shape: f32[1,9,9,1], index: 4, kind: input, shape index: {}]   ;;  %s2333_s5 = inlined_call_operand.vmem [shape: f32[1,9,9,1], index: 5, kind: input, shape index: {}]   ;;  %s2334_s6 = inlined_call_operand.vmem [shape: f32[1,9,9,1], index: 6, kind: input, shape index: {}]   ;;  %s2335_s7 = inlined_call_operand.vmem [shape: f32[1,9,9,1], index: 7, kind: input, shape index: {}]   ;;  %s2336_s8 = inlined_call_operand.vmem [shape: f32[1,32], index: 8, kind: input, shape index: {}]   ;;  %s2337_s9 = inlined_call_operand.vmem [shape: f32[1,32], index: 9, kind: input, shape index: {}]   ;;  %s2338_s10 = inlined_call_operand.vmem [shape: f32[2,8,8,32], index: 10, kind: output, shape index: {}]  }
   0x1 LB: > { %s1388_s14 = sadd.s32 4294967295, %s1471_s13   ;;  %p1392_p0 = scmp.ge.s32.totalorder %s1471_s13, 1  ;;  %s1471_s13 = sphi %s1529_s13, %s20_s13  }
   0x2   : > { %p342_p1 = scmp.lt.s32.totalorder %s1471_s13, 3 }
   0x4   : > { %p343_p2 = pnand %p1392_p0, %p342_p1 }
   0x6   : > { %346 = sbr.rel (%p343_p2) target bundleno = 319 (0x13f), region = 60 }
   0xb   : > { %v1540_v0 = vld [vmem:[%s2332_s4 + $0x40] sm:$0xff]  ;;  %v1473_v3 = vmov 0   ;;  %v1555_v4 = vld [vmem:[%s2332_s4 + $0x50] sm:$0xff]  ;;  %p395_p3 = scmp.lt.s32.totalorder %s1388_s14, 1  ;;  %vm1288_vm0 = vcmask 261120  }
   0xc   : > { %v1545_v1 = vld [vmem:[%s2332_s4 + $0x20] sm:$0xff]  ;;  %1462 = vset.pattern.permute.xlu2 %v1473_v3  ;;  %1461 = vset.pattern.permute.xlu1 %v1473_v3  ;;  %v1560_v5 = vld [vmem:[%s2332_s4 + $0x30] sm:$0xff] }
   0xd   : > { %v430_v2 = vld [vmem:[%s2332_s4] sm:$0xff]  ;;  %1460 = vset.pattern.permute.xlu0 %v1473_v3  ;;  %490 = vperm.xlu2 %1462, %v1540_v0   ;;  %v1565_v6 = vld [vmem:[%s2332_s4 + $0x10] sm:$0xff]  ;;  %s2417_s14 = smov (!%p395_p3, %s1388_s14), 1 }
   0xe   : > { %480 = vperm.xlu1 %1461, %v1545_v1   ;;  %470 = vperm.xlu0 %1460, %v430_v2   ;;  %v524_v7 = vld [vmem:[%s2333_s5] sm:$0xff]  ;;  %v1576_v8 = vld [vmem:[%s2332_s4 + $0x70] sm:$0xff]  ;;  %s1717_s15 = smul.u32 144, %s2417_s14  ;;  %s1449_s11 = sshll.u32 %s2417_s14, 6 }
   0xf   : > { %v1581_v9 = vld [vmem:[%s2332_s4 + $0x60] sm:$0xff]  ;;  %v1588_v10 = vld [vmem:[%s2333_s5 + $0x30] sm:$0xff] }
  0x10   : > { %v1593_v11 = vld [vmem:[%s2333_s5 + $0x20] sm:$0xff]  ;;  %v1598_v12 = vld [vmem:[%s2333_s5 + $0x10] sm:$0xff]  ;;  %s1732_s24 = scalar_lea.vmem %s2329_s1, %s1717_s15  ;;  %s1738_s27 = scalar_lea.vmem %s2328_s0, %s1717_s15 }
  0x11   : > { %v1606_v13 = vld [vmem:[%s2333_s5 + $0x60] sm:$0xff]  ;;  %v1611_v14 = vld [vmem:[%s2333_s5 + $0x50] sm:$0xff]  ;;  %s1958_s22 = scalar_lea.vmem %s2330_s2, %s1717_s15  ;;  %s2028_s26 = scalar_lea.vmem %s2331_s3, %s1717_s15 }
  0x12   : > { %v1616_v15 = vld [vmem:[%s2333_s5 + $0x40] sm:$0xff]  ;;  %v1624_v16 = vld [vmem:[%s2332_s4 + $0x11] sm:$0xff] }
  0x13   : > { %v620_v17 = vld [vmem:[%s2332_s4 + $0x1] sm:$0xff]  ;;  %v1632_v18 = vld [vmem:[%s2333_s5 + $0x70] sm:$0xff]  ;;  %v1743_v41 = vld [vmem:[%s2336_s8] ss:$0 sm:$0xff] }
  0x14   : > { %v1639_v19 = vld [vmem:[%s2332_s4 + $0x41] sm:$0xff]  ;;  %v1644_v20 = vld [vmem:[%s2332_s4 + $0x31] sm:$0xff]  ;;  %v1755_v46 = vld [vmem:[%s2337_s9] ss:$0 sm:$0xff] }
  0x15   : > { %495 = vperm.xlu2 %1462, %v1555_v4   ;;  %v1649_v21 = vld [vmem:[%s2332_s4 + $0x21] sm:$0xff]  ;;  %v1657_v22 = vld [vmem:[%s2332_s4 + $0x71] sm:$0xff] }
  0x16   : > { %485 = vperm.xlu1 %1461, %v1560_v5   ;;  %475 = vperm.xlu0 %1460, %v1565_v6   ;;  %v1662_v23 = vld [vmem:[%s2332_s4 + $0x61] sm:$0xff]  ;;  %v1667_v24 = vld [vmem:[%s2332_s4 + $0x51] sm:$0xff] }
  0x17   : > { %v718_v25 = vld [vmem:[%s2334_s6 + $0x20] sm:$0xff]  ;;  %v717_v26 = vld [vmem:[%s2334_s6 + $0x10] sm:$0xff] }
  0x18   : > { %v716_v27 = vld [vmem:[%s2334_s6] sm:$0xff]  ;;  %v721_v28 = vld [vmem:[%s2334_s6 + $0x50] sm:$0xff] }
  0x19   : > { %v720_v29 = vld [vmem:[%s2334_s6 + $0x40] sm:$0xff]  ;;  %v719_v30 = vld [vmem:[%s2334_s6 + $0x30] sm:$0xff] }
  0x1a   : > { %v812_v31 = vld [vmem:[%s2335_s7] sm:$0xff]  ;;  %v723_v32 = vld [vmem:[%s2334_s6 + $0x70] sm:$0xff] }
  0x1b   : > { %v722_v33 = vld [vmem:[%s2334_s6 + $0x60] sm:$0xff]  ;;  %v815_v34 = vld [vmem:[%s2335_s7 + $0x30] sm:$0xff] }
  0x1c   : > { %v814_v35 = vld [vmem:[%s2335_s7 + $0x20] sm:$0xff]  ;;  %v813_v36 = vld [vmem:[%s2335_s7 + $0x10] sm:$0xff] }
  0x1d   : > { %558 = vperm.xlu2 %1462, %v524_v7   ;;  %v818_v38 = vld [vmem:[%s2335_s7 + $0x60] sm:$0xff]  ;;  %v817_v39 = vld [vmem:[%s2335_s7 + $0x50] sm:$0xff] }
  0x1e   : > { %505 = vperm.xlu1 %1461, %v1576_v8   ;;  %500 = vperm.xlu0 %1460, %v1581_v9   ;;  %v816_v40 = vld [vmem:[%s2335_s7 + $0x40] sm:$0xff]  ;;  %v909_v44 = vld [vmem:[%s2334_s6 + $0x11] sm:$0xff] }
  0x1f   : > { %v516_v43 = vld [vmem:[%s1732_s24] sm:$0xff]  ;;  %v819_v48 = vld [vmem:[%s2335_s7 + $0x70] sm:$0xff] }
  0x20   : > { %v422_v45 = vld [vmem:[%s1738_s27] sm:$0xff]  ;;  %v532_v49 = vmul.f32 %v1743_v41, %v516_v43  ;;  %v519_v55 = vld [vmem:[%s1732_s24 + $0x30] sm:$0xff] }
  0x21   : > { %v908_v47 = vld [vmem:[%s2334_s6 + $0x1] sm:$0xff]  ;;  %v441_v50 = vmul.f32 %v1743_v41, %v422_v45  ;;  %v425_v56 = vld [vmem:[%s1738_s27 + $0x30] sm:$0xff]  ;;  %v535_v60 = vmul.f32 %v1743_v41, %v519_v55 }
  0x22   : > { %v540_v52 = vadd.f32 %v1755_v46, %v532_v49  ;;  %v912_v54 = vld [vmem:[%s2334_s6 + $0x41] sm:$0xff]  ;;  %v911_v58 = vld [vmem:[%s2334_s6 + $0x31] sm:$0xff]  ;;  %v444_v62 = vmul.f32 %v1743_v41, %v425_v56 }
  0x23   : > { %v452_v53 = vadd.f32 %v1755_v46, %v441_v50  ;;  %v910_v59 = vld [vmem:[%s2334_s6 + $0x21] sm:$0xff]  ;;  %v613_v55 = vld [vmem:[%s1738_s27 + $0x11] sm:$0xff] }
  0x24   : > { %v548_v57 = vmax.f32 %v540_v52, 0.0  ;;  %v518_v50 = vld [vmem:[%s1732_s24 + $0x20] sm:$0xff] }
  0x25   : > { %573 = vperm.xlu2 %1462, %v1588_v10   ;;  %v460_v61 = vmax.f32 %v452_v53, 0.0 }
  0x26   : > { %568 = vperm.xlu1 %1461, %v1593_v11   ;;  %563 = vperm.xlu0 %1460, %v1598_v12  }
  0x2d   : > { %588 = vperm.xlu2 %1462, %v1606_v13  }
  0x2e   : > { %583 = vperm.xlu1 %1461, %v1611_v14   ;;  %578 = vperm.xlu0 %1460, %v1616_v15  }
  0x35   : > { %659 = vperm.xlu2 %1462, %v1624_v16  }
  0x36   : > { %654 = vperm.xlu1 %1461, %v620_v17   ;;  %593 = vperm.xlu0 %1460, %v1632_v18   ;;  %v1785_v17 = vadd.f32 %v1755_v46, %v535_v60 }
  0x3d   : > { %674 = vperm.xlu2 %1462, %v1639_v19  }
  0x3e   : > { %669 = vperm.xlu1 %1461, %v1644_v20   ;;  %664 = vperm.xlu0 %1460, %v1649_v21  }
  0x45   : > { %689 = vperm.xlu2 %1462, %v1657_v22  }
  0x46   : > { %684 = vperm.xlu1 %1461, %v1662_v23   ;;  %679 = vperm.xlu0 %1460, %v1667_v24  }
  0x4d   : > { %760 = vperm.xlu2 %1462, %v718_v25  }
  0x4e   : > { %755 = vperm.xlu1 %1461, %v717_v26   ;;  %750 = vperm.xlu0 %1460, %v716_v27   ;;  %v1790_v26 = vadd.f32 %v1755_v46, %v444_v62  ;;  %v915_v27 = vld [vmem:[%s2334_s6 + $0x71] sm:$0xff]  ;;  %v426_v62 = vld [vmem:[%s1738_s27 + $0x40] sm:$0xff] }
  0x55   : > { %775 = vperm.xlu2 %1462, %v721_v28   ;;  %v522_v28 = vld [vmem:[%s1732_s24 + $0x60] sm:$0xff] }
  0x56   : > { %770 = vperm.xlu1 %1461, %v720_v29   ;;  %765 = vperm.xlu0 %1460, %v719_v30   ;;  %v428_v29 = vld [vmem:[%s1738_s27 + $0x60] sm:$0xff] }
  0x5d   : > { %846 = vperm.xlu2 %1462, %v812_v31   ;;  %v914_v31 = vld [vmem:[%s2334_s6 + $0x61] sm:$0xff] }
  0x5e   : > { %785 = vperm.xlu1 %1461, %v723_v32   ;;  %780 = vperm.xlu0 %1460, %v722_v33   ;;  %v913_v32 = vld [vmem:[%s2334_s6 + $0x51] sm:$0xff]  ;;  %v2341_v33 = vmax.f32 %v1785_v17, 0.0 }
  0x65   : > { %861 = vperm.xlu2 %1462, %v815_v34   ;;  %v538_v34 = vmul.f32 %v1743_v41, %v522_v28  ;;  %v427_v28 = vld [vmem:[%s1738_s27 + $0x50] sm:$0xff] }
  0x66   : > { %856 = vperm.xlu1 %1461, %v814_v35   ;;  %851 = vperm.xlu0 %1460, %v813_v36   ;;  %v2342_v35 = vmax.f32 %v1790_v26, 0.0  ;;  %v447_v36 = vmul.f32 %v1743_v41, %v428_v29 }
  0x67   : > { %v1714_v37 = vpop.permute.xlu2 %490  ;;  %v1815_v45 = vadd.f32 %v1755_v46, %v538_v34  ;;  %v520_v34 = vld [vmem:[%s1732_s24 + $0x40] sm:$0xff] }
  0x68   : > { %v1823_v49 = vadd.f32 %v1755_v46, %v447_v36 }
  0x69   : > { %2367 = vst [vmem:[#allocation2_spill] sm:$0xff] %v1815_v45  ;;  %v2339_v56 = vmax.f32 %v1815_v45, 0.0 }
  0x6a   : > { %2368 = vst [vmem:[#allocation3_spill] sm:$0xff] %v1823_v49 }
  0x6d   : > { %876 = vperm.xlu2 %1462, %v818_v38  }
  0x6e   : > { %871 = vperm.xlu1 %1461, %v817_v39   ;;  %866 = vperm.xlu0 %1460, %v816_v40  }
  0x6f   : > { %v1745_v42 = vpop.permute.xlu2 %495 }
  0x75   : > { %947 = vperm.xlu2 %1462, %v909_v44   ;;  %v424_v44 = vld [vmem:[%s1738_s27 + $0x20] sm:$0xff] }
  0x76   : > { %942 = vperm.xlu1 %1461, %v908_v47   ;;  %881 = vperm.xlu0 %1460, %v819_v48   ;;  %v423_v48 = vld [vmem:[%s1738_s27 + $0x10] sm:$0xff]  ;;  %v443_v53 = vmul.f32 %v1743_v41, %v424_v44  ;;  %v446_v44 = vmul.f32 %v1743_v41, %v427_v28 }
  0x77   : > { %v559_v51 = vpop.permute.xlu2 %558 }
  0x78   : > { %v1780_v63 = vmul.f32 %v559_v51, %v548_v57  ;;  %v517_v51 = vld [vmem:[%s1732_s24 + $0x10] sm:$0xff]  ;;  %v2340_v57 = vmax.f32 %v1823_v49, 0.0 }
  0x7d   : > { %962 = vperm.xlu2 %1462, %v912_v54   ;;  %v442_v54 = vmul.f32 %v1743_v41, %v423_v48  ;;  %v616_v48 = vld [vmem:[%s1738_s27 + $0x41] sm:$0xff] }
  0x7e   : > { %957 = vperm.xlu1 %1461, %v911_v58   ;;  %952 = vperm.xlu0 %1460, %v910_v59   ;;  %v534_v58 = vmul.f32 %v1743_v41, %v518_v50  ;;  %v533_v59 = vmul.f32 %v1743_v41, %v517_v51  ;;  %v536_v51 = vmul.f32 %v1743_v41, %v520_v34 }
  0x7f   : > { %v574_v2 = vpop.permute.xlu2 %573 }
  0x80   : > { %v1782_v3 = vpop.permute.xlu1 %480  ;;  %v471_v7 = vpop.permute.xlu0 %470  ;;  %v1811_v43 = vmul.f32 %v574_v2, %v2341_v33  ;;  %v1842_v2 = vadd.f32 %v1755_v46, %v443_v53  ;;  %v1859_v29 = vadd.f32 %v1755_v46, %v534_v58 }
  0x81   : > { %v1787_v25 = vmul.f32 %v471_v7, %v460_v61  ;;  %v629_v61 = vmul.f32 %v1743_v41, %v613_v55 }
  0x82   : > { %v2347_v53 = vmax.f32 %v1842_v2, 0.0  ;;  %v2346_v55 = vmax.f32 %v1859_v29, 0.0 }
  0x83   : > { %v604_v30 = vmax.f32 %v1787_v25, %v1780_v63  ;;  %v1867_v36 = vadd.f32 %v1755_v46, %v629_v61 }
  0x85   : > { %977 = vperm.xlu2 %1462, %v915_v27  }
  0x86   : > { %972 = vperm.xlu1 %1461, %v914_v31   ;;  %967 = vperm.xlu0 %1460, %v913_v32   ;;  %v1862_v31 = vadd.f32 %v1755_v46, %v533_v59  ;;  %v521_v32 = vld [vmem:[%s1732_s24 + $0x50] sm:$0xff]  ;;  %v2345_v59 = vmax.f32 %v1867_v36, 0.0 }
  0x87   : > { %v589_v38 = vpop.permute.xlu2 %588  ;;  %v537_v50 = vmul.f32 %v1743_v41, %v521_v32 }
  0x88   : > { %v486_v39 = vpop.permute.xlu1 %485  ;;  %v476_v40 = vpop.permute.xlu0 %475  ;;  %v2343_v58 = vmax.f32 %v1862_v31, 0.0 }
  0x89   : > { %v1819_v47 = vmul.f32 %v486_v39, %v2342_v35  ;;  %v1892_v34 = vadd.f32 %v1755_v46, %v537_v50 }
  0x8b   : > { %v607_v52 = vmax.f32 %v1819_v47, %v1811_v43 }
  0x8d   : > { %1050 = vperm.xlu2 %1462, %v1560_v5   ;;  %v1845_v5 = vadd.f32 %v1755_v46, %v442_v54 }
  0x8e   : > { %1045 = vperm.xlu1 %1461, %v1545_v1   ;;  %1040 = vperm.xlu0 %1460, %v1565_v6   ;;  %v1852_v1 = vmul.f32 %v589_v38, %v2339_v56  ;;  %v445_v38 = vmul.f32 %v1743_v41, %v426_v62  ;;  %v632_v62 = vmul.f32 %v1743_v41, %v616_v48  ;;  %v429_v48 = vld [vmem:[%s1738_s27 + $0x70] sm:$0xff]  ;;  %v612_v56 = vld [vmem:[%s1738_s27 + $0x1] sm:$0xff] }
  0x8f   : > { %v660_v60 = vpop.permute.xlu2 %659  ;;  %v2344_v54 = vmax.f32 %v1845_v5, 0.0 }
  0x90   : > { %v1847_v7 = vpop.permute.xlu1 %505  ;;  %v501_v27 = vpop.permute.xlu0 %500  ;;  %v1916_v33 = vadd.f32 %v1755_v46, %v632_v62 }
  0x91   : > { %v1856_v6 = vmul.f32 %v501_v27, %v2340_v57  ;;  %v1886_v27 = vadd.f32 %v1755_v46, %v445_v38  ;;  %v509_v38 = vmul.f32 %v476_v40, %v2344_v54  ;;  %v693_v57 = vmul.f32 %v660_v60, %v2345_v59  ;;  %v619_v54 = vld [vmem:[%s1738_s27 + $0x71] sm:$0xff] }
  0x92   : > { %2369 = vst [vmem:[#allocation4_spill] sm:$0xff] %v1916_v33  ;;  %v2350_v60 = vmax.f32 %v1892_v34, 0.0 }
  0x93   : > { %v2348_v35 = vmax.f32 %v1886_v27, 0.0 }
  0x95   : > { %1065 = vperm.xlu2 %1462, %v1581_v9   ;;  %v1889_v9 = vadd.f32 %v1755_v46, %v446_v44 }
  0x96   : > { %1060 = vperm.xlu1 %1461, %v1555_v4   ;;  %1055 = vperm.xlu0 %1460, %v1540_v0   ;;  %v1895_v4 = vadd.f32 %v1755_v46, %v536_v51  ;;  %v1900_v0 = vmul.f32 %v1782_v3, %v2347_v53  ;;  %v523_v51 = vld [vmem:[%s1732_s24 + $0x70] sm:$0xff]  ;;  %v635_v53 = vmul.f32 %v1743_v41, %v619_v54 }
  0x97   : > { %v675_v61 = vpop.permute.xlu2 %674 }
  0x98   : > { %v569_v28 = vpop.permute.xlu1 %568  ;;  %v564_v32 = vpop.permute.xlu0 %563  ;;  %v2349_v62 = vmax.f32 %v1895_v4, 0.0 }
  0x99   : > { %v1907_v44 = vmul.f32 %v569_v28, %v2346_v55  ;;  %v597_v50 = vmul.f32 %v564_v32, %v2343_v58  ;;  %v1414_v28 = vld [vmem:[%s2332_s4 + $0x80] sm:$0xff]  ;;  %v2351_v32 = vmax.f32 %v1889_v9, 0.0  ;;  %v448_v58 = vmul.f32 %v1743_v41, %v429_v48 }
  0x9a   : > { %v2352_v48 = vmax.f32 %v1916_v33, 0.0 }
  0x9b   : > { %v605_v40 = vmax.f32 %v509_v38, %v597_v50  ;;  %v628_v38 = vmul.f32 %v1743_v41, %v612_v56  ;;  %v539_v50 = vmul.f32 %v1743_v41, %v523_v51  ;;  %v1943_v56 = vmul.f32 %v1745_v42, %v2351_v32  ;;  %v710_v32 = vld [vmem:[%s1958_s22 + $0x20] sm:$0xff] }
  0x9d   : > { %1138 = vperm.xlu2 %1462, %v1598_v12   ;;  %v1932_v59 = vmax.f32 %v605_v40, %v693_v57  ;;  %v512_v12 = vmul.f32 %v1714_v37, %v2348_v35  ;;  %v1946_v57 = vadd.f32 %v1755_v46, %v448_v58  ;;  %v636_v37 = vadd.f32 %v1755_v46, %v628_v38  ;;  %v615_v58 = vld [vmem:[%s1738_s27 + $0x31] sm:$0xff] }
  0x9e   : > { %1075 = vperm.xlu1 %1461, %v1414_v28   ;;  %1070 = vperm.xlu0 %1460, %v1576_v8   ;;  %v1962_v42 = vadd.f32 %v1755_v46, %v539_v50  ;;  %v614_v28 = vld [vmem:[%s1738_s27 + $0x21] sm:$0xff]  ;;  %v1969_v35 = vadd.f32 %v1755_v46, %v635_v53  ;;  %v631_v38 = vmul.f32 %v1743_v41, %v615_v58 }
  0x9f   : > { %v690_v55 = vpop.permute.xlu2 %689  ;;  %v644_v50 = vmax.f32 %v636_v37, 0.0  ;;  %v726_v58 = vmul.f32 %v1743_v41, %v710_v32 }
  0xa0   : > { %v584_v51 = vpop.permute.xlu1 %583  ;;  %v579_v40 = vpop.permute.xlu0 %578  ;;  %2370 = vst [vmem:[#allocation5_spill] sm:$0xff] %v1962_v42  ;;  %v2355_v39 = vmax.f32 %v1962_v42, 0.0 }
  0xa1   : > { %v1950_v8 = vmul.f32 %v584_v51, %v2350_v60  ;;  %v600_v54 = vmul.f32 %v579_v40, %v2349_v62  ;;  %v696_v51 = vmul.f32 %v675_v61, %v2352_v48  ;;  %2371 = vst [vmem:[#allocation6_spill] sm:$0xff] %v1969_v35  ;;  %v2357_v60 = vmax.f32 %v1946_v57, 0.0  ;;  %v617_v40 = vld [vmem:[%s1738_s27 + $0x51] sm:$0xff] }
  0xa2   : > { %v630_v61 = vmul.f32 %v1743_v41, %v614_v28  ;;  %v1986_v48 = vadd.f32 %v1755_v46, %v631_v38  ;;  %v734_v3 = vadd.f32 %v1755_v46, %v726_v58 }
  0xa3   : > { %v608_v62 = vmax.f32 %v512_v12, %v600_v54  ;;  %v2353_v12 = vmax.f32 %v1969_v35, 0.0  ;;  %v811_v35 = vld [vmem:[%s2028_s26 + $0x70] sm:$0xff] }
  0xa4   : > { %2372 = vst [vmem:[#allocation7_spill] sm:$0xff] %v1986_v48  ;;  %v742_v63 = vmax.f32 %v734_v3, 0.0  ;;  %v708_v3 = vld [vmem:[%s1958_s22] sm:$0xff] }
  0xa5   : > { %1153 = vperm.xlu2 %1462, %v1616_v15   ;;  %v1979_v53 = vmax.f32 %v608_v62, %v696_v51  ;;  %v515_v62 = vmul.f32 %v1847_v7, %v2357_v60  ;;  %v618_v51 = vld [vmem:[%s1738_s27 + $0x61] sm:$0xff]  ;;  %v699_v32 = vmul.f32 %v690_v55, %v2353_v12  ;;  %v633_v55 = vmul.f32 %v1743_v41, %v617_v40 }
  0xa6   : > { %1148 = vperm.xlu1 %1461, %v1588_v10   ;;  %1143 = vperm.xlu0 %1460, %v1593_v11   ;;  %v1994_v11 = vadd.f32 %v1755_v46, %v630_v61  ;;  %v2356_v61 = vmax.f32 %v1986_v48, 0.0  ;;  %v724_v47 = vmul.f32 %v1743_v41, %v708_v3 }
  0xa7   : > { %v761_v54 = vpop.permute.xlu2 %760 }
  0xa8   : > { %v655_v15 = vpop.permute.xlu1 %654  ;;  %v594_v37 = vpop.permute.xlu0 %593  ;;  %v732_v3 = vadd.f32 %v1755_v46, %v724_v47 }
  0xa9   : > { %v692_v28 = vmul.f32 %v655_v15, %v644_v50  ;;  %v603_v10 = vmul.f32 %v594_v37, %v2355_v39  ;;  %v713_v50 = vld [vmem:[%s1958_s22 + $0x50] sm:$0xff]  ;;  %v634_v15 = vmul.f32 %v1743_v41, %v618_v51  ;;  %v2359_v37 = vmax.f32 %v1994_v11, 0.0 }
  0xaa   : > { %v2035_v51 = vmul.f32 %v761_v54, %v742_v63 }
  0xab   : > { %v2004_v38 = vmax.f32 %v604_v30, %v692_v28  ;;  %v611_v7 = vmax.f32 %v515_v62, %v603_v10  ;;  %v729_v30 = vmul.f32 %v1743_v41, %v713_v50  ;;  %v2018_v28 = vadd.f32 %v1755_v46, %v634_v15 }
  0xac   : > { %v2374_v50 = vmax.f32 %v1900_v0, %v1907_v44 }
  0xad   : > { %1168 = vperm.xlu2 %1462, %v1632_v18   ;;  %v2012_v58 = vmax.f32 %v611_v7, %v699_v32  ;;  %2373 = vst [vmem:[#allocation8_spill] sm:$0xff] %v2018_v28  ;;  %v737_v32 = vadd.f32 %v1755_v46, %v729_v30  ;;  %v2354_v54 = vmax.f32 %v2018_v28, 0.0 }
  0xae   : > { %1163 = vperm.xlu1 %1461, %v1606_v13   ;;  %1158 = vperm.xlu0 %1460, %v1611_v14   ;;  %v2031_v13 = vadd.f32 %v1755_v46, %v633_v55  ;;  %v709_v14 = vld [vmem:[%s1958_s22 + $0x10] sm:$0xff]  ;;  %v1430_v55 = vld [vmem:[%s2333_s5 + $0x80] sm:$0xff] }
  0xaf   : > { %v776_v25 = vpop.permute.xlu2 %775  ;;  %v725_v43 = vmul.f32 %v1743_v41, %v709_v14  ;;  %v745_v0 = vmax.f32 %v737_v32, 0.0 }
  0xb0   : > { %v670_v62 = vpop.permute.xlu1 %669  ;;  %v665_v18 = vpop.permute.xlu0 %664  ;;  %v2358_v63 = vmax.f32 %v2031_v13, 0.0 }
  0xb1   : > { %v695_v10 = vmul.f32 %v670_v62, %v2356_v61  ;;  %v694_v40 = vmul.f32 %v665_v18, %v2359_v37  ;;  %v804_v62 = vld [vmem:[%s2028_s26] sm:$0xff]  ;;  %v733_v14 = vadd.f32 %v1755_v46, %v725_v43 }
  0xb2   : > { %v820_v30 = vmul.f32 %v1743_v41, %v804_v62  ;;  %v2375_v62 = vmax.f32 %v1856_v6, %v1852_v1 }
  0xb3   : > { %v2041_v7 = vmax.f32 %v607_v52, %v695_v10  ;;  %v2046_v15 = vmax.f32 %v2374_v50, %v694_v40  ;;  %v712_v50 = vld [vmem:[%s1958_s22 + $0x40] sm:$0xff]  ;;  %v741_v47 = vmax.f32 %v733_v14, 0.0 }
  0xb4   : > { %v828_v32 = vadd.f32 %v1755_v46, %v820_v30  ;;  %v728_v43 = vmul.f32 %v1743_v41, %v712_v50  ;;  %v715_v50 = vld [vmem:[%s1958_s22 + $0x70] sm:$0xff] }
  0xb5   : > { %1239 = vperm.xlu2 %1462, %v1649_v21   ;;  %v798_v52 = vmax.f32 %v2046_v15, %v2035_v51 }
  0xb6   : > { %1234 = vperm.xlu1 %1461, %v1624_v16   ;;  %1173 = vperm.xlu0 %1460, %v1430_v55   ;;  %v711_v16 = vld [vmem:[%s1958_s22 + $0x30] sm:$0xff]  ;;  %v2069_v55 = vmul.f32 %v776_v25, %v745_v0  ;;  %v740_v25 = vmax.f32 %v732_v3, 0.0  ;;  %v836_v6 = vmax.f32 %v828_v32, 0.0 }
  0xb7   : > { %v847_v44 = vpop.permute.xlu2 %846  ;;  %v727_v0 = vmul.f32 %v1743_v41, %v711_v16 }
  0xb8   : > { %v685_v21 = vpop.permute.xlu1 %684  ;;  %v680_v18 = vpop.permute.xlu0 %679  ;;  %v884_v16 = vmul.f32 %v847_v44, %v836_v6 }
  0xb9   : > { %v698_v10 = vmul.f32 %v685_v21, %v2354_v54  ;;  %v697_v40 = vmul.f32 %v680_v18, %v2358_v63  ;;  %v2376_v21 = vmax.f32 %v1943_v56, %v1950_v8  ;;  %v807_v18 = vld [vmem:[%s2028_s26 + $0x30] sm:$0xff]  ;;  %v735_v3 = vadd.f32 %v1755_v46, %v727_v0 }
  0xba   : > { %v823_v8 = vmul.f32 %v1743_v41, %v807_v18  ;;  %v810_v18 = vld [vmem:[%s2028_s26 + $0x60] sm:$0xff] }
  0xbb   : > { %v2075_v12 = vmax.f32 %v2375_v62, %v698_v10  ;;  %v2080_v54 = vmax.f32 %v2376_v21, %v697_v40  ;;  %v736_v10 = vadd.f32 %v1755_v46, %v728_v43  ;;  %v904_v62 = vld [vmem:[%s1958_s22 + $0x41] sm:$0xff] }
  0xbc   : > { %v831_v32 = vadd.f32 %v1755_v46, %v823_v8  ;;  %v826_v8 = vmul.f32 %v1743_v41, %v810_v18  ;;  %v920_v42 = vmul.f32 %v1743_v41, %v904_v62  ;;  %v903_v62 = vld [vmem:[%s1958_s22 + $0x31] sm:$0xff] }
  0xbd   : > { %1254 = vperm.xlu2 %1462, %v1667_v24   ;;  %v801_v1 = vmax.f32 %v2080_v54, %v2069_v55  ;;  %v744_v43 = vmax.f32 %v736_v10, 0.0 }
  0xbe   : > { %1249 = vperm.xlu1 %1461, %v1639_v19   ;;  %1244 = vperm.xlu0 %1460, %v1644_v20   ;;  %v1446_v19 = vld [vmem:[%s2332_s4 + $0x81] sm:$0xff]  ;;  %v839_v44 = vmax.f32 %v831_v32, 0.0  ;;  %v928_v49 = vadd.f32 %v1755_v46, %v920_v42 }
  0xbf   : > { %v862_v56 = vpop.permute.xlu2 %861  ;;  %v714_v20 = vld [vmem:[%s1958_s22 + $0x60] sm:$0xff] }
  0xc0   : > { %v756_v30 = vpop.permute.xlu1 %755  ;;  %v751_v24 = vpop.permute.xlu0 %750  ;;  %v730_v0 = vmul.f32 %v1743_v41, %v714_v20  ;;  %v887_v20 = vmul.f32 %v862_v56, %v839_v44 }
  0xc1   : > { %v2092_v40 = vmul.f32 %v756_v30, %v741_v47  ;;  %v788_v14 = vmul.f32 %v751_v24, %v740_v25  ;;  %v743_v47 = vmax.f32 %v735_v3, 0.0  ;;  %v731_v25 = vmul.f32 %v1743_v41, %v715_v50  ;;  %v806_v50 = vld [vmem:[%s2028_s26 + $0x20] sm:$0xff] }
  0xc2   : > { %v822_v18 = vmul.f32 %v1743_v41, %v806_v50 }
  0xc3   : > { %v796_v21 = vmax.f32 %v2004_v38, %v788_v14  ;;  %v739_v3 = vadd.f32 %v1755_v46, %v731_v25 }
  0xc4   : > { %v830_v44 = vadd.f32 %v1755_v46, %v822_v18 }
  0xc5   : > { %1269 = vperm.xlu2 %1462, %v1446_v19   ;;  %v2107_v30 = vmax.f32 %v796_v21, %v884_v16  ;;  %v738_v19 = vadd.f32 %v1755_v46, %v730_v0  ;;  %v747_v32 = vmax.f32 %v739_v3, 0.0 }
  0xc6   : > { %1264 = vperm.xlu1 %1461, %v1657_v22   ;;  %1259 = vperm.xlu0 %1460, %v1662_v23   ;;  %v834_v22 = vadd.f32 %v1755_v46, %v826_v8  ;;  %v809_v8 = vld [vmem:[%s2028_s26 + $0x50] sm:$0xff]  ;;  %v838_v3 = vmax.f32 %v830_v44, 0.0 }
  0xc7   : > { %v877_v6 = vpop.permute.xlu2 %876  ;;  %v746_v21 = vmax.f32 %v738_v19, 0.0  ;;  %v825_v19 = vmul.f32 %v1743_v41, %v809_v8 }
  0xc8   : > { %v771_v38 = vpop.permute.xlu1 %770  ;;  %v766_v24 = vpop.permute.xlu0 %765 }
  0xc9   : > { %v2112_v10 = vmul.f32 %v771_v38, %v744_v43  ;;  %v791_v14 = vmul.f32 %v766_v24, %v743_v47  ;;  %v842_v47 = vmax.f32 %v834_v22, 0.0 }
  0xcb   : > { %v799_v16 = vmax.f32 %v2041_v7, %v791_v14  ;;  %v890_v39 = vmul.f32 %v877_v6, %v842_v47 }
  0xcd   : > { %v2122_v43 = vmax.f32 %v799_v16, %v887_v20 }
  0xcf   : > { %v2124_v25 = vpop.permute.xlu2 %947 }
  0xd0   : > { %v786_v0 = vpop.permute.xlu1 %785  ;;  %v781_v38 = vpop.permute.xlu0 %780 }
  0xd1   : > { %v2126_v24 = vmul.f32 %v786_v0, %v747_v32  ;;  %v794_v56 = vmul.f32 %v781_v38, %v746_v21  ;;  %v833_v21 = vadd.f32 %v1755_v46, %v825_v19 }
  0xd3   : > { %v802_v14 = vmax.f32 %v2075_v12, %v794_v56  ;;  %v841_v18 = vmax.f32 %v833_v21, 0.0  ;;  %v901_v21 = vld [vmem:[%s1958_s22 + $0x11] sm:$0xff] }
  0xd4   : > { %v917_v60 = vmul.f32 %v1743_v41, %v901_v21 }
  0xd5   : > { %v2134_v50 = vmax.f32 %v802_v14, %v890_v39 }
  0xd6   : > { %v925_v23 = vadd.f32 %v1755_v46, %v917_v60  ;;  %v827_v60 = vmul.f32 %v1743_v41, %v811_v35 }
  0xd7   : > { %2377 = vst [vmem:[#allocation9_spill] sm:$0xff] %v2134_v50  ;;  %v2136_v20 = vpop.permute.xlu2 %962 }
  0xd8   : > { %v857_v22 = vpop.permute.xlu1 %856  ;;  %v852_v16 = vpop.permute.xlu0 %851 }
  0xd9   : > { %v886_v32 = vmul.f32 %v857_v22, %v838_v3 }
  0xdb   : > { %v2142_v6 = vmax.f32 %v798_v52, %v886_v32 }
  0xdf   : > { %v2144_v12 = vpop.permute.xlu2 %977 }
  0xe0   : > { %v872_v47 = vpop.permute.xlu1 %871  ;;  %v867_v0 = vpop.permute.xlu0 %866 }
  0xe1   : > { %v889_v39 = vmul.f32 %v872_v47, %v841_v18  ;;  %v808_v47 = vld [vmem:[%s2028_s26 + $0x40] sm:$0xff] }
  0xe2   : > { %v824_v37 = vmul.f32 %v1743_v41, %v808_v47 }
  0xe3   : > { %v2149_v38 = vmax.f32 %v801_v1, %v889_v39  ;;  %v805_v1 = vld [vmem:[%s2028_s26 + $0x10] sm:$0xff] }
  0xe4   : > { %v821_v32 = vmul.f32 %v1743_v41, %v805_v1  ;;  %v832_v28 = vadd.f32 %v1755_v46, %v824_v37  ;;  %v907_v37 = vld [vmem:[%s1958_s22 + $0x71] sm:$0xff] }
  0xe5   : > { %2378 = vst [vmem:[#allocation10_spill] sm:$0xff] %v2149_v38  ;;  %v923_v48 = vmul.f32 %v1743_v41, %v907_v37 }
  0xe6   : > { %v829_v18 = vadd.f32 %v1755_v46, %v821_v32  ;;  %v900_v32 = vld [vmem:[%s1958_s22 + $0x1] sm:$0xff]  ;;  %v840_v47 = vmax.f32 %v832_v28, 0.0  ;;  %v919_v28 = vmul.f32 %v1743_v41, %v903_v62 }
  0xe7   : > { %v2151_v56 = vpop.permute.xlu2 %1050  ;;  %v1422_v62 = vld [vmem:[%s1732_s24 + $0x80] sm:$0xff]  ;;  %s2231_s24 = scalar_lea.vmem %s2338_s10, %s1449_s11 }
  0xe8   : > { %v2153_v44 = vpop.permute.xlu1 %942  ;;  %v2155_v51 = vpop.permute.xlu0 %881  ;;  %v837_v7 = vmax.f32 %v829_v18, 0.0  ;;  %v916_v18 = vmul.f32 %v1743_v41, %v900_v32  ;;  %v1406_v32 = vld [vmem:[%s1738_s27 + $0x80] sm:$0xff] }
  0xe9   : > { %v1021_v33 = vmul.f32 %v1743_v41, %v1406_v32 }
  0xea   : > { %v885_v1 = vmul.f32 %v852_v16, %v837_v7  ;;  %v2381_v7 = vmax.f32 %v1932_v59, %v2092_v40  ;;  %v924_v35 = vadd.f32 %v1755_v46, %v916_v18  ;;  %v835_v59 = vadd.f32 %v1755_v46, %v827_v60 }
  0xeb   : > { %v888_v40 = vmul.f32 %v867_v0, %v840_v47  ;;  %v931_v60 = vadd.f32 %v1755_v46, %v923_v48  ;;  %v1029_v48 = vadd.f32 %v1755_v46, %v1021_v33 }
  0xec   : > { %v893_v16 = vmax.f32 %v2381_v7, %v885_v1  ;;  %v902_v1 = vld [vmem:[%s1958_s22 + $0x21] sm:$0xff]  ;;  %v936_v7 = vmax.f32 %v928_v49, 0.0  ;;  %v932_v37 = vmax.f32 %v924_v35, 0.0  ;;  %v843_v0 = vmax.f32 %v835_v59, 0.0 }
  0xed   : > { %v918_v47 = vmul.f32 %v1743_v41, %v902_v1  ;;  %v2384_v49 = vmax.f32 %v1979_v53, %v2112_v10  ;;  %v1438_v53 = vld [vmem:[%s1738_s27 + $0x81] sm:$0xff]  ;;  %v2386_v10 = vmax.f32 %v1889_v9, 0.0  ;;  %v939_v33 = vmax.f32 %v931_v60, 0.0 }
  0xee   : > { %v984_v32 = vmul.f32 %v2136_v20, %v936_v7  ;;  %v906_v1 = vld [vmem:[%s1958_s22 + $0x61] sm:$0xff]  ;;  %v2388_v60 = vmax.f32 %v1892_v34, 0.0 }
  0xef   : > { %v2157_v15 = vpop.permute.xlu2 %1065  ;;  %v926_v20 = vadd.f32 %v1755_v46, %v918_v47 }
  0xf0   : > { %2379 = vst [vmem:[#allocation11_spill] sm:$0xff] %v2157_v15  ;;  %v2159_v52 = vpop.permute.xlu1 %957  ;;  %v2161_v8 = vpop.permute.xlu0 %952 }
  0xf7   : > { %v2163_v14 = vpop.permute.xlu2 %1138 }
  0xf8   : > { %v2165_v3 = vpop.permute.xlu1 %972  ;;  %v2167_v54 = vpop.permute.xlu0 %967 }
  0xff   : > { %v2169_v55 = vpop.permute.xlu2 %1153 }
 0x100   : > { %v1046_v19 = vpop.permute.xlu1 %1045  ;;  %v2172_v22 = vpop.permute.xlu0 %1040 }
 0x107   : > { %v2181_v63 = vpop.permute.xlu2 %1168 }
 0x108   : > { %v1061_v39 = vpop.permute.xlu1 %1060  ;;  %v2178_v61 = vpop.permute.xlu0 %1055  ;;  %2380 = vst [vmem:[#allocation12_spill] sm:$0xff] %v2181_v63  ;;  %v933_v63 = vmax.f32 %v925_v23, 0.0  ;;  %v2382_v23 = vmax.f32 %v1842_v2, 0.0 }
 0x109   : > { %v1082_v35 = vmul.f32 %v1061_v39, %v2386_v10  ;;  %v1037_v39 = vmax.f32 %v1029_v48, 0.0 }
 0x10a   : > { %v981_v38 = vmul.f32 %v2124_v25, %v933_v63  ;;  %v1079_v50 = vmul.f32 %v1046_v19, %v2382_v23  ;;  %v2383_v19 = vmax.f32 %v1859_v29, 0.0 }
 0x10c   : > { %v989_v42 = vmax.f32 %v893_v16, %v981_v38  ;;  %v896_v38 = vmax.f32 %v2384_v49, %v888_v40  ;;  %v927_v16 = vadd.f32 %v1755_v46, %v919_v28  ;;  %v980_v40 = vmul.f32 %v2153_v44, %v932_v37 }
 0x10d   : > { %v891_v28 = vmul.f32 %v2155_v51, %v843_v0  ;;  %v922_v49 = vmul.f32 %v1743_v41, %v906_v1 }
 0x10e   : > { %v1087_v25 = vmax.f32 %v989_v42, %v1079_v50  ;;  %v2385_v50 = vmax.f32 %v1994_v11, 0.0  ;;  %v905_v42 = vld [vmem:[%s1958_s22 + $0x51] sm:$0xff]  ;;  %v992_v7 = vmax.f32 %v896_v38, %v984_v32  ;;  %v935_v9 = vmax.f32 %v927_v16, 0.0 }
 0x10f   : > { %v1240_v15 = vpop.permute.xlu2 %1239  ;;  %v988_v47 = vmax.f32 %v2107_v30, %v980_v40  ;;  %v921_v38 = vmul.f32 %v1743_v41, %v905_v42  ;;  %v2389_v16 = vmax.f32 %v2012_v58, %v2126_v24  ;;  %v930_v10 = vadd.f32 %v1755_v46, %v922_v49 }
 0x110   : > { %v2190_v45 = vpop.permute.xlu1 %1075  ;;  %v2192_v21 = vpop.permute.xlu0 %1070  ;;  %v1273_v23 = vmul.f32 %v1240_v15, %v2385_v50  ;;  %v1119_v15 = vmul.f32 %v1743_v41, %v1422_v62  ;;  %v1090_v37 = vmax.f32 %v992_v7, %v1082_v35  ;;  %v934_v62 = vmax.f32 %v926_v20, 0.0 }
 0x111   : > { %v899_v50 = vmax.f32 %v2389_v16, %v891_v28  ;;  %v1085_v30 = vmul.f32 %v2190_v45, %v1037_v39  ;;  %v929_v58 = vadd.f32 %v1755_v46, %v921_v38  ;;  %v2391_v24 = vmax.f32 %v1862_v31, 0.0  ;;  %v2403_v16 = vld [vmem:[#allocation10_spill] sm:$0xff] }
 0x112   : > { %v1127_v0 = vadd.f32 %v1755_v46, %v1119_v15  ;;  %v2392_v45 = vmax.f32 %v1886_v27, 0.0  ;;  %v938_v28 = vmax.f32 %v930_v10, 0.0  ;;  %v2411_v10 = vld [vmem:[#allocation12_spill] sm:$0xff] }
 0x113   : > { %v1176_v35 = vmul.f32 %v2163_v14, %v2391_v24  ;;  %v937_v1 = vmax.f32 %v929_v58, 0.0 }
 0x114   : > { %v1081_v15 = vmul.f32 %v2178_v61, %v2392_v45 }
 0x117   : > { %v1255_v11 = vpop.permute.xlu2 %1254 }
 0x118   : > { %v2212_v63 = vpop.permute.xlu1 %1148  ;;  %v1144_v2 = vpop.permute.xlu0 %1143 }
 0x119   : > { %v1177_v18 = vmul.f32 %v1144_v2, %v2383_v19  ;;  %v1215_v2 = vmul.f32 %v1743_v41, %v1438_v53  ;;  %v1135_v53 = vmax.f32 %v1127_v0, 0.0  ;;  %v983_v41 = vmul.f32 %v2159_v52, %v935_v9 }
 0x11a   : > { %v2394_v9 = vmax.f32 %v1790_v26, 0.0 }
 0x11b   : > { %v1185_v29 = vmax.f32 %v1087_v25, %v1177_v18  ;;  %v2387_v18 = vmax.f32 %v1845_v5, 0.0  ;;  %v2390_v5 = vmax.f32 %v2031_v13, 0.0  ;;  %v1223_v34 = vadd.f32 %v1755_v46, %v1215_v2 }
 0x11c   : > { %v982_v13 = vmul.f32 %v2161_v8, %v934_v62  ;;  %v2393_v8 = vmax.f32 %v1867_v36, 0.0  ;;  %v991_v14 = vmax.f32 %v2122_v43, %v983_v41  ;;  %v1080_v39 = vmul.f32 %v2151_v56, %v2394_v9  ;;  %v2400_v62 = vld [vmem:[#allocation7_spill] sm:$0xff] }
 0x11d   : > { %v1281_v59 = vmax.f32 %v1185_v29, %v1273_v23  ;;  %v1078_v44 = vmul.f32 %v2172_v22, %v2387_v18  ;;  %v1276_v22 = vmul.f32 %v1255_v11, %v2390_v5  ;;  %v987_v29 = vmul.f32 %v2144_v12, %v939_v33 }
 0x11e   : > { %v1231_v12 = vmax.f32 %v1223_v34, 0.0  ;;  %v990_v42 = vmax.f32 %v2142_v6, %v982_v13  ;;  %v1089_v61 = vmax.f32 %v991_v14, %v1081_v15  ;;  %v2396_v18 = vmax.f32 %v1895_v4, 0.0  ;;  %v2398_v4 = vld [vmem:[#allocation4_spill] sm:$0xff]  ;;  %v2404_v34 = vld [vmem:[#allocation3_spill] sm:$0xff] }
 0x11f   : > { %1290 = vst.msk [vmem:[%s2231_s24 + $0x8] sm:$0xff] %vm1288_vm0, %v1281_v59  ;;  %v1086_v32 = vmax.f32 %v988_v47, %v1078_v44  ;;  %v995_v11 = vmax.f32 %v899_v50, %v987_v29  ;;  %v1270_v59 = vpop.permute.xlu2 %1269  ;;  %v986_v6 = vmul.f32 %v2165_v3, %v938_v28  ;;  %v2399_v47 = vmax.f32 %v2398_v4, 0.0  ;;  %v2406_v29 = vld [vmem:[#allocation11_spill] sm:$0xff] }
 0x120   : > { %v2245_v25 = vpop.permute.xlu1 %1163  ;;  %v1159_v19 = vpop.permute.xlu0 %1158  ;;  %v1279_v7 = vmul.f32 %v1270_v59, %v1231_v12  ;;  %v1179_v44 = vmul.f32 %v2169_v55, %v2396_v18  ;;  %v2401_v3 = vmax.f32 %v2400_v62, 0.0  ;;  %v2412_v12 = vld [vmem:[#allocation6_spill] sm:$0xff] }
 0x121   : > { %v1180_v51 = vmul.f32 %v1159_v19, %v2388_v60  ;;  %v1093_v20 = vmax.f32 %v995_v11, %v1085_v30  ;;  %v1184_v46 = vmax.f32 %v1086_v32, %v1176_v35  ;;  %v2395_v19 = vmax.f32 %v1785_v17, 0.0  ;;  %v2407_v32 = vld [vmem:[#allocation2_spill] sm:$0xff] }
 0x122   : > { %v1088_v60 = vmax.f32 %v990_v42, %v1080_v39  ;;  %v1187_v17 = vmax.f32 %v1089_v61, %v1179_v44  ;;  %v2408_v30 = vmax.f32 %v2407_v32, 0.0  ;;  %v2413_v45 = vmax.f32 %v2412_v12, 0.0 }
 0x123   : > { %v1188_v23 = vmax.f32 %v1090_v37, %v1180_v51  ;;  %v1178_v36 = vmul.f32 %v2212_v63, %v2395_v19  ;;  %v985_v37 = vmul.f32 %v2167_v54, %v937_v1  ;;  %v2397_v63 = vmax.f32 %v1946_v57, 0.0  ;;  %v2402_v54 = vld [vmem:[#allocation9_spill] sm:$0xff] }
 0x124   : > { %v994_v38 = vmax.f32 %v2402_v54, %v986_v6 }
 0x125   : > { %v1284_v48 = vmax.f32 %v1188_v23, %v1276_v22  ;;  %v1084_v51 = vmul.f32 %v2192_v21, %v2397_v63  ;;  %v1186_v0 = vmax.f32 %v1088_v60, %v1178_v36  ;;  %v993_v50 = vmax.f32 %v2403_v16, %v985_v37 }
 0x126   : > { %v2405_v23 = vmax.f32 %v2404_v34, 0.0 }
 0x127   : > { %1293 = vst.msk [vmem:[%s2231_s24 + $0x20] sm:$0xff] %vm1288_vm0, %v1284_v48  ;;  %v1092_v21 = vmax.f32 %v994_v38, %v1084_v51  ;;  %v1181_v48 = vmul.f32 %v2245_v25, %v2408_v30 }
 0x128   : > { %v1235_v52 = vpop.permute.xlu1 %1234  ;;  %v1174_v40 = vpop.permute.xlu0 %1173  ;;  %v1083_v57 = vmul.f32 %v2406_v29, %v2405_v23 }
 0x129   : > { %v1272_v33 = vmul.f32 %v1235_v52, %v2393_v8  ;;  %v1183_v31 = vmul.f32 %v1174_v40, %v1135_v53  ;;  %v2409_v53 = vld [vmem:[#allocation5_spill] sm:$0xff]  ;;  %v2414_v52 = vld [vmem:[#allocation8_spill] sm:$0xff] }
 0x12a   : > { %v2410_v41 = vmax.f32 %v2409_v53, 0.0  ;;  %v1091_v13 = vmax.f32 %v993_v50, %v1083_v57  ;;  %v2415_v40 = vmax.f32 %v2414_v52, 0.0 }
 0x12b   : > { %v1280_v27 = vmax.f32 %v1184_v46, %v1272_v33  ;;  %v1191_v2 = vmax.f32 %v1093_v20, %v1183_v31 }
 0x12c   : > { %v1182_v58 = vmul.f32 %v2411_v10, %v2410_v41  ;;  %v1189_v11 = vmax.f32 %v1091_v13, %v1181_v48 }
 0x12d   : > { %1289 = vst.msk [vmem:[%s2231_s24] sm:$0xff] %vm1288_vm0, %v1280_v27  ;;  %v1287_v43 = vmax.f32 %v1191_v2, %v1279_v7 }
 0x12e   : > { %v1190_v59 = vmax.f32 %v1092_v21, %v1182_v58 }
 0x12f   : > { %1296 = vst.msk [vmem:[%s2231_s24 + $0x38] sm:$0xff] %vm1288_vm0, %v1287_v43 }
 0x130   : > { %v1250_v26 = vpop.permute.xlu1 %1249  ;;  %v1245_v56 = vpop.permute.xlu0 %1244 }
 0x131   : > { %v1275_v55 = vmul.f32 %v1250_v26, %v2399_v47  ;;  %v1274_v49 = vmul.f32 %v1245_v56, %v2401_v3 }
 0x133   : > { %v1283_v5 = vmax.f32 %v1187_v17, %v1275_v55  ;;  %v1282_v22 = vmax.f32 %v1186_v0, %v1274_v49 }
 0x135   : > { %1292 = vst.msk [vmem:[%s2231_s24 + $0x18] sm:$0xff] %vm1288_vm0, %v1283_v5 }
 0x136   : > { %1291 = vst.msk [vmem:[%s2231_s24 + $0x10] sm:$0xff] %vm1288_vm0, %v1282_v22 }
 0x138   : > { %v1265_v24 = vpop.permute.xlu1 %1264  ;;  %v1260_v35 = vpop.permute.xlu0 %1259 }
 0x139   : > { %v1278_v15 = vmul.f32 %v1265_v24, %v2413_v45  ;;  %v1277_v20 = vmul.f32 %v1260_v35, %v2415_v40 }
 0x13b   : > { %v1286_v25 = vmax.f32 %v1190_v59, %v1278_v15  ;;  %v1285_v46 = vmax.f32 %v1189_v11, %v1277_v20 }
 0x13d   : > { %1295 = vst.msk [vmem:[%s2231_s24 + $0x30] sm:$0xff] %vm1288_vm0, %v1286_v25 }
 0x13e   : > { %1294 = vst.msk [vmem:[%s2231_s24 + $0x28] sm:$0xff] %vm1288_vm0, %v1285_v46 }
 0x13f PF: > { %s20_s13 = sadd.s32 1, %s1471_s13  }
 0x140   : > { %p17_p4 = scmp.ge.s32.totalorder %s20_s13, 4  }
 0x142   :  { %19 = sbr.rel (!%p17_p4) target bundleno = 1 (0x1), region = 103 }

// kernel: densenet_forward.9
= control target key start
LH: loop header
LB: loop body
LE: loop exit
PB: predicated region body
PF: predicated region fallthrough
CT: control target
= control target key end

     0   :  { %s444_s15 = smov 0   ;;  %s483_s0 = inlined_call_operand.vmem [shape: f32[2,4,16,64], index: 0, kind: input, shape index: {}]   ;;  %s484_s1 = inlined_call_operand.vmem [shape: f32[1,64], index: 1, kind: input, shape index: {}]   ;;  %s485_s2 = inlined_call_operand.vmem [shape: f32[1,64], index: 2, kind: input, shape index: {}]   ;;  %s486_s3 = inlined_call_operand.vmem [shape: bf16[64,32], index: 3, kind: input, shape index: {}]   ;;  %s487_s4 = inlined_call_operand.vmem [shape: f32[2,16,32], index: 4, kind: output, shape index: {}]  }
   0x1 LB: > { %s361_s16 = sadd.s32 4294967295, %s417_s15   ;;  %p365_p0 = scmp.ge.s32.totalorder %s417_s15, 1  ;;  %s417_s15 = sphi %s444_s15, %s14_s15  }
   0x2   : > { %p162_p1 = scmp.lt.s32.totalorder %s417_s15, 3 }
   0x4   : > { %p163_p2 = pnand %p365_p0, %p162_p1 }
   0x5   : > { %p188_p3 = scmp.lt.s32.totalorder (!%p163_p2), %s361_s16, 1 }
   0x6   : > { %166 = sbr.rel (%p163_p2) target bundleno = 167 (0xa7), region = 36 }
   0xb   : > { %v400_v0 = vld [vmem:[%s486_s3 + $0x18] sm:$0xff]  ;;  %v399_v1 = vld [vmem:[%s486_s3 + $0x10] sm:$0xff]  ;;  %s489_s16 = smov (!%p188_p3, %s361_s16), 1  ;;  %v409_v2 = vld [vmem:[%s484_s1] ss:$0 sm:$0xff]  ;;  %vm285_vm0 = vcmask 523264  }
   0xc   : > { %293 = vmatpush.bf16.msra.mxu0 %v400_v0  ;;  %s395_s23 = sshll.u32 %s489_s16, 6  ;;  %v398_v3 = vld [vmem:[%s486_s3 + $0x8] sm:$0xff]  ;;  %v410_v4 = vld [vmem:[%s485_s2] ss:$0 sm:$0xff]  ;;  %s396_s7 = sshll.u32 %s489_s16, 4  ;;  %vm303_vm1 = vcmask 261120  }
   0xd   : > { %s192_s28 = scalar_lea.vmem %s483_s0, %s395_s23  ;;  %v397_v23 = vld [vmem:[%s486_s3] sm:$0xff]  ;;  %s197_s10 = scalar_lea.vmem %s487_s4, %s396_s7 }
   0xe   : > { %v201_v5 = vld [vmem:[%s192_s28] sm:$0xff]  ;;  %v202_v6 = vld [vmem:[%s192_s28 + $0x8] sm:$0xff]  ;;  %v370_v7 = vld [vmem:[%s192_s28 + $0x10] sm:$0xff] }
   0xf   : > { %v206_v8 = vmul.f32 %v409_v2, %v201_v5  ;;  %v207_v9 = vmul.f32 %v409_v2, %v202_v6  ;;  %v371_v10 = vld [vmem:[%s192_s28 + $0x18] sm:$0xff]  ;;  %v220_v11 = vmul.f32 %v409_v2, %v370_v7  ;;  %v372_v12 = vld [vmem:[%s192_s28 + $0x20] sm:$0xff]  ;;  %v373_v13 = vld [vmem:[%s192_s28 + $0x28] sm:$0xff] }
  0x10   : > { %294 = vmatpush.bf16.msra.mxu0 %v399_v1  ;;  %v221_v14 = vmul.f32 %v409_v2, %v371_v10  ;;  %v231_v15 = vmul.f32 %v409_v2, %v372_v12  ;;  %v232_v16 = vmul.f32 %v409_v2, %v373_v13  ;;  %v374_v17 = vld [vmem:[%s192_s28 + $0x30] sm:$0xff]  ;;  %v375_v18 = vld [vmem:[%s192_s28 + $0x38] sm:$0xff] }
  0x11   : > { %v211_v19 = vadd.f32 %v410_v4, %v206_v8  ;;  %v212_v20 = vadd.f32 %v410_v4, %v207_v9  ;;  %v222_v21 = vadd.f32 %v410_v4, %v220_v11  ;;  %v242_v22 = vmul.f32 %v409_v2, %v374_v17 }
  0x12   : > { %v223_v24 = vadd.f32 %v410_v4, %v221_v14  ;;  %v233_v25 = vadd.f32 %v410_v4, %v231_v15  ;;  %v234_v26 = vadd.f32 %v410_v4, %v232_v16  ;;  %v243_v27 = vmul.f32 %v409_v2, %v375_v18 }
  0x13   : > { %v213_v28 = vmax.f32 %v211_v19, 0.0  ;;  %v214_v29 = vmax.f32 %v212_v20, 0.0  ;;  %v224_v30 = vmax.f32 %v222_v21, 0.0  ;;  %v244_v31 = vadd.f32 %v410_v4, %v242_v22 }
  0x14   : > { %295 = vmatpush.bf16.msra.mxu0 %v398_v3  ;;  %v225_v32 = vmax.f32 %v223_v24, 0.0  ;;  %v235_v33 = vmax.f32 %v233_v25, 0.0  ;;  %v236_v34 = vmax.f32 %v234_v26, 0.0  ;;  %v245_v35 = vadd.f32 %v410_v4, %v243_v27 }
  0x15   : > { %v226_v36 = vadd.f32 %v224_v30, %v213_v28  ;;  %v246_v37 = vmax.f32 %v244_v31, 0.0 }
  0x16   : > { %v227_v38 = vadd.f32 %v225_v32, %v214_v29  ;;  %v247_v39 = vmax.f32 %v245_v35, 0.0 }
  0x17   : > { %v237_v40 = vadd.f32 %v235_v33, %v226_v36 }
  0x18   : > { %296 = vmatpush.bf16.msra.mxu0 %v397_v23  ;;  %v238_v41 = vadd.f32 %v236_v34, %v227_v38 }
  0x19   : > { %v248_v42 = vadd.f32 %v246_v37, %v237_v40 }
  0x1a   : > { %v249_v43 = vadd.f32 %v247_v39, %v238_v41 }
  0x1b   : > { %v250_v44 = vmul.f32 0.25, %v248_v42 }
  0x1c   : > { %v251_v45 = vmul.f32 0.25, %v249_v43 }
  0x1e   : > { %v252_v46 = vpack.c.bf16 %v251_v45, %v250_v44 }
  0x20   : > { %392 = vmatmul.msk.bf16.vlgmr.msra.gmra.mxu0 %vm285_vm0, %v252_v46 }
  0x9d   : > { %v298_v47 = vpop.f32.mrf.mxu0 }
  0x9e   : > { %304 = vst.msk [vmem:[%s197_s10] sm:$0xff] %vm303_vm1, %v298_v47 }
  0xa5   : > { %v300_v48 = vpop.f32.mrf.mxu0 }
  0xa6   : > { %305 = vst.msk [vmem:[%s197_s10 + $0x8] sm:$0xff] %vm303_vm1, %v300_v48 }
  0xa7 PF: > { %s14_s15 = sadd.s32 1, %s417_s15  }
  0xa8   : > { %p11_p4 = scmp.ge.s32.totalorder %s14_s15, 4  }
  0xaa   :  { %13 = sbr.rel (!%p11_p4) target bundleno = 1 (0x1), region = 69 }

// kernel: densenet_forward.11
= control target key start
LH: loop header
LB: loop body
LE: loop exit
PB: predicated region body
PF: predicated region fallthrough
CT: control target
= control target key end

     0   :  { %10 = vsyncpa [#allocation3], 0  ;;  %s617_s0 = inlined_call_operand.vmem [shape: f32[2,16,64], index: 0, kind: input, shape index: {}]   ;;  %s618_s1 = inlined_call_operand.vmem [shape: f32[1,64], index: 1, kind: input, shape index: {}]   ;;  %s619_s2 = inlined_call_operand.vmem [shape: f32[1,64], index: 2, kind: input, shape index: {}]   ;;  %s620_s3 = inlined_call_operand.vmem [shape: f32[64,10], index: 3, kind: input, shape index: {}]   ;;  %s621_s4 = inlined_call_operand.vmem [shape: f32[1,10], index: 4, kind: input, shape index: {}]   ;;  %s622_s5 = inlined_call_operand.hbm [shape: f32[2,1,10], index: 5, kind: output, shape index: {}]  }
   0x1   :  { %12 = vsyncpa [#allocation3 + $0x1], 0  ;;  %s496_s18 = smov 0   ;;  %s498_s19 = smov 0  }
   0x2   :  { %s500_s20 = smov 0   ;;  %s502_s21 = smov 0  }
   0x3 LB: > { %s517_s22 = sadd.s32 4294967295, %s464_s21   ;;  %s351_s23 = sadd.s32 4294967294, %s464_s21   ;;  %s464_s21 = sphi %s502_s21, %s628_s21   ;;  %s460_s20 = sphi %s500_s20, %s627_s20   ;;  %s456_s19 = sphi %s498_s19, %s626_s19   ;;  %s452_s18 = sphi %s496_s18, %s625_s18  }
   0x4   : > { %s521_s24 = sadd.s32 1, %s464_s21   ;;  %s135_s25 = sadd.s32 1, %s460_s20 }
   0x5   : > { %s132_s26 = ssub.s32 %s464_s21, %s521_s24  ;;  %p145_p0 = scmp.ne.s32.totalorder %s460_s20, %s456_s19 }
   0x6   : > { %p133_p1 = scmp.eq.s32.totalorder %s132_s26, 0  ;;  %p146_p2 = scmp.eq.s32.totalorder %s517_s22, 1 }
   0x7   : > { %p151_p3 = scmp.ne.s32.totalorder %s456_s19, %s452_s18  ;;  %p152_p4 = scmp.eq.s32.totalorder %s351_s23, 1 }
   0x8   : > { %s532_s27 = scalar_select %p133_p1, %s460_s20, %s135_s25  }
   0x9   : > { %p534_p5 = por %p146_p2, %p145_p0  ;;  %p538_p6 = por %p152_p4, %p151_p3 }
   0xa   : > { %p354_p7 = scmp.ge.s32.totalorder %s464_s21, 1  ;;  %p190_p8 = scmp.lt.s32.totalorder %s464_s21, 3 }
   0xc   : > { %p191_p9 = pnand %p354_p7, %p190_p8 }
   0xd   : > { %p217_p10 = scmp.lt.s32.totalorder (!%p191_p9), %s517_s22, 1  ;;  %s215_s14 = sand.u32 (!%p191_p9), 1, %s456_s19  }
   0xe   : > { %194 = sbr.rel (%p191_p9) target bundleno = 178 (0xb2), region = 40  ;;  %s292_s17 = scalar_lea.hbm (!%p191_p9), %s622_s5, %s517_s22 }
   0xf   : > { %s216_s26 = scalar_lea.vmem (!%p191_p9), [#allocation2], %s215_s14  ;;  %s296_s6 = sshll.u32 (!%p191_p9), %s292_s17, 4  ;;  %s297_s6 = int_to_ptr.hbm [resolvable:$true] %s296_s6 }
  0x10   : > { %s294_s30 = sshll.u32 (!%p191_p9), %s216_s26, 4  ;;  %s284_s7 = scalar_lea.sflag (!%p191_p9), [#allocation3], %s215_s14  ;;  %s295_s30 = int_to_ptr.vmem [resolvable:$true] %s294_s30 }
  0x11   : > { %s416_s8 = sshra.s32 (!%p191_p9), %s297_s6, 4  ;;  %s417_s8 = int_to_ptr.hbm [resolvable:$true] %s416_s8 }
  0x12   : > { %s418_s9 = scalar_lea.hbm (!%p191_p9), %s417_s8, 1  ;;  %p423_p0 = scmp.lt.s32.totalorder (!%p191_p9), %s417_s8, %s622_s5 }
  0x13   : > { %v256_v0 = vld [vmem:[%s620_s3 + $0x38] sm:$0xff]  ;;  %v255_v1 = vld [vmem:[%s620_s3 + $0x30] sm:$0xff]  ;;  %v254_v2 = vld [vmem:[%s620_s3 + $0x28] sm:$0xff]  ;;  %s218_s11 = scalar_select %p217_p10, %s517_s22, 1  ;;  %vm238_vm0 = vcmask 523264   ;;  %vm281_vm1 = vcmask 73728  }
  0x14   : > { %269 = vmatpush.msra.mxu0 %v256_v0  ;;  %v400_v3 = vld [vmem:[%s618_s1] ss:$0 sm:$0xff]  ;;  %v252_v6 = vld [vmem:[%s620_s3 + $0x18] sm:$0xff]  ;;  %v251_v11 = vld [vmem:[%s620_s3 + $0x10] sm:$0xff]  ;;  %p419_p11 = scmp.ne.s32.totalorder %s417_s8, %s418_s9 }
  0x15   : > { %v253_v4 = vld [vmem:[%s620_s3 + $0x20] sm:$0xff]  ;;  %s360_s16 = sshll.u32 %s218_s11, 4  ;;  %v250_v14 = vld [vmem:[%s620_s3 + $0x8] sm:$0xff]  ;;  %s422_s11 = scalar_lea.hbm %s622_s5, 2 }
  0x16   : > { %270 = vmatpush.msra.mxu0 %v255_v1  ;;  %s221_s25 = scalar_lea.vmem %s617_s0, %s360_s16  ;;  %v401_v5 = vld [vmem:[%s619_s2] ss:$0 sm:$0xff]  ;;  %p420_p12 = pnand %p419_p11, %p534_p5 }
  0x17   : > { %v222_v7 = vld [vmem:[%s221_s25] sm:$0xff]  ;;  %v223_v8 = vld [vmem:[%s221_s25 + $0x8] sm:$0xff]  ;;  %p424_p1 = scmp.lt.s32.totalorder %s422_s11, %s418_s9 }
  0x18   : > { %271 = vmatpush.msra.mxu0 %v254_v2  ;;  %v228_v9 = vmul.f32 %v400_v3, %v222_v7  ;;  %v229_v10 = vmul.f32 %v400_v3, %v223_v8  ;;  %v249_v17 = vld [vmem:[%s620_s3] sm:$0xff]  ;;  %p421_p13 = pneg %p420_p12 }
  0x19   : > { %v257_v28 = vld [vmem:[%s621_s4] sm:$0x1]  ;;  %p425_p2 = por %p424_p1, %p423_p0 }
  0x1a   : > { %272 = vmatpush.msra.mxu0 %v253_v4  ;;  %v234_v12 = vadd.f32 %v401_v5, %v228_v9  ;;  %v235_v13 = vadd.f32 %v401_v5, %v229_v10 }
  0x1b   : > { %p426_p3 = pnand %p425_p2, %p421_p13 }
  0x1c   : > { %273 = vmatpush.msra.mxu0 %v252_v6  ;;  %v236_v15 = vmax.f32 %v234_v12, 0.0  ;;  %v237_v16 = vmax.f32 %v235_v13, 0.0 }
  0x1e   : > { %274 = vmatpush.msra.mxu0 %v251_v11  ;;  %v239_v18 = vsel %vm238_vm0, %v236_v15, 0.0  ;;  %v240_v19 = vsel %vm238_vm0, %v237_v16, 0.0 }
  0x1f   : > { %v241_v20 = vadd.f32 %v240_v19, %v239_v18 }
  0x20   : > { %275 = vmatpush.msra.mxu0 %v250_v14 }
  0x21   : > { %v242_v21 = vrot.slane %v241_v20, 4 }
  0x22   : > { %276 = vmatpush.msra.mxu0 %v249_v17 }
  0x23   : > { %v243_v22 = vadd.f32 %v242_v21, %v241_v20 }
  0x25   : > { %v244_v23 = vrot.slane %v243_v22, 2 }
  0x27   : > { %v245_v24 = vadd.f32 %v244_v23, %v243_v22 }
  0x29   : > { %v246_v25 = vrot.slane %v245_v24, 1 }
  0x2b   : > { %v247_v26 = vadd.f32 %v246_v25, %v245_v24 }
  0x2d   : > { %v248_v27 = vmul.f32 0.0625, %v247_v26 }
  0x2f   : > { %357 = vmatmul.msk.f32.vlgmr.msra.gmra.mxu0 %vm238_vm0, %v248_v27 }
  0xac   : > { %v278_v29 = vpop.f32.mrf.mxu0 }
  0xad   : > { %v279_v30 = vadd.f32 %v278_v29, %v257_v28 }
  0xaf   : > { %282 = vst.msk [vmem:[%s216_s26] sm:$0x1] %vm281_vm1, %v279_v30 }
  0xb0   : > { %429 = shalt.err (!%p426_p3)
}
  0xb1   : > { %361 = dma.vmem_to_hbm [thread:$0]  (%p534_p5), %s295_s30, 16, %s297_s6, %s284_s7  }
  0xb2 PF: > { %p367_p4 = scmp.ge.s32.totalorder %s464_s21, 2  ;;  %s308_s14 = sand.u32 1, %s452_s18  }
  0xb3   : > { %s309_s15 = scalar_lea.sflag [#allocation3], %s308_s14 }
  0xb4   : > { %p364_p7 = pnand %p367_p4, %p538_p6 }
  0xb6   : > { %p365_p8 = pneg %p364_p7 }
  0xb8   : > { %447 = dma.done.wait (%p365_p8), %s309_s15, 16  }
  0xb9   : > { %449 = vsyncadd (%p365_p8), %s309_s15, 4294967280  ;;  %p15_p9 = scmp.ge.s32.totalorder %s521_s24, 4   ;;  %s625_s18 = smov %s456_s19 }
  0xba   : > { %s626_s19 = smov %s460_s20  ;;  %s627_s20 = smov %s532_s27 }
  0xbb   : > { %s628_s21 = smov %s521_s24  ;;  %17 = sbr.rel (!%p15_p9) target bundleno = 3 (0x3), region = 75 }
  0xc0   :  { %314 = vsyncpa [#allocation3], 1 }
  0xc1   :  { %316 = vsyncpa [#allocation3 + $0x1], 1 }

// kernel: densenet_forward.10
= control target key start
LH: loop header
LB: loop body
LE: loop exit
PB: predicated region body
PF: predicated region fallthrough
CT: control target
= control target key end

     0   :  { %s2925_s24 = smov 0   ;;  %s3642_s0 = inlined_call_operand.vmem [shape: f32[48,1], index: 0, kind: input, shape index: {}]   ;;  %s3643_s1 = inlined_call_operand.vmem [shape: f32[2,48,64], index: 1, kind: input, shape index: {}]   ;;  %s3644_s2 = inlined_call_operand.vmem [shape: f32[2,1,64], index: 2, kind: input, shape index: {}]   ;;  %s3645_s3 = inlined_call_operand.vmem [shape: f32[2,1,64], index: 3, kind: input, shape index: {}]   ;;  %s3646_s4 = inlined_call_operand.vmem [shape: bf16[2,9,64,64], index: 4, kind: input, shape index: {}]   ;;  %s3647_s5 = inlined_call_operand.vmem [shape: f32[2,48,64], index: 5, kind: output, shape index: {0}]   ;;  %s3648_s6 = inlined_call_operand.vmem [shape: f32[1,64], index: 6, kind: output, shape index: {1}]   ;;  %s3649_s7 = inlined_call_operand.vmem [shape: f32[1,64], index: 7, kind: output, shape index: {2}]  }
   0x1 LB: > { %s2931_s25 = sadd.s32 4294967295, %s2882_s24   ;;  %p2320_p0 = scmp.ge.s32.totalorder %s2882_s24, 1  ;;  %s2882_s24 = sphi %s2925_s24, %s18_s24  }
   0x2   : > { %p243_p1 = scmp.lt.s32.totalorder %s2882_s24, 3 }
   0x4   : > { %p244_p2 = pnand %p2320_p0, %p243_p1 }
   0x5   : > { %p276_p3 = scmp.lt.s32.totalorder (!%p244_p2), %s2931_s25, 1  ;;  %p2322_p4 = scmp.ne.s32.totalorder (!%p244_p2), %s2931_s25, 0 }
   0x6   : > { %247 = sbr.rel (%p244_p2) target bundleno = 467 (0x1d3), region = 40 }
   0xb   : > { %s2937_s26 = scalar_select %p276_p3, %s2931_s25, 1 }
   0xc   : > { %291 = sbr.rel (%p2322_p4) target bundleno = 30 (0x1e), region = 44 }
   0xd   : > { %s278_s29 = scalar_lea.vmem %s3644_s2, %s2937_s26  ;;  %s281_s9 = scalar_lea.vmem %s3645_s3, %s2937_s26 }
   0xe   : > { %s2858_s10 = smul.u32 288, %s2937_s26 }
  0x10   : > { %s2951_s13 = scalar_lea.vmem %s3646_s4, %s2858_s10 }
  0x11   : > { %v292_v0 = vld [vmem:[%s3643_s1] sm:$0xff]  ;;  %vm304_vm0 = vcmask 523264   ;;  %v293_v1 = vld [vmem:[%s3643_s1 + $0x8] sm:$0xff]  ;;  %v294_v2 = vld [vmem:[%s3643_s1 + $0x10] sm:$0xff] }
  0x12   : > { %305 = vst.msk [vmem:[#allocation2] sm:$0xff] %vm304_vm0, %v292_v0  ;;  %v295_v3 = vld [vmem:[%s3643_s1 + $0x18] sm:$0xff]  ;;  %v296_v4 = vld [vmem:[%s3643_s1 + $0x20] sm:$0xff]  ;;  %v297_v5 = vld [vmem:[%s3643_s1 + $0x28] sm:$0xff] }
  0x13   : > { %306 = vst.msk [vmem:[#allocation2 + $0x8] sm:$0xff] %vm304_vm0, %v293_v1  ;;  %v298_v6 = vld [vmem:[%s3643_s1 + $0x30] sm:$0xff]  ;;  %v299_v7 = vld [vmem:[%s3643_s1 + $0x38] sm:$0xff]  ;;  %v300_v8 = vld [vmem:[%s3643_s1 + $0x40] sm:$0xff] }
  0x14   : > { %307 = vst.msk [vmem:[#allocation2 + $0x10] sm:$0xff] %vm304_vm0, %v294_v2  ;;  %v301_v9 = vld [vmem:[%s3643_s1 + $0x48] sm:$0xff]  ;;  %v302_v10 = vld [vmem:[%s3643_s1 + $0x50] sm:$0xff]  ;;  %v303_v11 = vld [vmem:[%s3643_s1 + $0x58] sm:$0xff] }
  0x15   : > { %308 = vst.msk [vmem:[#allocation2 + $0x18] sm:$0xff] %vm304_vm0, %v295_v3 }
  0x16   : > { %309 = vst.msk [vmem:[#allocation2 + $0x20] sm:$0xff] %vm304_vm0, %v296_v4 }
  0x17   : > { %310 = vst.msk [vmem:[#allocation2 + $0x28] sm:$0xff] %vm304_vm0, %v297_v5 }
  0x18   : > { %311 = vst.msk [vmem:[#allocation2 + $0x30] sm:$0xff] %vm304_vm0, %v298_v6 }
  0x19   : > { %312 = vst.msk [vmem:[#allocation2 + $0x38] sm:$0xff] %vm304_vm0, %v299_v7 }
  0x1a   : > { %313 = vst.msk [vmem:[#allocation2 + $0x40] sm:$0xff] %vm304_vm0, %v300_v8 }
  0x1b   : > { %314 = vst.msk [vmem:[#allocation2 + $0x48] sm:$0xff] %vm304_vm0, %v301_v9 }
  0x1c   : > { %315 = vst.msk [vmem:[#allocation2 + $0x50] sm:$0xff] %vm304_vm0, %v302_v10 }
  0x1d   : > { %316 = vst.msk [vmem:[#allocation2 + $0x58] sm:$0xff] %vm304_vm0, %v303_v11 }
  0x1e PF: > { %v3005_v12 = vld [vmem:[%s3642_s0 + $0x2] sm:$0xff]  ;;  %v3010_v13 = vld [vmem:[%s3642_s0 + $0x12] sm:$0xff]  ;;  %v2884_v15 = vmov 0   ;;  %v3023_v16 = vld [vmem:[%s3642_s0 + $0xa] sm:$0xff]  ;;  %vm329_vm1 = vcmask 523264   ;;  %p2775_p5 = scmp.ne.s32.totalorder %s2931_s25, 1 }
  0x1f   : > { %v3015_v14 = vld [vmem:[%s3642_s0 + $0x1] sm:$0xff]  ;;  %2870 = vset.pattern.permute.xlu2 %v2884_v15  ;;  %2869 = vset.pattern.permute.xlu1 %v2884_v15  ;;  %v3028_v17 = vld [vmem:[%s3642_s0 + $0x11] sm:$0xff]  ;;  %v3033_v18 = vld [vmem:[%s3642_s0 + $0x9] sm:$0xff] }
  0x20   : > { %2868 = vset.pattern.permute.xlu0 %v2884_v15  ;;  %502 = vperm.xlu2 %2870, %v3005_v12   ;;  %v3041_v19 = vld [vmem:[%s3642_s0 + $0x7] sm:$0xff]  ;;  %v323_v24 = vld [vmem:[#allocation2 + $0x30] sm:$0xff]  ;;  %v324_v25 = vld [vmem:[#allocation2 + $0x38] sm:$0xff] }
  0x21   : > { %512 = vperm.xlu1 %2869, %v3010_v13   ;;  %459 = vperm.xlu0 %2868, %v3015_v14   ;;  %v3046_v20 = vld [vmem:[%s3642_s0 + $0xb] sm:$0xff]  ;;  %v3051_v21 = vld [vmem:[%s3642_s0 + $0x3] sm:$0xff]  ;;  %v331_v27 = vsel %vm329_vm1, %v323_v24, 0.0  ;;  %v334_v33 = vsel %vm329_vm1, %v324_v25, 0.0  ;;  %v372_v35 = vmul.f32 %v323_v24, %v323_v24  ;;  %v3072_v40 = vld [vmem:[#allocation2 + $0x18] sm:$0xff]  ;;  %v373_v44 = vmul.f32 %v324_v25, %v324_v25 }
  0x22   : > { %v317_v22 = vld [vmem:[#allocation2] sm:$0xff]  ;;  %v3053_v23 = vld [vmem:[#allocation2 + $0x8] sm:$0xff]  ;;  %v3062_v30 = vld [vmem:[#allocation2 + $0x10] sm:$0xff]  ;;  %v339_v46 = vsel %vm329_vm1, %v3072_v40, 0.0  ;;  %v369_v49 = vmul.f32 %v3072_v40, %v3072_v40 }
  0x23   : > { %v330_v26 = vsel %vm329_vm1, %v317_v22, 0.0  ;;  %v333_v28 = vsel %vm329_vm1, %v3053_v23, 0.0  ;;  %v366_v29 = vmul.f32 %v317_v22, %v317_v22  ;;  %v325_v31 = vld [vmem:[#allocation2 + $0x40] sm:$0xff]  ;;  %v367_v34 = vmul.f32 %v3053_v23, %v3053_v23  ;;  %v326_v41 = vld [vmem:[#allocation2 + $0x48] sm:$0xff]  ;;  %v3084_v50 = vld [vmem:[%s3642_s0 + $0x10] sm:$0xff] }
  0x24   : > { %v332_v32 = vadd.f32 %v331_v27, %v330_v26  ;;  %v335_v36 = vadd.f32 %v334_v33, %v333_v28  ;;  %v336_v37 = vsel %vm329_vm1, %v3062_v30, 0.0  ;;  %v337_v38 = vsel %vm329_vm1, %v325_v31, 0.0  ;;  %v321_v51 = vld [vmem:[#allocation2 + $0x20] sm:$0xff]  ;;  %v327_v52 = vld [vmem:[#allocation2 + $0x50] sm:$0xff]  ;;  %v3095_v58 = vld [vmem:[%s3642_s0 + $0x8] sm:$0xff] }
  0x25   : > { %v368_v39 = vmul.f32 %v3062_v30, %v3062_v30  ;;  %v338_v42 = vadd.f32 %v337_v38, %v336_v37  ;;  %v374_v45 = vmul.f32 %v325_v31, %v325_v31  ;;  %v340_v47 = vsel %vm329_vm1, %v326_v41, 0.0  ;;  %v3090_v57 = vld [vmem:[%s3642_s0 + $0xf] sm:$0xff]  ;;  %v328_v0 = vld [vmem:[#allocation2 + $0x58] sm:$0xff] }
  0x26   : > { %v348_v43 = vsel %vm329_vm1, %v332_v32, 0.0  ;;  %v349_v48 = vsel %vm329_vm1, %v335_v36, 0.0  ;;  %v341_v53 = vadd.f32 %v340_v47, %v339_v46  ;;  %v375_v56 = vmul.f32 %v326_v41, %v326_v41  ;;  %v322_v63 = vld [vmem:[#allocation2 + $0x28] sm:$0xff] }
  0x27   : > { %v350_v54 = vadd.f32 %v349_v48, %v348_v43  ;;  %v351_v55 = vsel %vm329_vm1, %v338_v42, 0.0  ;;  %v342_v59 = vsel %vm329_vm1, %v321_v51, 0.0  ;;  %v343_v60 = vsel %vm329_vm1, %v327_v52, 0.0 }
  0x28   : > { %507 = vperm.xlu2 %2870, %v3023_v16   ;;  %v370_v61 = vmul.f32 %v321_v51, %v321_v51  ;;  %v376_v62 = vmul.f32 %v327_v52, %v327_v52  ;;  %v344_v1 = vadd.f32 %v343_v60, %v342_v59  ;;  %v353_v3 = vsel %vm329_vm1, %v341_v53, 0.0  ;;  %v3136_v60 = vld [vmem:[%s3642_s0 + $0x19] sm:$0xff] }
  0x29   : > { %469 = vperm.xlu1 %2869, %v3028_v17   ;;  %464 = vperm.xlu0 %2868, %v3033_v18   ;;  %v352_v2 = vadd.f32 %v351_v55, %v350_v54  ;;  %v378_v4 = vsel %vm329_vm1, %v366_v29, 0.0  ;;  %v345_v5 = vsel %vm329_vm1, %v322_v63, 0.0  ;;  %v346_v6 = vsel %vm329_vm1, %v328_v0, 0.0 }
  0x2a   : > { %v371_v7 = vmul.f32 %v322_v63, %v322_v63  ;;  %v377_v8 = vmul.f32 %v328_v0, %v328_v0  ;;  %v347_v9 = vadd.f32 %v346_v6, %v345_v5  ;;  %v355_v11 = vsel %vm329_vm1, %v344_v1, 0.0  ;;  %v3141_v63 = vld [vmem:[%s3642_s0 + $0x17] sm:$0xff]  ;;  %v3154_v6 = vld [vmem:[%s3642_s0 + $0xe] sm:$0xff] }
  0x2b   : > { %v354_v10 = vadd.f32 %v353_v3, %v352_v2  ;;  %v379_v15 = vsel %vm329_vm1, %v372_v35, 0.0  ;;  %v381_v24 = vsel %vm329_vm1, %v367_v34, 0.0  ;;  %v382_v25 = vsel %vm329_vm1, %v373_v44, 0.0  ;;  %v3119_v34 = vld [vmem:[%s3642_s0 + $0x13] sm:$0xff] }
  0x2c   : > { %v380_v22 = vadd.f32 %v379_v15, %v378_v4  ;;  %v384_v26 = vsel %vm329_vm1, %v368_v39, 0.0  ;;  %v357_v28 = vsel %vm329_vm1, %v347_v9, 0.0  ;;  %v383_v29 = vadd.f32 %v382_v25, %v381_v24  ;;  %v3146_v0 = vld [vmem:[%s3642_s0 + $0x18] sm:$0xff] }
  0x2d   : > { %v356_v27 = vadd.f32 %v355_v11, %v354_v10  ;;  %v385_v31 = vsel %vm329_vm1, %v374_v45, 0.0  ;;  %v387_v33 = vsel %vm329_vm1, %v369_v49, 0.0  ;;  %v388_v36 = vsel %vm329_vm1, %v375_v56, 0.0  ;;  %v3164_v9 = vld [vmem:[%s3642_s0 + $0x15] sm:$0xff] }
  0x2e   : > { %v386_v32 = vadd.f32 %v385_v31, %v384_v26  ;;  %v390_v35 = vsel %vm329_vm1, %v370_v61, 0.0  ;;  %v389_v38 = vadd.f32 %v388_v36, %v387_v33  ;;  %v391_v39 = vsel %vm329_vm1, %v376_v62, 0.0  ;;  %v3172_v26 = vld [vmem:[%s3642_s0 + $0x16] sm:$0xff] }
  0x2f   : > { %v358_v37 = vadd.f32 %v357_v28, %v356_v27  ;;  %v393_v41 = vsel %vm329_vm1, %v371_v7, 0.0  ;;  %v392_v42 = vadd.f32 %v391_v39, %v390_v35  ;;  %v394_v43 = vsel %vm329_vm1, %v377_v8, 0.0  ;;  %v3159_v8 = vld [vmem:[%s3642_s0 + $0xd] sm:$0xff]  ;;  %v3180_v31 = vld [vmem:[%s3642_s0 + $0x1d] sm:$0xff] }
  0x30   : > { %737 = vperm.xlu2 %2870, %v3041_v19   ;;  %v396_v44 = vsel %vm329_vm1, %v380_v22, 0.0  ;;  %v397_v45 = vsel %vm329_vm1, %v383_v29, 0.0  ;;  %v399_v48 = vsel %vm329_vm1, %v386_v32, 0.0  ;;  %v395_v49 = vadd.f32 %v394_v43, %v393_v41  ;;  %v2785_v36 = vld [vmem:[%s2951_s13 + $0x38] sm:$0xff]  ;;  %v2783_v41 = vld [vmem:[%s2951_s13 + $0x28] sm:$0xff] }
  0x31   : > { %647 = vperm.xlu1 %2869, %v3046_v20   ;;  %642 = vperm.xlu0 %2868, %v3051_v21   ;;  %v359_v46 = vrot.slane %v358_v37, 4  ;;  %v398_v47 = vadd.f32 %v397_v45, %v396_v44  ;;  %v401_v51 = vsel %vm329_vm1, %v389_v38, 0.0  ;;  %v403_v54 = vsel %vm329_vm1, %v392_v42, 0.0  ;;  %v3189_v35 = vld [vmem:[%s3642_s0 + $0x1e] sm:$0xff] }
  0x32   : > { %v405_v59 = vsel %vm329_vm1, %v395_v49, 0.0  ;;  %563 = vmatpush.bf16.msra.mxu0 %v2785_v36  ;;  %2850 = vmatpush.bf16.msra.mxu2 %v2785_v36  ;;  %v2781_v42 = vld [vmem:[%s2951_s13 + $0x18] sm:$0xff]  ;;  %v2782_v49 = vld [vmem:[%s2951_s13 + $0x20] sm:$0xff] }
  0x33   : > { %v360_v52 = vadd.f32 %v359_v46, %v358_v37  ;;  %v400_v53 = vadd.f32 %v399_v48, %v398_v47  ;;  %v3194_v37 = vld [vmem:[%s3642_s0 + $0x1f] sm:$0xff]  ;;  %611 = vmatpush.bf16.msra.mxu1 %v2781_v42  ;;  %2854 = vmatpush.bf16.msra.mxu3 %v2781_v42 }
  0x34   : > { %v430_v46 = vld [vmem:[%s281_s9] sm:$0x1] }
  0x35   : > { %v361_v55 = vrot.slane %v360_v52, 2  ;;  %v402_v56 = vadd.f32 %v401_v51, %v400_v53  ;;  %v485_v51 = vld [vmem:[#allocation2 + $0x2] sm:$0xff]  ;;  %v2780_v53 = vld [vmem:[%s2951_s13 + $0x10] sm:$0xff] }
  0x37   : > { %v362_v61 = vadd.f32 %v361_v55, %v360_v52  ;;  %v404_v62 = vadd.f32 %v403_v54, %v402_v56  ;;  %612 = vmatpush.bf16.msra.mxu1 %v2780_v53  ;;  %2855 = vmatpush.bf16.msra.mxu3 %v2780_v53  ;;  %v2779_v56 = vld [vmem:[%s2951_s13 + $0x8] sm:$0xff] }
  0x38   : > { %834 = vperm.xlu2 %2870, %v3084_v50   ;;  %v626_v53 = vld [vmem:[#allocation2 + $0xb] sm:$0xff] }
  0x39   : > { %742 = vperm.xlu0 %2868, %v3090_v57   ;;  %829 = vperm.xlu1 %2869, %v3095_v58   ;;  %v363_v1 = vrot.slane %v362_v61, 1  ;;  %v406_v2 = vadd.f32 %v405_v59, %v404_v62  ;;  %v2789_v59 = vld [vmem:[%s2951_s13 + $0x58] sm:$0xff] }
  0x3b   : > { %v407_v3 = vrot.slane %v406_v2, 4  ;;  %v364_v4 = vadd.f32 %v363_v1, %v362_v61  ;;  %613 = vmatpush.bf16.msra.mxu1 %v2779_v56  ;;  %2856 = vmatpush.bf16.msra.mxu3 %v2779_v56 }
  0x3d   : > { %v408_v5 = vadd.f32 %v407_v3, %v406_v2  ;;  %v365_v10 = vmul.f32 0.03125, %v364_v4  ;;  %v2778_v2 = vld [vmem:[%s2951_s13] sm:$0xff]  ;;  %v2788_v3 = vld [vmem:[%s2951_s13 + $0x50] sm:$0xff] }
  0x3f   : > { %v409_v7 = vrot.slane %v408_v5, 2  ;;  %v414_v24 = vmul.f32 %v365_v10, %v365_v10  ;;  %614 = vmatpush.bf16.msra.mxu1 %v2778_v2  ;;  %2857 = vmatpush.bf16.msra.mxu3 %v2778_v2 }
  0x40   : > { %652 = vperm.xlu2 %2870, %v3119_v34  }
  0x41   : > { %924 = vperm.xlu0 %2868, %v3033_v18   ;;  %929 = vperm.xlu1 %2869, %v3028_v17   ;;  %v410_v11 = vadd.f32 %v409_v7, %v408_v5  ;;  %v2787_v5 = vld [vmem:[%s2951_s13 + $0x48] sm:$0xff]  ;;  %v2797_v7 = vld [vmem:[%s2951_s13 + $0x98] sm:$0xff] }
  0x43   : > { %v411_v15 = vrot.slane %v410_v11, 1 }
  0x45   : > { %v412_v22 = vadd.f32 %v411_v15, %v410_v11 }
  0x47   : > { %v413_v25 = vmul.f32 0.03125, %v412_v22  ;;  %v2792_v22 = vld [vmem:[%s2951_s13 + $0x70] sm:$0xff] }
  0x48   : > { %934 = vperm.xlu2 %2870, %v3136_v60  }
  0x49   : > { %747 = vperm.xlu0 %2868, %v3141_v63   ;;  %839 = vperm.xlu1 %2869, %v3146_v0   ;;  %v415_v27 = vsub.f32 %v413_v25, %v414_v24  ;;  %v2786_v24 = vld [vmem:[%s2951_s13 + $0x40] sm:$0xff]  ;;  %v2796_v25 = vld [vmem:[%s2951_s13 + $0x90] sm:$0xff] }
  0x4b   : > { %v416_v28 = vmax.f32 %v415_v27, 0.0 }
  0x4d   : > { %v418_v29 = vadd.f32 1e-05, %v416_v28  ;;  %v487_v28 = vld [vmem:[#allocation2 + $0x12] sm:$0xff] }
  0x4f   : > { %2871 = vrsqrt.f32 %v418_v29  ;;  %vm425_vm2 = vweird.f32 %v418_v29 }
  0x50   : > { %1114 = vperm.xlu2 %2870, %v3154_v6  }
  0x51   : > { %1019 = vperm.xlu0 %2868, %v3159_v8   ;;  %1024 = vperm.xlu1 %2869, %v3164_v9  }
  0x55   : > { %v2872_v32 = vpop.eup %2871 }
  0x56   : > { %v420_v33 = vmul.f32 %v2872_v32, %v418_v29  ;;  %vm426_vm3 = vweird.f32 %v2872_v32  ;;  %v2795_v29 = vld [vmem:[%s2951_s13 + $0x88] sm:$0xff] }
  0x57   : > { %vm427_vm4 = vmor %vm425_vm2, %vm426_vm3 }
  0x58   : > { %1214 = vperm.xlu2 %2870, %v3141_v63   ;;  %v421_v38 = vmul.f32 %v2872_v32, %v420_v33 }
  0x59   : > { %1119 = vperm.xlu0 %2868, %v3172_v26   ;;  %1209 = vperm.xlu1 %2869, %v3090_v57  }
  0x60   : > { %1029 = vperm.xlu2 %2870, %v3180_v31  }
  0x61   : > { %1357 = vperm.xlu0 %2868, %v3005_v12   ;;  %1362 = vperm.xlu1 %2869, %v3023_v16   ;;  %v422_v12 = vmul.f32 0.5, %v421_v38  ;;  %v2784_v16 = vld [vmem:[%s2951_s13 + $0x30] sm:$0xff]  ;;  %v2790_v38 = vld [vmem:[%s2951_s13 + $0x60] sm:$0xff] }
  0x62   : > { %564 = vmatpush.bf16.msra.mxu0 %v2784_v16  ;;  %2851 = vmatpush.bf16.msra.mxu2 %v2784_v16  ;;  %v436_v16 = vld [vmem:[#allocation2 + $0x1] sm:$0xff] }
  0x63   : > { %v423_v39 = vsub.f32 1.5, %v422_v12  ;;  %v2794_v12 = vld [vmem:[%s2951_s13 + $0x80] sm:$0xff] }
  0x65   : > { %v424_v43 = vmul.f32 %v2872_v32, %v423_v39  ;;  %v438_v39 = vld [vmem:[#allocation2 + $0x11] sm:$0xff] }
  0x66   : > { %565 = vmatpush.bf16.msra.mxu0 %v2783_v41  ;;  %2852 = vmatpush.bf16.msra.mxu2 %v2783_v41  ;;  %v437_v41 = vld [vmem:[#allocation2 + $0x9] sm:$0xff] }
  0x67   : > { %v428_v44 = vsel %vm427_vm4, %v2872_v32, %v424_v43  ;;  %v2801_v32 = vld [vmem:[%s2951_s13 + $0xb8] sm:$0xff] }
  0x68   : > { %1367 = vperm.xlu2 %2870, %v3010_v13   ;;  %v417_v13 = vld [vmem:[%s278_s29] sm:$0x1]  ;;  %985 = vmatpush.bf16.msrb.mxu1 %v2801_v32 }
  0x69   : > { %1124 = vperm.xlu0 %2868, %v3189_v35   ;;  %1219 = vperm.xlu1 %2869, %v3194_v37   ;;  %v429_v45 = vmul.f32 %v428_v44, %v417_v13  ;;  %v2799_v44 = vld [vmem:[%s2951_s13 + $0xa8] sm:$0xff] }
  0x6a   : > { %566 = vmatpush.bf16.msra.mxu0 %v2782_v49  ;;  %2853 = vmatpush.bf16.msra.mxu2 %v2782_v49 }
  0x6b   : > { %v431_v47 = vmul.f32 %v429_v45, %v365_v10  ;;  %v3215_v48 = vperm.slane %v429_v45, 0 }
  0x6d   : > { %v432_v52 = vsub.f32 %v430_v46, %v431_v47  ;;  %v491_v55 = vmul.f32 %v485_v51, %v3215_v48  ;;  %v445_v42 = vmul.f32 %v3215_v48, %v436_v16  ;;  %v447_v13 = vmul.f32 %v3215_v48, %v438_v39  ;;  %v627_v16 = vld [vmem:[#allocation2 + $0x13] sm:$0xff] }
  0x6e   : > { %703 = vmatpush.bf16.msrb.mxu2 %v2789_v59  ;;  %890 = vmatpush.bf16.msrb.mxu0 %v2797_v7  ;;  %v446_v43 = vmul.f32 %v3215_v48, %v437_v41  ;;  %v818_v32 = vmul.f32 %v3215_v48, %v3053_v23 }
  0x6f   : > { %v3219_v54 = vperm.slane %v432_v52, 0 }
  0x70   : > { %1496 = vperm.xlu2 %2870, %v3051_v21   ;;  %v486_v21 = vld [vmem:[#allocation2 + $0xa] sm:$0xff] }
  0x71   : > { %1314 = vperm.xlu0 %2868, %v3015_v14   ;;  %1319 = vperm.xlu1 %2869, %v3033_v18   ;;  %v492_v14 = vmul.f32 %v486_v21, %v3215_v48  ;;  %v494_v61 = vadd.f32 %v491_v55, %v3219_v54  ;;  %v451_v49 = vadd.f32 %v3219_v54, %v445_v42  ;;  %v2798_v21 = vld [vmem:[%s2951_s13 + $0xa0] sm:$0xff]  ;;  %v2805_v55 = vld [vmem:[%s2951_s13 + $0xd8] sm:$0xff] }
  0x72   : > { %704 = vmatpush.bf16.msrb.mxu2 %v2788_v3  ;;  %891 = vmatpush.bf16.msrb.mxu0 %v2796_v25  ;;  %v3266_v51 = vadd.f32 %v3219_v54, %v447_v13  ;;  %v3269_v52 = vadd.f32 %v3219_v54, %v446_v43  ;;  %v2804_v3 = vld [vmem:[%s2951_s13 + $0xd0] sm:$0xff]  ;;  %v819_v25 = vmul.f32 %v3215_v48, %v3062_v30  ;;  %v2802_v42 = vld [vmem:[%s2951_s13 + $0xc0] sm:$0xff] }
  0x73   : > { %v495_v1 = vadd.f32 %v492_v14, %v3219_v54  ;;  %v497_v4 = vmax.f32 %v494_v61, 0.0  ;;  %v632_v14 = vmul.f32 %v626_v53, %v3215_v48  ;;  %v454_v56 = vmax.f32 %v451_v49, 0.0  ;;  %v2811_v53 = vld [vmem:[%s2951_s13 + $0x108] sm:$0xff] }
  0x74   : > { %v456_v59 = vmax.f32 %v3266_v51, 0.0  ;;  %v455_v61 = vmax.f32 %v3269_v52, 0.0  ;;  %v633_v13 = vmul.f32 %v627_v16, %v3215_v48 }
  0x76   : > { %705 = vmatpush.bf16.msrb.mxu2 %v2787_v5  ;;  %892 = vmatpush.bf16.msrb.mxu0 %v2795_v29 }
  0x78   : > { %1595 = vperm.xlu2 %2870, %v3090_v57  }
  0x79   : > { %1501 = vperm.xlu0 %2868, %v3046_v20   ;;  %1590 = vperm.xlu1 %2869, %v3041_v19   ;;  %v498_v20 = vmax.f32 %v495_v1, 0.0  ;;  %v2793_v19 = vld [vmem:[%s2951_s13 + $0x78] sm:$0xff] }
  0x7a   : > { %v503_v62 = vpop.permute.xlu2 %502  ;;  %798 = vmatpush.bf16.msrb.mxu3 %v2793_v19  ;;  %706 = vmatpush.bf16.msrb.mxu2 %v2786_v24  ;;  %v2813_v1 = vld [vmem:[%s2951_s13 + $0x118] sm:$0xff]  ;;  %v720_v19 = vld [vmem:[#allocation2 + $0x7] sm:$0xff] }
  0x7b   : > { %v515_v10 = vmul.f32 %v503_v62, %v497_v4  ;;  %893 = vmatpush.bf16.msrb.mxu0 %v2794_v12  ;;  %v726_v24 = vmul.f32 %v720_v19, %v3215_v48  ;;  %v820_v19 = vmul.f32 %v3215_v48, %v3072_v40 }
  0x7d   : > { %v729_v12 = vadd.f32 %v726_v24, %v3219_v54  ;;  %v823_v24 = vadd.f32 %v820_v19, %v3219_v54  ;;  %v2814_v19 = vld [vmem:[%s2951_s13] sm:$0xff] }
  0x7e   : > { %799 = vmatpush.bf16.msrb.mxu3 %v2792_v22  ;;  %v2809_v22 = vld [vmem:[%s2951_s13 + $0xf8] sm:$0xff] }
  0x7f   : > { %v826_v51 = vmax.f32 %v823_v24, 0.0  ;;  %v2831_v24 = vld [vmem:[%s2951_s13 + $0x88] sm:$0xff] }
  0x80   : > { %1324 = vperm.xlu2 %2870, %v3028_v17  }
  0x81   : > { %1684 = vperm.xlu0 %2868, %v3095_v58   ;;  %1689 = vperm.xlu1 %2869, %v3084_v50   ;;  %v493_v50 = vmul.f32 %v487_v28, %v3215_v48  ;;  %v2791_v58 = vld [vmem:[%s2951_s13 + $0x68] sm:$0xff] }
  0x82   : > { %v508_v11 = vpop.permute.xlu2 %507  ;;  %800 = vmatpush.bf16.msrb.mxu3 %v2791_v58  ;;  %v2803_v28 = vld [vmem:[%s2951_s13 + $0xc8] sm:$0xff] }
  0x83   : > { %v516_v15 = vmul.f32 %v508_v11, %v498_v20  ;;  %v496_v36 = vadd.f32 %v493_v50, %v3219_v54  ;;  %v635_v20 = vadd.f32 %v632_v14, %v3219_v54 }
  0x85   : > { %v518_v27 = vpack.c.bf16 %v516_v15, %v515_v10  ;;  %v721_v10 = vld [vmem:[#allocation2 + $0xf] sm:$0xff]  ;;  %v638_v50 = vmax.f32 %v635_v20, 0.0  ;;  %v1193_v20 = vld [vmem:[#allocation2 + $0x17] sm:$0xff] }
  0x86   : > { %801 = vmatpush.bf16.msrb.mxu3 %v2790_v38  ;;  %v727_v29 = vmul.f32 %v721_v10, %v3215_v48  ;;  %v2808_v38 = vld [vmem:[%s2951_s13 + $0xf0] sm:$0xff]  ;;  %v909_v10 = vld [vmem:[#allocation2 + $0x19] sm:$0xff] }
  0x87   : > { %2347 = vmatmul.msk.bf16.vlgmr.msra.gmra.mxu0 %vm329_vm1, %v518_v27  ;;  %v2821_v27 = vld [vmem:[%s2951_s13 + $0x38] sm:$0xff] }
  0x88   : > { %1694 = vperm.xlu2 %2870, %v3146_v0   ;;  %v2800_v0 = vld [vmem:[%s2951_s13 + $0xb0] sm:$0xff]  ;;  %1270 = vmatpush.bf16.msra.mxu0 %v2813_v1  ;;  %v2810_v1 = vld [vmem:[%s2951_s13 + $0x100] sm:$0xff] }
  0x89   : > { %1506 = vperm.xlu0 %2868, %v3119_v34   ;;  %1600 = vperm.xlu1 %2869, %v3141_v63   ;;  %v499_v34 = vmax.f32 %v496_v36, 0.0  ;;  %v2812_v36 = vld [vmem:[%s2951_s13 + $0x110] sm:$0xff] }
  0x8a   : > { %v3249_v33 = vpop.permute.xlu2 %737  ;;  %986 = vmatpush.bf16.msrb.mxu1 %v2800_v0  ;;  %v822_v0 = vadd.f32 %v819_v25, %v3219_v54  ;;  %v1003_v25 = vld [vmem:[#allocation2 + $0x15] sm:$0xff] }
  0x8c   : > { %1271 = vmatpush.bf16.msra.mxu0 %v2812_v36  ;;  %v2829_v36 = vld [vmem:[%s2951_s13 + $0x78] sm:$0xff] }
  0x8e   : > { %987 = vmatpush.bf16.msrb.mxu1 %v2799_v44  ;;  %v2807_v44 = vld [vmem:[%s2951_s13 + $0xe8] sm:$0xff] }
  0x90   : > { %1872 = vperm.xlu2 %2870, %v3159_v8   ;;  %1272 = vmatpush.bf16.msra.mxu0 %v2811_v53 }
  0x91   : > { %1778 = vperm.xlu0 %2868, %v3033_v18   ;;  %1783 = vperm.xlu1 %2869, %v3028_v17   ;;  %v625_v18 = vld [vmem:[#allocation2 + $0x3] sm:$0xff] }
  0x92   : > { %v3262_v45 = vpop.permute.xlu2 %834  ;;  %988 = vmatpush.bf16.msrb.mxu1 %v2798_v21  ;;  %v631_v62 = vmul.f32 %v625_v18, %v3215_v48  ;;  %v2819_v21 = vld [vmem:[%s2951_s13 + $0x28] sm:$0xff]  ;;  %v636_v18 = vadd.f32 %v633_v13, %v3219_v54 }
  0x93   : > { %v513_v46 = vpop.permute.xlu1 %512  ;;  %v460_v47 = vpop.permute.xlu0 %459 }
  0x94   : > { %v517_v8 = vmul.f32 %v513_v46, %v499_v34  ;;  %v472_v5 = vmul.f32 %v460_v47, %v454_v56  ;;  %v821_v34 = vadd.f32 %v818_v32, %v3219_v54  ;;  %v732_v46 = vmax.f32 %v729_v12, 0.0  ;;  %1273 = vmatpush.bf16.msra.mxu0 %v2810_v1  ;;  %v2824_v32 = vld [vmem:[%s2951_s13 + $0x50] sm:$0xff] }
  0x95   : > { %v825_v47 = vmax.f32 %v822_v0, 0.0 }
  0x96   : > { %v519_v17 = vpack.c.bf16 %v517_v8, %v517_v8  ;;  %v824_v49 = vmax.f32 %v821_v34, 0.0 }
  0x98   : > { %2348 = vmatmul.msk.bf16.vlgmr.msra.gmra.mxu2 %vm329_vm1, %v519_v17  ;;  %1971 = vperm.xlu2 %2870, %v3172_v26   ;;  %v2806_v17 = vld [vmem:[%s2951_s13 + $0xe0] sm:$0xff] }
  0x99   : > { %1877 = vperm.xlu0 %2868, %v3164_v9   ;;  %1966 = vperm.xlu1 %2869, %v3154_v6   ;;  %v634_v9 = vadd.f32 %v631_v62, %v3219_v54  ;;  %v843_v62 = vmul.f32 %v3262_v45, %v825_v47 }
  0x9a   : > { %v3282_v2 = vpop.permute.xlu2 %652  ;;  %1080 = vmatpush.bf16.msra.mxu2 %v2805_v55  ;;  %v750_v55 = vmul.f32 %v3249_v33, %v732_v46  ;;  %v2815_v46 = vld [vmem:[%s2951_s13 + $0x8] sm:$0xff] }
  0x9b   : > { %v470_v4 = vpop.permute.xlu1 %469  ;;  %v465_v26 = vpop.permute.xlu0 %464  ;;  %v637_v58 = vmax.f32 %v634_v9, 0.0  ;;  %v1199_v9 = vmul.f32 %v1193_v20, %v3215_v48  ;;  %v1340_v20 = vld [vmem:[#allocation2 + $0x32] sm:$0xff] }
  0x9c   : > { %v474_v7 = vmul.f32 %v470_v4, %v456_v59  ;;  %v473_v6 = vmul.f32 %v465_v26, %v455_v61  ;;  %v2817_v26 = vld [vmem:[%s2951_s13 + $0x18] sm:$0xff] }
  0x9e   : > { %v476_v11 = vpack.c.bf16 %v474_v7, %v474_v7  ;;  %v475_v15 = vpack.c.bf16 %v473_v6, %v472_v5  ;;  %1081 = vmatpush.bf16.msra.mxu2 %v2804_v3  ;;  %v639_v3 = vmax.f32 %v636_v18, 0.0  ;;  %v2825_v5 = vld [vmem:[%s2951_s13 + $0x58] sm:$0xff]  ;;  %v2818_v7 = vld [vmem:[%s2951_s13 + $0x20] sm:$0xff] }
  0xa0   : > { %2365 = vmatmul.msk.bf16.vlgmr.msra.gmra.mxu1 %vm329_vm1, %v475_v15  ;;  %2366 = vmatmul.msk.bf16.vlgmr.msra.gmra.mxu3 %vm329_vm1, %v476_v11  ;;  %v657_v6 = vmul.f32 %v3282_v2, %v639_v3  ;;  %v1002_v2 = vld [vmem:[#allocation2 + $0xd] sm:$0xff] }
  0xa1   : > { %2060 = vperm.xlu0 %2868, %v3090_v57   ;;  %1788 = vperm.xlu2 %2870, %v3136_v60   ;;  %v2820_v57 = vld [vmem:[%s2951_s13 + $0x30] sm:$0xff] }
  0xa2   : > { %2065 = vperm.xlu1 %2869, %v3141_v63   ;;  %v3306_v30 = vpop.permute.xlu2 %934  ;;  %1175 = vmatpush.bf16.msra.mxu3 %v2809_v22  ;;  %v3313_v63 = vadd.f32 %v727_v29, %v3219_v54  ;;  %v1009_v29 = vmul.f32 %v1003_v25, %v3215_v48 }
  0xa3   : > { %v648_v39 = vpop.permute.xlu1 %647  ;;  %v643_v23 = vpop.permute.xlu0 %642  ;;  %1417 = vmatpush.bf16.msra.mxu1 %v2821_v27  ;;  %1082 = vmatpush.bf16.msra.mxu2 %v2803_v28  ;;  %v659_v27 = vpack.c.bf16 %v657_v6, %v657_v6  ;;  %v915_v28 = vmul.f32 %v909_v10, %v3215_v48  ;;  %v1346_v10 = vmul.f32 %v1340_v20, %v3215_v48 }
  0xa4   : > { %v656_v41 = vmul.f32 %v648_v39, %v638_v50  ;;  %v655_v60 = vmul.f32 %v643_v23, %v637_v58  ;;  %v733_v8 = vmax.f32 %v3313_v63, 0.0  ;;  %v3356_v58 = vadd.f32 %v1199_v9, %v3219_v54  ;;  %v1097_v23 = vld [vmem:[#allocation2 + $0xe] sm:$0xff] }
  0xa5   : > { %v918_v12 = vadd.f32 %v915_v28, %v3219_v54  ;;  %v1012_v34 = vadd.f32 %v1009_v29, %v3219_v54  ;;  %v1103_v47 = vmul.f32 %v1097_v23, %v3215_v48 }
  0xa6   : > { %v658_v43 = vpack.c.bf16 %v656_v41, %v655_v60  ;;  %1176 = vmatpush.bf16.msra.mxu3 %v2808_v38  ;;  %v2833_v38 = vld [vmem:[%s2951_s13 + $0x98] sm:$0xff]  ;;  %v1205_v0 = vmax.f32 %v3356_v58, 0.0 }
  0xa7   : > { %1418 = vmatpush.bf16.msra.mxu1 %v2820_v57  ;;  %1083 = vmatpush.bf16.msra.mxu2 %v2802_v42  ;;  %v1098_v42 = vld [vmem:[#allocation2 + $0x16] sm:$0xff]  ;;  %v921_v13 = vmax.f32 %v918_v12, 0.0 }
  0xa8   : > { %2391 = vmatmul.msk.bf16.vlgmr.msrb.gmra.mxu2 %vm329_vm1, %v658_v43  ;;  %v1104_v18 = vmul.f32 %v1098_v42, %v3215_v48 }
  0xa9   : > { %1882 = vperm.xlu0 %2868, %v3180_v31   ;;  %2070 = vperm.xlu2 %2870, %v3194_v37  }
  0xaa   : > { %1976 = vperm.xlu1 %2869, %v3189_v35   ;;  %1177 = vmatpush.bf16.msra.mxu3 %v2807_v44  ;;  %v3334_v37 = vpop.permute.xlu2 %1114 }
  0xab   : > { %v743_v14 = vpop.permute.xlu0 %742  ;;  %v3329_v56 = vpop.permute.xlu1 %829  ;;  %1419 = vmatpush.bf16.msra.mxu1 %v2819_v21  ;;  %1465 = vmatpush.bf16.msrb.mxu2 %v2817_v26  ;;  %v1015_v21 = vmax.f32 %v1012_v34, 0.0  ;;  %v1107_v26 = vadd.f32 %v1104_v18, %v3219_v54  ;;  %v1342_v34 = vld [vmem:[#allocation2 + $0x42] sm:$0xff]  ;;  %v1298_v18 = vld [vmem:[#allocation2 + $0x39] sm:$0xff] }
  0xac   : > { %v751_v31 = vmul.f32 %v743_v14, %v733_v8  ;;  %v842_v35 = vmul.f32 %v3329_v56, %v824_v49  ;;  %v2832_v14 = vld [vmem:[%s2951_s13 + $0x90] sm:$0xff] }
  0xae   : > { %v753_v4 = vpack.c.bf16 %v751_v31, %v750_v55  ;;  %v845_v33 = vpack.c.bf16 %v843_v62, %v842_v35  ;;  %1178 = vmatpush.bf16.msra.mxu3 %v2806_v17  ;;  %v2823_v17 = vld [vmem:[%s2951_s13 + $0x48] sm:$0xff]  ;;  %v2828_v55 = vld [vmem:[%s2951_s13 + $0x70] sm:$0xff]  ;;  %v939_v62 = vmul.f32 %v3306_v30, %v921_v13  ;;  %v1106_v31 = vadd.f32 %v1103_v47, %v3219_v54  ;;  %v1004_v35 = vld [vmem:[#allocation2 + $0x1d] sm:$0xff] }
  0xaf   : > { %1420 = vmatpush.bf16.msra.mxu1 %v2818_v7  ;;  %v1010_v30 = vmul.f32 %v1004_v35, %v3215_v48 }
  0xb0   : > { %2417 = vmatmul.msk.bf16.vlgmr.msrb.gmra.mxu3 %vm329_vm1, %v753_v4  ;;  %2443 = vmatmul.msk.bf16.vlgmr.msrb.gmra.mxu0 %vm329_vm1, %v845_v33  ;;  %v941_v7 = vpack.c.bf16 %v939_v62, %v939_v62  ;;  %v1109_v9 = vmax.f32 %v1106_v31, 0.0 }
  0xb1   : > { %1650 = vmatpush.bf16.msrb.mxu0 %v2829_v36  ;;  %v2826_v36 = vld [vmem:[%s2951_s13 + $0x60] sm:$0xff] }
  0xb2   : > { %1556 = vmatpush.bf16.msrb.mxu3 %v2825_v5  ;;  %v3353_v50 = vpop.permute.xlu2 %1214  ;;  %v1341_v5 = vld [vmem:[#allocation2 + $0x3a] sm:$0xff] }
  0xb3   : > { %v925_v11 = vpop.permute.xlu0 %924  ;;  %v930_v15 = vpop.permute.xlu1 %929 }
  0xb4   : > { %v937_v22 = vmul.f32 %v925_v11, %v455_v61  ;;  %v938_v40 = vmul.f32 %v930_v15, %v456_v59  ;;  %v2816_v61 = vld [vmem:[%s2951_s13 + $0x10] sm:$0xff]  ;;  %v1008_v59 = vmul.f32 %v1002_v2, %v3215_v48  ;;  %v1110_v11 = vmax.f32 %v1107_v26, 0.0 }
  0xb5   : > { %1466 = vmatpush.bf16.msrb.mxu2 %v2816_v61  ;;  %1651 = vmatpush.bf16.msrb.mxu0 %v2828_v55  ;;  %v1347_v15 = vmul.f32 %v1341_v5, %v3215_v48  ;;  %v1013_v2 = vadd.f32 %v1010_v30, %v3219_v54  ;;  %v1349_v61 = vadd.f32 %v1346_v10, %v3219_v54  ;;  %v1479_v5 = vld [vmem:[#allocation2 + $0x33] sm:$0xff] }
  0xb6   : > { %v940_v52 = vpack.c.bf16 %v938_v40, %v937_v22  ;;  %1557 = vmatpush.bf16.msrb.mxu3 %v2824_v32  ;;  %v1011_v60 = vadd.f32 %v1008_v59, %v3219_v54  ;;  %v2822_v22 = vld [vmem:[%s2951_s13 + $0x40] sm:$0xff]  ;;  %v2827_v40 = vld [vmem:[%s2951_s13 + $0x68] sm:$0xff] }
  0xb7   : > { %v1350_v32 = vadd.f32 %v1347_v15, %v3219_v54  ;;  %v1016_v12 = vmax.f32 %v1013_v2, 0.0  ;;  %v1573_v15 = vld [vmem:[#allocation2 + $0x37] sm:$0xff] }
  0xb8   : > { %2392 = vmatmul.msk.bf16.gmra.mxu2 %vm329_vm1, %v659_v27  ;;  %2469 = vmatmul.msk.bf16.vlgmr.msrb.gmra.mxu1 %vm329_vm1, %v940_v52  ;;  %v1014_v53 = vmax.f32 %v1011_v60, 0.0  ;;  %v1127_v27 = vmul.f32 %v3334_v37, %v1109_v9  ;;  %v1099_v37 = vld [vmem:[#allocation2 + $0x1e] sm:$0xff] }
  0xb9   : > { %1744 = vmatpush.bf16.msrb.mxu1 %v2833_v38  ;;  %1467 = vmatpush.bf16.msrb.mxu2 %v2815_v46  ;;  %v1194_v38 = vld [vmem:[#allocation2 + $0x1f] sm:$0xff]  ;;  %v1353_v58 = vmax.f32 %v1350_v32, 0.0  ;;  %v1105_v63 = vmul.f32 %v1099_v37, %v3215_v48  ;;  %v2839_v32 = vld [vmem:[%s2951_s13 + $0xc8] sm:$0xff]  ;;  %v2848_v37 = vld [vmem:[%s2951_s13 + $0x110] sm:$0xff] }
  0xba   : > { %v3377_v49 = vpop.permute.xlu2 %1029  ;;  %1558 = vmatpush.bf16.msrb.mxu3 %v2823_v17  ;;  %1652 = vmatpush.bf16.msrb.mxu0 %v2827_v40  ;;  %v1348_v17 = vmul.f32 %v1342_v34, %v3215_v48 }
  0xbb   : > { %v748_v16 = vpop.permute.xlu0 %747  ;;  %v3368_v39 = vpop.permute.xlu1 %839  ;;  %v1034_v60 = vmul.f32 %v3377_v49, %v1016_v12  ;;  %v1108_v47 = vadd.f32 %v1105_v63, %v3219_v54 }
  0xbc   : > { %v752_v57 = vmul.f32 %v1205_v0, %v748_v16  ;;  %v844_v41 = vmul.f32 %v3368_v39, %v826_v51  ;;  %v1223_v51 = vmul.f32 %v3353_v50, %v1205_v0  ;;  %v1352_v50 = vmax.f32 %v1349_v61, 0.0  ;;  %v2841_v0 = vld [vmem:[%s2951_s13 + $0xd8] sm:$0xff] }
  0xbd   : > { %1745 = vmatpush.bf16.msrb.mxu1 %v2832_v14  ;;  %1468 = vmatpush.bf16.msrb.mxu2 %v2814_v19  ;;  %v1036_v49 = vpack.c.bf16 %v1034_v60, %v1034_v60  ;;  %v2836_v14 = vld [vmem:[%s2951_s13 + $0xb0] sm:$0xff]  ;;  %v1111_v62 = vmax.f32 %v1108_v47, 0.0  ;;  %v1351_v26 = vadd.f32 %v1348_v17, %v3219_v54  ;;  %v3458_v60 = vld [vmem:[#allocation2 + $0x40] sm:$0xff]  ;;  %v2843_v17 = vld [vmem:[%s2951_s13 + $0xe8] sm:$0xff] }
  0xbe   : > { %v754_v43 = vpack.c.bf16 %v752_v57, %v752_v57  ;;  %v846_v44 = vpack.c.bf16 %v844_v41, %v844_v41  ;;  %1559 = vmatpush.bf16.msrb.mxu3 %v2822_v22  ;;  %1653 = vmatpush.bf16.msrb.mxu0 %v2826_v36  ;;  %v2837_v57 = vld [vmem:[%s2951_s13 + $0xb8] sm:$0xff]  ;;  %v2830_v41 = vld [vmem:[%s2951_s13 + $0x80] sm:$0xff]  ;;  %v2844_v36 = vld [vmem:[%s2951_s13 + $0xf0] sm:$0xff] }
  0xbf   : > { %v1354_v22 = vmax.f32 %v1351_v26, 0.0 }
  0xc0   : > { %2418 = vmatmul.msk.bf16.gmra.mxu3 %vm329_vm1, %v754_v43  ;;  %2444 = vmatmul.msk.bf16.gmra.mxu0 %vm329_vm1, %v846_v44 }
  0xc1   : > { %1746 = vmatpush.bf16.msrb.mxu1 %v2831_v24 }
  0xc2   : > { %v3398_v25 = vpop.permute.xlu2 %1367 }
  0xc3   : > { %v1020_v1 = vpop.permute.xlu0 %1019  ;;  %v1025_v3 = vpop.permute.xlu1 %1024 }
  0xc4   : > { %v1032_v4 = vmul.f32 %v1020_v1, %v1014_v53  ;;  %v1033_v33 = vmul.f32 %v1025_v3, %v1015_v21  ;;  %v1297_v21 = vld [vmem:[#allocation2 + $0x31] sm:$0xff]  ;;  %v1304_v1 = vmul.f32 %v1298_v18, %v3215_v48 }
  0xc5   : > { %1747 = vmatpush.bf16.msrb.mxu1 %v2830_v41  ;;  %v1303_v35 = vmul.f32 %v1297_v21, %v3215_v48  ;;  %v2840_v3 = vld [vmem:[%s2951_s13 + $0xd0] sm:$0xff]  ;;  %v3455_v41 = vld [vmem:[#allocation2 + $0x38] sm:$0xff] }
  0xc6   : > { %v1035_v6 = vpack.c.bf16 %v1033_v33, %v1032_v4  ;;  %v2845_v4 = vld [vmem:[%s2951_s13 + $0xf8] sm:$0xff]  ;;  %v3433_v10 = vadd.f32 %v1304_v1, %v3219_v54 }
  0xc7   : > { %v2849_v33 = vld [vmem:[%s2951_s13 + $0x118] sm:$0xff]  ;;  %v1306_v9 = vadd.f32 %v1303_v35, %v3219_v54 }
  0xc8   : > { %2470 = vmatmul.msk.bf16.gmra.mxu1 %vm329_vm1, %v941_v7  ;;  %2495 = vmatmul.msk.bf16.vlgmr.msra.gmra.mxu2 %vm329_vm1, %v1035_v6  ;;  %v1574_v7 = vld [vmem:[#allocation2 + $0x3f] sm:$0xff] }
  0xc9   : > { %1838 = vmatpush.bf16.msra.mxu2 %v2837_v57  ;;  %v1309_v61 = vmax.f32 %v1306_v9, 0.0 }
  0xca   : > { %v3417_v43 = vpop.permute.xlu2 %1496 }
  0xcb   : > { %v1120_v28 = vpop.permute.xlu0 %1119  ;;  %v1210_v52 = vpop.permute.xlu1 %1209 }
  0xcc   : > { %v1128_v59 = vmul.f32 %v1120_v28, %v1110_v11  ;;  %v1222_v29 = vmul.f32 %v1210_v52, %v733_v8  ;;  %v1200_v8 = vmul.f32 %v1194_v38, %v3215_v48  ;;  %v1480_v11 = vld [vmem:[#allocation2 + $0x3b] sm:$0xff]  ;;  %v1580_v28 = vmul.f32 %v1574_v7, %v3215_v48  ;;  %v2835_v52 = vld [vmem:[%s2951_s13 + $0xa8] sm:$0xff] }
  0xcd   : > { %1839 = vmatpush.bf16.msra.mxu2 %v2836_v14  ;;  %v1372_v38 = vmul.f32 %v3398_v25, %v1354_v22  ;;  %v2834_v25 = vld [vmem:[%s2951_s13 + $0xa0] sm:$0xff]  ;;  %v2847_v14 = vld [vmem:[%s2951_s13 + $0x108] sm:$0xff] }
  0xce   : > { %v1130_v16 = vpack.c.bf16 %v1128_v59, %v1127_v27  ;;  %v1225_v23 = vpack.c.bf16 %v1223_v51, %v1222_v29  ;;  %v1203_v53 = vadd.f32 %v1200_v8, %v3219_v54  ;;  %v1485_v27 = vmul.f32 %v1479_v5, %v3215_v48  ;;  %v1481_v5 = vld [vmem:[#allocation2 + $0x43] sm:$0xff] }
  0xcf   : > { %v1310_v51 = vmax.f32 %v3433_v10, 0.0  ;;  %v1486_v59 = vmul.f32 %v1480_v11, %v3215_v48  ;;  %v1579_v29 = vmul.f32 %v1573_v15, %v3215_v48  ;;  %v1374_v34 = vpack.c.bf16 %v1372_v38, %v1372_v38 }
  0xd0   : > { %2521 = vmatmul.msk.bf16.vlgmr.msra.gmra.mxu3 %vm329_vm1, %v1130_v16  ;;  %2547 = vmatmul.msk.bf16.vlgmr.msra.gmra.mxu0 %vm329_vm1, %v1225_v23  ;;  %v1206_v31 = vmax.f32 %v1203_v53, 0.0  ;;  %v1488_v12 = vadd.f32 %v1485_v27, %v3219_v54  ;;  %v3449_v16 = vadd.f32 %v1580_v28, %v3219_v54  ;;  %v1299_v23 = vld [vmem:[#allocation2 + $0x41] sm:$0xff]  ;;  %v1487_v15 = vmul.f32 %v1481_v5, %v3215_v48 }
  0xd1   : > { %1932 = vmatpush.bf16.msra.mxu3 %v2841_v0  ;;  %2026 = vmatpush.bf16.msra.mxu0 %v2845_v4  ;;  %v1489_v8 = vadd.f32 %v1486_v59, %v3219_v54  ;;  %v1582_v0 = vadd.f32 %v1579_v29, %v3219_v54  ;;  %v3486_v27 = vld [vmem:[#allocation2 + $0x48] sm:$0xff] }
  0xd2   : > { %v1596_v40 = vpop.permute.xlu2 %1595  ;;  %1840 = vmatpush.bf16.msra.mxu2 %v2835_v52  ;;  %v1586_v47 = vmax.f32 %v3449_v16, 0.0  ;;  %v1490_v29 = vadd.f32 %v1487_v15, %v3219_v54 }
  0xd3   : > { %v1358_v42 = vpop.permute.xlu0 %1357  ;;  %v1363_v13 = vpop.permute.xlu1 %1362  ;;  %v1492_v21 = vmax.f32 %v1489_v8, 0.0  ;;  %v1585_v18 = vmax.f32 %v1582_v0, 0.0  ;;  %v1855_v0 = vld [vmem:[#allocation2 + $0x3d] sm:$0xff] }
  0xd4   : > { %v1370_v44 = vmul.f32 %v1358_v42, %v1352_v50  ;;  %v1371_v46 = vmul.f32 %v1363_v13, %v1353_v58  ;;  %v1305_v42 = vmul.f32 %v1299_v23, %v3215_v48  ;;  %v1604_v4 = vmul.f32 %v1596_v40, %v1586_v47  ;;  %v2846_v40 = vld [vmem:[%s2951_s13 + $0x100] sm:$0xff] }
  0xd5   : > { %1933 = vmatpush.bf16.msra.mxu3 %v2840_v3  ;;  %2027 = vmatpush.bf16.msra.mxu0 %v2844_v36 }
  0xd6   : > { %v1373_v55 = vpack.c.bf16 %v1371_v46, %v1370_v44  ;;  %1841 = vmatpush.bf16.msra.mxu2 %v2834_v25  ;;  %v1491_v44 = vmax.f32 %v1488_v12, 0.0  ;;  %v1673_v46 = vmul.f32 %v3455_v41, %v3215_v48  ;;  %v1493_v12 = vmax.f32 %v1490_v29, 0.0 }
  0xd8   : > { %2496 = vmatmul.msk.bf16.gmra.mxu2 %vm329_vm1, %v1036_v49  ;;  %2573 = vmatmul.msk.bf16.vlgmr.msra.gmra.mxu1 %vm329_vm1, %v1373_v55  ;;  %v1674_v49 = vmul.f32 %v3458_v60, %v3215_v48  ;;  %v2838_v55 = vld [vmem:[%s2951_s13 + $0xc0] sm:$0xff]  ;;  %v1676_v3 = vadd.f32 %v1673_v46, %v3219_v54 }
  0xd9   : > { %2120 = vmatpush.bf16.msra.mxu1 %v2849_v33  ;;  %1934 = vmatpush.bf16.msra.mxu3 %v2839_v32  ;;  %v1949_v46 = vld [vmem:[#allocation2 + $0x3e] sm:$0xff] }
  0xda   : > { %v1325_v53 = vpop.permute.xlu2 %1324  ;;  %2028 = vmatpush.bf16.msra.mxu0 %v2843_v17  ;;  %v1679_v9 = vmax.f32 %v1676_v3, 0.0  ;;  %v1955_v17 = vmul.f32 %v1949_v46, %v3215_v48 }
  0xdb   : > { %v1125_v20 = vpop.permute.xlu0 %1124  ;;  %v1220_v19 = vpop.permute.xlu1 %1219 }
  0xdc   : > { %v1129_v30 = vmul.f32 %v1125_v20, %v1111_v62  ;;  %v1224_v6 = vmul.f32 %v1220_v19, %v1206_v31  ;;  %v3472_v62 = vadd.f32 %v1305_v42, %v3219_v54  ;;  %v1509_v31 = vmul.f32 %v3417_v43, %v1491_v44  ;;  %v2842_v19 = vld [vmem:[%s2951_s13 + $0xe0] sm:$0xff] }
  0xdd   : > { %2121 = vmatpush.bf16.msra.mxu1 %v2848_v37  ;;  %1935 = vmatpush.bf16.msra.mxu3 %v2838_v55  ;;  %v1677_v20 = vadd.f32 %v1674_v49, %v3219_v54  ;;  %v1675_v37 = vmul.f32 %v3486_v27, %v3215_v48 }
  0xde   : > { %v1131_v24 = vpack.c.bf16 %v1129_v30, %v1129_v30  ;;  %v1226_v2 = vpack.c.bf16 %v1224_v6, %v1224_v6  ;;  %v1311_v7 = vmax.f32 %v3472_v62, 0.0  ;;  %v1575_v6 = vld [vmem:[#allocation2 + $0x47] sm:$0xff]  ;;  %2029 = vmatpush.bf16.msra.mxu0 %v2842_v19 }
  0xdf   : > { %v1680_v11 = vmax.f32 %v1677_v20, 0.0  ;;  %v1581_v22 = vmul.f32 %v1575_v6, %v3215_v48 }
  0xe0   : > { %2522 = vmatmul.msk.bf16.gmra.mxu3 %vm329_vm1, %v1131_v24  ;;  %2548 = vmatmul.msk.bf16.gmra.mxu0 %vm329_vm1, %v1226_v2  ;;  %v1329_v24 = vmul.f32 %v1325_v53, %v1311_v7 }
  0xe1   : > { %2122 = vmatpush.bf16.msra.mxu1 %v2847_v14  ;;  %v3490_v32 = vadd.f32 %v1581_v22, %v3219_v54 }
  0xe2   : > { %v1695_v2 = vpop.permute.xlu2 %1694  ;;  %v1331_v36 = vpack.c.bf16 %v1329_v24, %v1329_v24 }
  0xe3   : > { %v1315_v57 = vpop.permute.xlu0 %1314  ;;  %v1320_v50 = vpop.permute.xlu1 %1319  ;;  %v1587_v23 = vmax.f32 %v3490_v32, 0.0 }
  0xe4   : > { %v1327_v58 = vmul.f32 %v1315_v57, %v1309_v61  ;;  %v1328_v63 = vmul.f32 %v1320_v50, %v1310_v51  ;;  %v1678_v57 = vadd.f32 %v1675_v37, %v3219_v54 }
  0xe5   : > { %2123 = vmatpush.bf16.msra.mxu1 %v2846_v40 }
  0xe6   : > { %v1330_v13 = vpack.c.bf16 %v1328_v63, %v1327_v58  ;;  %v1681_v42 = vmax.f32 %v1678_v57, 0.0  ;;  %v2045_v57 = vld [vmem:[#allocation2 + $0x4f] sm:$0xff] }
  0xe8   : > { %2574 = vmatmul.msk.bf16.gmra.mxu1 %vm329_vm1, %v1374_v34  ;;  %2591 = vmatmul.msk.bf16.vlgmr.msrb.gmra.mxu2 %vm329_vm1, %v1330_v13  ;;  %v1856_v34 = vld [vmem:[#allocation2 + $0x45] sm:$0xff]  ;;  %v1699_v55 = vmul.f32 %v1695_v2, %v1681_v42  ;;  %v1857_v2 = vld [vmem:[#allocation2 + $0x4d] sm:$0xff] }
  0xe9   : > { %v1950_v13 = vld [vmem:[#allocation2 + $0x46] sm:$0xff] }
  0xea   : > { %v1873_v58 = vpop.permute.xlu2 %1872  ;;  %v1956_v49 = vmul.f32 %v1950_v13, %v3215_v48  ;;  %v1701_v20 = vpack.c.bf16 %v1699_v55, %v1699_v55 }
  0xeb   : > { %v1502_v35 = vpop.permute.xlu0 %1501  ;;  %v1591_v1 = vpop.permute.xlu1 %1590 }
  0xec   : > { %v1510_v33 = vmul.f32 %v1502_v35, %v1492_v21  ;;  %v1603_v26 = vmul.f32 %v1591_v1, %v1585_v18  ;;  %v1861_v21 = vmul.f32 %v1855_v0, %v3215_v48  ;;  %v1862_v18 = vmul.f32 %v1856_v34, %v3215_v48 }
  0xed   : > { %v2051_v34 = vmul.f32 %v2045_v57, %v3215_v48 }
  0xee   : > { %v1512_v30 = vpack.c.bf16 %v1510_v33, %v1509_v31  ;;  %v1606_v43 = vpack.c.bf16 %v1604_v4, %v1603_v26  ;;  %v1864_v62 = vadd.f32 %v1861_v21, %v3219_v54  ;;  %v1763_v31 = vld [vmem:[#allocation2 + $0x49] sm:$0xff]  ;;  %v1865_v3 = vadd.f32 %v1862_v18, %v3219_v54 }
  0xef   : > { %v1959_v4 = vadd.f32 %v1956_v49, %v3219_v54  ;;  %v1958_v26 = vadd.f32 %v1955_v17, %v3219_v54  ;;  %v1769_v5 = vmul.f32 %v1763_v31, %v3215_v48 }
  0xf0   : > { %2617 = vmatmul.msk.bf16.vlgmr.msrb.gmra.mxu3 %vm329_vm1, %v1512_v30  ;;  %2643 = vmatmul.msk.bf16.vlgmr.msrb.gmra.mxu0 %vm329_vm1, %v1606_v43  ;;  %v1867_v43 = vmax.f32 %v1864_v62, 0.0  ;;  %v1868_v6 = vmax.f32 %v1865_v3, 0.0 }
  0xf1   : > { %v1961_v10 = vmax.f32 %v1958_v26, 0.0 }
  0xf2   : > { %v1972_v19 = vpop.permute.xlu2 %1971  ;;  %v1885_v15 = vmul.f32 %v1873_v58, %v1867_v43 }
  0xf3   : > { %v1685_v28 = vpop.permute.xlu0 %1684  ;;  %v1690_v52 = vpop.permute.xlu1 %1689 }
  0xf4   : > { %v1697_v61 = vmul.f32 %v1685_v28, %v1679_v9  ;;  %v1698_v59 = vmul.f32 %v1690_v52, %v1680_v11  ;;  %v1962_v9 = vmax.f32 %v1959_v4, 0.0  ;;  %v1951_v52 = vld [vmem:[#allocation2 + $0x4e] sm:$0xff] }
  0xf5   : > { %v1957_v37 = vmul.f32 %v1951_v52, %v3215_v48 }
  0xf6   : > { %v1700_v38 = vpack.c.bf16 %v1698_v59, %v1697_v61  ;;  %v1980_v40 = vmul.f32 %v1972_v19, %v1962_v9 }
  0xf7   : > { %v1960_v0 = vadd.f32 %v1957_v37, %v3219_v54 }
  0xf8   : > { %2592 = vmatmul.msk.bf16.gmra.mxu2 %vm329_vm1, %v1331_v36  ;;  %2669 = vmatmul.msk.bf16.vlgmr.msrb.gmra.mxu1 %vm329_vm1, %v1700_v38  ;;  %v1863_v36 = vmul.f32 %v1857_v2, %v3215_v48 }
  0xfb   : > { %v1507_v50 = vpop.permute.xlu0 %1506  ;;  %v1601_v8 = vpop.permute.xlu1 %1600 }
  0xfc   : > { %v1511_v63 = vmul.f32 %v1507_v50, %v1493_v12  ;;  %v1605_v25 = vmul.f32 %v1601_v8, %v1587_v23  ;;  %v1789_v29 = vpop.permute.xlu2 %1788 }
  0xfe   : > { %v1513_v44 = vpack.c.bf16 %v1511_v63, %v1511_v63  ;;  %v1607_v53 = vpack.c.bf16 %v1605_v25, %v1605_v25  ;;  %v1866_v63 = vadd.f32 %v1863_v36, %v3219_v54 }
 0x100   : > { %2618 = vmatmul.msk.bf16.gmra.mxu3 %vm329_vm1, %v1513_v44  ;;  %2644 = vmatmul.msk.bf16.gmra.mxu0 %vm329_vm1, %v1607_v53  ;;  %v1869_v13 = vmax.f32 %v1866_v63, 0.0  ;;  %v1963_v44 = vmax.f32 %v1960_v0, 0.0 }
 0x103   : > { %v1779_v14 = vpop.permute.xlu0 %1778  ;;  %v1784_v1 = vpop.permute.xlu1 %1783 }
 0x104   : > { %v1791_v35 = vmul.f32 %v1779_v14, %v1310_v51  ;;  %v1792_v33 = vmul.f32 %v1784_v1, %v1311_v7  ;;  %v1772_v51 = vadd.f32 %v1769_v5, %v3219_v54  ;;  %v568_v16 = vpop.f32.mrf.mxu0  ;;  %v2071_v55 = vpop.permute.xlu2 %2070 }
 0x106   : > { %v1794_v30 = vpack.c.bf16 %v1792_v33, %v1791_v35  ;;  %v1775_v61 = vmax.f32 %v1772_v51, 0.0 }
 0x108   : > { %2670 = vmatmul.msk.bf16.gmra.mxu1 %vm329_vm1, %v1701_v20  ;;  %2695 = vmatmul.msk.bf16.vlgmr.msra.gmra.mxu2 %vm329_vm1, %v1794_v30  ;;  %v1793_v38 = vmul.f32 %v1789_v29, %v1775_v61 }
 0x10a   : > { %v1795_v25 = vpack.c.bf16 %v1793_v38, %v1793_v38 }
 0x10b   : > { %v1878_v11 = vpop.permute.xlu0 %1877  ;;  %v1967_v22 = vpop.permute.xlu1 %1966 }
 0x10c   : > { %v1886_v7 = vmul.f32 %v1878_v11, %v1868_v6  ;;  %v1979_v24 = vmul.f32 %v1967_v22, %v1961_v10  ;;  %v570_v35 = vpop.f32.mrf.mxu0 }
 0x10e   : > { %v1888_v28 = vpack.c.bf16 %v1886_v7, %v1885_v15  ;;  %v1982_v59 = vpack.c.bf16 %v1980_v40, %v1979_v24 }
 0x110   : > { %2721 = vmatmul.msk.bf16.vlgmr.msra.gmra.mxu3 %vm329_vm1, %v1888_v28  ;;  %2747 = vmatmul.msk.bf16.vlgmr.msra.gmra.mxu0 %vm329_vm1, %v1982_v59 }
 0x113   : > { %v2061_v12 = vpop.permute.xlu0 %2060 }
 0x114   : > { %v2073_v50 = vmul.f32 %v2061_v12, %v1586_v47  ;;  %v2066_v58 = vpop.permute.xlu1 %2065  ;;  %v2054_v47 = vadd.f32 %v2051_v34, %v3219_v54 }
 0x115   : > { %v2074_v8 = vmul.f32 %v2066_v58, %v1587_v23 }
 0x116   : > { %v2057_v49 = vmax.f32 %v2054_v47, 0.0  ;;  %v2873_v47 = vld [vmem:[#allocation2 + $0x8] sm:$0xff] }
 0x117   : > { %v2076_v42 = vpack.c.bf16 %v2074_v8, %v2073_v50 }
 0x118   : > { %2696 = vmatmul.msk.bf16.gmra.mxu2 %vm329_vm1, %v1795_v25  ;;  %v2075_v14 = vmul.f32 %v2071_v55, %v2057_v49 }
 0x119   : > { %2773 = vmatmul.msk.bf16.vlgmr.msra.gmra.mxu1 %vm329_vm1, %v2076_v42 }
 0x11a   : > { %v2077_v1 = vpack.c.bf16 %v2075_v14, %v2075_v14 }
 0x11b   : > { %v1883_v46 = vpop.permute.xlu0 %1882  ;;  %v573_v53 = vpop.f32.mrf.mxu2 }
 0x11c   : > { %v1887_v21 = vmul.f32 %v1883_v46, %v1869_v13  ;;  %v1977_v32 = vpop.permute.xlu1 %1976 }
 0x11d   : > { %v1981_v23 = vmul.f32 %v1977_v32, %v1963_v44  ;;  %v616_v48 = vpop.f32.mrf.mxu1 }
 0x11e   : > { %v1889_v18 = vpack.c.bf16 %v1887_v21, %v1887_v21  ;;  %v617_v11 = vadd.f32 %v616_v48, %v568_v16 }
 0x11f   : > { %v1983_v17 = vpack.c.bf16 %v1981_v23, %v1981_v23 }
 0x120   : > { %2722 = vmatmul.msk.bf16.gmra.mxu3 %vm329_vm1, %v1889_v18 }
 0x121   : > { %2748 = vmatmul.msk.bf16.gmra.mxu0 %vm329_vm1, %v1983_v17 }
 0x123   : > { %v575_v62 = vpop.f32.mrf.mxu2  ;;  %v621_v31 = vpop.f32.mrf.mxu3 }
 0x124   : > { %v622_v50 = vadd.f32 %v621_v31, %v573_v53  ;;  %v2874_v62 = vld [vmem:[#allocation2 + $0x10] sm:$0xff] }
 0x125   : > { %v618_v4 = vpop.f32.mrf.mxu1 }
 0x126   : > { %v619_v28 = vadd.f32 %v618_v4, %v570_v35 }
 0x129   : > { %2774 = vmatmul.msk.bf16.gmra.mxu1 %vm329_vm1, %v2077_v1 }
 0x12b   : > { %v623_v54 = vpop.f32.mrf.mxu3  ;;  %v708_v3 = vpop.f32.mrf.mxu2 }
 0x12c   : > { %v717_v22 = vadd.f32 %v708_v3, %v617_v11 }
 0x12d   : > { %v895_v33 = vpop.f32.mrf.mxu0 }
 0x133   : > { %v710_v26 = vpop.f32.mrf.mxu2  ;;  %v803_v20 = vpop.f32.mrf.mxu3 }
 0x134   : > { %v812_v40 = vadd.f32 %v803_v20, %v717_v22  ;;  %v718_v29 = vadd.f32 %v710_v26, %v619_v28  ;;  %v2875_v20 = vld [vmem:[#allocation2 + $0x18] sm:$0xff] }
 0x135   : > { %v897_v19 = vpop.f32.mrf.mxu0  ;;  %v990_v5 = vpop.f32.mrf.mxu1 }
 0x136   : > { %v904_v52 = vadd.f32 %v895_v33, %v812_v40 }
 0x138   : > { %v999_v36 = vadd.f32 %v990_v5, %v904_v52 }
 0x13b   : > { %v713_v30 = vpop.f32.mrf.mxu2  ;;  %v805_v43 = vpop.f32.mrf.mxu3 }
 0x13c   : > { %v813_v37 = vadd.f32 %v805_v43, %v718_v29  ;;  %v719_v25 = vadd.f32 %v713_v30, %v622_v50 }
 0x13d   : > { %v900_v6 = vpop.f32.mrf.mxu0  ;;  %v992_v9 = vpop.f32.mrf.mxu1 }
 0x13e   : > { %v905_v58 = vadd.f32 %v897_v19, %v813_v37 }
 0x140   : > { %v1000_v42 = vadd.f32 %v992_v9, %v905_v58 }
 0x143   : > { %v715_v10 = vpop.f32.mrf.mxu2  ;;  %v808_v51 = vpop.f32.mrf.mxu3 }
 0x144   : > { %v814_v13 = vadd.f32 %v808_v51, %v719_v25 }
 0x145   : > { %v902_v15 = vpop.f32.mrf.mxu0  ;;  %v995_v7 = vpop.f32.mrf.mxu1 }
 0x146   : > { %v906_v23 = vadd.f32 %v900_v6, %v814_v13 }
 0x148   : > { %v1001_v55 = vadd.f32 %v995_v7, %v906_v23 }
 0x14b   : > { %v810_v24 = vpop.f32.mrf.mxu3  ;;  %v1085_v2 = vpop.f32.mrf.mxu2 }
 0x14c   : > { %v1094_v38 = vadd.f32 %v1085_v2, %v999_v36 }
 0x14d   : > { %v997_v61 = vpop.f32.mrf.mxu1  ;;  %v1275_v59 = vpop.f32.mrf.mxu0 }
 0x153   : > { %v1087_v12 = vpop.f32.mrf.mxu2  ;;  %v1180_v57 = vpop.f32.mrf.mxu3 }
 0x154   : > { %v1189_v63 = vadd.f32 %v1180_v57, %v1094_v38  ;;  %v1095_v16 = vadd.f32 %v1087_v12, %v1000_v42 }
 0x155   : > { %v1277_v8 = vpop.f32.mrf.mxu0  ;;  %v1422_v0 = vpop.f32.mrf.mxu1 }
 0x156   : > { %v1284_v34 = vadd.f32 %v1275_v59, %v1189_v63 }
 0x158   : > { %v1287_v44 = vmul.f32 %v1284_v34, %v3329_v56 }
 0x15a   : > { %v1290_v46 = vadd.f32 %v2873_v47, %v1287_v44 }
 0x15b   : > { %v1090_v21 = vpop.f32.mrf.mxu2  ;;  %v1182_v32 = vpop.f32.mrf.mxu3 }
 0x15c   : > { %1293 = vst.msk [vmem:[#allocation2 + $0x8] sm:$0xff] %vm329_vm1, %v1290_v46  ;;  %v1190_v18 = vadd.f32 %v1182_v32, %v1095_v16  ;;  %v1096_v14 = vadd.f32 %v1090_v21, %v1001_v55 }
 0x15d   : > { %v1280_v53 = vpop.f32.mrf.mxu0  ;;  %v1424_v49 = vpop.f32.mrf.mxu1 }
 0x15e   : > { %v1285_v17 = vadd.f32 %v1277_v8, %v1190_v18 }
 0x160   : > { %v1288_v48 = vmul.f32 %v1285_v17, %v3262_v45 }
 0x162   : > { %v1291_v31 = vadd.f32 %v2874_v62, %v1288_v48 }
 0x163   : > { %v1092_v35 = vpop.f32.mrf.mxu2  ;;  %v1185_v1 = vpop.f32.mrf.mxu3 }
 0x164   : > { %1294 = vst.msk [vmem:[#allocation2 + $0x10] sm:$0xff] %vm329_vm1, %v1291_v31  ;;  %v1191_v54 = vadd.f32 %v1185_v1, %v1096_v14 }
 0x165   : > { %v1282_v3 = vpop.f32.mrf.mxu0  ;;  %v1427_v4 = vpop.f32.mrf.mxu1 }
 0x166   : > { %v1286_v33 = vadd.f32 %v1280_v53, %v1191_v54 }
 0x168   : > { %v1289_v26 = vmul.f32 %v1286_v33, %v3368_v39 }
 0x16a   : > { %v1292_v19 = vadd.f32 %v2875_v20, %v1289_v26 }
 0x16b   : > { %v1187_v5 = vpop.f32.mrf.mxu3  ;;  %v1470_v30 = vpop.f32.mrf.mxu2 }
 0x16c   : > { %1295 = vst.msk [vmem:[#allocation2 + $0x18] sm:$0xff] %vm329_vm1, %v1292_v19  ;;  %v1471_v52 = vadd.f32 %v1470_v30, %v1422_v0 }
 0x16d   : > { %v1429_v43 = vpop.f32.mrf.mxu1  ;;  %v1655_v6 = vpop.f32.mrf.mxu0 }
 0x173   : > { %v1472_v9 = vpop.f32.mrf.mxu2  ;;  %v1561_v10 = vpop.f32.mrf.mxu3 }
 0x174   : > { %v1570_v59 = vadd.f32 %v1561_v10, %v1471_v52  ;;  %v1473_v12 = vadd.f32 %v1472_v9, %v1424_v49 }
 0x175   : > { %v1657_v51 = vpop.f32.mrf.mxu0  ;;  %v1749_v11 = vpop.f32.mrf.mxu1 }
 0x176   : > { %v1664_v36 = vadd.f32 %v1655_v6, %v1570_v59 }
 0x178   : > { %v1758_v50 = vadd.f32 %v1749_v11, %v1664_v36 }
 0x17b   : > { %v1475_v15 = vpop.f32.mrf.mxu2  ;;  %v1563_v7 = vpop.f32.mrf.mxu3 }
 0x17c   : > { %v1571_v58 = vadd.f32 %v1563_v7, %v1473_v12  ;;  %v1476_v13 = vadd.f32 %v1475_v15, %v1427_v4 }
 0x17d   : > { %v1751_v22 = vpop.f32.mrf.mxu1  ;;  %v1660_v40 = vpop.f32.mrf.mxu0 }
 0x17e   : > { %v1665_v25 = vadd.f32 %v1657_v51, %v1571_v58 }
 0x180   : > { %v1759_v0 = vadd.f32 %v1751_v22, %v1665_v25 }
 0x183   : > { %v1477_v24 = vpop.f32.mrf.mxu2  ;;  %v1566_v2 = vpop.f32.mrf.mxu3 }
 0x184   : > { %v1572_v46 = vadd.f32 %v1566_v2, %v1476_v13 }
 0x185   : > { %v1754_v28 = vpop.f32.mrf.mxu1  ;;  %v1662_v61 = vpop.f32.mrf.mxu0 }
 0x186   : > { %v1666_v53 = vadd.f32 %v1660_v40, %v1572_v46 }
 0x188   : > { %v1760_v31 = vadd.f32 %v1754_v28, %v1666_v53 }
 0x18b   : > { %v1568_v29 = vpop.f32.mrf.mxu3  ;;  %v1843_v37 = vpop.f32.mrf.mxu2 }
 0x18c   : > { %v1852_v63 = vadd.f32 %v1843_v37, %v1758_v50 }
 0x18d   : > { %v1756_v38 = vpop.f32.mrf.mxu1  ;;  %v2031_v57 = vpop.f32.mrf.mxu0 }
 0x193   : > { %v1937_v8 = vpop.f32.mrf.mxu3  ;;  %v1845_v34 = vpop.f32.mrf.mxu2 }
 0x194   : > { %v1946_v42 = vadd.f32 %v1937_v8, %v1852_v63  ;;  %v1853_v32 = vadd.f32 %v1845_v34, %v1759_v0 }
 0x195   : > { %v2033_v44 = vpop.f32.mrf.mxu0 }
 0x196   : > { %v2040_v16 = vadd.f32 %v2031_v57, %v1946_v42  ;;  %v2125_v47 = vpop.f32.mrf.mxu1 }
 0x198   : > { %v2134_v21 = vadd.f32 %v2125_v47, %v2040_v16 }
 0x19a   : > { %v2137_v23 = vmul.f32 %v2134_v21, %v3329_v56 }
 0x19b   : > { %v1939_v18 = vpop.f32.mrf.mxu3  ;;  %v1848_v17 = vpop.f32.mrf.mxu2 }
 0x19c   : > { %v2140_v49 = vadd.f32 %v2137_v23, %v3455_v41  ;;  %v1947_v55 = vadd.f32 %v1939_v18, %v1853_v32  ;;  %v1854_v1 = vadd.f32 %v1848_v17, %v1760_v31 }
 0x19e   : > { %2143 = vst.msk [vmem:[#allocation2 + $0x38] sm:$0xff] %vm329_vm1, %v2140_v49  ;;  %v2036_v48 = vpop.f32.mrf.mxu0  ;;  %v2041_v14 = vadd.f32 %v2033_v44, %v1947_v55  ;;  %v2127_v62 = vpop.f32.mrf.mxu1 }
 0x1a0   : > { %v2135_v35 = vadd.f32 %v2127_v62, %v2041_v14 }
 0x1a2   : > { %v2138_v54 = vmul.f32 %v2135_v35, %v3262_v45 }
 0x1a3   : > { %v1942_v3 = vpop.f32.mrf.mxu3  ;;  %v1850_v56 = vpop.f32.mrf.mxu2 }
 0x1a4   : > { %v2141_v4 = vadd.f32 %v2138_v54, %v3458_v60  ;;  %v1948_v33 = vadd.f32 %v1942_v3, %v1854_v1 }
 0x1a6   : > { %2144 = vst.msk [vmem:[#allocation2 + $0x40] sm:$0xff] %vm329_vm1, %v2141_v4  ;;  %v2038_v41 = vpop.f32.mrf.mxu0  ;;  %v2042_v26 = vadd.f32 %v2036_v48, %v1948_v33  ;;  %v2130_v20 = vpop.f32.mrf.mxu1 }
 0x1a8   : > { %v2136_v19 = vadd.f32 %v2130_v20, %v2042_v26 }
 0x1aa   : > { %v2139_v5 = vmul.f32 %v2136_v19, %v3368_v39  ;;  %2149 = sbr.rel (%p2775_p5) target bundleno = 467 (0x1d3), region = 48 }
 0x1ab   : > { %v1944_v30 = vpop.f32.mrf.mxu3 }
 0x1ac   : > { %v2142_v43 = vadd.f32 %v2139_v5, %v3486_v27 }
 0x1ae   : > { %2145 = vst.msk [vmem:[#allocation2 + $0x48] sm:$0xff] %vm329_vm1, %v2142_v43  ;;  %v2132_v6 = vpop.f32.mrf.mxu1 }
 0x1af   : > { %v2150_v45 = vld [vmem:[#allocation2] sm:$0xff]  ;;  %v2151_v60 = vld [vmem:[#allocation2 + $0x8] sm:$0xff]  ;;  %v2152_v9 = vld [vmem:[#allocation2 + $0x10] sm:$0xff]  ;;  %vm2209_vm5 = vcmask 516096  }
 0x1b0   : > { %2162 = vst.msk [vmem:[%s3647_s5] sm:$0xff] %vm329_vm1, %v2150_v45  ;;  %v2174_v10 = vsel %vm329_vm1, %v2150_v45, 0.0  ;;  %v2211_v39 = vmul.f32 %v2150_v45, %v2150_v45  ;;  %v2212_v51 = vmul.f32 %v2151_v60, %v2151_v60  ;;  %v2153_v11 = vld [vmem:[#allocation2 + $0x18] sm:$0xff]  ;;  %v2154_v27 = vld [vmem:[#allocation2 + $0x20] sm:$0xff]  ;;  %v2177_v15 = vsel %vm329_vm1, %v2151_v60, 0.0  ;;  %v2155_v24 = vld [vmem:[#allocation2 + $0x28] sm:$0xff] }
 0x1b1   : > { %2163 = vst.msk [vmem:[%s3647_s5 + $0x8] sm:$0xff] %vm329_vm1, %v2151_v60  ;;  %v2180_v7 = vsel %vm329_vm1, %v2152_v9, 0.0  ;;  %v2213_v22 = vmul.f32 %v2152_v9, %v2152_v9  ;;  %v2214_v40 = vmul.f32 %v2153_v11, %v2153_v11  ;;  %v2156_v2 = vld [vmem:[#allocation2 + $0x30] sm:$0xff]  ;;  %v2183_v61 = vsel %vm329_vm1, %v2153_v11, 0.0  ;;  %v2157_v29 = vld [vmem:[#allocation2 + $0x38] sm:$0xff]  ;;  %v2158_v57 = vld [vmem:[#allocation2 + $0x40] sm:$0xff] }
 0x1b2   : > { %v2223_v28 = vsel %vm329_vm1, %v2211_v39, 0.0  ;;  %v2226_v52 = vsel %vm329_vm1, %v2212_v51, 0.0  ;;  %2164 = vst.msk [vmem:[%s3647_s5 + $0x10] sm:$0xff] %vm329_vm1, %v2152_v9  ;;  %v2215_v59 = vmul.f32 %v2154_v27, %v2154_v27  ;;  %v2186_v38 = vsel %vm329_vm1, %v2154_v27, 0.0  ;;  %v2160_v53 = vld [vmem:[#allocation2 + $0x50] sm:$0xff]  ;;  %v2161_v56 = vld [vmem:[#allocation2 + $0x58] sm:$0xff] }
 0x1b3   : > { %v2229_v36 = vsel %vm329_vm1, %v2213_v22, 0.0  ;;  %2165 = vst.msk [vmem:[%s3647_s5 + $0x18] sm:$0xff] %vm329_vm1, %v2153_v11  ;;  %v2232_v37 = vsel %vm329_vm1, %v2214_v40, 0.0  ;;  %v2189_v12 = vsel %vm329_vm1, %v2155_v24, 0.0  ;;  %v2216_v50 = vmul.f32 %v2155_v24, %v2155_v24 }
 0x1b4   : > { %2166 = vst.msk [vmem:[%s3647_s5 + $0x20] sm:$0xff] %vm329_vm1, %v2154_v27  ;;  %v2175_v58 = vsel %vm329_vm1, %v2156_v2, 0.0  ;;  %v2217_v63 = vmul.f32 %v2156_v2, %v2156_v2  ;;  %v2178_v8 = vsel %vm329_vm1, %v2157_v29, 0.0  ;;  %v2235_v25 = vsel %vm329_vm1, %v2215_v59, 0.0 }
 0x1b5   : > { %2167 = vst.msk [vmem:[%s3647_s5 + $0x28] sm:$0xff] %vm329_vm1, %v2155_v24  ;;  %v2176_v34 = vadd.f32 %v2175_v58, %v2174_v10  ;;  %v2179_v42 = vadd.f32 %v2178_v8, %v2177_v15  ;;  %v2218_v13 = vmul.f32 %v2157_v29, %v2157_v29  ;;  %v2159_v44 = vld [vmem:[#allocation2 + $0x48] sm:$0xff]  ;;  %v2181_v47 = vsel %vm329_vm1, %v2158_v57, 0.0 }
 0x1b6   : > { %2168 = vst.msk [vmem:[%s3647_s5 + $0x30] sm:$0xff] %vm329_vm1, %v2156_v2  ;;  %v2224_v16 = vsel %vm329_vm1, %v2217_v63, 0.0  ;;  %v2219_v0 = vmul.f32 %v2158_v57, %v2158_v57  ;;  %v2184_v46 = vsel %vm329_vm1, %v2159_v44, 0.0  ;;  %v2182_v55 = vadd.f32 %v2181_v47, %v2180_v7 }
 0x1b7   : > { %v2192_v21 = vsel %vm329_vm1, %v2176_v34, 0.0  ;;  %v2225_v32 = vadd.f32 %v2224_v16, %v2223_v28  ;;  %2169 = vst.msk [vmem:[%s3647_s5 + $0x38] sm:$0xff] %vm329_vm1, %v2157_v29  ;;  %v2193_v23 = vsel %vm329_vm1, %v2179_v42, 0.0  ;;  %v2227_v18 = vsel %vm329_vm1, %v2218_v13, 0.0 }
 0x1b8   : > { %v2194_v49 = vadd.f32 %v2193_v23, %v2192_v21  ;;  %v2228_v17 = vadd.f32 %v2227_v18, %v2226_v52  ;;  %2170 = vst.msk [vmem:[%s3647_s5 + $0x40] sm:$0xff] %vm329_vm1, %v2158_v57  ;;  %v2230_v48 = vsel %vm329_vm1, %v2219_v0, 0.0  ;;  %v2185_v31 = vadd.f32 %v2184_v46, %v2183_v61 }
 0x1b9   : > { %v2241_v14 = vsel %vm329_vm1, %v2225_v32, 0.0  ;;  %v2231_v62 = vadd.f32 %v2230_v48, %v2229_v36  ;;  %2171 = vst.msk [vmem:[%s3647_s5 + $0x48] sm:$0xff] %vm329_vm1, %v2159_v44  ;;  %v2220_v35 = vmul.f32 %v2159_v44, %v2159_v44  ;;  %v2195_v54 = vsel %vm329_vm1, %v2182_v55, 0.0 }
 0x1ba   : > { %v2242_v1 = vsel %vm329_vm1, %v2228_v17, 0.0  ;;  %2172 = vst.msk [vmem:[%s3647_s5 + $0x50] sm:$0xff] %vm329_vm1, %v2160_v53  ;;  %v2187_v3 = vsel %vm329_vm1, %v2160_v53, 0.0  ;;  %v2221_v4 = vmul.f32 %v2160_v53, %v2160_v53  ;;  %v2196_v41 = vadd.f32 %v2195_v54, %v2194_v49 }
 0x1bb   : > { %v2243_v33 = vadd.f32 %v2242_v1, %v2241_v14  ;;  %v2244_v26 = vsel %vm329_vm1, %v2231_v62, 0.0  ;;  %v2197_v20 = vsel %vm329_vm1, %v2185_v31, 0.0  ;;  %2173 = vst.msk [vmem:[%s3647_s5 + $0x58] sm:$0xff] %vm329_vm1, %v2161_v56  ;;  %v2233_v19 = vsel %vm329_vm1, %v2220_v35, 0.0 }
 0x1bc   : > { %v2188_v5 = vadd.f32 %v2187_v3, %v2186_v38  ;;  %v2236_v30 = vsel %vm329_vm1, %v2221_v4, 0.0  ;;  %v2190_v43 = vsel %vm329_vm1, %v2161_v56, 0.0  ;;  %v2198_v45 = vadd.f32 %v2197_v20, %v2196_v41 }
 0x1bd   : > { %v2245_v6 = vadd.f32 %v2244_v26, %v2243_v33  ;;  %v2234_v60 = vadd.f32 %v2233_v19, %v2232_v37  ;;  %v2237_v9 = vadd.f32 %v2236_v30, %v2235_v25  ;;  %v2238_v10 = vsel %vm329_vm1, %v2216_v50, 0.0 }
 0x1be   : > { %v2199_v39 = vsel %vm329_vm1, %v2188_v5, 0.0  ;;  %v2191_v51 = vadd.f32 %v2190_v43, %v2189_v12  ;;  %v2222_v11 = vmul.f32 %v2161_v56, %v2161_v56 }
 0x1bf   : > { %v2246_v27 = vsel %vm329_vm1, %v2234_v60, 0.0  ;;  %v2200_v15 = vadd.f32 %v2199_v39, %v2198_v45  ;;  %v2248_v7 = vsel %vm329_vm1, %v2237_v9, 0.0 }
 0x1c0   : > { %v2247_v22 = vadd.f32 %v2246_v27, %v2245_v6  ;;  %v2201_v40 = vsel %vm329_vm1, %v2191_v51, 0.0  ;;  %v2239_v24 = vsel %vm329_vm1, %v2222_v11, 0.0 }
 0x1c1   : > { %v2202_v2 = vadd.f32 %v2201_v40, %v2200_v15  ;;  %v2240_v28 = vadd.f32 %v2239_v24, %v2238_v10 }
 0x1c2   : > { %v2249_v52 = vadd.f32 %v2248_v7, %v2247_v22 }
 0x1c3   : > { %v2250_v61 = vsel %vm329_vm1, %v2240_v28, 0.0  ;;  %v2203_v59 = vrot.slane %v2202_v2, 4 }
 0x1c4   : > { %v2251_v29 = vadd.f32 %v2250_v61, %v2249_v52 }
 0x1c5   : > { %v2204_v36 = vadd.f32 %v2203_v59, %v2202_v2 }
 0x1c6   : > { %v2252_v37 = vrot.slane %v2251_v29, 4 }
 0x1c7   : > { %v2205_v38 = vrot.slane %v2204_v36, 2 }
 0x1c8   : > { %v2253_v12 = vadd.f32 %v2252_v37, %v2251_v29 }
 0x1c9   : > { %v2206_v57 = vadd.f32 %v2205_v38, %v2204_v36 }
 0x1ca   : > { %v2254_v50 = vrot.slane %v2253_v12, 2 }
 0x1cb   : > { %v2207_v58 = vrot.slane %v2206_v57, 1 }
 0x1cc   : > { %v2255_v63 = vadd.f32 %v2254_v50, %v2253_v12 }
 0x1cd   : > { %v2208_v8 = vadd.f32 %v2207_v58, %v2206_v57 }
 0x1ce   : > { %v2256_v25 = vrot.slane %v2255_v63, 1 }
 0x1cf   : > { %2210 = vst.msk [vmem:[%s3648_s6] sm:$0x1] %vm2209_vm5, %v2208_v8 }
 0x1d0   : > { %v2257_v34 = vadd.f32 %v2256_v25, %v2255_v63 }
 0x1d2   : > { %2258 = vst.msk [vmem:[%s3649_s7] sm:$0x1] %vm2209_vm5, %v2257_v34 }
 0x1d3 PF: > { %s18_s24 = sadd.s32 1, %s2882_s24  }
 0x1d4   : > { %p15_p6 = scmp.ge.s32.totalorder %s18_s24, 4  }
 0x1d6   :  { %17 = sbr.rel (!%p15_p6) target bundleno = 1 (0x1), region = 105 }

// kernel: densenet_forward.8
= control target key start
LH: loop header
LB: loop body
LE: loop exit
PB: predicated region body
PF: predicated region fallthrough
CT: control target
= control target key end

     0   :  { %s5328_s24 = smov 0   ;;  %s7773_s0 = inlined_call_operand.vmem [shape: f32[120,1], index: 0, kind: input, shape index: {}]   ;;  %s7774_s1 = inlined_call_operand.vmem [shape: f32[2,120,64], index: 1, kind: input, shape index: {}]   ;;  %s7775_s2 = inlined_call_operand.vmem [shape: f32[2,1,64], index: 2, kind: input, shape index: {}]   ;;  %s7776_s3 = inlined_call_operand.vmem [shape: f32[2,1,64], index: 3, kind: input, shape index: {}]   ;;  %s7777_s4 = inlined_call_operand.vmem [shape: bf16[2,9,64,64], index: 4, kind: input, shape index: {}]   ;;  %s7778_s5 = inlined_call_operand.vmem [shape: f32[2,120,64], index: 5, kind: output, shape index: {0}]   ;;  %s7779_s6 = inlined_call_operand.vmem [shape: f32[1,64], index: 6, kind: output, shape index: {1}]   ;;  %s7780_s7 = inlined_call_operand.vmem [shape: f32[1,64], index: 7, kind: output, shape index: {2}]  }
   0x1 LB: > { %s5334_s25 = sadd.s32 4294967295, %s5285_s24   ;;  %p4656_p0 = scmp.ge.s32.totalorder %s5285_s24, 1  ;;  %s5285_s24 = sphi %s5328_s24, %s18_s24  }
   0x2   : > { %p243_p1 = scmp.lt.s32.totalorder %s5285_s24, 3 }
   0x4   : > { %p244_p2 = pnand %p4656_p0, %p243_p1 }
   0x6   : > { %247 = sbr.rel (%p244_p2) target bundleno = 864 (0x360), region = 40 }
   0xb   : > { %p276_p3 = scmp.lt.s32.totalorder %s5334_s25, 1  ;;  %p4658_p4 = scmp.ne.s32.totalorder %s5334_s25, 0 }
   0xd   : > { %s5340_s26 = scalar_select %p276_p3, %s5334_s25, 1 }
   0xe   : > { %291 = sbr.rel (%p4658_p4) target bundleno = 50 (0x32), region = 44 }
   0xf   : > { %s278_s29 = scalar_lea.vmem %s7775_s2, %s5340_s26  ;;  %s281_s9 = scalar_lea.vmem %s7776_s3, %s5340_s26 }
  0x10   : > { %s5248_s10 = smul.u32 288, %s5340_s26 }
  0x12   : > { %s5354_s13 = scalar_lea.vmem %s7777_s4, %s5248_s10 }
  0x13   : > { %v292_v0 = vld [vmem:[%s7774_s1] sm:$0xff]  ;;  %vm322_vm0 = vcmask 523264   ;;  %v293_v1 = vld [vmem:[%s7774_s1 + $0x8] sm:$0xff]  ;;  %v294_v2 = vld [vmem:[%s7774_s1 + $0x10] sm:$0xff] }
  0x14   : > { %323 = vst.msk [vmem:[#allocation2] sm:$0xff] %vm322_vm0, %v292_v0  ;;  %v295_v3 = vld [vmem:[%s7774_s1 + $0x18] sm:$0xff]  ;;  %v296_v4 = vld [vmem:[%s7774_s1 + $0x20] sm:$0xff]  ;;  %v297_v5 = vld [vmem:[%s7774_s1 + $0x28] sm:$0xff] }
  0x15   : > { %324 = vst.msk [vmem:[#allocation2 + $0x8] sm:$0xff] %vm322_vm0, %v293_v1  ;;  %v298_v6 = vld [vmem:[%s7774_s1 + $0x30] sm:$0xff]  ;;  %v299_v7 = vld [vmem:[%s7774_s1 + $0x38] sm:$0xff]  ;;  %v300_v8 = vld [vmem:[%s7774_s1 + $0x40] sm:$0xff] }
  0x16   : > { %325 = vst.msk [vmem:[#allocation2 + $0x10] sm:$0xff] %vm322_vm0, %v294_v2  ;;  %v301_v9 = vld [vmem:[%s7774_s1 + $0x48] sm:$0xff]  ;;  %v302_v10 = vld [vmem:[%s7774_s1 + $0x50] sm:$0xff]  ;;  %v303_v11 = vld [vmem:[%s7774_s1 + $0x58] sm:$0xff] }
  0x17   : > { %326 = vst.msk [vmem:[#allocation2 + $0x18] sm:$0xff] %vm322_vm0, %v295_v3  ;;  %v304_v12 = vld [vmem:[%s7774_s1 + $0x60] sm:$0xff]  ;;  %v305_v13 = vld [vmem:[%s7774_s1 + $0x68] sm:$0xff]  ;;  %v306_v14 = vld [vmem:[%s7774_s1 + $0x70] sm:$0xff] }
  0x18   : > { %327 = vst.msk [vmem:[#allocation2 + $0x20] sm:$0xff] %vm322_vm0, %v296_v4  ;;  %v307_v15 = vld [vmem:[%s7774_s1 + $0x78] sm:$0xff]  ;;  %v308_v16 = vld [vmem:[%s7774_s1 + $0x80] sm:$0xff]  ;;  %v309_v17 = vld [vmem:[%s7774_s1 + $0x88] sm:$0xff] }
  0x19   : > { %328 = vst.msk [vmem:[#allocation2 + $0x28] sm:$0xff] %vm322_vm0, %v297_v5  ;;  %v310_v18 = vld [vmem:[%s7774_s1 + $0x90] sm:$0xff]  ;;  %v311_v19 = vld [vmem:[%s7774_s1 + $0x98] sm:$0xff]  ;;  %v312_v20 = vld [vmem:[%s7774_s1 + $0xa0] sm:$0xff] }
  0x1a   : > { %329 = vst.msk [vmem:[#allocation2 + $0x30] sm:$0xff] %vm322_vm0, %v298_v6  ;;  %v313_v21 = vld [vmem:[%s7774_s1 + $0xa8] sm:$0xff]  ;;  %v314_v22 = vld [vmem:[%s7774_s1 + $0xb0] sm:$0xff]  ;;  %v315_v23 = vld [vmem:[%s7774_s1 + $0xb8] sm:$0xff] }
  0x1b   : > { %330 = vst.msk [vmem:[#allocation2 + $0x38] sm:$0xff] %vm322_vm0, %v299_v7  ;;  %v316_v24 = vld [vmem:[%s7774_s1 + $0xc0] sm:$0xff]  ;;  %v317_v25 = vld [vmem:[%s7774_s1 + $0xc8] sm:$0xff]  ;;  %v318_v26 = vld [vmem:[%s7774_s1 + $0xd0] sm:$0xff] }
  0x1c   : > { %331 = vst.msk [vmem:[#allocation2 + $0x40] sm:$0xff] %vm322_vm0, %v300_v8  ;;  %v319_v27 = vld [vmem:[%s7774_s1 + $0xd8] sm:$0xff]  ;;  %v320_v28 = vld [vmem:[%s7774_s1 + $0xe0] sm:$0xff]  ;;  %v321_v29 = vld [vmem:[%s7774_s1 + $0xe8] sm:$0xff] }
  0x1d   : > { %332 = vst.msk [vmem:[#allocation2 + $0x48] sm:$0xff] %vm322_vm0, %v301_v9 }
  0x1e   : > { %333 = vst.msk [vmem:[#allocation2 + $0x50] sm:$0xff] %vm322_vm0, %v302_v10 }
  0x1f   : > { %334 = vst.msk [vmem:[#allocation2 + $0x58] sm:$0xff] %vm322_vm0, %v303_v11 }
  0x20   : > { %335 = vst.msk [vmem:[#allocation2 + $0x60] sm:$0xff] %vm322_vm0, %v304_v12 }
  0x21   : > { %336 = vst.msk [vmem:[#allocation2 + $0x68] sm:$0xff] %vm322_vm0, %v305_v13 }
  0x22   : > { %337 = vst.msk [vmem:[#allocation2 + $0x70] sm:$0xff] %vm322_vm0, %v306_v14 }
  0x23   : > { %338 = vst.msk [vmem:[#allocation2 + $0x78] sm:$0xff] %vm322_vm0, %v307_v15 }
  0x24   : > { %339 = vst.msk [vmem:[#allocation2 + $0x80] sm:$0xff] %vm322_vm0, %v308_v16 }
  0x25   : > { %340 = vst.msk [vmem:[#allocation2 + $0x88] sm:$0xff] %vm322_vm0, %v309_v17 }
  0x26   : > { %341 = vst.msk [vmem:[#allocation2 + $0x90] sm:$0xff] %vm322_vm0, %v310_v18 }
  0x27   : > { %342 = vst.msk [vmem:[#allocation2 + $0x98] sm:$0xff] %vm322_vm0, %v311_v19 }
  0x28   : > { %343 = vst.msk [vmem:[#allocation2 + $0xa0] sm:$0xff] %vm322_vm0, %v312_v20 }
  0x29   : > { %344 = vst.msk [vmem:[#allocation2 + $0xa8] sm:$0xff] %vm322_vm0, %v313_v21 }
  0x2a   : > { %345 = vst.msk [vmem:[#allocation2 + $0xb0] sm:$0xff] %vm322_vm0, %v314_v22 }
  0x2b   : > { %346 = vst.msk [vmem:[#allocation2 + $0xb8] sm:$0xff] %vm322_vm0, %v315_v23 }
  0x2c   : > { %347 = vst.msk [vmem:[#allocation2 + $0xc0] sm:$0xff] %vm322_vm0, %v316_v24 }
  0x2d   : > { %348 = vst.msk [vmem:[#allocation2 + $0xc8] sm:$0xff] %vm322_vm0, %v317_v25 }
  0x2e   : > { %349 = vst.msk [vmem:[#allocation2 + $0xd0] sm:$0xff] %vm322_vm0, %v318_v26 }
  0x2f   : > { %350 = vst.msk [vmem:[#allocation2 + $0xd8] sm:$0xff] %vm322_vm0, %v319_v27 }
  0x30   : > { %351 = vst.msk [vmem:[#allocation2 + $0xe0] sm:$0xff] %vm322_vm0, %v320_v28 }
  0x31   : > { %352 = vst.msk [vmem:[#allocation2 + $0xe8] sm:$0xff] %vm322_vm0, %v321_v29 }
  0x32 PF: > { %v619_v30 = vld [vmem:[%s7773_s0 + $0x25] sm:$0xff]  ;;  %v617_v31 = vld [vmem:[%s7773_s0 + $0x15] sm:$0xff]  ;;  %v5287_v33 = vmov 0   ;;  %vm383_vm1 = vcmask 523264   ;;  %v620_v34 = vld [vmem:[%s7773_s0 + $0x2d] sm:$0xff]  ;;  %p5165_p5 = scmp.ne.s32.totalorder %s5334_s25, 1 }
  0x33   : > { %v615_v32 = vld [vmem:[%s7773_s0 + $0x5] sm:$0xff]  ;;  %5260 = vset.pattern.permute.xlu2 %v5287_v33  ;;  %5259 = vset.pattern.permute.xlu1 %v5287_v33  ;;  %v618_v37 = vld [vmem:[%s7773_s0 + $0x1d] sm:$0xff]  ;;  %v5496_v38 = vld [vmem:[#allocation2 + $0x10] sm:$0xff] }
  0x34   : > { %5258 = vset.pattern.permute.xlu0 %v5287_v33  ;;  %683 = vperm.xlu2 %5260, %v619_v30   ;;  %v5489_v35 = vld [vmem:[#allocation2] sm:$0xff]  ;;  %v5491_v36 = vld [vmem:[#allocation2 + $0x8] sm:$0xff]  ;;  %v5498_v39 = vld [vmem:[#allocation2 + $0x18] sm:$0xff]  ;;  %v390_v47 = vsel %vm383_vm1, %v5496_v38, 0.0 }
  0x35   : > { %673 = vperm.xlu1 %5259, %v617_v31   ;;  %663 = vperm.xlu0 %5258, %v615_v32   ;;  %v5500_v40 = vld [vmem:[#allocation2 + $0x78] sm:$0xff]  ;;  %v384_v41 = vsel %vm383_vm1, %v5489_v35, 0.0  ;;  %v387_v42 = vsel %vm383_vm1, %v5491_v36, 0.0  ;;  %v5506_v43 = vld [vmem:[#allocation2 + $0x20] sm:$0xff]  ;;  %v5510_v45 = vld [vmem:[#allocation2 + $0x88] sm:$0xff]  ;;  %v393_v48 = vsel %vm383_vm1, %v5498_v39, 0.0 }
  0x36   : > { %v5508_v44 = vld [vmem:[#allocation2 + $0x80] sm:$0xff]  ;;  %v385_v46 = vsel %vm383_vm1, %v5500_v40, 0.0  ;;  %v616_v49 = vld [vmem:[%s7773_s0 + $0xd] sm:$0xff]  ;;  %v5523_v51 = vld [vmem:[#allocation2 + $0x98] sm:$0xff]  ;;  %v391_v54 = vsel %vm383_vm1, %v5510_v45, 0.0  ;;  %v396_v55 = vsel %vm383_vm1, %v5506_v43, 0.0 }
  0x37   : > { %v5521_v50 = vld [vmem:[#allocation2 + $0x90] sm:$0xff]  ;;  %v386_v52 = vadd.f32 %v385_v46, %v384_v41  ;;  %v388_v53 = vsel %vm383_vm1, %v5508_v44, 0.0  ;;  %v5531_v56 = vld [vmem:[#allocation2 + $0x28] sm:$0xff]  ;;  %v5533_v57 = vld [vmem:[#allocation2 + $0xa0] sm:$0xff]  ;;  %v392_v59 = vadd.f32 %v391_v54, %v390_v47  ;;  %v397_v61 = vsel %vm383_vm1, %v5523_v51, 0.0 }
  0x38   : > { %v389_v58 = vadd.f32 %v388_v53, %v387_v42  ;;  %v394_v60 = vsel %vm383_vm1, %v5521_v50, 0.0  ;;  %v399_v63 = vsel %vm383_vm1, %v5531_v56, 0.0  ;;  %v400_v0 = vsel %vm383_vm1, %v5533_v57, 0.0  ;;  %v5543_v1 = vld [vmem:[#allocation2 + $0x30] sm:$0xff]  ;;  %v5545_v2 = vld [vmem:[#allocation2 + $0xa8] sm:$0xff]  ;;  %v5554_v10 = vld [vmem:[#allocation2 + $0x38] sm:$0xff] }
  0x39   : > { %v395_v62 = vadd.f32 %v394_v60, %v393_v48  ;;  %v398_v3 = vadd.f32 %v397_v61, %v396_v55  ;;  %v429_v4 = vsel %vm383_vm1, %v386_v52, 0.0  ;;  %v432_v6 = vsel %vm383_vm1, %v392_v59, 0.0  ;;  %v5556_v11 = vld [vmem:[#allocation2 + $0xb0] sm:$0xff]  ;;  %v623_v17 = vld [vmem:[%s7773_s0 + $0x45] sm:$0xff]  ;;  %v5568_v19 = vld [vmem:[#allocation2 + $0xb8] sm:$0xff] }
  0x3a   : > { %v430_v5 = vsel %vm383_vm1, %v389_v58, 0.0  ;;  %v402_v7 = vsel %vm383_vm1, %v5543_v1, 0.0  ;;  %v403_v8 = vsel %vm383_vm1, %v5545_v2, 0.0  ;;  %v401_v12 = vadd.f32 %v400_v0, %v399_v63  ;;  %v5566_v18 = vld [vmem:[#allocation2 + $0x40] sm:$0xff]  ;;  %v621_v23 = vld [vmem:[%s7773_s0 + $0x35] sm:$0xff]  ;;  %v5581_v27 = vld [vmem:[#allocation2 + $0x48] sm:$0xff] }
  0x3b   : > { %v431_v9 = vadd.f32 %v430_v5, %v429_v4  ;;  %v434_v13 = vsel %vm383_vm1, %v395_v62, 0.0  ;;  %v405_v14 = vsel %vm383_vm1, %v5554_v10, 0.0  ;;  %v406_v15 = vsel %vm383_vm1, %v5556_v11, 0.0  ;;  %v622_v22 = vld [vmem:[%s7773_s0 + $0x3d] sm:$0xff]  ;;  %v5591_v42 = vld [vmem:[#allocation2 + $0x50] sm:$0xff]  ;;  %v5593_v46 = vld [vmem:[#allocation2 + $0xc8] sm:$0xff] }
  0x3c   : > { %688 = vperm.xlu2 %5260, %v620_v34   ;;  %v404_v20 = vadd.f32 %v403_v8, %v402_v7  ;;  %v436_v21 = vsel %vm383_vm1, %v398_v3, 0.0  ;;  %v408_v24 = vsel %vm383_vm1, %v5566_v18, 0.0  ;;  %v409_v25 = vsel %vm383_vm1, %v5568_v19, 0.0  ;;  %v5583_v28 = vld [vmem:[#allocation2 + $0xc0] sm:$0xff]  ;;  %v624_v55 = vld [vmem:[%s7773_s0 + $0x4d] sm:$0xff]  ;;  %v5610_v61 = vld [vmem:[#allocation2 + $0x58] sm:$0xff] }
  0x3d   : > { %678 = vperm.xlu1 %5259, %v618_v37   ;;  %668 = vperm.xlu0 %5258, %v616_v49   ;;  %v433_v16 = vadd.f32 %v432_v6, %v431_v9  ;;  %v407_v29 = vadd.f32 %v406_v15, %v405_v14  ;;  %v438_v30 = vsel %vm383_vm1, %v401_v12, 0.0  ;;  %v410_v32 = vadd.f32 %v409_v25, %v408_v24  ;;  %v745_v49 = vld [vmem:[%s7773_s0 + $0xe] sm:$0xff]  ;;  %v744_v54 = vld [vmem:[%s7773_s0 + $0x6] sm:$0xff]  ;;  %v5617_v5 = vld [vmem:[#allocation2 + $0xd8] sm:$0xff] }
  0x3e   : > { %v440_v33 = vsel %vm383_vm1, %v404_v20, 0.0  ;;  %v411_v34 = vsel %vm383_vm1, %v5581_v27, 0.0  ;;  %v412_v37 = vsel %vm383_vm1, %v5583_v28, 0.0  ;;  %v414_v58 = vsel %vm383_vm1, %v5591_v42, 0.0  ;;  %v5612_v62 = vld [vmem:[#allocation2 + $0xd0] sm:$0xff]  ;;  %v5615_v4 = vld [vmem:[#allocation2 + $0x60] sm:$0xff] }
  0x3f   : > { %v435_v26 = vadd.f32 %v434_v13, %v433_v16  ;;  %v442_v47 = vsel %vm383_vm1, %v407_v29, 0.0  ;;  %v413_v52 = vadd.f32 %v412_v37, %v411_v34  ;;  %v444_v53 = vsel %vm383_vm1, %v410_v32, 0.0  ;;  %v748_v13 = vld [vmem:[%s7773_s0 + $0x26] sm:$0xff]  ;;  %v5672_v32 = vld [vmem:[#allocation2 + $0x70] sm:$0xff] }
  0x40   : > { %v415_v59 = vsel %vm383_vm1, %v5593_v46, 0.0  ;;  %v417_v6 = vsel %vm383_vm1, %v5610_v61, 0.0  ;;  %v418_v7 = vsel %vm383_vm1, %v5612_v62, 0.0  ;;  %v465_v9 = vmul.f32 %v5489_v35, %v5489_v35  ;;  %v5630_v14 = vld [vmem:[#allocation2 + $0x68] sm:$0xff]  ;;  %v5632_v15 = vld [vmem:[#allocation2 + $0xe0] sm:$0xff] }
  0x41   : > { %v437_v31 = vadd.f32 %v436_v21, %v435_v26  ;;  %v416_v0 = vadd.f32 %v415_v59, %v414_v58  ;;  %v446_v3 = vsel %vm383_vm1, %v413_v52, 0.0  ;;  %v466_v12 = vmul.f32 %v5491_v36, %v5491_v36  ;;  %v747_v36 = vld [vmem:[%s7773_s0 + $0x1e] sm:$0xff]  ;;  %v746_v21 = vld [vmem:[%s7773_s0 + $0x16] sm:$0xff] }
  0x42   : > { %v419_v16 = vadd.f32 %v418_v7, %v417_v6  ;;  %v421_v20 = vsel %vm383_vm1, %v5617_v5, 0.0  ;;  %v480_v24 = vmul.f32 %v5500_v40, %v5500_v40  ;;  %v481_v25 = vmul.f32 %v5508_v44, %v5508_v44 }
  0x43   : > { %v439_v41 = vadd.f32 %v438_v30, %v437_v31  ;;  %v448_v35 = vsel %vm383_vm1, %v416_v0, 0.0  ;;  %v469_v26 = vmul.f32 %v5506_v43, %v5506_v43  ;;  %v470_v29 = vmul.f32 %v5531_v56, %v5531_v56  ;;  %v749_v0 = vld [vmem:[%s7773_s0 + $0x2e] sm:$0xff] }
  0x44   : > { %703 = vperm.xlu2 %5260, %v623_v17   ;;  %v420_v17 = vsel %vm383_vm1, %v5615_v4, 0.0  ;;  %v482_v30 = vmul.f32 %v5510_v45, %v5510_v45  ;;  %v423_v40 = vsel %vm383_vm1, %v5630_v14, 0.0  ;;  %v424_v44 = vsel %vm383_vm1, %v5632_v15, 0.0 }
  0x45   : > { %698 = vperm.xlu1 %5259, %v622_v22   ;;  %693 = vperm.xlu0 %5258, %v621_v23   ;;  %v441_v48 = vadd.f32 %v440_v33, %v439_v41  ;;  %v467_v22 = vmul.f32 %v5496_v38, %v5496_v38  ;;  %v468_v23 = vmul.f32 %v5498_v39, %v5498_v39  ;;  %v450_v43 = vsel %vm383_vm1, %v419_v16, 0.0  ;;  %v5674_v33 = vld [vmem:[#allocation2 + $0xe8] sm:$0xff] }
  0x46   : > { %v483_v38 = vmul.f32 %v5521_v50, %v5521_v50  ;;  %v422_v39 = vadd.f32 %v421_v20, %v420_v17  ;;  %v471_v56 = vmul.f32 %v5543_v1, %v5543_v1  ;;  %v472_v45 = vmul.f32 %v5554_v10, %v5554_v10 }
  0x47   : > { %v443_v60 = vadd.f32 %v442_v47, %v441_v48  ;;  %v484_v50 = vmul.f32 %v5523_v51, %v5523_v51  ;;  %v495_v34 = vsel %vm383_vm1, %v465_v9, 0.0  ;;  %v496_v37 = vsel %vm383_vm1, %v480_v24, 0.0 }
  0x48   : > { %v498_v41 = vsel %vm383_vm1, %v466_v12, 0.0  ;;  %v499_v47 = vsel %vm383_vm1, %v481_v25, 0.0  ;;  %v425_v48 = vadd.f32 %v424_v44, %v423_v40  ;;  %v485_v1 = vmul.f32 %v5533_v57, %v5533_v57 }
  0x49   : > { %v445_v63 = vadd.f32 %v444_v53, %v443_v60  ;;  %v501_v10 = vsel %vm383_vm1, %v467_v22, 0.0  ;;  %v502_v51 = vsel %vm383_vm1, %v482_v30, 0.0  ;;  %v452_v52 = vsel %vm383_vm1, %v422_v39, 0.0 }
  0x4a   : > { %v504_v53 = vsel %vm383_vm1, %v468_v23, 0.0  ;;  %v426_v58 = vsel %vm383_vm1, %v5672_v32, 0.0  ;;  %v427_v57 = vsel %vm383_vm1, %v5674_v33, 0.0  ;;  %v497_v59 = vadd.f32 %v496_v37, %v495_v34 }
  0x4b   : > { %v447_v8 = vadd.f32 %v446_v3, %v445_v63  ;;  %v500_v60 = vadd.f32 %v499_v47, %v498_v41  ;;  %v750_v63 = vld [vmem:[%s7773_s0 + $0x36] sm:$0xff]  ;;  %v486_v3 = vmul.f32 %v5545_v2, %v5545_v2  ;;  %v503_v6 = vadd.f32 %v502_v51, %v501_v10 }
  0x4c   : > { %791 = vperm.xlu2 %5260, %v745_v49   ;;  %v507_v7 = vsel %vm383_vm1, %v469_v26, 0.0  ;;  %v473_v9 = vmul.f32 %v5566_v18, %v5566_v18  ;;  %v487_v12 = vmul.f32 %v5556_v11, %v5556_v11  ;;  %v428_v17 = vadd.f32 %v427_v57, %v426_v58 }
  0x4d   : > { %786 = vperm.xlu1 %5259, %v744_v54   ;;  %708 = vperm.xlu0 %5258, %v624_v55   ;;  %v449_v31 = vadd.f32 %v448_v35, %v447_v8  ;;  %v505_v54 = vsel %vm383_vm1, %v483_v38, 0.0  ;;  %v751_v55 = vld [vmem:[%s7773_s0 + $0x3e] sm:$0xff]  ;;  %v508_v8 = vsel %vm383_vm1, %v484_v50, 0.0  ;;  %v510_v2 = vsel %vm383_vm1, %v470_v29, 0.0  ;;  %v753_v50 = vld [vmem:[%s7773_s0 + $0x4e] sm:$0xff] }
  0x4e   : > { %v506_v16 = vadd.f32 %v505_v54, %v504_v53  ;;  %v511_v35 = vsel %vm383_vm1, %v485_v1, 0.0  ;;  %v540_v18 = vsel %vm383_vm1, %v497_v59, 0.0  ;;  %v541_v11 = vsel %vm383_vm1, %v500_v60, 0.0 }
  0x4f   : > { %v451_v49 = vadd.f32 %v450_v43, %v449_v31  ;;  %v513_v22 = vsel %vm383_vm1, %v471_v56, 0.0  ;;  %v542_v23 = vadd.f32 %v541_v11, %v540_v18  ;;  %v543_v24 = vsel %vm383_vm1, %v503_v6, 0.0  ;;  %v1014_v31 = vld [vmem:[%s7773_s0 + $0x7] sm:$0xff] }
  0x50   : > { %v474_v25 = vmul.f32 %v5581_v27, %v5581_v27  ;;  %v489_v26 = vmul.f32 %v5583_v28, %v5583_v28  ;;  %v512_v29 = vadd.f32 %v511_v35, %v510_v2  ;;  %v545_v30 = vsel %vm383_vm1, %v506_v16, 0.0 }
  0x51   : > { %v453_v20 = vadd.f32 %v452_v52, %v451_v49  ;;  %v516_v39 = vsel %vm383_vm1, %v472_v45, 0.0  ;;  %v517_v40 = vsel %vm383_vm1, %v487_v12, 0.0  ;;  %v544_v44 = vadd.f32 %v543_v24, %v542_v23  ;;  %v752_v45 = vld [vmem:[%s7773_s0 + $0x46] sm:$0xff]  ;;  %v1015_v12 = vld [vmem:[%s7773_s0 + $0xf] sm:$0xff] }
  0x52   : > { %v456_v43 = vsel %vm383_vm1, %v428_v17, 0.0  ;;  %v475_v27 = vmul.f32 %v5591_v42, %v5591_v42  ;;  %v490_v34 = vmul.f32 %v5593_v46, %v5593_v46  ;;  %v519_v37 = vsel %vm383_vm1, %v473_v9, 0.0 }
  0x53   : > { %v546_v47 = vadd.f32 %v545_v30, %v544_v44  ;;  %v476_v42 = vmul.f32 %v5610_v61, %v5610_v61  ;;  %v518_v1 = vadd.f32 %v517_v40, %v516_v39  ;;  %v549_v10 = vsel %vm383_vm1, %v512_v29, 0.0  ;;  %v1020_v30 = vld [vmem:[%s7773_s0 + $0x37] sm:$0xff]  ;;  %v1019_v40 = vld [vmem:[%s7773_s0 + $0x2f] sm:$0xff]  ;;  %v1018_v44 = vld [vmem:[%s7773_s0 + $0x27] sm:$0xff] }
  0x54   : > { %806 = vperm.xlu2 %5260, %v748_v13   ;;  %v488_v13 = vmul.f32 %v5568_v19, %v5568_v19  ;;  %v514_v19 = vsel %vm383_vm1, %v486_v3, 0.0  ;;  %v522_v49 = vsel %vm383_vm1, %v474_v25, 0.0  ;;  %v523_v46 = vsel %vm383_vm1, %v489_v26, 0.0 }
  0x55   : > { %801 = vperm.xlu1 %5259, %v747_v36   ;;  %796 = vperm.xlu0 %5258, %v746_v21   ;;  %v454_v36 = vsel %vm383_vm1, %v425_v48, 0.0  ;;  %v509_v21 = vadd.f32 %v508_v8, %v507_v7  ;;  %v515_v56 = vadd.f32 %v514_v19, %v513_v22  ;;  %v491_v48 = vmul.f32 %v5612_v62, %v5612_v62  ;;  %v1017_v7 = vld [vmem:[%s7773_s0 + $0x1f] sm:$0xff] }
  0x56   : > { %v455_v38 = vadd.f32 %v454_v36, %v453_v20  ;;  %v520_v41 = vsel %vm383_vm1, %v488_v13, 0.0  ;;  %v477_v53 = vmul.f32 %v5615_v4, %v5615_v4  ;;  %v492_v62 = vmul.f32 %v5617_v5, %v5617_v5 }
  0x57   : > { %v547_v28 = vsel %vm383_vm1, %v509_v21, 0.0  ;;  %v521_v54 = vadd.f32 %v520_v41, %v519_v37  ;;  %v551_v61 = vsel %vm383_vm1, %v515_v56, 0.0  ;;  %v526_v58 = vsel %vm383_vm1, %v490_v34, 0.0  ;;  %v1023_v37 = vld [vmem:[%s7773_s0 + $0x4f] sm:$0xff]  ;;  %v1022_v41 = vld [vmem:[%s7773_s0 + $0x47] sm:$0xff] }
  0x58   : > { %v457_v51 = vadd.f32 %v456_v43, %v455_v38  ;;  %v548_v52 = vadd.f32 %v547_v28, %v546_v47  ;;  %v478_v59 = vmul.f32 %v5630_v14, %v5630_v14  ;;  %v493_v60 = vmul.f32 %v5632_v15, %v5632_v15  ;;  %v1016_v15 = vld [vmem:[%s7773_s0 + $0x17] sm:$0xff]  ;;  %v1021_v47 = vld [vmem:[%s7773_s0 + $0x3f] sm:$0xff] }
  0x59   : > { %v553_v4 = vsel %vm383_vm1, %v518_v1, 0.0  ;;  %v528_v3 = vsel %vm383_vm1, %v476_v42, 0.0  ;;  %v529_v6 = vsel %vm383_vm1, %v491_v48, 0.0  ;;  %v479_v8 = vmul.f32 %v5672_v32, %v5672_v32 }
  0x5a   : > { %v550_v57 = vadd.f32 %v549_v10, %v548_v52  ;;  %v555_v9 = vsel %vm383_vm1, %v521_v54, 0.0  ;;  %v494_v13 = vmul.f32 %v5674_v33, %v5674_v33  ;;  %v531_v16 = vsel %vm383_vm1, %v477_v53, 0.0 }
  0x5b   : > { %v532_v17 = vsel %vm383_vm1, %v492_v62, 0.0  ;;  %v530_v32 = vadd.f32 %v529_v6, %v528_v3  ;;  %v534_v36 = vsel %vm383_vm1, %v478_v59, 0.0  ;;  %v535_v21 = vsel %vm383_vm1, %v493_v60, 0.0  ;;  %v5169_v60 = vld [vmem:[%s5354_s13 + $0x8] sm:$0xff]  ;;  %v5175_v3 = vld [vmem:[%s5354_s13 + $0x38] sm:$0xff] }
  0x5c   : > { %821 = vperm.xlu2 %5260, %v751_v55   ;;  %v525_v55 = vsel %vm383_vm1, %v475_v27, 0.0  ;;  %v552_v5 = vadd.f32 %v551_v61, %v550_v57  ;;  %v533_v11 = vadd.f32 %v532_v17, %v531_v16  ;;  %v537_v22 = vsel %vm383_vm1, %v479_v8, 0.0  ;;  %v5171_v61 = vld [vmem:[%s5354_s13 + $0x18] sm:$0xff]  ;;  %v5170_v57 = vld [vmem:[%s5354_s13 + $0x10] sm:$0xff]  ;;  %901 = vmatpush.bf16.msra.mxu0 %v5175_v3  ;;  %v579_v16 = vld [vmem:[%s278_s29] sm:$0x1] }
  0x5d   : > { %816 = vperm.xlu1 %5259, %v750_v63   ;;  %811 = vperm.xlu0 %5258, %v749_v0   ;;  %v524_v63 = vadd.f32 %v523_v46, %v522_v49  ;;  %v458_v0 = vrot.slane %v457_v51, 4  ;;  %v527_v14 = vadd.f32 %v526_v58, %v525_v55  ;;  %v538_v19 = vsel %vm383_vm1, %v494_v13, 0.0  ;;  %v596_v8 = vld [vmem:[%s7773_s0 + $0x18] sm:$0xff]  ;;  %v5173_v13 = vld [vmem:[%s5354_s13 + $0x28] sm:$0xff] }
  0x5e   : > { %v554_v20 = vadd.f32 %v553_v4, %v552_v5  ;;  %v536_v24 = vadd.f32 %v535_v21, %v534_v36  ;;  %v561_v25 = vsel %vm383_vm1, %v530_v32, 0.0  ;;  %v539_v38 = vadd.f32 %v538_v19, %v537_v22  ;;  %974 = vmatpush.bf16.msra.mxu1 %v5171_v61  ;;  %5244 = vmatpush.bf16.msra.mxu3 %v5171_v61  ;;  %v597_v36 = vld [vmem:[%s7773_s0 + $0x20] sm:$0xff]  ;;  %v599_v21 = vld [vmem:[%s7773_s0 + $0x30] sm:$0xff] }
  0x5f   : > { %v557_v2 = vsel %vm383_vm1, %v524_v63, 0.0  ;;  %v459_v35 = vadd.f32 %v458_v0, %v457_v51  ;;  %v559_v33 = vsel %vm383_vm1, %v527_v14, 0.0  ;;  %v563_v39 = vsel %vm383_vm1, %v533_v11, 0.0  ;;  %v5168_v63 = vld [vmem:[%s5354_s13] sm:$0xff]  ;;  %5240 = vmatpush.bf16.msra.mxu2 %v5175_v3  ;;  %v1230_v14 = vld [vmem:[%s7773_s0 + $0x57] sm:$0xff]  ;;  %v598_v11 = vld [vmem:[%s7773_s0 + $0x28] sm:$0xff] }
  0x60   : > { %v556_v18 = vadd.f32 %v555_v9, %v554_v20  ;;  %v565_v43 = vsel %vm383_vm1, %v536_v24, 0.0  ;;  %v567_v28 = vsel %vm383_vm1, %v539_v38, 0.0  ;;  %v595_v9 = vld [vmem:[%s7773_s0 + $0x10] sm:$0xff]  ;;  %v5172_v22 = vld [vmem:[%s5354_s13 + $0x20] sm:$0xff] }
  0x61   : > { %v460_v26 = vrot.slane %v459_v35, 2  ;;  %v603_v61 = vld [vmem:[%s7773_s0 + $0x50] sm:$0xff] }
  0x62   : > { %v558_v23 = vadd.f32 %v557_v2, %v556_v18  ;;  %975 = vmatpush.bf16.msra.mxu1 %v5170_v57  ;;  %5245 = vmatpush.bf16.msra.mxu3 %v5170_v57 }
  0x63   : > { %v461_v27 = vadd.f32 %v460_v26, %v459_v35  ;;  %v592_v35 = vld [vmem:[%s281_s9] sm:$0x1]  ;;  %v606_v26 = vld [vmem:[#allocation2 + $0xd] sm:$0xff] }
  0x64   : > { %1056 = vperm.xlu2 %5260, %v1014_v31   ;;  %v560_v29 = vadd.f32 %v559_v33, %v558_v23  ;;  %v605_v33 = vld [vmem:[#allocation2 + $0x5] sm:$0xff] }
  0x65   : > { %831 = vperm.xlu1 %5259, %v753_v50   ;;  %826 = vperm.xlu0 %5258, %v752_v45   ;;  %v462_v45 = vrot.slane %v461_v27, 1 }
  0x66   : > { %v562_v31 = vadd.f32 %v561_v25, %v560_v29  ;;  %976 = vmatpush.bf16.msra.mxu1 %v5169_v60  ;;  %5246 = vmatpush.bf16.msra.mxu3 %v5169_v60 }
  0x67   : > { %v463_v48 = vadd.f32 %v462_v45, %v461_v27  ;;  %v600_v27 = vld [vmem:[%s7773_s0 + $0x38] sm:$0xff] }
  0x68   : > { %v564_v56 = vadd.f32 %v563_v39, %v562_v31  ;;  %v612_v31 = vld [vmem:[#allocation2 + $0x3d] sm:$0xff] }
  0x69   : > { %v5807_v51 = vmul.f32 0.0078125, %v463_v48 }
  0x6a   : > { %v566_v50 = vadd.f32 %v565_v43, %v564_v56  ;;  %977 = vmatpush.bf16.msra.mxu1 %v5168_v63  ;;  %5247 = vmatpush.bf16.msra.mxu3 %v5168_v63  ;;  %v611_v43 = vld [vmem:[#allocation2 + $0x35] sm:$0xff]  ;;  %v601_v56 = vld [vmem:[%s7773_s0 + $0x40] sm:$0xff] }
  0x6b   : > { %v576_v53 = vmul.f32 %v5807_v51, %v5807_v51 }
  0x6c   : > { %1071 = vperm.xlu2 %5260, %v1017_v7   ;;  %v568_v34 = vadd.f32 %v567_v28, %v566_v50 }
  0x6d   : > { %1066 = vperm.xlu1 %5259, %v1016_v15   ;;  %1061 = vperm.xlu0 %5258, %v1015_v12  }
  0x6e   : > { %v569_v42 = vrot.slane %v568_v34, 4 }
  0x70   : > { %v570_v1 = vadd.f32 %v569_v42, %v568_v34 }
  0x72   : > { %v571_v10 = vrot.slane %v570_v1, 2 }
  0x74   : > { %1086 = vperm.xlu2 %5260, %v1020_v30   ;;  %v572_v49 = vadd.f32 %v571_v10, %v570_v1  ;;  %v608_v1 = vld [vmem:[#allocation2 + $0x1d] sm:$0xff] }
  0x75   : > { %1081 = vperm.xlu1 %5259, %v1019_v40   ;;  %1076 = vperm.xlu0 %5258, %v1018_v44  }
  0x76   : > { %v573_v46 = vrot.slane %v572_v49, 1 }
  0x78   : > { %v574_v52 = vadd.f32 %v573_v46, %v572_v49  ;;  %v735_v49 = vld [vmem:[#allocation2 + $0xe] sm:$0xff] }
  0x7a   : > { %v575_v54 = vmul.f32 0.0078125, %v574_v52  ;;  %v1625_v52 = vld [vmem:[%s7773_s0 + $0x11] sm:$0xff] }
  0x7c   : > { %1101 = vperm.xlu2 %5260, %v1023_v37   ;;  %v577_v62 = vsub.f32 %v575_v54, %v576_v53  ;;  %v734_v53 = vld [vmem:[#allocation2 + $0x6] sm:$0xff]  ;;  %v607_v54 = vld [vmem:[#allocation2 + $0x15] sm:$0xff] }
  0x7d   : > { %1096 = vperm.xlu1 %5259, %v1022_v41   ;;  %1091 = vperm.xlu0 %5258, %v1021_v47  }
  0x7e   : > { %v578_v55 = vmax.f32 %v577_v62, 0.0 }
  0x80   : > { %v580_v58 = vadd.f32 1e-05, %v578_v55 }
  0x82   : > { %5261 = vrsqrt.f32 %v580_v58  ;;  %vm587_vm2 = vweird.f32 %v580_v58 }
  0x84   : > { %1273 = vperm.xlu2 %5260, %v1017_v7  }
  0x85   : > { %1268 = vperm.xlu1 %5259, %v1016_v15   ;;  %1263 = vperm.xlu0 %5258, %v1015_v12   ;;  %v5174_v15 = vld [vmem:[%s5354_s13 + $0x30] sm:$0xff] }
  0x86   : > { %902 = vmatpush.bf16.msra.mxu0 %v5174_v15  ;;  %5241 = vmatpush.bf16.msra.mxu2 %v5174_v15 }
  0x88   : > { %v5262_v4 = vpop.eup %5261 }
  0x89   : > { %v582_v0 = vmul.f32 %v5262_v4, %v580_v58  ;;  %vm588_vm3 = vweird.f32 %v5262_v4  ;;  %v604_v58 = vld [vmem:[%s7773_s0 + $0x58] sm:$0xff] }
  0x8a   : > { %vm589_vm4 = vmor %vm587_vm2, %vm588_vm3  ;;  %903 = vmatpush.bf16.msra.mxu0 %v5173_v13  ;;  %5242 = vmatpush.bf16.msra.mxu2 %v5173_v13 }
  0x8b   : > { %v583_v5 = vmul.f32 %v5262_v4, %v582_v0 }
  0x8c   : > { %1288 = vperm.xlu2 %5260, %v1020_v30  }
  0x8d   : > { %1283 = vperm.xlu1 %5259, %v1019_v40   ;;  %1278 = vperm.xlu0 %5258, %v1018_v44   ;;  %v584_v7 = vmul.f32 0.5, %v583_v5  ;;  %v602_v40 = vld [vmem:[%s7773_s0 + $0x48] sm:$0xff] }
  0x8e   : > { %v5813_v59 = vpop.permute.xlu2 %683  ;;  %904 = vmatpush.bf16.msra.mxu0 %v5172_v22  ;;  %5243 = vmatpush.bf16.msra.mxu2 %v5172_v22 }
  0x8f   : > { %v585_v12 = vsub.f32 1.5, %v584_v7 }
  0x91   : > { %v586_v17 = vmul.f32 %v5262_v4, %v585_v12 }
  0x93   : > { %v590_v32 = vsel %vm589_vm4, %v5262_v4, %v586_v17 }
  0x94   : > { %1303 = vperm.xlu2 %5260, %v1023_v37   ;;  %v591_v2 = vmul.f32 %v590_v32, %v579_v16  ;;  %v613_v16 = vld [vmem:[#allocation2 + $0x45] sm:$0xff] }
  0x95   : > { %1298 = vperm.xlu1 %5259, %v1022_v41   ;;  %1293 = vperm.xlu0 %5258, %v1021_v47   ;;  %v5904_v32 = vld [vmem:[%s7773_s0 + $0x29] sm:$0xff] }
  0x96   : > { %v5818_v6 = vpop.permute.xlu2 %688  ;;  %v593_v18 = vmul.f32 %v591_v2, %v5807_v51  ;;  %v5854_v19 = vperm.slane %v591_v2, 0 }
  0x98   : > { %v594_v23 = vsub.f32 %v592_v35, %v593_v18  ;;  %v628_v24 = vmul.f32 %v5854_v19, %v605_v33  ;;  %v629_v44 = vmul.f32 %v5854_v19, %v606_v26  ;;  %v635_v50 = vmul.f32 %v5854_v19, %v612_v31  ;;  %v5909_v35 = vld [vmem:[%s7773_s0 + $0x19] sm:$0xff]  ;;  %v5915_v18 = vld [vmem:[%s7773_s0 + $0x21] sm:$0xff] }
  0x99   : > { %v634_v45 = vmul.f32 %v5854_v19, %v611_v43  ;;  %v631_v62 = vmul.f32 %v5854_v19, %v608_v1  ;;  %v755_v57 = vmul.f32 %v735_v49, %v5854_v19  ;;  %v754_v4 = vmul.f32 %v734_v53, %v5854_v19  ;;  %v736_v31 = vld [vmem:[#allocation2 + $0x16] sm:$0xff]  ;;  %v609_v43 = vld [vmem:[#allocation2 + $0x25] sm:$0xff] }
  0x9a   : > { %v5859_v29 = vperm.slane %v594_v23, 0  ;;  %v630_v0 = vmul.f32 %v5854_v19, %v607_v54  ;;  %v5936_v1 = vld [vmem:[%s7773_s0 + $0x31] sm:$0xff] }
  0x9c   : > { %1465 = vperm.xlu2 %5260, %v596_v8   ;;  %v641_v39 = vadd.f32 %v5859_v29, %v628_v24  ;;  %v642_v34 = vadd.f32 %v5859_v29, %v629_v44  ;;  %v648_v10 = vadd.f32 %v5859_v29, %v635_v50  ;;  %v647_v51 = vadd.f32 %v5859_v29, %v634_v45  ;;  %v737_v44 = vld [vmem:[#allocation2 + $0x1e] sm:$0xff] }
  0x9d   : > { %1308 = vperm.xlu0 %5258, %v1230_v14   ;;  %1460 = vperm.xlu1 %5259, %v595_v9   ;;  %v644_v5 = vadd.f32 %v5859_v29, %v631_v62  ;;  %v614_v14 = vld [vmem:[#allocation2 + $0x4d] sm:$0xff]  ;;  %v765_v9 = vadd.f32 %v755_v57, %v5859_v29  ;;  %v764_v13 = vadd.f32 %v754_v4, %v5859_v29 }
  0x9e   : > { %v5836_v20 = vpop.permute.xlu2 %703  ;;  %v651_v28 = vmax.f32 %v641_v39, 0.0  ;;  %v652_v48 = vmax.f32 %v642_v34, 0.0  ;;  %v658_v60 = vmax.f32 %v648_v10, 0.0  ;;  %v657_v63 = vmax.f32 %v647_v51, 0.0  ;;  %v741_v34 = vld [vmem:[#allocation2 + $0x3e] sm:$0xff] }
  0x9f   : > { %v643_v17 = vadd.f32 %v5859_v29, %v630_v0  ;;  %v775_v33 = vmax.f32 %v765_v9, 0.0  ;;  %v774_v22 = vmax.f32 %v764_v13, 0.0  ;;  %v756_v10 = vmul.f32 %v736_v31, %v5854_v19  ;;  %v5972_v13 = vld [vmem:[%s7773_s0 + $0x49] sm:$0xff] }
  0xa0   : > { %v761_v53 = vmul.f32 %v741_v34, %v5854_v19 }
  0xa1   : > { %v653_v23 = vmax.f32 %v643_v17, 0.0  ;;  %v766_v57 = vadd.f32 %v756_v10, %v5859_v29 }
  0xa4   : > { %1480 = vperm.xlu2 %5260, %v599_v21   ;;  %v654_v21 = vmax.f32 %v644_v5, 0.0 }
  0xa5   : > { %1470 = vperm.xlu0 %5258, %v597_v36   ;;  %1475 = vperm.xlu1 %5259, %v598_v11   ;;  %v637_v36 = vmul.f32 %v5854_v19, %v614_v14  ;;  %v636_v11 = vmul.f32 %v5854_v19, %v613_v16  ;;  %v5967_v14 = vld [vmem:[%s7773_s0 + $0x59] sm:$0xff]  ;;  %v5178_v16 = vld [vmem:[%s5354_s13 + $0x50] sm:$0xff] }
  0xa6   : > { %v5857_v25 = vpop.permute.xlu2 %791 }
  0xa7   : > { %v5861_v30 = vpop.permute.xlu1 %673  ;;  %v664_v38 = vpop.permute.xlu0 %663  ;;  %v650_v26 = vadd.f32 %v5859_v29, %v637_v36  ;;  %v5979_v36 = vld [vmem:[%s7773_s0 + $0x51] sm:$0xff] }
  0xa8   : > { %v711_v41 = vmul.f32 %v664_v38, %v651_v28  ;;  %v835_v28 = vmul.f32 %v5857_v25, %v775_v33  ;;  %v713_v45 = vmul.f32 %v5861_v30, %v653_v23  ;;  %v757_v25 = vmul.f32 %v737_v44, %v5854_v19  ;;  %v5177_v33 = vld [vmem:[%s5354_s13 + $0x48] sm:$0xff] }
  0xa9   : > { %v632_v30 = vmul.f32 %v5854_v19, %v609_v43  ;;  %v743_v43 = vld [vmem:[#allocation2 + $0x4e] sm:$0xff] }
  0xac   : > { %1495 = vperm.xlu2 %5260, %v602_v40  }
  0xad   : > { %1485 = vperm.xlu0 %5258, %v600_v27   ;;  %1490 = vperm.xlu1 %5259, %v601_v56   ;;  %v610_v27 = vld [vmem:[#allocation2 + $0x2d] sm:$0xff]  ;;  %v649_v56 = vadd.f32 %v5859_v29, %v636_v11 }
  0xae   : > { %v5877_v37 = vpop.permute.xlu2 %806  ;;  %v633_v51 = vmul.f32 %v5854_v19, %v610_v27  ;;  %v742_v27 = vld [vmem:[#allocation2 + $0x46] sm:$0xff] }
  0xaf   : > { %v679_v47 = vpop.permute.xlu1 %678  ;;  %v669_v42 = vpop.permute.xlu0 %668 }
  0xb0   : > { %v712_v46 = vmul.f32 %v669_v42, %v652_v48  ;;  %v714_v38 = vmul.f32 %v679_v47, %v654_v21  ;;  %v740_v47 = vld [vmem:[#allocation2 + $0x36] sm:$0xff]  ;;  %v660_v48 = vmax.f32 %v650_v26, 0.0 }
  0xb1   : > { %v760_v54 = vmul.f32 %v740_v47, %v5854_v19 }
  0xb2   : > { %v721_v55 = vpack.c.bf16 %v712_v46, %v711_v41  ;;  %v5931_v41 = vld [vmem:[%s7773_s0 + $0x41] sm:$0xff]  ;;  %v722_v49 = vpack.c.bf16 %v714_v38, %v713_v45  ;;  %v5945_v46 = vld [vmem:[%s7773_s0 + $0x39] sm:$0xff]  ;;  %v739_v38 = vld [vmem:[#allocation2 + $0x2e] sm:$0xff] }
  0xb3   : > { %v759_v45 = vmul.f32 %v739_v38, %v5854_v19 }
  0xb4   : > { %1667 = vperm.xlu2 %5260, %v1625_v52   ;;  %4704 = vmatmul.msk.bf16.vlgmr.msra.gmra.mxu1 %vm383_vm1, %v721_v55  ;;  %v659_v52 = vmax.f32 %v649_v56, 0.0 }
  0xb5   : > { %1500 = vperm.xlu0 %5258, %v603_v61   ;;  %1505 = vperm.xlu1 %5259, %v604_v58   ;;  %v5179_v61 = vld [vmem:[%s5354_s13 + $0x58] sm:$0xff]  ;;  %v767_v58 = vadd.f32 %v757_v25, %v5859_v29  ;;  %v5182_v25 = vld [vmem:[%s5354_s13 + $0x70] sm:$0xff] }
  0xb6   : > { %v5895_v3 = vpop.permute.xlu2 %821  ;;  %1171 = vmatpush.bf16.msrb.mxu2 %v5179_v61  ;;  %v719_v5 = vmul.f32 %v5836_v20, %v659_v52  ;;  %v5183_v20 = vld [vmem:[%s5354_s13 + $0x78] sm:$0xff] }
  0xb7   : > { %v699_v7 = vpop.permute.xlu1 %698  ;;  %v694_v8 = vpop.permute.xlu0 %693  ;;  %1378 = vmatpush.bf16.msrb.mxu3 %v5183_v20 }
  0xb8   : > { %v718_v15 = vmul.f32 %v699_v7, %v658_v60  ;;  %v717_v12 = vmul.f32 %v694_v8, %v657_v63  ;;  %v645_v60 = vadd.f32 %v5859_v29, %v632_v30  ;;  %v646_v63 = vadd.f32 %v5859_v29, %v633_v51 }
  0xb9   : > { %v771_v7 = vadd.f32 %v761_v53, %v5859_v29  ;;  %v770_v8 = vadd.f32 %v760_v54, %v5859_v29  ;;  %v5181_v54 = vld [vmem:[%s5354_s13 + $0x68] sm:$0xff] }
  0xba   : > { %v724_v2 = vpack.c.bf16 %v718_v15, %v717_v12  ;;  %v777_v15 = vmax.f32 %v767_v58, 0.0  ;;  %v776_v12 = vmax.f32 %v766_v57, 0.0  ;;  %v655_v17 = vmax.f32 %v645_v60, 0.0  ;;  %1172 = vmatpush.bf16.msrb.mxu2 %v5178_v16 }
  0xbb   : > { %v781_v21 = vmax.f32 %v771_v7, 0.0  ;;  %v780_v11 = vmax.f32 %v770_v8, 0.0  ;;  %1379 = vmatpush.bf16.msrb.mxu3 %v5182_v25 }
  0xbc   : > { %4707 = vmatmul.msk.bf16.vlgmr.msra.gmra.mxu3 %vm383_vm1, %v724_v2  ;;  %1682 = vperm.xlu2 %5260, %v5904_v32   ;;  %v656_v2 = vmax.f32 %v646_v63, 0.0 }
  0xbd   : > { %1672 = vperm.xlu0 %5258, %v5909_v35   ;;  %1677 = vperm.xlu1 %5259, %v5915_v18   ;;  %v841_v56 = vmul.f32 %v5895_v3, %v781_v21  ;;  %v769_v3 = vadd.f32 %v759_v45, %v5859_v29  ;;  %v5184_v45 = vld [vmem:[%s5354_s13 + $0x80] sm:$0xff] }
  0xbe   : > { %v5922_v24 = vpop.permute.xlu2 %1056  ;;  %1173 = vmatpush.bf16.msrb.mxu2 %v5177_v33  ;;  %v1006_v33 = vld [vmem:[#allocation2 + $0x17] sm:$0xff] }
  0xbf   : > { %v787_v39 = vpop.permute.xlu1 %786  ;;  %v709_v40 = vpop.permute.xlu0 %708  ;;  %v779_v61 = vmax.f32 %v769_v3, 0.0  ;;  %1380 = vmatpush.bf16.msrb.mxu3 %v5181_v54  ;;  %v1026_v38 = vmul.f32 %v1006_v33, %v5854_v19  ;;  %v2045_v54 = vld [vmem:[%s7773_s0 + $0x4a] sm:$0xff] }
  0xc0   : > { %v834_v50 = vmul.f32 %v787_v39, %v774_v22  ;;  %v720_v62 = vmul.f32 %v709_v40, %v660_v48  ;;  %v715_v39 = vmul.f32 %v5813_v59, %v655_v17  ;;  %v716_v40 = vmul.f32 %v5818_v6, %v656_v2  ;;  %v5176_v6 = vld [vmem:[%s5354_s13 + $0x40] sm:$0xff] }
  0xc1   : > { %v762_v59 = vmul.f32 %v742_v27, %v5854_v19  ;;  %v1007_v27 = vld [vmem:[#allocation2 + $0x1f] sm:$0xff] }
  0xc2   : > { %v844_v42 = vpack.c.bf16 %v835_v28, %v834_v50  ;;  %v725_v9 = vpack.c.bf16 %v720_v62, %v719_v5  ;;  %v738_v50 = vld [vmem:[#allocation2 + $0x26] sm:$0xff]  ;;  %v723_v48 = vpack.c.bf16 %v716_v40, %v715_v39  ;;  %1174 = vmatpush.bf16.msrb.mxu2 %v5176_v6  ;;  %v1005_v5 = vld [vmem:[#allocation2 + $0xf] sm:$0xff] }
  0xc3   : > { %v758_v10 = vmul.f32 %v738_v50, %v5854_v19  ;;  %v2041_v50 = vld [vmem:[%s7773_s0 + $0x2a] sm:$0xff] }
  0xc4   : > { %4683 = vmatmul.msk.bf16.vlgmr.msra.gmra.mxu0 %vm383_vm1, %v844_v42  ;;  %1697 = vperm.xlu2 %5260, %v5931_v41   ;;  %v763_v42 = vmul.f32 %v743_v43, %v5854_v19 }
  0xc5   : > { %4705 = vmatmul.msk.bf16.gmra.mxu1 %vm383_vm1, %v722_v49  ;;  %1687 = vperm.xlu0 %5258, %v5936_v1   ;;  %v772_v49 = vadd.f32 %v762_v59, %v5859_v29 }
  0xc6   : > { %1692 = vperm.xlu1 %5259, %v5945_v46   ;;  %v5955_v55 = vpop.permute.xlu2 %1071  ;;  %v773_v51 = vadd.f32 %v763_v42, %v5859_v29 }
  0xc7   : > { %v802_v4 = vpop.permute.xlu1 %801  ;;  %v797_v0 = vpop.permute.xlu0 %796  ;;  %v782_v58 = vmax.f32 %v772_v49, 0.0 }
  0xc8   : > { %v837_v22 = vmul.f32 %v802_v4, %v777_v15  ;;  %v836_v23 = vmul.f32 %v797_v0, %v776_v12  ;;  %v783_v62 = vmax.f32 %v773_v51, 0.0  ;;  %v1025_v12 = vmul.f32 %v1005_v5, %v5854_v19  ;;  %v1008_v51 = vld [vmem:[#allocation2 + $0x27] sm:$0xff]  ;;  %v1419_v5 = vld [vmem:[#allocation2 + $0x18] sm:$0xff] }
  0xca   : > { %v845_v34 = vpack.c.bf16 %v837_v22, %v836_v23  ;;  %v5185_v23 = vld [vmem:[%s5354_s13 + $0x88] sm:$0xff] }
  0xcc   : > { %4708 = vmatmul.msk.bf16.gmra.mxu3 %vm383_vm1, %v725_v9  ;;  %1712 = vperm.xlu2 %5260, %v5967_v14   ;;  %v1004_v9 = vld [vmem:[#allocation2 + $0x7] sm:$0xff] }
  0xcd   : > { %1702 = vperm.xlu0 %5258, %v5972_v13   ;;  %v1024_v16 = vmul.f32 %v1004_v9, %v5854_v19 }
  0xce   : > { %1707 = vperm.xlu1 %5259, %v5979_v36   ;;  %v5986_v26 = vpop.permute.xlu2 %1086 }
  0xcf   : > { %v817_v44 = vpop.permute.xlu1 %816  ;;  %v812_v31 = vpop.permute.xlu0 %811  ;;  %v1034_v2 = vadd.f32 %v1024_v16, %v5859_v29 }
  0xd0   : > { %v840_v28 = vmul.f32 %v817_v44, %v780_v11  ;;  %v5186_v11 = vld [vmem:[%s5354_s13 + $0x90] sm:$0xff] }
  0xd1   : > { %v1044_v22 = vmax.f32 %v1034_v2, 0.0 }
  0xd2   : > { %v847_v47 = vpack.c.bf16 %v841_v56, %v840_v28  ;;  %v1036_v56 = vadd.f32 %v1026_v38, %v5859_v29 }
  0xd3   : > { %v1104_v43 = vmul.f32 %v5922_v24, %v1044_v22  ;;  %v1027_v24 = vmul.f32 %v1007_v27, %v5854_v19  ;;  %v5190_v22 = vld [vmem:[%s5354_s13 + $0xb0] sm:$0xff] }
  0xd4   : > { %4684 = vmatmul.msk.bf16.gmra.mxu0 %vm383_vm1, %v845_v34  ;;  %4686 = vmatmul.msk.bf16.vlgmr.msra.gmra.mxu2 %vm383_vm1, %v847_v47  ;;  %v2043_v34 = vld [vmem:[%s7773_s0 + $0x3a] sm:$0xff]  ;;  %v2042_v47 = vld [vmem:[%s7773_s0 + $0x32] sm:$0xff]  ;;  %v1046_v42 = vmax.f32 %v1036_v56, 0.0 }
  0xd5   : > { %4706 = vmatmul.msk.bf16.gmra.mxu1 %vm383_vm1, %v723_v48  ;;  %1874 = vperm.xlu0 %5258, %v5909_v35   ;;  %v768_v35 = vadd.f32 %v758_v10, %v5859_v29  ;;  %v1037_v25 = vadd.f32 %v1027_v24, %v5859_v29  ;;  %v2249_v27 = vld [vmem:[%s7773_s0 + $0x33] sm:$0xff]  ;;  %v1011_v24 = vld [vmem:[#allocation2 + $0x3f] sm:$0xff] }
  0xd6   : > { %1884 = vperm.xlu2 %5260, %v5904_v32   ;;  %1879 = vperm.xlu1 %5259, %v5915_v18   ;;  %v6004_v30 = vpop.permute.xlu2 %1101  ;;  %v5180_v32 = vld [vmem:[%s5354_s13 + $0x60] sm:$0xff]  ;;  %v839_v18 = vmul.f32 %v812_v31, %v779_v61  ;;  %v1028_v61 = vmul.f32 %v1008_v51, %v5854_v19 }
  0xd7   : > { %v832_v52 = vpop.permute.xlu1 %831  ;;  %v827_v53 = vpop.permute.xlu0 %826  ;;  %v778_v57 = vmax.f32 %v768_v35, 0.0  ;;  %1381 = vmatpush.bf16.msrb.mxu3 %v5180_v32  ;;  %v1047_v35 = vmax.f32 %v1037_v25, 0.0  ;;  %v1009_v32 = vld [vmem:[#allocation2 + $0x2f] sm:$0xff]  ;;  %v1420_v25 = vld [vmem:[#allocation2 + $0x20] sm:$0xff] }
  0xd8   : > { %v843_v60 = vmul.f32 %v832_v52, %v783_v62  ;;  %v842_v63 = vmul.f32 %v827_v53, %v782_v58  ;;  %v2044_v52 = vld [vmem:[%s7773_s0 + $0x42] sm:$0xff]  ;;  %v2046_v53 = vld [vmem:[%s7773_s0 + $0x52] sm:$0xff]  ;;  %v1029_v9 = vmul.f32 %v1009_v32, %v5854_v19 }
  0xd9   : > { %v838_v8 = vmul.f32 %v5877_v37, %v778_v57  ;;  %v5188_v32 = vld [vmem:[%s5354_s13 + $0xa0] sm:$0xff] }
  0xdb   : > { %v846_v15 = vpack.c.bf16 %v839_v18, %v838_v8 }
  0xdd   : > { %1889 = vperm.xlu0 %5258, %v5936_v1   ;;  %v848_v1 = vpack.c.bf16 %v843_v60, %v842_v63  ;;  %v1107_v60 = vmul.f32 %v5955_v55, %v1047_v35  ;;  %v1038_v63 = vadd.f32 %v1028_v61, %v5859_v29  ;;  %v2252_v61 = vld [vmem:[%s7773_s0 + $0x4b] sm:$0xff] }
  0xde   : > { %1899 = vperm.xlu2 %5260, %v5931_v41   ;;  %1894 = vperm.xlu1 %5259, %v5945_v46   ;;  %v6014_v4 = vpop.permute.xlu2 %1273  ;;  %v5187_v41 = vld [vmem:[%s5354_s13 + $0x98] sm:$0xff]  ;;  %v1035_v46 = vadd.f32 %v1025_v12, %v5859_v29  ;;  %v1429_v12 = vmul.f32 %v1419_v5, %v5854_v19 }
  0xdf   : > { %v6016_v0 = vpop.permute.xlu1 %1066  ;;  %v1062_v7 = vpop.permute.xlu0 %1061  ;;  %1575 = vmatpush.bf16.msrb.mxu0 %v5187_v41  ;;  %v1048_v55 = vmax.f32 %v1038_v63, 0.0  ;;  %v5191_v41 = vld [vmem:[%s5354_s13 + $0xb8] sm:$0xff]  ;;  %v1313_v33 = vmul.f32 %v6014_v4, %v1047_v35  ;;  %v2248_v4 = vld [vmem:[%s7773_s0 + $0x2b] sm:$0xff] }
  0xe0   : > { %v1045_v21 = vmax.f32 %v1035_v46, 0.0  ;;  %v1106_v62 = vmul.f32 %v6016_v0, %v1046_v42  ;;  %v2047_v0 = vld [vmem:[%s7773_s0 + $0x5a] sm:$0xff]  ;;  %v1039_v46 = vadd.f32 %v1029_v9, %v5859_v29  ;;  %1782 = vmatpush.bf16.msrb.mxu1 %v5191_v41 }
  0xe1   : > { %v2253_v41 = vld [vmem:[%s7773_s0 + $0x53] sm:$0xff] }
  0xe2   : > { %v1105_v39 = vmul.f32 %v1062_v7, %v1045_v21  ;;  %v1418_v7 = vld [vmem:[#allocation2 + $0x10] sm:$0xff]  ;;  %v1115_v8 = vpack.c.bf16 %v1107_v60, %v1106_v62  ;;  %v1049_v38 = vmax.f32 %v1039_v46, 0.0  ;;  %v2251_v62 = vld [vmem:[%s7773_s0 + $0x43] sm:$0xff] }
  0xe3   : > { %1576 = vmatpush.bf16.msrb.mxu0 %v5186_v11  ;;  %v1428_v16 = vmul.f32 %v1418_v7, %v5854_v19  ;;  %v2255_v46 = vld [vmem:[%s7773_s0 + $0x63] sm:$0xff] }
  0xe4   : > { %4685 = vmatmul.msk.bf16.gmra.mxu0 %vm383_vm1, %v846_v15  ;;  %4687 = vmatmul.msk.bf16.gmra.mxu2 %vm383_vm1, %v848_v1  ;;  %v1114_v28 = vpack.c.bf16 %v1105_v39, %v1104_v43  ;;  %v2246_v15 = vld [vmem:[%s7773_s0 + $0x1b] sm:$0xff]  ;;  %v2247_v43 = vld [vmem:[%s7773_s0 + $0x23] sm:$0xff] }
  0xe5   : > { %1904 = vperm.xlu0 %5258, %v5972_v13   ;;  %v1841_v13 = vld [vmem:[%s7773_s0 + $0x61] sm:$0xff]  ;;  %1783 = vmatpush.bf16.msrb.mxu1 %v5190_v22 }
  0xe6   : > { %1914 = vperm.xlu2 %5260, %v5967_v14   ;;  %1909 = vperm.xlu1 %5259, %v5979_v36   ;;  %v6028_v37 = vpop.permute.xlu2 %1288  ;;  %v2040_v14 = vld [vmem:[%s7773_s0 + $0x22] sm:$0xff]  ;;  %v2039_v36 = vld [vmem:[%s7773_s0 + $0x1a] sm:$0xff] }
  0xe7   : > { %v6030_v20 = vpop.permute.xlu1 %1081  ;;  %v6032_v17 = vpop.permute.xlu0 %1076  ;;  %1577 = vmatpush.bf16.msrb.mxu0 %v5185_v23  ;;  %v2048_v1 = vld [vmem:[%s7773_s0 + $0x62] sm:$0xff]  ;;  %v1010_v23 = vld [vmem:[#allocation2 + $0x37] sm:$0xff] }
  0xeb   : > { %1578 = vmatpush.bf16.msrb.mxu0 %v5184_v45  ;;  %v1030_v45 = vmul.f32 %v1010_v23, %v5854_v19  ;;  %v5195_v23 = vld [vmem:[%s5354_s13 + $0xd8] sm:$0xff] }
  0xec   : > { %1989 = vmatpush.bf16.msra.mxu2 %v5195_v23  ;;  %v1424_v23 = vld [vmem:[#allocation2 + $0x40] sm:$0xff] }
  0xed   : > { %1919 = vperm.xlu0 %5258, %v1841_v13  }
  0xee   : > { %2086 = vperm.xlu2 %5260, %v2040_v14   ;;  %2081 = vperm.xlu1 %5259, %v2039_v36   ;;  %v6047_v40 = vpop.permute.xlu2 %1303  ;;  %v1439_v14 = vadd.f32 %v1429_v12, %v5859_v29  ;;  %v1438_v36 = vadd.f32 %v1428_v16, %v5859_v29 }
  0xef   : > { %v6049_v44 = vpop.permute.xlu1 %1096  ;;  %v6051_v31 = vpop.permute.xlu0 %1091 }
  0xf0   : > { %v1449_v56 = vmax.f32 %v1439_v14, 0.0 }
  0xf4   : > { %4733 = vmatmul.msk.bf16.vlgmr.msrb.gmra.mxu2 %vm383_vm1, %v1114_v28  ;;  %v1448_v28 = vmax.f32 %v1438_v36, 0.0 }
  0xf5   : > { %2091 = vperm.xlu0 %5258, %v2041_v50   ;;  %v5189_v50 = vld [vmem:[%s5354_s13 + $0xa8] sm:$0xff] }
  0xf6   : > { %2101 = vperm.xlu2 %5260, %v2043_v34   ;;  %2096 = vperm.xlu1 %5259, %v2042_v47   ;;  %v6067_v59 = vpop.permute.xlu2 %1465  ;;  %v1109_v34 = vmul.f32 %v6030_v20, %v1049_v38  ;;  %v1108_v47 = vmul.f32 %v6032_v17, %v1048_v55  ;;  %v1040_v20 = vadd.f32 %v1030_v45, %v5859_v29 }
  0xf7   : > { %v1269_v48 = vpop.permute.xlu1 %1268  ;;  %v1264_v6 = vpop.permute.xlu0 %1263  ;;  %1784 = vmatpush.bf16.msrb.mxu1 %v5189_v50  ;;  %v1031_v17 = vmul.f32 %v1011_v24, %v5854_v19  ;;  %v1616_v50 = vld [vmem:[#allocation2 + $0x19] sm:$0xff]  ;;  %v2484_v24 = vld [vmem:[%s7773_s0 + $0x5] sm:$0xff] }
  0xf8   : > { %v1312_v10 = vmul.f32 %v1269_v48, %v1046_v42  ;;  %v1311_v3 = vmul.f32 %v1264_v6, %v1045_v21  ;;  %v1050_v60 = vmax.f32 %v1040_v20, 0.0 }
  0xfa   : > { %v1321_v49 = vpack.c.bf16 %v1312_v10, %v1311_v3  ;;  %v1421_v10 = vld [vmem:[#allocation2 + $0x28] sm:$0xff]  ;;  %v1509_v3 = vmul.f32 %v6067_v59, %v1449_v56  ;;  %v1422_v56 = vld [vmem:[#allocation2 + $0x30] sm:$0xff] }
  0xfb   : > { %v1431_v35 = vmul.f32 %v1421_v10, %v5854_v19  ;;  %1785 = vmatpush.bf16.msrb.mxu1 %v5188_v32  ;;  %v2485_v10 = vld [vmem:[%s7773_s0 + $0xd] sm:$0xff]  ;;  %v1432_v20 = vmul.f32 %v1422_v56, %v5854_v19  ;;  %v1220_v32 = vld [vmem:[#allocation2 + $0x57] sm:$0xff]  ;;  %v1617_v56 = vld [vmem:[#allocation2 + $0x21] sm:$0xff] }
  0xfc   : > { %4762 = vmatmul.msk.bf16.vlgmr.msrb.gmra.mxu3 %vm383_vm1, %v1321_v49  ;;  %v1116_v49 = vpack.c.bf16 %v1109_v34, %v1108_v47 }
  0xfd   : > { %2106 = vperm.xlu0 %5258, %v2044_v52  }
  0xfe   : > { %2116 = vperm.xlu2 %5260, %v2046_v53   ;;  %2111 = vperm.xlu1 %5259, %v2045_v54   ;;  %v6082_v58 = vpop.permute.xlu2 %1480  ;;  %v2250_v53 = vld [vmem:[%s7773_s0 + $0x3b] sm:$0xff]  ;;  %v1430_v54 = vmul.f32 %v1420_v25, %v5854_v19 }
  0xff   : > { %v6084_v57 = vpop.permute.xlu1 %1283  ;;  %v1279_v18 = vpop.permute.xlu0 %1278 }
 0x100   : > { %v1314_v2 = vmul.f32 %v1279_v18, %v1048_v55  ;;  %v1041_v18 = vadd.f32 %v1031_v17, %v5859_v29  ;;  %v1315_v63 = vmul.f32 %v6084_v57, %v1049_v38  ;;  %v1440_v5 = vadd.f32 %v1430_v54, %v5859_v29  ;;  %v1423_v38 = vld [vmem:[#allocation2 + $0x38] sm:$0xff] }
 0x101   : > { %v1433_v34 = vmul.f32 %v1423_v38, %v5854_v19 }
 0x102   : > { %v1322_v39 = vpack.c.bf16 %v1314_v2, %v1313_v33  ;;  %v1051_v55 = vmax.f32 %v1041_v18, 0.0  ;;  %v1450_v16 = vmax.f32 %v1440_v5, 0.0  ;;  %v2254_v2 = vld [vmem:[%s7773_s0 + $0x5b] sm:$0xff] }
 0x103   : > { %v1443_v54 = vadd.f32 %v1433_v34, %v5859_v29 }
 0x104   : > { %4734 = vmatmul.msk.bf16.gmra.mxu2 %vm383_vm1, %v1115_v8  ;;  %v1441_v8 = vadd.f32 %v1431_v35, %v5859_v29  ;;  %v1111_v33 = vmul.f32 %v6051_v31, %v1051_v55 }
 0x105   : > { %2121 = vperm.xlu0 %5258, %v2047_v0  }
 0x106   : > { %2288 = vperm.xlu2 %5260, %v2246_v15   ;;  %2126 = vperm.xlu1 %5259, %v2048_v1   ;;  %v6103_v21 = vpop.permute.xlu2 %1495  ;;  %v1316_v15 = vmul.f32 %v6028_v37, %v1050_v60  ;;  %v1012_v1 = vld [vmem:[#allocation2 + $0x47] sm:$0xff]  ;;  %v1451_v57 = vmax.f32 %v1441_v8, 0.0  ;;  %v1240_v8 = vmul.f32 %v1220_v32, %v5854_v19 }
 0x107   : > { %7796 = vst [vmem:[#allocation3_spill] sm:$0xff] %v6103_v21  ;;  %v6105_v13 = vpop.permute.xlu1 %1298  ;;  %v6107_v11 = vpop.permute.xlu0 %1293  ;;  %v1032_v37 = vmul.f32 %v1012_v1, %v5854_v19  ;;  %v2487_v1 = vld [vmem:[%s7773_s0 + $0x1d] sm:$0xff] }
 0x108   : > { %v1323_v12 = vpack.c.bf16 %v1316_v15, %v1315_v63  ;;  %v1453_v15 = vmax.f32 %v1443_v54, 0.0 }
 0x109   : > { %v1042_v31 = vadd.f32 %v1032_v37, %v5859_v29 }
 0x10c   : > { %4763 = vmatmul.msk.bf16.gmra.mxu3 %vm383_vm1, %v1322_v39 }
 0x10d   : > { %2293 = vperm.xlu0 %5258, %v2247_v43  }
 0x10e   : > { %2303 = vperm.xlu2 %5260, %v2249_v27   ;;  %2298 = vperm.xlu1 %5259, %v2248_v4   ;;  %v6127_v42 = vpop.permute.xlu2 %1667  ;;  %v1110_v27 = vmul.f32 %v5986_v26, %v1050_v60  ;;  %v1013_v4 = vld [vmem:[#allocation2 + $0x4f] sm:$0xff]  ;;  %v1442_v60 = vadd.f32 %v1432_v20, %v5859_v29 }
 0x10f   : > { %v6129_v48 = vpop.permute.xlu0 %1308  ;;  %v6131_v6 = vpop.permute.xlu1 %1460  ;;  %v1033_v25 = vmul.f32 %v1013_v4, %v5854_v19  ;;  %v2486_v26 = vld [vmem:[%s7773_s0 + $0x15] sm:$0xff] }
 0x110   : > { %v1508_v51 = vmul.f32 %v6131_v6, %v1448_v28  ;;  %v1615_v28 = vld [vmem:[#allocation2 + $0x11] sm:$0xff]  ;;  %v1117_v45 = vpack.c.bf16 %v1111_v33, %v1110_v27  ;;  %v1250_v33 = vadd.f32 %v1240_v8, %v5859_v29 }
 0x111   : > { %v1635_v17 = vmul.f32 %v1615_v28, %v5854_v19 }
 0x112   : > { %v1518_v52 = vpack.c.bf16 %v1509_v3, %v1508_v51  ;;  %v5194_v3 = vld [vmem:[%s5354_s13 + $0xd0] sm:$0xff]  ;;  %v1052_v51 = vmax.f32 %v1042_v31, 0.0  ;;  %v1260_v34 = vmax.f32 %v1250_v33, 0.0  ;;  %v1427_v33 = vld [vmem:[#allocation2 + $0x58] sm:$0xff] }
 0x113   : > { %1990 = vmatpush.bf16.msra.mxu2 %v5194_v3  ;;  %v1645_v63 = vadd.f32 %v1635_v17, %v5859_v29  ;;  %v2491_v3 = vld [vmem:[%s7773_s0 + $0x3d] sm:$0xff] }
 0x114   : > { %4735 = vmatmul.msk.bf16.gmra.mxu2 %vm383_vm1, %v1116_v49  ;;  %4791 = vmatmul.msk.bf16.vlgmr.msrb.gmra.mxu0 %vm383_vm1, %v1518_v52  ;;  %v1636_v49 = vmul.f32 %v1616_v50, %v5854_v19  ;;  %v1318_v52 = vmul.f32 %v6105_v13, %v1052_v51  ;;  %v1112_v37 = vmul.f32 %v6049_v44, %v1052_v51 }
 0x115   : > { %2308 = vperm.xlu0 %5258, %v2250_v53   ;;  %v1317_v53 = vmul.f32 %v6107_v11, %v1051_v55  ;;  %v1320_v17 = vmul.f32 %v6129_v48, %v1260_v34 }
 0x116   : > { %2318 = vperm.xlu2 %5260, %v2252_v61   ;;  %2313 = vperm.xlu1 %5259, %v2251_v62   ;;  %v6154_v7 = vpop.permute.xlu2 %1682  ;;  %v5193_v61 = vld [vmem:[%s5354_s13 + $0xc8] sm:$0xff]  ;;  %v1043_v62 = vadd.f32 %v1033_v25, %v5859_v29  ;;  %v6216_v11 = vadd.f32 %v1636_v49, %v5859_v29 }
 0x117   : > { %v6157_v9 = vpop.permute.xlu0 %1470  ;;  %v6159_v0 = vpop.permute.xlu1 %1475  ;;  %1991 = vmatpush.bf16.msra.mxu2 %v5193_v61  ;;  %v1324_v5 = vpack.c.bf16 %v1318_v52, %v1317_v53  ;;  %v5199_v52 = vld [vmem:[%s5354_s13 + $0xf8] sm:$0xff] }
 0x118   : > { %v1510_v14 = vmul.f32 %v6157_v9, %v1450_v16  ;;  %v1511_v36 = vmul.f32 %v6159_v0, %v1451_v57  ;;  %v1053_v55 = vmax.f32 %v1043_v62, 0.0  ;;  %v2488_v16 = vld [vmem:[%s7773_s0 + $0x25] sm:$0xff]  ;;  %2196 = vmatpush.bf16.msra.mxu3 %v5199_v52 }
 0x119   : > { %v5192_v57 = vld [vmem:[%s5354_s13 + $0xc0] sm:$0xff] }
 0x11a   : > { %v1519_v47 = vpack.c.bf16 %v1511_v36, %v1510_v14  ;;  %v1113_v36 = vmul.f32 %v6004_v30, %v1053_v55  ;;  %v1319_v62 = vmul.f32 %v6047_v40, %v1053_v55  ;;  %v2608_v40 = vld [vmem:[%s7773_s0 + $0xe] sm:$0xff]  ;;  %v2607_v55 = vld [vmem:[%s7773_s0 + $0x6] sm:$0xff] }
 0x11b   : > { %1992 = vmatpush.bf16.msra.mxu2 %v5192_v57 }
 0x11c   : > { %4764 = vmatmul.msk.bf16.gmra.mxu3 %vm383_vm1, %v1323_v12  ;;  %v2489_v12 = vld [vmem:[%s7773_s0 + $0x2d] sm:$0xff]  ;;  %v1118_v50 = vpack.c.bf16 %v1113_v36, %v1112_v37 }
 0x11d   : > { %2323 = vperm.xlu0 %5258, %v2253_v41   ;;  %v1452_v41 = vmax.f32 %v1442_v60, 0.0  ;;  %v1426_v37 = vld [vmem:[#allocation2 + $0x50] sm:$0xff] }
 0x11e   : > { %2333 = vperm.xlu2 %5260, %v2255_v46   ;;  %2328 = vperm.xlu1 %5259, %v2254_v2   ;;  %v6176_v22 = vpop.permute.xlu2 %1697  ;;  %v1655_v46 = vmax.f32 %v1645_v63, 0.0  ;;  %v1656_v2 = vmax.f32 %v6216_v11, 0.0  ;;  %v2614_v11 = vld [vmem:[%s7773_s0 + $0x3e] sm:$0xff] }
 0x11f   : > { %v6179_v39 = vpop.permute.xlu0 %1485  ;;  %v6181_v43 = vpop.permute.xlu1 %1490  ;;  %v1512_v27 = vmul.f32 %v6082_v58, %v1452_v41 }
 0x120   : > { %7797 = vst [vmem:[#allocation4_spill] sm:$0xff] %v6179_v39  ;;  %v1513_v14 = vmul.f32 %v6179_v39, %v1453_v15  ;;  %v1715_v4 = vmul.f32 %v6127_v42, %v1655_v46  ;;  %v2490_v42 = vld [vmem:[%s7773_s0 + $0x35] sm:$0xff]  ;;  %v2493_v15 = vld [vmem:[%s7773_s0 + $0x4d] sm:$0xff] }
 0x121   : > { %7798 = vst [vmem:[#allocation5_spill] sm:$0xff] %v6181_v43  ;;  %v5197_v46 = vld [vmem:[%s5354_s13 + $0xe8] sm:$0xff] }
 0x122   : > { %v1520_v25 = vpack.c.bf16 %v1513_v14, %v1512_v27  ;;  %v1620_v27 = vld [vmem:[#allocation2 + $0x39] sm:$0xff] }
 0x124   : > { %4736 = vmatmul.msk.bf16.gmra.mxu2 %vm383_vm1, %v1117_v45  ;;  %4792 = vmatmul.msk.bf16.gmra.mxu0 %vm383_vm1, %v1519_v47  ;;  %v1425_v45 = vld [vmem:[#allocation2 + $0x48] sm:$0xff] }
 0x125   : > { %2526 = vperm.xlu0 %5258, %v2484_v24   ;;  %v1618_v47 = vld [vmem:[#allocation2 + $0x29] sm:$0xff]  ;;  %v1434_v24 = vmul.f32 %v1424_v23, %v5854_v19  ;;  %v1435_v51 = vmul.f32 %v1425_v45, %v5854_v19  ;;  %v1437_v45 = vmul.f32 %v1427_v33, %v5854_v19 }
 0x126   : > { %2536 = vperm.xlu2 %5260, %v2486_v26   ;;  %2531 = vperm.xlu1 %5259, %v2485_v10   ;;  %v6205_v35 = vpop.permute.xlu2 %1712  ;;  %v1637_v26 = vmul.f32 %v1617_v56, %v5854_v19  ;;  %v2492_v10 = vld [vmem:[%s7773_s0 + $0x45] sm:$0xff]  ;;  %v1638_v20 = vmul.f32 %v1618_v47, %v5854_v19 }
 0x127   : > { %v6209_v18 = vpop.permute.xlu0 %1500  ;;  %v6213_v13 = vpop.permute.xlu1 %1505  ;;  %v1444_v49 = vadd.f32 %v1434_v24, %v5859_v29  ;;  %v1445_v32 = vadd.f32 %v1435_v51, %v5859_v29  ;;  %v5203_v51 = vld [vmem:[%s5354_s13 + $0x118] sm:$0xff] }
 0x128   : > { %7799 = vst [vmem:[#allocation6_spill] sm:$0xff] %v6209_v18  ;;  %v6261_v53 = vadd.f32 %v1637_v26, %v5859_v29  ;;  %v6272_v48 = vadd.f32 %v1638_v20, %v5859_v29  ;;  %v1640_v26 = vmul.f32 %v1620_v27, %v5854_v19  ;;  %v5211_v20 = vld [vmem:[%s5354_s13 + $0x38] sm:$0xff]  ;;  %2403 = vmatpush.bf16.msra.mxu0 %v5203_v51  ;;  %v1622_v27 = vld [vmem:[#allocation2 + $0x49] sm:$0xff] }
 0x129   : > { %7800 = vst [vmem:[#allocation7_spill] sm:$0xff] %v6213_v13  ;;  %v1454_v8 = vmax.f32 %v1444_v49, 0.0  ;;  %v1447_v49 = vadd.f32 %v1437_v45, %v5859_v29  ;;  %2763 = vmatpush.bf16.msra.mxu1 %v5211_v20 }
 0x12a   : > { %v1658_v57 = vmax.f32 %v6272_v48, 0.0  ;;  %v6404_v48 = vld [vmem:[%s7773_s0 + $0x1f] sm:$0xff] }
 0x12b   : > { %v1514_v41 = vmul.f32 %v6181_v43, %v1454_v8 }
 0x12c   : > { %4765 = vmatmul.msk.bf16.gmra.mxu3 %vm383_vm1, %v1324_v5  ;;  %v1325_v5 = vpack.c.bf16 %v1320_v17, %v1319_v62  ;;  %v1718_v56 = vmul.f32 %v6154_v7, %v1658_v57  ;;  %v2611_v7 = vld [vmem:[%s7773_s0 + $0x26] sm:$0xff] }
 0x12d   : > { %2541 = vperm.xlu0 %5258, %v2487_v1   ;;  %v1657_v1 = vmax.f32 %v6261_v53, 0.0  ;;  %v6325_v53 = vadd.f32 %v1640_v26, %v5859_v29 }
 0x12e   : > { %2551 = vperm.xlu2 %5260, %v2489_v12   ;;  %2546 = vperm.xlu1 %5259, %v2488_v16   ;;  %v5198_v12 = vld [vmem:[%s5354_s13 + $0xf0] sm:$0xff]  ;;  %v1455_v16 = vmax.f32 %v1445_v32, 0.0 }
 0x12f   : > { %v1673_v38 = vpop.permute.xlu0 %1672  ;;  %v1678_v28 = vpop.permute.xlu1 %1677  ;;  %2197 = vmatpush.bf16.msra.mxu3 %v5198_v12  ;;  %v2612_v12 = vld [vmem:[%s7773_s0 + $0x2e] sm:$0xff] }
 0x130   : > { %v1716_v31 = vmul.f32 %v1673_v38, %v1656_v2  ;;  %v6239_v44 = vpop.permute.xlu2 %1884  ;;  %v1717_v14 = vmul.f32 %v1678_v28, %v1657_v1  ;;  %v1515_v23 = vmul.f32 %v6103_v21, %v1455_v16  ;;  %v1619_v38 = vld [vmem:[#allocation2 + $0x31] sm:$0xff]  ;;  %v1436_v28 = vmul.f32 %v1426_v37, %v5854_v19 }
 0x131   : > { %v979_v54 = vpop.f32.mrf.mxu1 }
 0x132   : > { %v1725_v30 = vpack.c.bf16 %v1716_v31, %v1715_v4  ;;  %v1521_v24 = vpack.c.bf16 %v1515_v23, %v1514_v41  ;;  %v1446_v17 = vadd.f32 %v1436_v28, %v5859_v29  ;;  %v1660_v41 = vmax.f32 %v6325_v53, 0.0  ;;  %v1621_v28 = vld [vmem:[#allocation2 + $0x41] sm:$0xff] }
 0x133   : > { %2198 = vmatpush.bf16.msra.mxu3 %v5197_v46  ;;  %v1641_v51 = vmul.f32 %v1621_v28, %v5854_v19 }
 0x134   : > { %4737 = vmatmul.msk.bf16.gmra.mxu2 %vm383_vm1, %v1118_v50  ;;  %4793 = vmatmul.msk.bf16.gmra.mxu0 %vm383_vm1, %v1520_v25  ;;  %v1726_v25 = vpack.c.bf16 %v1718_v56, %v1717_v14 }
 0x135   : > { %4820 = vmatmul.msk.bf16.vlgmr.msrb.gmra.mxu1 %vm383_vm1, %v1725_v30  ;;  %2556 = vperm.xlu0 %5258, %v2490_v42   ;;  %v2609_v30 = vld [vmem:[%s7773_s0 + $0x16] sm:$0xff]  ;;  %v1639_v42 = vmul.f32 %v1619_v38, %v5854_v19 }
 0x136   : > { %2566 = vperm.xlu2 %5260, %v2492_v10   ;;  %2561 = vperm.xlu1 %5259, %v2491_v3   ;;  %v2610_v10 = vld [vmem:[%s7773_s0 + $0x1e] sm:$0xff] }
 0x137   : > { %v6263_v61 = vpop.permute.xlu0 %1687  ;;  %v5196_v3 = vld [vmem:[%s5354_s13 + $0xe0] sm:$0xff]  ;;  %v1649_v52 = vadd.f32 %v1639_v42, %v5859_v29 }
 0x138   : > { %v6267_v60 = vpop.permute.xlu2 %1899  ;;  %v6269_v63 = vpop.permute.xlu1 %1692  ;;  %2199 = vmatpush.bf16.msra.mxu3 %v5196_v3  ;;  %v2029_v42 = vld [vmem:[#allocation2 + $0x1a] sm:$0xff]  ;;  %v2616_v3 = vld [vmem:[%s7773_s0 + $0x4e] sm:$0xff] }
 0x139   : > { %v6301_v34 = vpop.f32.mrf.mxu1  ;;  %v1659_v16 = vmax.f32 %v1649_v52, 0.0  ;;  %v1720_v23 = vmul.f32 %v6269_v63, %v1660_v41  ;;  %v1642_v63 = vmul.f32 %v1622_v27, %v5854_v19 }
 0x13b   : > { %v1719_v14 = vmul.f32 %v6263_v61, %v1659_v16  ;;  %v2615_v61 = vld [vmem:[%s7773_s0 + $0x46] sm:$0xff]  ;;  %v6374_v52 = vadd.f32 %v1642_v63, %v5859_v29 }
 0x13c   : > { %4766 = vmatmul.msk.bf16.gmra.mxu3 %vm383_vm1, %v1325_v5  ;;  %v2031_v63 = vld [vmem:[#allocation2 + $0x2a] sm:$0xff] }
 0x13d   : > { %2571 = vperm.xlu0 %5258, %v2493_v15   ;;  %v1727_v26 = vpack.c.bf16 %v1720_v23, %v1719_v14 }
 0x13e   : > { %2654 = vperm.xlu2 %5260, %v2608_v40   ;;  %2649 = vperm.xlu1 %5259, %v2607_v55   ;;  %v1456_v40 = vmax.f32 %v1446_v17, 0.0  ;;  %v1457_v55 = vmax.f32 %v1447_v49, 0.0  ;;  %v2049_v17 = vmul.f32 %v2029_v42, %v5854_v19 }
 0x13f   : > { %v6289_v36 = vpop.permute.xlu0 %1702 }
 0x140   : > { %v6292_v4 = vpop.permute.xlu2 %1914  ;;  %v6294_v31 = vpop.permute.xlu1 %1707  ;;  %v1516_v37 = vmul.f32 %v6209_v18, %v1456_v40  ;;  %v1517_v33 = vmul.f32 %v6213_v13, %v1457_v55 }
 0x141   : > { %v906_v50 = vpop.f32.mrf.mxu0 }
 0x142   : > { %v6303_v47 = vadd.f32 %v979_v54, %v906_v50 }
 0x144   : > { %4794 = vmatmul.msk.bf16.gmra.mxu0 %vm383_vm1, %v1521_v24  ;;  %v994_v24 = vpop.f32.mrf.mxu3 }
 0x145   : > { %4821 = vmatmul.msk.bf16.gmra.mxu1 %vm383_vm1, %v1726_v25  ;;  %2659 = vperm.xlu0 %5258, %v2609_v30   ;;  %v2030_v30 = vld [vmem:[#allocation2 + $0x22] sm:$0xff]  ;;  %v1522_v25 = vpack.c.bf16 %v1517_v33, %v1516_v37  ;;  %v6398_v37 = vld [vmem:[%s7773_s0 + $0xf] sm:$0xff]  ;;  %v7781_v33 = vmax.f32 %v6374_v52, 0.0 }
 0x146   : > { %2669 = vperm.xlu2 %5260, %v2611_v7   ;;  %2664 = vperm.xlu1 %5259, %v2610_v10   ;;  %v2876_v10 = vld [vmem:[%s7773_s0 + $0x7] sm:$0xff]  ;;  %v2050_v20 = vmul.f32 %v2030_v30, %v5854_v19 }
 0x147   : > { %v1875_v54 = vpop.permute.xlu0 %1874 }
 0x148   : > { %v1922_v62 = vmul.f32 %v1875_v54, %v1656_v2  ;;  %v6329_v32 = vpop.permute.xlu2 %2086  ;;  %v1880_v5 = vpop.permute.xlu1 %1879  ;;  %v2613_v2 = vld [vmem:[%s7773_s0 + $0x36] sm:$0xff] }
 0x149   : > { %v1923_v8 = vmul.f32 %v1880_v5, %v1657_v1  ;;  %v6331_v15 = vpop.f32.mrf.mxu0  ;;  %v984_v1 = vpop.f32.mrf.mxu1 }
 0x14b   : > { %v1932_v46 = vpack.c.bf16 %v1923_v8, %v1922_v62  ;;  %v5202_v8 = vld [vmem:[%s5354_s13 + $0x110] sm:$0xff] }
 0x14c   : > { %2404 = vmatpush.bf16.msra.mxu0 %v5202_v8  ;;  %v6412_v23 = vpop.f32.mrf.mxu3 }
 0x14d   : > { %4849 = vmatmul.msk.bf16.vlgmr.msra.gmra.mxu2 %vm383_vm1, %v1932_v46  ;;  %2674 = vperm.xlu0 %5258, %v2612_v12   ;;  %v6386_v46 = vadd.f32 %v1641_v51, %v5859_v29  ;;  %7801 = vst [vmem:[#allocation8_spill] sm:$0xff] %v6412_v23  ;;  %v5238_v23 = vld [vmem:[%s5354_s13 + $0x110] sm:$0xff] }
 0x14e   : > { %2684 = vperm.xlu2 %5260, %v2614_v11   ;;  %2679 = vperm.xlu1 %5259, %v2613_v2   ;;  %v1924_v11 = vmul.f32 %v6239_v44, %v1658_v57  ;;  %v6409_v44 = vld [vmem:[%s7773_s0 + $0x17] sm:$0xff] }
 0x14f   : > { %v1890_v38 = vpop.permute.xlu0 %1889  ;;  %v5210_v57 = vld [vmem:[%s5354_s13 + $0x30] sm:$0xff] }
 0x150   : > { %v6350_v56 = vpop.permute.xlu2 %2101  ;;  %v6352_v50 = vpop.permute.xlu1 %1894  ;;  %v1925_v54 = vmul.f32 %v1890_v38, %v1659_v16  ;;  %v2060_v16 = vadd.f32 %v2050_v20, %v5859_v29  ;;  %v1661_v38 = vmax.f32 %v6386_v46, 0.0  ;;  %2764 = vmatpush.bf16.msra.mxu1 %v5210_v57  ;;  %v6450_v57 = vld [vmem:[%s7773_s0 + $0x2f] sm:$0xff] }
 0x151   : > { %v911_v45 = vpop.f32.mrf.mxu0  ;;  %v6371_v49 = vpop.f32.mrf.mxu1 }
 0x152   : > { %v6354_v7 = vadd.f32 %v984_v1, %v911_v45  ;;  %v2059_v1 = vadd.f32 %v2049_v17, %v5859_v29  ;;  %v1933_v14 = vpack.c.bf16 %v1925_v54, %v1924_v11  ;;  %v2070_v27 = vmax.f32 %v2060_v16, 0.0  ;;  %v1624_v54 = vld [vmem:[#allocation2 + $0x59] sm:$0xff]  ;;  %v6437_v16 = vld [vmem:[%s7773_s0 + $0x27] sm:$0xff] }
 0x153   : > { %v1722_v45 = vmul.f32 %v6289_v36, %v7781_v33  ;;  %v1927_v53 = vmul.f32 %v6267_v60, %v1661_v38 }
 0x154   : > { %4795 = vmatmul.msk.bf16.gmra.mxu0 %vm383_vm1, %v1522_v25  ;;  %v2069_v28 = vmax.f32 %v2059_v1, 0.0  ;;  %v2130_v51 = vmul.f32 %v6329_v32, %v2070_v27  ;;  %v2051_v32 = vmul.f32 %v2031_v63, %v5854_v19  ;;  %v1644_v27 = vmul.f32 %v1624_v54, %v5854_v19 }
 0x155   : > { %4822 = vmatmul.msk.bf16.gmra.mxu1 %vm383_vm1, %v1727_v26  ;;  %2689 = vperm.xlu0 %5258, %v2615_v61   ;;  %v5201_v61 = vld [vmem:[%s5354_s13 + $0x108] sm:$0xff] }
 0x156   : > { %2918 = vperm.xlu2 %5260, %v2876_v10   ;;  %2694 = vperm.xlu1 %5259, %v2616_v3   ;;  %v2032_v10 = vld [vmem:[#allocation2 + $0x32] sm:$0xff]  ;;  %v1721_v3 = vmul.f32 %v6176_v22, %v1661_v38  ;;  %v5209_v38 = vld [vmem:[%s5354_s13 + $0x28] sm:$0xff] }
 0x157   : > { %v6376_v62 = vpop.permute.xlu0 %1904  ;;  %v921_v5 = vpop.f32.mrf.mxu2  ;;  %2405 = vmatpush.bf16.msra.mxu0 %v5201_v61  ;;  %v6442_v22 = vld [vmem:[%s7773_s0 + $0x37] sm:$0xff]  ;;  %v2052_v1 = vmul.f32 %v2032_v10, %v5854_v19  ;;  %2765 = vmatpush.bf16.msra.mxu1 %v5209_v38 }
 0x158   : > { %v6379_v40 = vpop.permute.xlu2 %2116  ;;  %v6381_v55 = vpop.permute.xlu1 %1909  ;;  %v6383_v12 = vadd.f32 %v994_v24, %v921_v5  ;;  %v1623_v24 = vld [vmem:[#allocation2 + $0x51] sm:$0xff]  ;;  %v1728_v46 = vpack.c.bf16 %v1722_v45, %v1721_v3 }
 0x159   : > { %v6392_v2 = vpop.f32.mrf.mxu0  ;;  %v989_v20 = vpop.f32.mrf.mxu1  ;;  %v1643_v5 = vmul.f32 %v1623_v24, %v5854_v19  ;;  %v1926_v24 = vmul.f32 %v6352_v50, %v1660_v41  ;;  %v2062_v63 = vadd.f32 %v2052_v1, %v5859_v29 }
 0x15a   : > { %v999_v45 = vpop.f32.mrf.mxu3 }
 0x15b   : > { %v1934_v50 = vpack.c.bf16 %v1927_v53, %v1926_v24  ;;  %v2072_v54 = vmax.f32 %v2062_v63, 0.0  ;;  %v2034_v24 = vld [vmem:[#allocation2 + $0x42] sm:$0xff] }
 0x15d   : > { %4850 = vmatmul.msk.bf16.gmra.mxu2 %vm383_vm1, %v1933_v14  ;;  %2923 = vperm.xlu0 %5258, %v6398_v37   ;;  %v5200_v14 = vld [vmem:[%s5354_s13 + $0x100] sm:$0xff] }
 0x15e   : > { %2933 = vperm.xlu2 %5260, %v6404_v48   ;;  %2928 = vperm.xlu1 %5259, %v6409_v44  }
 0x15f   : > { %v6422_v30 = vpop.permute.xlu0 %1919  ;;  %v6424_v25 = vpop.f32.mrf.mxu2  ;;  %2406 = vmatpush.bf16.msra.mxu0 %v5200_v14 }
 0x160   : > { %v6427_v42 = vpop.permute.xlu2 %2288  ;;  %v2082_v26 = vpop.permute.xlu1 %2081 }
 0x161   : > { %v2129_v17 = vmul.f32 %v2082_v26, %v2069_v28  ;;  %v916_v36 = vpop.f32.mrf.mxu0  ;;  %v1653_v28 = vadd.f32 %v1643_v5, %v5859_v29  ;;  %v2061_v26 = vadd.f32 %v2051_v32, %v5859_v29  ;;  %v6475_v5 = vld [vmem:[%s7773_s0 + $0x3f] sm:$0xff] }
 0x162   : > { %v6432_v8 = vadd.f32 %v989_v20, %v916_v36 }
 0x163   : > { %v2139_v11 = vpack.c.bf16 %v2130_v51, %v2129_v17  ;;  %v6469_v17 = vadd.f32 %v1644_v27, %v5859_v29  ;;  %v1663_v41 = vmax.f32 %v1653_v28, 0.0  ;;  %v2071_v36 = vmax.f32 %v2061_v26, 0.0 }
 0x165   : > { %4823 = vmatmul.msk.bf16.gmra.mxu1 %vm383_vm1, %v1728_v46  ;;  %4878 = vmatmul.msk.bf16.vlgmr.msra.gmra.mxu3 %vm383_vm1, %v2139_v11  ;;  %v6480_v46 = vld [vmem:[%s7773_s0 + $0x4f] sm:$0xff]  ;;  %v6485_v11 = vld [vmem:[%s7773_s0 + $0x47] sm:$0xff]  ;;  %v1664_v60 = vmax.f32 %v6469_v17, 0.0  ;;  %v1723_v32 = vmul.f32 %v6294_v31, %v1663_v41  ;;  %v2236_v31 = vld [vmem:[#allocation2 + $0x1b] sm:$0xff] }
 0x166   : > { %2938 = vperm.xlu0 %5258, %v6437_v16   ;;  %2948 = vperm.xlu2 %5260, %v6442_v22   ;;  %v2256_v38 = vmul.f32 %v2236_v31, %v5854_v19  ;;  %v1831_v31 = vld [vmem:[#allocation2 + $0x61] sm:$0xff] }
 0x167   : > { %2943 = vperm.xlu1 %5259, %v6450_v57   ;;  %v2092_v61 = vpop.permute.xlu0 %2091  ;;  %v926_v10 = vpop.f32.mrf.mxu2 }
 0x168   : > { %v6464_v3 = vpop.permute.xlu2 %2303  ;;  %v2097_v51 = vpop.permute.xlu1 %2096  ;;  %v6466_v20 = vadd.f32 %v999_v45, %v926_v10  ;;  %v2131_v1 = vmul.f32 %v2092_v61, %v2071_v36  ;;  %v5207_v45 = vld [vmem:[%s5354_s13 + $0x18] sm:$0xff]  ;;  %v1724_v10 = vmul.f32 %v6205_v35, %v1664_v60  ;;  %v2237_v61 = vld [vmem:[#allocation2 + $0x23] sm:$0xff]  ;;  %v2054_v36 = vmul.f32 %v2034_v24, %v5854_v19 }
 0x169   : > { %v2132_v14 = vmul.f32 %v2097_v51, %v2072_v54  ;;  %2836 = vmatpush.bf16.msrb.mxu2 %v5207_v45  ;;  %v2033_v51 = vld [vmem:[#allocation2 + $0x3a] sm:$0xff]  ;;  %v5206_v54 = vld [vmem:[%s5354_s13 + $0x10] sm:$0xff]  ;;  %v2257_v33 = vmul.f32 %v2237_v61, %v5854_v19  ;;  %v7803_v35 = vmax.f32 %v6374_v52, 0.0 }
 0x16a   : > { %v1729_v53 = vpack.c.bf16 %v1724_v10, %v1723_v32  ;;  %v2053_v13 = vmul.f32 %v2033_v51, %v5854_v19  ;;  %v5205_v10 = vld [vmem:[%s5354_s13 + $0x8] sm:$0xff]  ;;  %v1851_v51 = vmul.f32 %v1831_v31, %v5854_v19 }
 0x16b   : > { %v1928_v32 = vmul.f32 %v6376_v62, %v7803_v35 }
 0x16d   : > { %4851 = vmatmul.msk.bf16.gmra.mxu2 %vm383_vm1, %v1934_v50  ;;  %v2140_v50 = vpack.c.bf16 %v2132_v14, %v2131_v1  ;;  %v1929_v1 = vmul.f32 %v6381_v55, %v1663_v41  ;;  %v2064_v14 = vadd.f32 %v2054_v36, %v5859_v29  ;;  %v2267_v55 = vadd.f32 %v2257_v33, %v5859_v29 }
 0x16e   : > { %2953 = vperm.xlu0 %5258, %v6475_v5   ;;  %2963 = vperm.xlu2 %5260, %v6480_v46   ;;  %v2063_v41 = vadd.f32 %v2053_v13, %v5859_v29  ;;  %v1861_v13 = vadd.f32 %v1851_v51, %v5859_v29 }
 0x16f   : > { %2958 = vperm.xlu1 %5259, %v6485_v11   ;;  %v2107_v27 = vpop.permute.xlu0 %2106  ;;  %v6494_v28 = vpop.f32.mrf.mxu2  ;;  %2837 = vmatpush.bf16.msrb.mxu2 %v5206_v54  ;;  %v1935_v61 = vpack.c.bf16 %v1929_v1, %v1928_v32  ;;  %v2277_v54 = vmax.f32 %v2267_v55, 0.0  ;;  %v2238_v32 = vld [vmem:[#allocation2 + $0x2b] sm:$0xff] }
 0x170   : > { %7802 = vst [vmem:[#allocation9_spill] sm:$0xff] %v6494_v28  ;;  %v6497_v26 = vpop.permute.xlu2 %2318  ;;  %v6499_v63 = vpop.permute.xlu1 %2111  ;;  %v2258_v55 = vmul.f32 %v2238_v32, %v5854_v19 }
 0x173   : > { %2838 = vmatpush.bf16.msrb.mxu2 %v5205_v10 }
 0x175   : > { %4824 = vmatmul.msk.bf16.gmra.mxu1 %vm383_vm1, %v1729_v53  ;;  %4879 = vmatmul.msk.bf16.gmra.mxu3 %vm383_vm1, %v2140_v50  ;;  %v2074_v53 = vmax.f32 %v2064_v14, 0.0  ;;  %v5204_v50 = vld [vmem:[%s5354_s13] sm:$0xff] }
 0x176   : > { %3124 = vperm.xlu0 %5258, %v6398_v37   ;;  %3134 = vperm.xlu2 %5260, %v6404_v48   ;;  %v2266_v37 = vadd.f32 %v2256_v38, %v5859_v29  ;;  %v2073_v38 = vmax.f32 %v2063_v41, 0.0 }
 0x177   : > { %3129 = vperm.xlu1 %5259, %v6409_v44   ;;  %v6519_v45 = vpop.permute.xlu0 %2121  ;;  %v1176_v24 = vpop.f32.mrf.mxu2  ;;  %v2134_v33 = vmul.f32 %v2107_v27, %v2074_v53  ;;  %2839 = vmatpush.bf16.msrb.mxu2 %v5204_v50  ;;  %v3288_v53 = vld [vmem:[%s7773_s0 + $0x10] sm:$0xff]  ;;  %v5208_v50 = vld [vmem:[%s5354_s13 + $0x20] sm:$0xff] }
 0x178   : > { %v6523_v48 = vpop.permute.xlu2 %2333  ;;  %v6525_v52 = vpop.permute.xlu1 %2126  ;;  %v1201_v62 = vadd.f32 %v1176_v24, %v6303_v47  ;;  %v2276_v36 = vmax.f32 %v2266_v37, 0.0  ;;  %v982_v47 = vadd.f32 %v6301_v34, %v6331_v15  ;;  %v2035_v24 = vld [vmem:[#allocation2 + $0x4a] sm:$0xff]  ;;  %v2036_v37 = vld [vmem:[#allocation2 + $0x52] sm:$0xff]  ;;  %2766 = vmatpush.bf16.msra.mxu1 %v5208_v50 }
 0x179   : > { %v6530_v44 = vpop.f32.mrf.mxu3  ;;  %v2055_v51 = vmul.f32 %v2035_v24, %v5854_v19  ;;  %v6578_v24 = vpop.f32.mrf.mxu0 }
 0x17a   : > { %7804 = vst [vmem:[#allocation10_spill] sm:$0xff] %v6530_v44  ;;  %v2336_v14 = vmul.f32 %v6427_v42, %v2276_v36 }
 0x17d   : > { %4852 = vmatmul.msk.bf16.gmra.mxu2 %vm383_vm1, %v1935_v61  ;;  %v1871_v61 = vmax.f32 %v1861_v13, 0.0 }
 0x17e   : > { %3139 = vperm.xlu0 %5258, %v6437_v16   ;;  %3149 = vperm.xlu2 %5260, %v6442_v22   ;;  %v2133_v16 = vmul.f32 %v6350_v56, %v2073_v38  ;;  %v2239_v22 = vld [vmem:[#allocation2 + $0x33] sm:$0xff] }
 0x17f   : > { %3144 = vperm.xlu1 %5259, %v6450_v57   ;;  %v2294_v35 = vpop.permute.xlu0 %2293  ;;  %v1178_v1 = vpop.f32.mrf.mxu2  ;;  %v2259_v36 = vmul.f32 %v2239_v22, %v5854_v19  ;;  %v3289_v56 = vld [vmem:[%s7773_s0 + $0x18] sm:$0xff]  ;;  %v1931_v38 = vmul.f32 %v6422_v30, %v1871_v61 }
 0x180   : > { %v2337_v10 = vmul.f32 %v2294_v35, %v2277_v54  ;;  %v6542_v31 = vpop.permute.xlu2 %2536  ;;  %v2299_v34 = vpop.permute.xlu1 %2298  ;;  %v6544_v15 = vadd.f32 %v1178_v1, %v982_v47  ;;  %v2141_v42 = vpack.c.bf16 %v2134_v33, %v2133_v16  ;;  %v2268_v54 = vadd.f32 %v2258_v55, %v5859_v29  ;;  %v2474_v16 = vld [vmem:[#allocation2 + $0x7d] sm:$0xff] }
 0x181   : > { %v1383_v27 = vpop.f32.mrf.mxu3  ;;  %v2065_v47 = vadd.f32 %v2055_v51, %v5859_v29  ;;  %v2269_v35 = vadd.f32 %v2259_v36, %v5859_v29  ;;  %v3290_v55 = vld [vmem:[%s7773_s0 + $0x20] sm:$0xff]  ;;  %v2494_v61 = vmul.f32 %v2474_v16, %v5854_v19 }
 0x182   : > { %v2346_v57 = vpack.c.bf16 %v2337_v10, %v2336_v14  ;;  %v6548_v41 = vadd.f32 %v1383_v27, %v1201_v62  ;;  %v2056_v62 = vmul.f32 %v2036_v37, %v5854_v19  ;;  %v2278_v22 = vmax.f32 %v2268_v54, 0.0  ;;  %v2475_v27 = vld [vmem:[#allocation2 + $0x85] sm:$0xff]  ;;  %v2240_v36 = vld [vmem:[#allocation2 + $0x3b] sm:$0xff] }
 0x183   : > { %v2279_v17 = vmax.f32 %v2269_v35, 0.0  ;;  %v2495_v51 = vmul.f32 %v2475_v27, %v5854_v19  ;;  %v2038_v35 = vld [vmem:[#allocation2 + $0x62] sm:$0xff] }
 0x184   : > { %4907 = vmatmul.msk.bf16.vlgmr.msra.gmra.mxu0 %vm383_vm1, %v2346_v57  ;;  %v2066_v30 = vadd.f32 %v2056_v62, %v5859_v29  ;;  %v2075_v57 = vmax.f32 %v2065_v47, 0.0  ;;  %v2338_v50 = vmul.f32 %v2299_v34, %v2278_v22  ;;  %v2241_v62 = vld [vmem:[#allocation2 + $0x43] sm:$0xff]  ;;  %v2260_v34 = vmul.f32 %v2240_v36, %v5854_v19 }
 0x185   : > { %4880 = vmatmul.msk.bf16.gmra.mxu3 %vm383_vm1, %v2141_v42  ;;  %v2339_v47 = vmul.f32 %v6464_v3, %v2279_v17  ;;  %v2505_v27 = vadd.f32 %v2495_v51, %v5859_v29  ;;  %v3293_v17 = vld [vmem:[%s7773_s0 + $0x38] sm:$0xff] }
 0x186   : > { %3330 = vperm.xlu0 %5258, %v3288_v53   ;;  %3154 = vperm.xlu2 %5260, %v6475_v5   ;;  %v1930_v5 = vmul.f32 %v6292_v4, %v1664_v60  ;;  %v5215_v4 = vld [vmem:[%s5354_s13 + $0x58] sm:$0xff]  ;;  %v3291_v60 = vld [vmem:[%s7773_s0 + $0x28] sm:$0xff]  ;;  %v2076_v42 = vmax.f32 %v2066_v30, 0.0  ;;  %v987_v53 = vadd.f32 %v6371_v49, %v6392_v2  ;;  %v2504_v2 = vadd.f32 %v2494_v61, %v5859_v29 }
 0x187   : > { %3335 = vperm.xlu1 %5259, %v3289_v56   ;;  %v6566_v13 = vpop.permute.xlu0 %2308  ;;  %v1181_v33 = vpop.f32.mrf.mxu2  ;;  %3032 = vmatpush.bf16.msrb.mxu3 %v5215_v4  ;;  %v2135_v56 = vmul.f32 %v6499_v63, %v2075_v57  ;;  %v2347_v3 = vpack.c.bf16 %v2339_v47, %v2338_v50  ;;  %v5219_v61 = vld [vmem:[%s5354_s13 + $0x78] sm:$0xff]  ;;  %v2270_v51 = vadd.f32 %v2260_v34, %v5859_v29 }
 0x188   : > { %v6569_v32 = vpop.permute.xlu2 %2551  ;;  %v6571_v1 = vpop.permute.xlu1 %2313  ;;  %v1203_v14 = vadd.f32 %v1181_v33, %v6354_v7  ;;  %v1936_v37 = vpack.c.bf16 %v1931_v38, %v1930_v5  ;;  %v3292_v7 = vld [vmem:[%s7773_s0 + $0x30] sm:$0xff]  ;;  %v2037_v33 = vld [vmem:[#allocation2 + $0x5a] sm:$0xff]  ;;  %v2136_v63 = vmul.f32 %v6379_v40, %v2076_v42  ;;  %v2058_v40 = vmul.f32 %v2038_v35, %v5854_v19  ;;  %3238 = vmatpush.bf16.msrb.mxu0 %v5219_v61 }
 0x189   : > { %v6580_v10 = vpop.f32.mrf.mxu3  ;;  %v2057_v4 = vmul.f32 %v2037_v33, %v5854_v19  ;;  %v5223_v42 = vld [vmem:[%s5354_s13 + $0x98] sm:$0xff] }
 0x18a   : > { %v2068_v36 = vadd.f32 %v2058_v40, %v5859_v29  ;;  %3444 = vmatpush.bf16.msrb.mxu1 %v5223_v42 }
 0x18b   : > { %v2067_v50 = vadd.f32 %v2057_v4, %v5859_v29  ;;  %v3295_v4 = vld [vmem:[%s7773_s0 + $0x48] sm:$0xff] }
 0x18d   : > { %4853 = vmatmul.msk.bf16.gmra.mxu2 %vm383_vm1, %v1936_v37  ;;  %v2261_v37 = vmul.f32 %v2241_v62, %v5854_v19 }
 0x18e   : > { %3340 = vperm.xlu0 %5258, %v3290_v55   ;;  %3350 = vperm.xlu2 %5260, %v3292_v7   ;;  %v2142_v7 = vpack.c.bf16 %v2136_v63, %v2135_v56 }
 0x18f   : > { %3345 = vperm.xlu1 %5259, %v3291_v60   ;;  %v6598_v54 = vpop.permute.xlu0 %2323  ;;  %v1183_v38 = vpop.f32.mrf.mxu2  ;;  %v3294_v60 = vld [vmem:[%s7773_s0 + $0x40] sm:$0xff] }
 0x190   : > { %v6601_v5 = vpop.permute.xlu2 %2566  ;;  %v6603_v30 = vpop.permute.xlu1 %2328  ;;  %v6605_v49 = vadd.f32 %v1183_v38, %v987_v53  ;;  %v2271_v53 = vadd.f32 %v2261_v37, %v5859_v29  ;;  %v2077_v37 = vmax.f32 %v2067_v50, 0.0 }
 0x191   : > { %v1388_v16 = vpop.f32.mrf.mxu3  ;;  %v1580_v22 = vpop.f32.mrf.mxu0 }
 0x192   : > { %v6612_v57 = vadd.f32 %v1388_v16, %v1203_v14  ;;  %v6615_v55 = vadd.f32 %v1580_v22, %v6548_v41  ;;  %v2514_v14 = vmax.f32 %v2504_v2, 0.0  ;;  %v2515_v41 = vmax.f32 %v2505_v27, 0.0  ;;  %v2477_v2 = vld [vmem:[#allocation2 + $0x95] sm:$0xff]  ;;  %v2476_v22 = vld [vmem:[#allocation2 + $0x8d] sm:$0xff] }
 0x193   : > { %v2280_v27 = vmax.f32 %v2270_v51, 0.0  ;;  %v2497_v40 = vmul.f32 %v2477_v2, %v5854_v19  ;;  %v2137_v42 = vmul.f32 %v6519_v45, %v2077_v37 }
 0x194   : > { %4908 = vmatmul.msk.bf16.gmra.mxu0 %vm383_vm1, %v2347_v3  ;;  %v2281_v3 = vmax.f32 %v2271_v53, 0.0  ;;  %v2243_v53 = vld [vmem:[#allocation2 + $0x53] sm:$0xff] }
 0x195   : > { %4881 = vmatmul.msk.bf16.gmra.mxu3 %vm383_vm1, %v2142_v7 }
 0x196   : > { %3355 = vperm.xlu0 %5258, %v3293_v17   ;;  %3360 = vperm.xlu2 %5260, %v3294_v60   ;;  %v991_v17 = vpop.f32.mrf.mxu1  ;;  %v2496_v60 = vmul.f32 %v2476_v22, %v5854_v19 }
 0x197   : > { %3159 = vperm.xlu1 %5259, %v6485_v11   ;;  %v2527_v56 = vpop.permute.xlu0 %2526  ;;  %v1186_v62 = vpop.f32.mrf.mxu2  ;;  %v2078_v11 = vmax.f32 %v2068_v36, 0.0  ;;  %v992_v61 = vadd.f32 %v991_v17, %v6578_v24  ;;  %v2507_v36 = vadd.f32 %v2497_v40, %v5859_v29 }
 0x198   : > { %v2574_v38 = vmul.f32 %v2527_v56, %v2514_v14  ;;  %v6634_v47 = vpop.permute.xlu2 %2654  ;;  %v2532_v33 = vpop.permute.xlu1 %2531  ;;  %v1205_v35 = vadd.f32 %v1186_v62, %v6432_v8  ;;  %v3091_v8 = vld [vmem:[%s7773_s0 + $0x57] sm:$0xff]  ;;  %v2340_v14 = vmul.f32 %v6566_v13, %v2280_v27 }
 0x199   : > { %v2575_v63 = vmul.f32 %v2532_v33, %v2515_v41  ;;  %v6637_v34 = vpop.f32.mrf.mxu3  ;;  %v6639_v16 = vpop.f32.mrf.mxu0  ;;  %v2341_v41 = vmul.f32 %v6571_v1, %v2281_v3  ;;  %v2138_v51 = vmul.f32 %v6525_v52, %v2078_v11  ;;  %v5214_v62 = vld [vmem:[%s5354_s13 + $0x50] sm:$0xff]  ;;  %v2506_v33 = vadd.f32 %v2496_v60, %v5859_v29  ;;  %v2597_v3 = vld [vmem:[#allocation2 + $0x7e] sm:$0xff] }
 0x19a   : > { %v2242_v1 = vld [vmem:[#allocation2 + $0x4b] sm:$0xff]  ;;  %3033 = vmatpush.bf16.msrb.mxu3 %v5214_v62  ;;  %v2517_v11 = vmax.f32 %v2507_v36, 0.0  ;;  %v2617_v17 = vmul.f32 %v2597_v3, %v5854_v19 }
 0x19b   : > { %v2584_v7 = vpack.c.bf16 %v2575_v63, %v2574_v38  ;;  %v2348_v52 = vpack.c.bf16 %v2341_v41, %v2340_v14  ;;  %v2598_v63 = vld [vmem:[#allocation2 + $0x86] sm:$0xff]  ;;  %v2143_v37 = vpack.c.bf16 %v2138_v51, %v2137_v42  ;;  %v5218_v42 = vld [vmem:[%s5354_s13 + $0x70] sm:$0xff] }
 0x19c   : > { %v2618_v40 = vmul.f32 %v2598_v63, %v5854_v19  ;;  %3239 = vmatpush.bf16.msrb.mxu0 %v5218_v42 }
 0x19d   : > { %4957 = vmatmul.msk.bf16.vlgmr.msrb.gmra.mxu2 %vm383_vm1, %v2584_v7  ;;  %v3296_v7 = vld [vmem:[%s7773_s0 + $0x50] sm:$0xff] }
 0x19e   : > { %3365 = vperm.xlu0 %5258, %v3295_v4   ;;  %3169 = vperm.xlu2 %5260, %v3091_v8   ;;  %v3494_v4 = vld [vmem:[%s7773_s0 + $0x11] sm:$0xff]  ;;  %v2262_v8 = vmul.f32 %v2242_v1, %v5854_v19 }
 0x19f   : > { %3164 = vperm.xlu1 %5259, %v6480_v46   ;;  %v2542_v50 = vpop.permute.xlu0 %2541  ;;  %v1188_v56 = vpop.f32.mrf.mxu2  ;;  %v2263_v46 = vmul.f32 %v2243_v53, %v5854_v19  ;;  %v2478_v53 = vld [vmem:[#allocation2 + $0x9d] sm:$0xff] }
 0x1a0   : > { %v6658_v38 = vpop.permute.xlu2 %2669  ;;  %v6660_v24 = vpop.permute.xlu1 %2546  ;;  %v6662_v13 = vadd.f32 %v1188_v56, %v992_v61  ;;  %v2577_v61 = vmul.f32 %v2542_v50, %v2517_v11  ;;  %v2272_v51 = vadd.f32 %v2262_v8, %v5859_v29  ;;  %v2498_v3 = vmul.f32 %v2478_v53, %v5854_v19  ;;  %v2599_v53 = vld [vmem:[#allocation2 + $0x8e] sm:$0xff] }
 0x1a1   : > { %v1393_v45 = vpop.f32.mrf.mxu3  ;;  %v1585_v2 = vpop.f32.mrf.mxu0  ;;  %v2273_v60 = vadd.f32 %v2263_v46, %v5859_v29 }
 0x1a2   : > { %v6666_v22 = vadd.f32 %v1393_v45, %v1205_v35  ;;  %v6669_v27 = vadd.f32 %v1585_v2, %v6612_v57  ;;  %v3297_v57 = vld [vmem:[%s7773_s0 + $0x58] sm:$0xff]  ;;  %v2516_v35 = vmax.f32 %v2506_v33, 0.0  ;;  %v2628_v33 = vadd.f32 %v2618_v40, %v5859_v29 }
 0x1a3   : > { %v2627_v2 = vadd.f32 %v2617_v17, %v5859_v29  ;;  %v2283_v46 = vmax.f32 %v2273_v60, 0.0  ;;  %v2282_v11 = vmax.f32 %v2272_v51, 0.0  ;;  %v2508_v40 = vadd.f32 %v2498_v3, %v5859_v29 }
 0x1a4   : > { %4909 = vmatmul.msk.bf16.gmra.mxu0 %vm383_vm1, %v2348_v52  ;;  %v2576_v1 = vmul.f32 %v6542_v31, %v2516_v35  ;;  %v2479_v52 = vld [vmem:[#allocation2 + $0xa5] sm:$0xff]  ;;  %v2244_v35 = vld [vmem:[#allocation2 + $0x5b] sm:$0xff] }
 0x1a5   : > { %4882 = vmatmul.msk.bf16.gmra.mxu3 %vm383_vm1, %v2143_v37  ;;  %v6709_v31 = vld [vmem:[%s7773_s0 + $0x21] sm:$0xff]  ;;  %v5222_v37 = vld [vmem:[%s5354_s13 + $0x90] sm:$0xff]  ;;  %v2637_v8 = vmax.f32 %v2627_v2, 0.0 }
 0x1a6   : > { %3370 = vperm.xlu0 %5258, %v3296_v7   ;;  %3536 = vperm.xlu2 %5260, %v3494_v4   ;;  %v2585_v63 = vpack.c.bf16 %v2577_v61, %v2576_v1  ;;  %v2499_v7 = vmul.f32 %v2479_v52, %v5854_v19  ;;  %v2638_v4 = vmax.f32 %v2628_v33, 0.0  ;;  %v5213_v61 = vld [vmem:[%s5354_s13 + $0x48] sm:$0xff]  ;;  %v2600_v1 = vld [vmem:[#allocation2 + $0x96] sm:$0xff] }
 0x1a7   : > { %3375 = vperm.xlu1 %5259, %v3297_v57   ;;  %v6686_v14 = vpop.permute.xlu0 %2556  ;;  %v1191_v41 = vpop.f32.mrf.mxu2  ;;  %3445 = vmatpush.bf16.msrb.mxu1 %v5222_v37  ;;  %v2343_v57 = vmul.f32 %v6598_v54, %v2283_v46  ;;  %v2245_v54 = vld [vmem:[#allocation2 + $0x63] sm:$0xff] }
 0x1a8   : > { %v6690_v36 = vpop.permute.xlu2 %2684  ;;  %v6692_v56 = vpop.permute.xlu1 %2561  ;;  %v1207_v62 = vadd.f32 %v1191_v41, %v6383_v12  ;;  %v3495_v12 = vld [vmem:[%s7773_s0 + $0x19] sm:$0xff]  ;;  %v2342_v41 = vmul.f32 %v6497_v26, %v2282_v11  ;;  %v2509_v33 = vadd.f32 %v2499_v7, %v5859_v29  ;;  %v2698_v2 = vmul.f32 %v6634_v47, %v2638_v4  ;;  %3034 = vmatpush.bf16.msrb.mxu3 %v5213_v61 }
 0x1a9   : > { %v6697_v50 = vpop.f32.mrf.mxu3  ;;  %v6699_v45 = vpop.f32.mrf.mxu0  ;;  %v2518_v11 = vmax.f32 %v2508_v40, 0.0  ;;  %v3906_v7 = vld [vmem:[%s7773_s0 + $0x1a] sm:$0xff]  ;;  %v2619_v4 = vmul.f32 %v2599_v53, %v5854_v19 }
 0x1aa   : > { %v2349_v3 = vpack.c.bf16 %v2343_v57, %v2342_v41  ;;  %v4112_v47 = vld [vmem:[%s7773_s0 + $0x1b] sm:$0xff]  ;;  %v2480_v41 = vld [vmem:[#allocation2 + $0xad] sm:$0xff] }
 0x1ab   : > { %v5212_v57 = vld [vmem:[%s5354_s13 + $0x40] sm:$0xff]  ;;  %v2578_v61 = vmul.f32 %v6660_v24, %v2518_v11  ;;  %v2629_v53 = vadd.f32 %v2619_v4, %v5859_v29  ;;  %v2500_v11 = vmul.f32 %v2480_v41, %v5854_v19 }
 0x1ac   : > { %3035 = vmatpush.bf16.msrb.mxu3 %v5212_v57  ;;  %v4113_v57 = vld [vmem:[%s7773_s0 + $0x23] sm:$0xff] }
 0x1ad   : > { %4958 = vmatmul.msk.bf16.gmra.mxu2 %vm383_vm1, %v2585_v63  ;;  %v2639_v4 = vmax.f32 %v2629_v53, 0.0 }
 0x1ae   : > { %3541 = vperm.xlu0 %5258, %v3495_v12   ;;  %3747 = vperm.xlu2 %5260, %v6709_v31  }
 0x1af   : > { %3742 = vperm.xlu1 %5259, %v3495_v12   ;;  %v6717_v17 = vpop.permute.xlu0 %2571  ;;  %v6719_v60 = vpop.f32.mrf.mxu2  ;;  %v2264_v12 = vmul.f32 %v2244_v35, %v5854_v19  ;;  %v2519_v35 = vmax.f32 %v2509_v33, 0.0  ;;  %v2481_v33 = vld [vmem:[#allocation2 + $0xb5] sm:$0xff] }
 0x1b0   : > { %7805 = vst [vmem:[#allocation11_spill] sm:$0xff] %v6719_v60  ;;  %v6723_v42 = vpop.permute.xlu2 %2918  ;;  %v2650_v51 = vpop.permute.xlu1 %2649 }
 0x1b1   : > { %v2697_v52 = vmul.f32 %v2650_v51, %v2637_v8  ;;  %v1398_v46 = vpop.f32.mrf.mxu3  ;;  %v1590_v63 = vpop.f32.mrf.mxu0  ;;  %v2620_v8 = vmul.f32 %v2600_v1, %v5854_v19  ;;  %v2274_v40 = vadd.f32 %v2264_v12, %v5859_v29  ;;  %v2579_v24 = vmul.f32 %v6569_v32, %v2519_v35 }
 0x1b2   : > { %v6728_v37 = vadd.f32 %v1398_v46, %v1207_v62  ;;  %v6731_v26 = vadd.f32 %v1590_v63, %v6666_v22  ;;  %v2265_v62 = vmul.f32 %v2245_v54, %v5854_v19  ;;  %v3907_v22 = vld [vmem:[%s7773_s0 + $0x22] sm:$0xff] }
 0x1b3   : > { %v2707_v18 = vpack.c.bf16 %v2698_v2, %v2697_v52  ;;  %v2630_v1 = vadd.f32 %v2620_v8, %v5859_v29  ;;  %v2284_v12 = vmax.f32 %v2274_v40, 0.0  ;;  %v2510_v40 = vadd.f32 %v2500_v11, %v5859_v29 }
 0x1b4   : > { %4910 = vmatmul.msk.bf16.gmra.mxu0 %vm383_vm1, %v2349_v3  ;;  %v2275_v2 = vadd.f32 %v2265_v62, %v5859_v29  ;;  %v5217_v62 = vld [vmem:[%s5354_s13 + $0x68] sm:$0xff] }
 0x1b5   : > { %4936 = vmatmul.msk.bf16.vlgmr.msra.gmra.mxu1 %vm383_vm1, %v2707_v18  ;;  %v2640_v8 = vmax.f32 %v2630_v1, 0.0  ;;  %v2344_v35 = vmul.f32 %v6603_v30, %v2284_v12  ;;  %3240 = vmatpush.bf16.msrb.mxu0 %v5217_v62  ;;  %v2866_v30 = vld [vmem:[#allocation2 + $0x7f] sm:$0xff] }
 0x1b6   : > { %3948 = vperm.xlu0 %5258, %v3906_v7   ;;  %4154 = vperm.xlu2 %5260, %v4112_v47   ;;  %v2586_v7 = vpack.c.bf16 %v2579_v24, %v2578_v61  ;;  %v2501_v47 = vmul.f32 %v2481_v33, %v5854_v19  ;;  %v2285_v32 = vmax.f32 %v2275_v2, 0.0  ;;  %v2602_v2 = vld [vmem:[#allocation2 + $0xa6] sm:$0xff]  ;;  %v2886_v62 = vmul.f32 %v2866_v30, %v5854_v19 }
 0x1b7   : > { %3953 = vperm.xlu1 %5259, %v3907_v22   ;;  %v2660_v51 = vpop.permute.xlu0 %2659  ;;  %v1196_v54 = vpop.f32.mrf.mxu2  ;;  %v5221_v22 = vld [vmem:[%s5354_s13 + $0x88] sm:$0xff] }
 0x1b8   : > { %v6753_v18 = vpop.permute.xlu2 %2933  ;;  %v2665_v52 = vpop.permute.xlu1 %2664  ;;  %v1209_v46 = vadd.f32 %v1196_v54, %v6466_v20  ;;  %v3497_v20 = vld [vmem:[%s7773_s0 + $0x29] sm:$0xff]  ;;  %v2511_v61 = vadd.f32 %v2501_v47, %v5859_v29  ;;  %v2699_v41 = vmul.f32 %v2660_v51, %v2639_v4  ;;  %v2345_v54 = vmul.f32 %v6523_v48, %v2285_v32  ;;  %3446 = vmatpush.bf16.msrb.mxu1 %v5221_v22  ;;  %v2601_v47 = vld [vmem:[#allocation2 + $0x9e] sm:$0xff] }
 0x1b9   : > { %v6757_v63 = vpop.f32.mrf.mxu3  ;;  %v6759_v3 = vpop.f32.mrf.mxu0  ;;  %v2700_v53 = vmul.f32 %v2665_v52, %v2640_v8  ;;  %v2520_v52 = vmax.f32 %v2510_v40, 0.0  ;;  %v2622_v8 = vmul.f32 %v2602_v2, %v5854_v19  ;;  %v3908_v32 = vld [vmem:[%s7773_s0 + $0x2a] sm:$0xff]  ;;  %v2621_v22 = vmul.f32 %v2601_v47, %v5854_v19 }
 0x1ba   : > { %7806 = vst [vmem:[#allocation12_spill] sm:$0xff] %v6757_v63  ;;  %v2521_v4 = vmax.f32 %v2511_v61, 0.0 }
 0x1bb   : > { %v2708_v48 = vpack.c.bf16 %v2700_v53, %v2699_v41  ;;  %v2632_v61 = vadd.f32 %v2622_v8, %v5859_v29  ;;  %v2483_v53 = vld [vmem:[#allocation2 + $0xc5] sm:$0xff] }
 0x1bc   : > { %v2581_v40 = vmul.f32 %v6692_v56, %v2521_v4  ;;  %v4115_v4 = vld [vmem:[%s7773_s0 + $0x33] sm:$0xff]  ;;  %v4114_v8 = vld [vmem:[%s7773_s0 + $0x2b] sm:$0xff] }
 0x1bd   : > { %4959 = vmatmul.msk.bf16.gmra.mxu2 %vm383_vm1, %v2586_v7  ;;  %v2867_v7 = vld [vmem:[#allocation2 + $0x87] sm:$0xff]  ;;  %v2642_v47 = vmax.f32 %v2632_v61, 0.0 }
 0x1be   : > { %4159 = vperm.xlu0 %5258, %v4113_v57   ;;  %3551 = vperm.xlu2 %5260, %v3497_v20   ;;  %v2350_v57 = vpack.c.bf16 %v2345_v54, %v2344_v35  ;;  %v2580_v35 = vmul.f32 %v6686_v14, %v2520_v52  ;;  %v2896_v54 = vadd.f32 %v2886_v62, %v5859_v29  ;;  %v3909_v52 = vld [vmem:[%s7773_s0 + $0x32] sm:$0xff]  ;;  %v5216_v62 = vld [vmem:[%s5354_s13 + $0x60] sm:$0xff] }
 0x1bf   : > { %3546 = vperm.xlu1 %5259, %v6709_v31   ;;  %v2675_v1 = vpop.permute.xlu0 %2674  ;;  %v2631_v14 = vadd.f32 %v2621_v22, %v5859_v29  ;;  %v6815_v56 = vpop.f32.mrf.mxu2  ;;  %3241 = vmatpush.bf16.msrb.mxu0 %v5216_v62 }
 0x1c0   : > { %v6777_v33 = vpop.permute.xlu2 %2948  ;;  %v6779_v24 = vpop.permute.xlu1 %2679  ;;  %7808 = vst [vmem:[#allocation14_spill] sm:$0xff] %v6815_v56  ;;  %v2702_v61 = vmul.f32 %v2675_v1, %v2642_v47 }
 0x1c1   : > { %v1403_v12 = vpop.f32.mrf.mxu3  ;;  %v1595_v11 = vpop.f32.mrf.mxu0  ;;  %v2641_v22 = vmax.f32 %v2631_v14, 0.0 }
 0x1c2   : > { %v6781_v51 = vadd.f32 %v1403_v12, %v1209_v46  ;;  %v6784_v31 = vadd.f32 %v1595_v11, %v6728_v37  ;;  %v6795_v46 = vld [vmem:[%s7773_s0 + $0x31] sm:$0xff]  ;;  %v2887_v37 = vmul.f32 %v2867_v7, %v5854_v19  ;;  %v2482_v11 = vld [vmem:[#allocation2 + $0xbd] sm:$0xff]  ;;  %v2587_v7 = vpack.c.bf16 %v2581_v40, %v2580_v35  ;;  %v6832_v35 = vpop.f32.mrf.mxu1 }
 0x1c4   : > { %7807 = vst [vmem:[#allocation13_spill] sm:$0xff] %v6784_v31  ;;  %4911 = vmatmul.msk.bf16.gmra.mxu0 %vm383_vm1, %v2350_v57  ;;  %v2503_v57 = vmul.f32 %v2483_v53, %v5854_v19 }
 0x1c5   : > { %4937 = vmatmul.msk.bf16.gmra.mxu1 %vm383_vm1, %v2708_v48  ;;  %v2906_v48 = vmax.f32 %v2896_v54, 0.0  ;;  %v2868_v54 = vld [vmem:[#allocation2 + $0x8f] sm:$0xff] }
 0x1c6   : > { %3752 = vperm.xlu0 %5258, %v3497_v20   ;;  %3958 = vperm.xlu2 %5260, %v3908_v32   ;;  %v6812_v20 = vadd.f32 %v2887_v37, %v5859_v29  ;;  %v2502_v37 = vmul.f32 %v2482_v11, %v5854_v19  ;;  %v2513_v40 = vadd.f32 %v2503_v57, %v5859_v29  ;;  %v2603_v32 = vld [vmem:[#allocation2 + $0xae] sm:$0xff]  ;;  %v2869_v57 = vld [vmem:[#allocation2 + $0x97] sm:$0xff] }
 0x1c7   : > { %3757 = vperm.xlu1 %5259, %v6795_v46   ;;  %v6804_v41 = vpop.permute.xlu0 %2689  ;;  %v2966_v56 = vmul.f32 %v6723_v42, %v2906_v48  ;;  %v2888_v42 = vmul.f32 %v2868_v54, %v5854_v19 }
 0x1c8   : > { %v6807_v2 = vpop.permute.xlu2 %2963  ;;  %v6809_v30 = vpop.permute.xlu1 %2694  ;;  %v7810_v21 = vmax.f32 %v6812_v20, 0.0 }
 0x1c9   : > { %v6817_v12 = vpop.f32.mrf.mxu0 }
 0x1ca   : > { %7809 = vst [vmem:[#allocation15_spill] sm:$0xff] %v6817_v12  ;;  %v6912_v12 = vpop.f32.mrf.mxu3 }
 0x1cb   : > { %7812 = vst [vmem:[#allocation17_spill] sm:$0xff] %v6912_v12 }
 0x1cd   : > { %4960 = vmatmul.msk.bf16.gmra.mxu2 %vm383_vm1, %v2587_v7  ;;  %v2512_v7 = vadd.f32 %v2502_v37, %v5859_v29  ;;  %v3704_v37 = vld [vmem:[%s7773_s0 + $0x39] sm:$0xff] }
 0x1ce   : > { %3963 = vperm.xlu0 %5258, %v3909_v52   ;;  %4169 = vperm.xlu2 %5260, %v4115_v4   ;;  %v2701_v52 = vmul.f32 %v6658_v38, %v2641_v22  ;;  %v2604_v4 = vld [vmem:[#allocation2 + $0xb6] sm:$0xff]  ;;  %v2889_v38 = vmul.f32 %v2869_v57, %v5854_v19  ;;  %v5220_v22 = vld [vmem:[%s5354_s13 + $0x80] sm:$0xff] }
 0x1cf   : > { %4164 = vperm.xlu1 %5259, %v4114_v8   ;;  %v2924_v53 = vpop.permute.xlu0 %2923  ;;  %v2522_v28 = vmax.f32 %v2512_v7, 0.0  ;;  %3447 = vmatpush.bf16.msrb.mxu1 %v5220_v22 }
 0x1d0   : > { %v2967_v11 = vmul.f32 %v2924_v53, %v7810_v21  ;;  %v6839_v14 = vpop.permute.xlu2 %3134  ;;  %v2929_v44 = vpop.permute.xlu1 %2928  ;;  %v2523_v21 = vmax.f32 %v2513_v40, 0.0  ;;  %v2709_v62 = vpack.c.bf16 %v2702_v61, %v2701_v52  ;;  %v2623_v53 = vmul.f32 %v2603_v32, %v5854_v19 }
 0x1d1   : > { %v6843_v1 = vpop.f32.mrf.mxu2  ;;  %v1600_v47 = vpop.f32.mrf.mxu0  ;;  %v6867_v54 = vadd.f32 %v2889_v38, %v5859_v29 }
 0x1d2   : > { %v2976_v8 = vpack.c.bf16 %v2967_v11, %v2966_v56  ;;  %v6847_v48 = vadd.f32 %v1600_v47, %v6781_v51  ;;  %v2624_v56 = vmul.f32 %v2604_v4, %v5854_v19  ;;  %v6859_v51 = vadd.f32 %v2888_v42, %v5859_v29  ;;  %v6863_v40 = vpop.f32.mrf.mxu1  ;;  %v3705_v42 = vld [vmem:[%s7773_s0 + $0x41] sm:$0xff] }
 0x1d3   : > { %v2583_v32 = vmul.f32 %v6717_v17, %v2523_v21  ;;  %v2633_v61 = vadd.f32 %v2623_v53, %v5859_v29  ;;  %v3911_v21 = vld [vmem:[%s7773_s0 + $0x42] sm:$0xff]  ;;  %v5231_v53 = vld [vmem:[%s5354_s13 + $0xd8] sm:$0xff]  ;;  %v7815_v39 = vmax.f32 %v6867_v54, 0.0 }
 0x1d4   : > { %7811 = vst [vmem:[#allocation16_spill] sm:$0xff] %v6847_v48  ;;  %4986 = vmatmul.msk.bf16.vlgmr.msrb.gmra.mxu3 %vm383_vm1, %v2976_v8  ;;  %v2634_v52 = vadd.f32 %v2624_v56, %v5859_v29  ;;  %v2908_v47 = vmax.f32 %v6859_v51, 0.0  ;;  %v2870_v56 = vld [vmem:[#allocation2 + $0x9f] sm:$0xff]  ;;  %v2871_v51 = vld [vmem:[#allocation2 + $0xa7] sm:$0xff] }
 0x1d5   : > { %4938 = vmatmul.msk.bf16.gmra.mxu1 %vm383_vm1, %v2709_v62  ;;  %v2643_v8 = vmax.f32 %v2633_v61, 0.0  ;;  %v5227_v62 = vld [vmem:[%s5354_s13 + $0xb8] sm:$0xff]  ;;  %3856 = vmatpush.bf16.msra.mxu3 %v5231_v53  ;;  %v4117_v53 = vld [vmem:[%s7773_s0 + $0x43] sm:$0xff] }
 0x1d6   : > { %3556 = vperm.xlu0 %5258, %v6795_v46   ;;  %3762 = vperm.xlu2 %5260, %v3704_v37   ;;  %v2582_v46 = vmul.f32 %v6601_v5, %v2522_v28  ;;  %v7788_v28 = vmax.f32 %v6867_v54, 0.0  ;;  %v3910_v5 = vld [vmem:[%s7773_s0 + $0x3a] sm:$0xff]  ;;  %v2968_v38 = vmul.f32 %v2929_v44, %v2908_v47 }
 0x1d7   : > { %3561 = vperm.xlu1 %5259, %v3704_v37   ;;  %v2644_v37 = vmax.f32 %v2634_v52, 0.0  ;;  %v2703_v22 = vmul.f32 %v6779_v24, %v2643_v8  ;;  %3650 = vmatpush.bf16.msra.mxu2 %v5227_v62  ;;  %v2605_v61 = vld [vmem:[#allocation2 + $0xbe] sm:$0xff] }
 0x1d8   : > { %v6869_v11 = vpop.permute.xlu0 %2938  ;;  %v6871_v7 = vpop.permute.xlu2 %3149  ;;  %v2588_v4 = vpack.c.bf16 %v2583_v32, %v2582_v46  ;;  %v2969_v32 = vmul.f32 %v6753_v18, %v7788_v28  ;;  %v2606_v46 = vld [vmem:[#allocation2 + $0xc6] sm:$0xff]  ;;  %v2625_v28 = vmul.f32 %v2605_v61, %v5854_v19  ;;  %v7813_v61 = vmax.f32 %v6812_v20, 0.0  ;;  %v3503_v54 = vld [vmem:[%s7773_s0 + $0x59] sm:$0xff] }
 0x1d9   : > { %v6875_v17 = vpop.permute.xlu1 %2943  ;;  %v6877_v57 = vpop.f32.mrf.mxu2  ;;  %v2704_v44 = vmul.f32 %v6690_v36, %v2644_v37  ;;  %v2626_v43 = vmul.f32 %v2606_v46, %v5854_v19  ;;  %v4116_v36 = vld [vmem:[%s7773_s0 + $0x3b] sm:$0xff] }
 0x1da   : > { %v2977_v8 = vpack.c.bf16 %v2969_v32, %v2968_v38  ;;  %v6908_v18 = vpop.f32.mrf.mxu1 }
 0x1db   : > { %v2710_v62 = vpack.c.bf16 %v2704_v44, %v2703_v22  ;;  %v2635_v22 = vadd.f32 %v2625_v28, %v5859_v29 }
 0x1dd   : > { %4961 = vmatmul.msk.bf16.gmra.mxu2 %vm383_vm1, %v2588_v4  ;;  %v2645_v28 = vmax.f32 %v2635_v22, 0.0 }
 0x1de   : > { %3767 = vperm.xlu0 %5258, %v3705_v42   ;;  %3973 = vperm.xlu2 %5260, %v3911_v21   ;;  %v2890_v21 = vmul.f32 %v2870_v56, %v5854_v19  ;;  %v2636_v56 = vadd.f32 %v2626_v43, %v5859_v29 }
 0x1df   : > { %3968 = vperm.xlu1 %5259, %v3910_v5   ;;  %v2891_v5 = vmul.f32 %v2871_v51, %v5854_v19 }
 0x1e0   : > { %v6897_v48 = vpop.permute.xlu0 %2953  ;;  %v6899_v52 = vpop.permute.xlu2 %3154  ;;  %v6923_v37 = vadd.f32 %v2890_v21, %v5859_v29  ;;  %v5235_v21 = vld [vmem:[%s5354_s13 + $0xf8] sm:$0xff]  ;;  %v2646_v12 = vmax.f32 %v2636_v56, 0.0  ;;  %v2705_v56 = vmul.f32 %v6804_v41, %v2645_v28  ;;  %v5230_v28 = vld [vmem:[%s5354_s13 + $0xd0] sm:$0xff] }
 0x1e1   : > { %v6902_v4 = vpop.permute.xlu1 %2958  ;;  %v6904_v24 = vpop.f32.mrf.mxu2  ;;  %v6926_v38 = vadd.f32 %v2891_v5, %v5859_v29  ;;  %4062 = vmatpush.bf16.msra.mxu0 %v5235_v21  ;;  %3857 = vmatpush.bf16.msra.mxu3 %v5230_v28 }
 0x1e2   : > { %v2910_v5 = vmax.f32 %v6923_v37, 0.0  ;;  %v6950_v37 = vpop.f32.mrf.mxu1 }
 0x1e4   : > { %4987 = vmatmul.msk.bf16.gmra.mxu3 %vm383_vm1, %v2977_v8 }
 0x1e5   : > { %4939 = vmatmul.msk.bf16.gmra.mxu1 %vm383_vm1, %v2710_v62  ;;  %v5239_v62 = vld [vmem:[%s5354_s13 + $0x118] sm:$0xff] }
 0x1e6   : > { %4174 = vperm.xlu0 %5258, %v4116_v36   ;;  %3566 = vperm.xlu2 %5260, %v3705_v42   ;;  %v7791_v42 = vmax.f32 %v6926_v38, 0.0 }
 0x1e7   : > { %4179 = vperm.xlu1 %5259, %v4117_v53   ;;  %v3501_v53 = vld [vmem:[%s7773_s0 + $0x49] sm:$0xff]  ;;  %4268 = vmatpush.bf16.msra.mxu1 %v5239_v62 }
 0x1e8   : > { %v3125_v51 = vpop.permute.xlu0 %3124  ;;  %v6930_v32 = vpop.permute.xlu2 %3350  ;;  %v2971_v22 = vmul.f32 %v6875_v17, %v7791_v42  ;;  %v3279_v62 = vld [vmem:[#allocation2 + $0x90] sm:$0xff] }
 0x1e9   : > { %v3172_v46 = vmul.f32 %v3125_v51, %v7813_v61  ;;  %v3130_v44 = vpop.permute.xlu1 %3129  ;;  %v6934_v8 = vpop.f32.mrf.mxu2  ;;  %v6948_v51 = vld [vmem:[%s7773_s0 + $0x51] sm:$0xff]  ;;  %v2706_v61 = vmul.f32 %v6809_v30, %v2646_v12 }
 0x1ea   : > { %v3173_v36 = vmul.f32 %v3130_v44, %v2908_v47  ;;  %v6940_v43 = vpop.f32.mrf.mxu3  ;;  %v2970_v47 = vmul.f32 %v6869_v11, %v2910_v5  ;;  %v3278_v11 = vld [vmem:[#allocation2 + $0x88] sm:$0xff] }
 0x1eb   : > { %v2711_v30 = vpack.c.bf16 %v2706_v61, %v2705_v56  ;;  %v3912_v12 = vld [vmem:[%s7773_s0 + $0x4a] sm:$0xff]  ;;  %4269 = vmatpush.bf16.msra.mxu1 %v5238_v23 }
 0x1ec   : > { %v3182_v20 = vpack.c.bf16 %v3173_v36, %v3172_v46  ;;  %v2873_v46 = vld [vmem:[#allocation2 + $0xb7] sm:$0xff]  ;;  %v2872_v36 = vld [vmem:[#allocation2 + $0xaf] sm:$0xff]  ;;  %v2978_v42 = vpack.c.bf16 %v2971_v22, %v2970_v47 }
 0x1ed   : > { %v2893_v41 = vmul.f32 %v2873_v46, %v5854_v19  ;;  %v2892_v60 = vmul.f32 %v2872_v36, %v5854_v19  ;;  %v4118_v47 = vld [vmem:[%s7773_s0 + $0x4b] sm:$0xff]  ;;  %v6988_v46 = vpop.f32.mrf.mxu1 }
 0x1ee   : > { %5015 = vmatmul.msk.bf16.vlgmr.msrb.gmra.mxu0 %vm383_vm1, %v3182_v20  ;;  %3571 = vperm.xlu0 %5258, %v3501_v53   ;;  %v5226_v20 = vld [vmem:[%s5354_s13 + $0xb0] sm:$0xff] }
 0x1ef   : > { %3777 = vperm.xlu2 %5260, %v6948_v51   ;;  %3772 = vperm.xlu1 %5259, %v3501_v53   ;;  %v3298_v53 = vmul.f32 %v3278_v11, %v5854_v19  ;;  %v3913_v22 = vld [vmem:[%s7773_s0 + $0x52] sm:$0xff]  ;;  %v6986_v61 = vadd.f32 %v2893_v41, %v5859_v29 }
 0x1f0   : > { %v3140_v44 = vpop.permute.xlu0 %3139  ;;  %v6960_v21 = vpop.permute.xlu2 %3360  ;;  %3651 = vmatpush.bf16.msra.mxu2 %v5226_v20 }
 0x1f1   : > { %7814 = vst [vmem:[#allocation18_spill] sm:$0xff] %v6960_v21  ;;  %v6962_v63 = vpop.permute.xlu1 %3144  ;;  %v6964_v17 = vpop.f32.mrf.mxu2  ;;  %v3299_v21 = vmul.f32 %v3279_v62, %v5854_v19  ;;  %v6993_v62 = vadd.f32 %v2892_v60, %v5859_v29  ;;  %v3175_v36 = vmul.f32 %v3140_v44, %v2910_v5  ;;  %v4119_v5 = vld [vmem:[%s7773_s0 + $0x53] sm:$0xff] }
 0x1f2   : > { %v6982_v56 = vpop.f32.mrf.mxu3 }
 0x1f3   : > { %v3309_v11 = vadd.f32 %v3299_v21, %v5859_v29  ;;  %v7794_v21 = vmax.f32 %v6986_v61, 0.0  ;;  %v7795_v44 = vmax.f32 %v6993_v62, 0.0 }
 0x1f4   : > { %4988 = vmatmul.msk.bf16.gmra.mxu3 %vm383_vm1, %v2978_v42  ;;  %v3308_v42 = vadd.f32 %v3298_v53, %v5859_v29 }
 0x1f5   : > { %4940 = vmatmul.msk.bf16.gmra.mxu1 %vm383_vm1, %v2711_v30  ;;  %v3319_v60 = vmax.f32 %v3309_v11, 0.0  ;;  %v2874_v11 = vld [vmem:[#allocation2 + $0xbf] sm:$0xff] }
 0x1f6   : > { %3978 = vperm.xlu0 %5258, %v3912_v12   ;;  %v5234_v12 = vld [vmem:[%s5354_s13 + $0xf0] sm:$0xff]  ;;  %v3318_v53 = vmax.f32 %v3308_v42, 0.0 }
 0x1f7   : > { %4184 = vperm.xlu2 %5260, %v4118_v47   ;;  %3983 = vperm.xlu1 %5259, %v3913_v22   ;;  %v3174_v47 = vmul.f32 %v6839_v14, %v7815_v39  ;;  %v7003_v22 = vpop.f32.mrf.mxu0  ;;  %v1812_v39 = vadd.f32 %v6832_v35, %v6615_v55  ;;  %v2973_v14 = vmul.f32 %v6897_v48, %v7794_v21  ;;  %v3280_v55 = vld [vmem:[#allocation2 + $0x98] sm:$0xff] }
 0x1f8   : > { %v3331_v20 = vpop.permute.xlu0 %3330  ;;  %v6995_v30 = vpop.permute.xlu2 %3169  ;;  %7816 = vst [vmem:[#allocation19_spill] sm:$0xff] %v7003_v22  ;;  %4063 = vmatpush.bf16.msra.mxu0 %v5234_v12  ;;  %v1409_v35 = vadd.f32 %v6580_v10, %v6544_v15  ;;  %v2894_v21 = vmul.f32 %v2874_v11, %v5854_v19  ;;  %v3300_v22 = vmul.f32 %v3280_v55, %v5854_v19  ;;  %v5224_v11 = vld [vmem:[%s5354_s13 + $0xa0] sm:$0xff] }
 0x1f9   : > { %v3336_v28 = vpop.permute.xlu1 %3335  ;;  %v6997_v41 = vpop.f32.mrf.mxu2  ;;  %v3183_v31 = vpack.c.bf16 %v3175_v36, %v3174_v47  ;;  %v2019_v42 = vadd.f32 %v6843_v1, %v1812_v39  ;;  %v3378_v36 = vmul.f32 %v3331_v20, %v3318_v53  ;;  %v3281_v1 = vld [vmem:[#allocation2 + $0xa0] sm:$0xff]  ;;  %v5225_v20 = vld [vmem:[%s5354_s13 + $0xa8] sm:$0xff] }
 0x1fa   : > { %v3379_v12 = vmul.f32 %v3336_v28, %v3319_v60  ;;  %v7021_v47 = vpop.f32.mrf.mxu3  ;;  %v5229_v28 = vld [vmem:[%s5354_s13 + $0xc8] sm:$0xff]  ;;  %v1606_v15 = vadd.f32 %v6639_v16, %v1409_v35  ;;  %v7039_v10 = vpop.f32.mrf.mxu1  ;;  %3652 = vmatpush.bf16.msra.mxu2 %v5225_v20  ;;  %v3914_v16 = vld [vmem:[%s7773_s0 + $0x5a] sm:$0xff]  ;;  %v7059_v55 = vadd.f32 %v2894_v21, %v5859_v29 }
 0x1fb   : > { %v2875_v53 = vld [vmem:[#allocation2 + $0xc7] sm:$0xff]  ;;  %v2226_v60 = vadd.f32 %v6940_v43, %v2019_v42  ;;  %3858 = vmatpush.bf16.msra.mxu3 %v5229_v28  ;;  %v3301_v43 = vmul.f32 %v3281_v1, %v5854_v19  ;;  %v5263_v1 = vld [vmem:[#allocation2 + $0x10] sm:$0xff] }
 0x1fc   : > { %v3388_v23 = vpack.c.bf16 %v3379_v12, %v3378_v36  ;;  %v1813_v35 = vadd.f32 %v6863_v40, %v1606_v15  ;;  %v5228_v36 = vld [vmem:[%s5354_s13 + $0xc0] sm:$0xff]  ;;  %v3310_v40 = vadd.f32 %v3300_v22, %v5859_v29  ;;  %v7819_v15 = vmax.f32 %v6993_v62, 0.0 }
 0x1fe   : > { %5016 = vmatmul.msk.bf16.gmra.mxu0 %vm383_vm1, %v3183_v31  ;;  %4189 = vperm.xlu0 %5258, %v4119_v5   ;;  %v2972_v31 = vmul.f32 %v6777_v33, %v7795_v44 }
 0x1ff   : > { %3581 = vperm.xlu2 %5260, %v3503_v54   ;;  %3576 = vperm.xlu1 %5259, %v6948_v51  }
 0x200   : > { %v7029_v48 = vpop.permute.xlu0 %3340  ;;  %v7031_v5 = vpop.permute.xlu2 %3536  ;;  %v2979_v33 = vpack.c.bf16 %v2973_v14, %v2972_v31  ;;  %v3709_v14 = vld [vmem:[%s7773_s0 + $0x61] sm:$0xff]  ;;  %3653 = vmatpush.bf16.msra.mxu2 %v5224_v11  ;;  %v3311_v31 = vadd.f32 %v3301_v43, %v5859_v29  ;;  %3859 = vmatpush.bf16.msra.mxu3 %v5228_v36 }
 0x201   : > { %v3346_v51 = vpop.permute.xlu1 %3345  ;;  %v7036_v39 = vpop.f32.mrf.mxu2  ;;  %v4121_v11 = vld [vmem:[%s7773_s0 + $0x63] sm:$0xff]  ;;  %v4120_v36 = vld [vmem:[%s7773_s0 + $0x5b] sm:$0xff] }
 0x202   : > { %7817 = vst [vmem:[#allocation20_spill] sm:$0xff] %v7036_v39  ;;  %v2408_v44 = vpop.f32.mrf.mxu0  ;;  %v2895_v39 = vmul.f32 %v2875_v53, %v5854_v19  ;;  %v7818_v53 = vmax.f32 %v6926_v38, 0.0  ;;  %v7081_v38 = vpop.f32.mrf.mxu3  ;;  %v3321_v43 = vmax.f32 %v3311_v31, 0.0  ;;  %v5264_v31 = vld [vmem:[#allocation2 + $0x18] sm:$0xff] }
 0x203   : > { %v2433_v42 = vadd.f32 %v2408_v44, %v2226_v60  ;;  %v2020_v44 = vadd.f32 %v6877_v57, %v1813_v35  ;;  %v1814_v35 = vadd.f32 %v6908_v18, %v6669_v27 }
 0x204   : > { %4989 = vmatmul.msk.bf16.gmra.mxu3 %vm383_vm1, %v2979_v33  ;;  %v7064_v28 = vadd.f32 %v2895_v39, %v5859_v29  ;;  %v3176_v57 = vmul.f32 %v6962_v63, %v7818_v53  ;;  %v3177_v39 = vmul.f32 %v6871_v7, %v7819_v15  ;;  %v2914_v33 = vmax.f32 %v7059_v55, 0.0  ;;  %v7091_v7 = vpop.f32.mrf.mxu1  ;;  %v5233_v15 = vld [vmem:[%s5354_s13 + $0xe8] sm:$0xff] }
 0x205   : > { %v2443_v12 = vmul.f32 %v2433_v42, %v6131_v6  ;;  %5044 = vmatmul.msk.bf16.vlgmr.msrb.gmra.mxu1 %vm383_vm1, %v3388_v23  ;;  %v2227_v21 = vadd.f32 %v6982_v56, %v2020_v44  ;;  %v3320_v23 = vmax.f32 %v3310_v40, 0.0  ;;  %v2021_v27 = vadd.f32 %v6904_v24, %v1814_v35  ;;  %v3283_v24 = vld [vmem:[#allocation2 + $0xb0] sm:$0xff]  ;;  %4064 = vmatpush.bf16.msra.mxu0 %v5233_v15 }
 0x206   : > { %3782 = vperm.xlu0 %5258, %v3503_v54   ;;  %v2915_v62 = vmax.f32 %v7064_v28, 0.0  ;;  %v2974_v44 = vmul.f32 %v6902_v4, %v2914_v33  ;;  %v3381_v40 = vmul.f32 %v3346_v51, %v3321_v43 }
 0x207   : > { %v2453_v20 = vadd.f32 %v5263_v1, %v2443_v12  ;;  %3988 = vperm.xlu2 %5260, %v3914_v16   ;;  %3787 = vperm.xlu1 %5259, %v3709_v14   ;;  %v3915_v16 = vld [vmem:[%s7773_s0 + $0x62] sm:$0xff]  ;;  %v3184_v14 = vpack.c.bf16 %v3177_v39, %v3176_v57  ;;  %v3380_v18 = vmul.f32 %v7029_v48, %v3320_v23 }
 0x208   : > { %v7069_v60 = vpop.permute.xlu0 %3355  ;;  %v7083_v42 = vpop.permute.xlu2 %3747  ;;  %v2975_v4 = vmul.f32 %v6807_v2, %v2915_v62  ;;  %v3282_v57 = vld [vmem:[#allocation2 + $0xa8] sm:$0xff]  ;;  %v3485_v2 = vld [vmem:[#allocation2 + $0x91] sm:$0xff] }
 0x209   : > { %2463 = vst.msk [vmem:[#allocation2 + $0x10] sm:$0xff] %vm383_vm1, %v2453_v20  ;;  %v7073_v22 = vpop.permute.xlu1 %3159  ;;  %v7075_v54 = vpop.f32.mrf.mxu2  ;;  %v1411_v20 = vadd.f32 %v6637_v34, %v6605_v49  ;;  %v5237_v39 = vld [vmem:[%s5354_s13 + $0x108] sm:$0xff]  ;;  %v3389_v43 = vpack.c.bf16 %v3381_v40, %v3380_v18 }
 0x20a   : > { %v2410_v63 = vpop.f32.mrf.mxu0  ;;  %v2980_v34 = vpack.c.bf16 %v2975_v4, %v2974_v44  ;;  %4270 = vmatpush.bf16.msra.mxu1 %v5237_v39  ;;  %v3505_v44 = vmul.f32 %v3485_v2, %v5854_v19  ;;  %v3179_v4 = vmul.f32 %v7073_v22, %v2914_v33 }
 0x20b   : > { %v2434_v56 = vadd.f32 %v2410_v63, %v2227_v21  ;;  %v2228_v21 = vadd.f32 %v7021_v47, %v2021_v27  ;;  %v1608_v49 = vadd.f32 %v6699_v45, %v1411_v20  ;;  %v3484_v63 = vld [vmem:[#allocation2 + $0x89] sm:$0xff]  ;;  %v3302_v47 = vmul.f32 %v3282_v57, %v5854_v19 }
 0x20c   : > { %v3504_v45 = vmul.f32 %v3484_v63, %v5854_v19  ;;  %v7132_v27 = vpop.f32.mrf.mxu1  ;;  %v3515_v39 = vadd.f32 %v3505_v44, %v5859_v29 }
 0x20d   : > { %v2444_v12 = vmul.f32 %v2434_v56, %v6067_v59  ;;  %v3303_v56 = vmul.f32 %v3283_v24, %v5854_v19  ;;  %v3312_v20 = vadd.f32 %v3302_v47, %v5859_v29 }
 0x20e   : > { %5017 = vmatmul.msk.bf16.gmra.mxu0 %vm383_vm1, %v3184_v14  ;;  %3993 = vperm.xlu0 %5258, %v3915_v16   ;;  %v3691_v16 = vld [vmem:[#allocation2 + $0x99] sm:$0xff]  ;;  %v2211_v14 = vpop.f32.mrf.mxu3  ;;  %v3514_v57 = vadd.f32 %v3504_v45, %v5859_v29  ;;  %v3525_v47 = vmax.f32 %v3515_v39, 0.0 }
 0x20f   : > { %v2454_v1 = vadd.f32 %v5264_v31, %v2444_v12  ;;  %4199 = vperm.xlu2 %5260, %v4121_v11   ;;  %4194 = vperm.xlu1 %5259, %v4120_v36   ;;  %v1815_v11 = vadd.f32 %v6950_v37, %v1608_v49  ;;  %v3711_v18 = vmul.f32 %v3691_v16, %v5854_v19  ;;  %v7820_v49 = vmax.f32 %v6986_v61, 0.0 }
 0x210   : > { %v7111_v53 = vpop.permute.xlu0 %3365  ;;  %v7127_v36 = vpop.permute.xlu2 %4154  ;;  %v3313_v31 = vadd.f32 %v3303_v56, %v5859_v29  ;;  %v1816_v56 = vadd.f32 %v6988_v46, %v6731_v26  ;;  %v3524_v16 = vmax.f32 %v3514_v57, 0.0  ;;  %v1413_v26 = vadd.f32 %v6697_v50, %v6662_v13  ;;  %v7180_v13 = vld [vmem:[#allocation2 + $0xb8] sm:$0xff] }
 0x211   : > { %2464 = vst.msk [vmem:[#allocation2 + $0x18] sm:$0xff] %vm383_vm1, %v2454_v1  ;;  %v7115_v48 = vpop.permute.xlu1 %3164  ;;  %v7117_v51 = vpop.f32.mrf.mxu2  ;;  %v2022_v40 = vadd.f32 %v6934_v8, %v1815_v11  ;;  %v5265_v1 = vld [vmem:[#allocation2 + $0x20] sm:$0xff]  ;;  %v3178_v55 = vmul.f32 %v6899_v52, %v7820_v49  ;;  %v7155_v22 = vadd.f32 %v3711_v18, %v5859_v29  ;;  %v5266_v18 = vld [vmem:[#allocation2 + $0x28] sm:$0xff] }
 0x212   : > { %v2413_v23 = vpop.f32.mrf.mxu0  ;;  %v3323_v63 = vmax.f32 %v3313_v31, 0.0  ;;  %v2023_v45 = vadd.f32 %v6964_v17, %v1816_v56  ;;  %v7172_v31 = vld [vmem:[#allocation2 + $0xc0] sm:$0xff] }
 0x213   : > { %v2435_v35 = vadd.f32 %v2413_v23, %v2228_v21  ;;  %v2229_v21 = vadd.f32 %v7081_v38, %v2022_v40  ;;  %v3322_v38 = vmax.f32 %v3312_v20, 0.0  ;;  %v3185_v2 = vpack.c.bf16 %v3179_v4, %v3178_v55  ;;  %v3487_v55 = vld [vmem:[#allocation2 + $0xa1] sm:$0xff] }
 0x214   : > { %4990 = vmatmul.msk.bf16.gmra.mxu3 %vm383_vm1, %v2980_v34  ;;  %v3081_v34 = vld [vmem:[#allocation2 + $0xcf] sm:$0xff]  ;;  %v3731_v52 = vmax.f32 %v7155_v22, 0.0  ;;  %v7170_v46 = vpop.f32.mrf.mxu1  ;;  %v3584_v20 = vmul.f32 %v7031_v5, %v3524_v16  ;;  %v2230_v17 = vadd.f32 %v2211_v14, %v2023_v45  ;;  %v3305_v49 = vmul.f32 %v7172_v31, %v5854_v19 }
 0x215   : > { %v2445_v12 = vmul.f32 %v2435_v35, %v6157_v9  ;;  %5045 = vmatmul.msk.bf16.gmra.mxu1 %vm383_vm1, %v3389_v43  ;;  %v5232_v43 = vld [vmem:[%s5354_s13 + $0xe0] sm:$0xff]  ;;  %v3101_v61 = vmul.f32 %v3081_v34, %v5854_v19 }
 0x216   : > { %v2213_v11 = vpop.f32.mrf.mxu3  ;;  %4065 = vmatpush.bf16.msra.mxu0 %v5232_v43  ;;  %v3507_v43 = vmul.f32 %v3487_v55, %v5854_v19  ;;  %v3315_v16 = vadd.f32 %v3305_v49, %v5859_v29  ;;  %v7823_v49 = vld [vmem:[#allocation4_spill] sm:$0xff] }
 0x217   : > { %v2455_v37 = vadd.f32 %v5265_v1, %v2445_v12  ;;  %v3383_v12 = vmul.f32 %v7069_v60, %v3323_v63  ;;  %v3111_v50 = vadd.f32 %v3101_v61, %v5859_v29 }
 0x218   : > { %v7141_v24 = vpop.permute.xlu0 %3370  ;;  %v7166_v44 = vpop.permute.xlu2 %3551 }
 0x219   : > { %2465 = vst.msk [vmem:[#allocation2 + $0x20] sm:$0xff] %vm383_vm1, %v2455_v37  ;;  %v7146_v8 = vpop.permute.xlu1 %3375  ;;  %v7148_v15 = vpop.f32.mrf.mxu2  ;;  %v3382_v37 = vmul.f32 %v6930_v32, %v3322_v38  ;;  %v3791_v32 = vmul.f32 %v7083_v42, %v3731_v52  ;;  %v3304_v38 = vmul.f32 %v7180_v13, %v5854_v19  ;;  %v3121_v42 = vmax.f32 %v3111_v50, 0.0 }
 0x21a   : > { %v2415_v33 = vpop.f32.mrf.mxu0 }
 0x21b   : > { %v2436_v23 = vadd.f32 %v2415_v33, %v2229_v21  ;;  %v1610_v21 = vadd.f32 %v6759_v3, %v1413_v26  ;;  %v3390_v14 = vpack.c.bf16 %v3383_v12, %v3382_v37  ;;  %v3314_v12 = vadd.f32 %v3304_v38, %v5859_v29  ;;  %v3896_v26 = vld [vmem:[#allocation2 + $0x92] sm:$0xff] }
 0x21c   : > { %v3181_v37 = vmul.f32 %v6995_v30, %v3121_v42  ;;  %v7822_v30 = vld [vmem:[#allocation13_spill] sm:$0xff] }
 0x21d   : > { %v2446_v35 = vmul.f32 %v2436_v23, %v6159_v0  ;;  %v5236_v23 = vld [vmem:[%s5354_s13 + $0x100] sm:$0xff]  ;;  %v1817_v3 = vadd.f32 %v7039_v10, %v1610_v21  ;;  %v5267_v10 = vld [vmem:[#allocation2 + $0x30] sm:$0xff] }
 0x21e   : > { %5018 = vmatmul.msk.bf16.gmra.mxu0 %vm383_vm1, %v3185_v2  ;;  %4271 = vmatpush.bf16.msra.mxu1 %v5236_v23  ;;  %v2216_v61 = vpop.f32.mrf.mxu3 }
 0x21f   : > { %v2456_v40 = vadd.f32 %v5266_v18, %v2446_v35  ;;  %v2024_v56 = vadd.f32 %v6997_v41, %v1817_v3  ;;  %v3897_v41 = vld [vmem:[#allocation2 + $0x9a] sm:$0xff] }
 0x220   : > { %v3542_v1 = vpop.permute.xlu0 %3541 }
 0x221   : > { %2466 = vst.msk [vmem:[#allocation2 + $0x28] sm:$0xff] %vm383_vm1, %v2456_v40  ;;  %v3585_v60 = vmul.f32 %v3542_v1, %v3525_v47  ;;  %v3743_v4 = vpop.permute.xlu1 %3742  ;;  %v7177_v57 = vpop.f32.mrf.mxu2  ;;  %v2231_v18 = vadd.f32 %v2213_v11, %v2024_v56  ;;  %v3693_v11 = vld [vmem:[#allocation2 + $0xa9] sm:$0xff] }
 0x222   : > { %v3790_v39 = vmul.f32 %v3743_v4, %v3525_v47  ;;  %v2418_v5 = vpop.f32.mrf.mxu0  ;;  %v3180_v47 = vmul.f32 %v7115_v48, %v2915_v62  ;;  %v7205_v40 = vpop.permute.xlu2 %3958  ;;  %v7821_v4 = vld [vmem:[#allocation8_spill] sm:$0xff]  ;;  %v3713_v23 = vmul.f32 %v3693_v11, %v5854_v19 }
 0x223   : > { %v3594_v33 = vpack.c.bf16 %v3585_v60, %v3584_v20  ;;  %v2437_v34 = vadd.f32 %v2418_v5, %v2230_v17  ;;  %v7210_v20 = vadd.f32 %v3507_v43, %v5859_v29  ;;  %v7214_v48 = vpop.f32.mrf.mxu1  ;;  %v3325_v17 = vmax.f32 %v3315_v16, 0.0  ;;  %v7826_v43 = vld [vmem:[#allocation12_spill] sm:$0xff]  ;;  %v7232_v16 = vld [vmem:[#allocation2 + $0xd0] sm:$0xff] }
 0x224   : > { %v3800_v63 = vpack.c.bf16 %v3791_v32, %v3790_v39  ;;  %v997_v21 = vadd.f32 %v7821_v4, %v6424_v25  ;;  %v3186_v50 = vpack.c.bf16 %v3181_v37, %v3180_v47  ;;  %v3916_v32 = vmul.f32 %v3896_v26, %v5854_v19  ;;  %v7825_v25 = vld [vmem:[#allocation20_spill] sm:$0xff] }
 0x225   : > { %v2447_v2 = vmul.f32 %v2437_v34, %v6082_v58  ;;  %5046 = vmatmul.msk.bf16.gmra.mxu1 %vm383_vm1, %v3390_v14  ;;  %5073 = vmatmul.msk.bf16.vlgmr.msra.gmra.mxu2 %vm383_vm1, %v3594_v33  ;;  %v3917_v39 = vmul.f32 %v3897_v41, %v5854_v19  ;;  %v1818_v5 = vadd.f32 %v7091_v7, %v7822_v30  ;;  %v3324_v14 = vmax.f32 %v3314_v12, 0.0  ;;  %v7824_v33 = vld [vmem:[#allocation11_spill] sm:$0xff]  ;;  %v7230_v7 = vld [vmem:[#allocation2 + $0xc8] sm:$0xff] }
 0x226   : > { %5102 = vmatmul.msk.bf16.vlgmr.msra.gmra.mxu3 %vm383_vm1, %v3800_v63  ;;  %v1208_v34 = vadd.f32 %v7824_v33, %v997_v21  ;;  %v3527_v63 = vmax.f32 %v7210_v20, 0.0  ;;  %v3385_v38 = vmul.f32 %v7111_v53, %v3325_v17  ;;  %v7827_v12 = vld [vmem:[#allocation18_spill] sm:$0xff]  ;;  %v7828_v41 = vld [vmem:[#allocation15_spill] sm:$0xff]  ;;  %v7245_v11 = vadd.f32 %v3713_v23, %v5859_v29 }
 0x227   : > { %v2457_v35 = vadd.f32 %v5267_v10, %v2447_v2  ;;  %v2025_v3 = vadd.f32 %v7825_v25, %v1818_v5  ;;  %v5268_v2 = vld [vmem:[#allocation2 + $0x38] sm:$0xff]  ;;  %v3926_v10 = vadd.f32 %v3916_v32, %v5859_v29  ;;  %v3306_v21 = vmul.f32 %v7230_v7, %v5854_v19 }
 0x228   : > { %v7202_v45 = vpop.permute.xlu0 %3948  ;;  %v1415_v56 = vadd.f32 %v7826_v43, %v1208_v34  ;;  %v3587_v20 = vmul.f32 %v7166_v44, %v3527_v63  ;;  %v3733_v34 = vmax.f32 %v7245_v11, 0.0 }
 0x229   : > { %2467 = vst.msk [vmem:[#allocation2 + $0x30] sm:$0xff] %vm383_vm1, %v2457_v35  ;;  %v3954_v1 = vpop.permute.xlu1 %3953  ;;  %v7212_v28 = vpop.f32.mrf.mxu2  ;;  %v3927_v35 = vadd.f32 %v3917_v39, %v5859_v29  ;;  %v2232_v26 = vadd.f32 %v2216_v61, %v2025_v3  ;;  %v3307_v61 = vmul.f32 %v7232_v16, %v5854_v19  ;;  %v3936_v44 = vmax.f32 %v3926_v10, 0.0 }
 0x22a   : > { %v2420_v62 = vpop.f32.mrf.mxu0  ;;  %v1612_v37 = vadd.f32 %v7828_v41, %v1415_v56  ;;  %v3316_v25 = vadd.f32 %v3306_v21, %v5859_v29  ;;  %v7832_v21 = vld [vmem:[#allocation16_spill] sm:$0xff] }
 0x22b   : > { %v2438_v60 = vadd.f32 %v2420_v62, %v2231_v18  ;;  %v3384_v18 = vmul.f32 %v7827_v12, %v3324_v14  ;;  %v2218_v62 = vpop.f32.mrf.mxu3  ;;  %v3937_v30 = vmax.f32 %v3927_v35, 0.0  ;;  %v3317_v3 = vadd.f32 %v3307_v61, %v5859_v29  ;;  %v3899_v35 = vld [vmem:[#allocation2 + $0xaa] sm:$0xff] }
 0x22c   : > { %v1819_v14 = vadd.f32 %v7132_v27, %v1612_v37  ;;  %v3326_v41 = vmax.f32 %v3316_v25, 0.0  ;;  %v1820_v61 = vadd.f32 %v7170_v46, %v7832_v21 }
 0x22d   : > { %v2448_v55 = vmul.f32 %v2438_v60, %v7823_v49  ;;  %v3391_v4 = vpack.c.bf16 %v3385_v38, %v3384_v18  ;;  %v5269_v38 = vld [vmem:[#allocation2 + $0x40] sm:$0xff]  ;;  %v3327_v37 = vmax.f32 %v3317_v3, 0.0  ;;  %v5270_v3 = vld [vmem:[#allocation2 + $0x48] sm:$0xff] }
 0x22e   : > { %5019 = vmatmul.msk.bf16.gmra.mxu0 %vm383_vm1, %v3186_v50  ;;  %v7251_v50 = vpop.permute.xlu2 %4169  ;;  %v2026_v23 = vadd.f32 %v7075_v54, %v1819_v14  ;;  %v7830_v18 = vld [vmem:[#allocation9_spill] sm:$0xff]  ;;  %v3386_v25 = vmul.f32 %v7141_v24, %v3326_v41 }
 0x22f   : > { %v2458_v42 = vadd.f32 %v5268_v2, %v2448_v55  ;;  %v7829_v55 = vld [vmem:[#allocation5_spill] sm:$0xff]  ;;  %v3387_v46 = vmul.f32 %v7146_v8, %v3327_v37  ;;  %v7836_v8 = vld [vmem:[#allocation19_spill] sm:$0xff] }
 0x230   : > { %v7236_v47 = vpop.permute.xlu0 %4159  ;;  %v2233_v43 = vadd.f32 %v2218_v62, %v2026_v23 }
 0x231   : > { %2468 = vst.msk [vmem:[#allocation2 + $0x38] sm:$0xff] %vm383_vm1, %v2458_v42  ;;  %v3547_v53 = vpop.permute.xlu1 %3546  ;;  %v7253_v22 = vpop.f32.mrf.mxu2  ;;  %v3997_v42 = vmul.f32 %v3954_v1, %v3937_v30 }
 0x232   : > { %v3586_v17 = vmul.f32 %v3731_v52, %v3547_v53  ;;  %v2423_v60 = vpop.f32.mrf.mxu0  ;;  %v2768_v39 = vpop.f32.mrf.mxu1 }
 0x233   : > { %v2439_v32 = vadd.f32 %v2423_v60, %v2232_v26  ;;  %v7256_v52 = vadd.f32 %v7177_v57, %v2768_v39  ;;  %v3996_v57 = vmul.f32 %v7202_v45, %v3936_v44  ;;  %v7831_v26 = vld [vmem:[#allocation10_spill] sm:$0xff]  ;;  %v2221_v60 = vpop.f32.mrf.mxu3  ;;  %v7833_v44 = vld [vmem:[#allocation3_spill] sm:$0xff] }
 0x234   : > { %v3595_v5 = vpack.c.bf16 %v3587_v20, %v3586_v17  ;;  %v1002_v53 = vadd.f32 %v7831_v26, %v7830_v18  ;;  %v3898_v20 = vld [vmem:[#allocation2 + $0xa2] sm:$0xff]  ;;  %v3392_v18 = vpack.c.bf16 %v3387_v46, %v3386_v25 }
 0x235   : > { %v2449_v33 = vmul.f32 %v2439_v32, %v7829_v55  ;;  %5047 = vmatmul.msk.bf16.gmra.mxu1 %vm383_vm1, %v3391_v4  ;;  %v4006_v1 = vpack.c.bf16 %v3997_v42, %v3996_v57  ;;  %v3694_v32 = vld [vmem:[#allocation2 + $0xb1] sm:$0xff] }
 0x236   : > { %5074 = vmatmul.msk.bf16.gmra.mxu2 %vm383_vm1, %v3595_v5  ;;  %v7278_v39 = vpop.permute.xlu2 %3762  ;;  %v7834_v5 = vld [vmem:[#allocation14_spill] sm:$0xff]  ;;  %v3714_v57 = vmul.f32 %v3694_v32, %v5854_v19 }
 0x237   : > { %v2459_v2 = vadd.f32 %v5269_v38, %v2449_v33  ;;  %v1210_v14 = vadd.f32 %v7834_v5, %v1002_v53  ;;  %v3918_v33 = vmul.f32 %v3898_v20, %v5854_v19 }
 0x238   : > { %v3753_v27 = vpop.permute.xlu0 %3752  ;;  %v3724_v37 = vadd.f32 %v3714_v57, %v5859_v29  ;;  %v3900_v57 = vld [vmem:[#allocation2 + $0xb2] sm:$0xff] }
 0x239   : > { %2469 = vst.msk [vmem:[#allocation2 + $0x40] sm:$0xff] %vm383_vm1, %v2459_v2  ;;  %v3792_v56 = vmul.f32 %v3753_v27, %v3527_v63  ;;  %v3758_v10 = vpop.permute.xlu1 %3757  ;;  %v3919_v63 = vmul.f32 %v3899_v35, %v5854_v19  ;;  %v2848_v23 = vpop.f32.mrf.mxu2  ;;  %v4103_v2 = vld [vmem:[#allocation2 + $0x9b] sm:$0xff]  ;;  %v3928_v24 = vadd.f32 %v3918_v33, %v5859_v29  ;;  %v3920_v11 = vmul.f32 %v3900_v57, %v5854_v19 }
 0x23a   : > { %v3793_v12 = vmul.f32 %v3758_v10, %v3733_v34  ;;  %v2425_v54 = vpop.f32.mrf.mxu0  ;;  %v2770_v45 = vpop.f32.mrf.mxu1  ;;  %v4123_v26 = vmul.f32 %v4103_v2, %v5854_v19 }
 0x23b   : > { %v2440_v17 = vadd.f32 %v2425_v54, %v2233_v43  ;;  %v7273_v4 = vadd.f32 %v7212_v28, %v2770_v45  ;;  %v2027_v28 = vadd.f32 %v7117_v51, %v1820_v61  ;;  %v3929_v27 = vadd.f32 %v3919_v63, %v5859_v29  ;;  %v7835_v43 = vld [vmem:[#allocation17_spill] sm:$0xff]  ;;  %v4102_v51 = vld [vmem:[#allocation2 + $0x93] sm:$0xff]  ;;  %v2223_v61 = vpop.f32.mrf.mxu3 }
 0x23c   : > { %v3801_v62 = vpack.c.bf16 %v3793_v12, %v3792_v56  ;;  %v1417_v56 = vadd.f32 %v7835_v43, %v1210_v14  ;;  %v3938_v21 = vmax.f32 %v3928_v24, 0.0 }
 0x23d   : > { %v2450_v30 = vmul.f32 %v2440_v17, %v7833_v44  ;;  %v2234_v10 = vadd.f32 %v2221_v60, %v2027_v28  ;;  %v3939_v20 = vmax.f32 %v3929_v27, 0.0  ;;  %v3490_v17 = vld [vmem:[#allocation2 + $0xb9] sm:$0xff]  ;;  %v4122_v60 = vmul.f32 %v4102_v51, %v5854_v19 }
 0x23e   : > { %5103 = vmatmul.msk.bf16.gmra.mxu3 %vm383_vm1, %v3801_v62  ;;  %5131 = vmatmul.msk.bf16.vlgmr.msra.gmra.mxu0 %vm383_vm1, %v4006_v1  ;;  %v1614_v54 = vadd.f32 %v7836_v8, %v1417_v56  ;;  %v7837_v62 = vld [vmem:[#allocation6_spill] sm:$0xff]  ;;  %v7307_v5 = vpop.permute.xlu2 %3973  ;;  %v3510_v14 = vmul.f32 %v3490_v17, %v5854_v19  ;;  %v3734_v28 = vmax.f32 %v3724_v37, 0.0  ;;  %v3998_v27 = vmul.f32 %v7205_v40, %v3938_v21  ;;  %v3901_v51 = vld [vmem:[#allocation2 + $0xba] sm:$0xff] }
 0x23f   : > { %v2460_v38 = vadd.f32 %v5270_v3, %v2450_v30  ;;  %v4133_v30 = vadd.f32 %v4123_v26, %v5859_v29  ;;  %v4132_v3 = vadd.f32 %v4122_v60, %v5859_v29  ;;  %v7838_v26 = vld [vmem:[#allocation7_spill] sm:$0xff]  ;;  %v3921_v40 = vmul.f32 %v3901_v51, %v5854_v19 }
 0x240   : > { %v3964_v42 = vpop.permute.xlu0 %3963  ;;  %v1821_v1 = vadd.f32 %v7214_v48, %v1614_v54  ;;  %v3930_v60 = vadd.f32 %v3920_v11, %v5859_v29  ;;  %v3794_v21 = vmul.f32 %v7278_v39, %v3734_v28  ;;  %v3902_v11 = vld [vmem:[#allocation2 + $0xc2] sm:$0xff] }
 0x241   : > { %2470 = vst.msk [vmem:[#allocation2 + $0x48] sm:$0xff] %vm383_vm1, %v2460_v38  ;;  %v7292_v35 = vpop.permute.xlu1 %4164  ;;  %v3999_v48 = vmul.f32 %v3964_v42, %v3939_v20  ;;  %v2851_v25 = vpop.f32.mrf.mxu2  ;;  %v7316_v42 = vadd.f32 %v3510_v14, %v5859_v29  ;;  %v5272_v20 = vld [vmem:[#allocation2 + $0x58] sm:$0xff]  ;;  %v4105_v14 = vld [vmem:[#allocation2 + $0xab] sm:$0xff] }
 0x242   : > { %v2428_v12 = vpop.f32.mrf.mxu0  ;;  %v2773_v41 = vpop.f32.mrf.mxu1  ;;  %v2028_v32 = vadd.f32 %v7148_v15, %v1821_v1  ;;  %v4104_v1 = vld [vmem:[#allocation2 + $0xa3] sm:$0xff]  ;;  %v4125_v39 = vmul.f32 %v4105_v14, %v5854_v19  ;;  %v4107_v14 = vld [vmem:[#allocation2 + $0xbb] sm:$0xff] }
 0x243   : > { %v2441_v53 = vadd.f32 %v2428_v12, %v2234_v10  ;;  %v7299_v45 = vadd.f32 %v7253_v22, %v2773_v41  ;;  %v5271_v22 = vld [vmem:[#allocation2 + $0x50] sm:$0xff]  ;;  %v4143_v10 = vmax.f32 %v4133_v30, 0.0  ;;  %v4007_v8 = vpack.c.bf16 %v3999_v48, %v3998_v27 }
 0x244   : > { %v2235_v38 = vadd.f32 %v2223_v61, %v2028_v32  ;;  %v3530_v37 = vmax.f32 %v7316_v42, 0.0  ;;  %v4135_v42 = vadd.f32 %v4125_v39, %v5859_v29 }
 0x245   : > { %v2451_v63 = vmul.f32 %v2441_v53, %v7837_v62  ;;  %5048 = vmatmul.msk.bf16.gmra.mxu1 %vm383_vm1, %v3392_v18  ;;  %v4203_v41 = vmul.f32 %v7236_v47, %v4143_v10  ;;  %v3931_v47 = vadd.f32 %v3921_v40, %v5859_v29 }
 0x246   : > { %v3567_v61 = vpop.permute.xlu2 %3566 }
 0x247   : > { %v2461_v33 = vadd.f32 %v5271_v22, %v2451_v63  ;;  %v3941_v57 = vmax.f32 %v3931_v47, 0.0 }
 0x248   : > { %v3557_v46 = vpop.permute.xlu0 %3556 }
 0x249   : > { %2471 = vst.msk [vmem:[#allocation2 + $0x50] sm:$0xff] %vm383_vm1, %v2461_v33  ;;  %v3588_v15 = vmul.f32 %v3733_v34, %v3557_v46  ;;  %v3562_v2 = vpop.permute.xlu1 %3561  ;;  %v4142_v34 = vmax.f32 %v4132_v3, 0.0  ;;  %v2853_v22 = vpop.f32.mrf.mxu2  ;;  %v3491_v33 = vld [vmem:[#allocation2 + $0xc1] sm:$0xff]  ;;  %v4124_v46 = vmul.f32 %v4104_v1, %v5854_v19  ;;  %v3697_v3 = vld [vmem:[#allocation2 + $0xc9] sm:$0xff]  ;;  %v4145_v1 = vmax.f32 %v4135_v42, 0.0 }
 0x24a   : > { %v3589_v43 = vmul.f32 %v3734_v28, %v3562_v2  ;;  %v2430_v56 = vpop.f32.mrf.mxu0  ;;  %v2775_v12 = vpop.f32.mrf.mxu1  ;;  %v3940_v2 = vmax.f32 %v3930_v60, 0.0  ;;  %v3511_v28 = vmul.f32 %v3491_v33, %v5854_v19  ;;  %v3717_v27 = vmul.f32 %v3697_v3, %v5854_v19 }
 0x24b   : > { %v2442_v24 = vadd.f32 %v2430_v56, %v2235_v38  ;;  %v7318_v18 = vadd.f32 %v2848_v23, %v2775_v12  ;;  %v4202_v63 = vmul.f32 %v7127_v36, %v4142_v34  ;;  %v3922_v60 = vmul.f32 %v3902_v11, %v5854_v19 }
 0x24c   : > { %v3596_v54 = vpack.c.bf16 %v3589_v43, %v3588_v15  ;;  %v4134_v43 = vadd.f32 %v4124_v46, %v5859_v29  ;;  %v3521_v12 = vadd.f32 %v3511_v28, %v5859_v29 }
 0x24d   : > { %v2452_v53 = vmul.f32 %v2442_v24, %v7838_v26  ;;  %v4212_v48 = vpack.c.bf16 %v4203_v41, %v4202_v63  ;;  %v3903_v41 = vld [vmem:[#allocation2 + $0xca] sm:$0xff] }
 0x24e   : > { %5075 = vmatmul.msk.bf16.gmra.mxu2 %vm383_vm1, %v3596_v54  ;;  %5132 = vmatmul.msk.bf16.gmra.mxu0 %vm383_vm1, %v4007_v8  ;;  %v4001_v8 = vmul.f32 %v7307_v5, %v3941_v57  ;;  %v7352_v54 = vadd.f32 %v3717_v27, %v5859_v29  ;;  %v4144_v34 = vmax.f32 %v4134_v43, 0.0  ;;  %v3923_v5 = vmul.f32 %v3903_v41, %v5854_v19  ;;  %v3493_v57 = vld [vmem:[#allocation2 + $0xd1] sm:$0xff] }
 0x24f   : > { %v2462_v17 = vadd.f32 %v5272_v20, %v2452_v53  ;;  %v3778_v53 = vpop.permute.xlu2 %3777 }
 0x250   : > { %v3768_v23 = vpop.permute.xlu0 %3767  ;;  %v3737_v63 = vmax.f32 %v7352_v54, 0.0 }
 0x251   : > { %2472 = vst.msk [vmem:[#allocation2 + $0x58] sm:$0xff] %vm383_vm1, %v2462_v17  ;;  %v3795_v32 = vmul.f32 %v3768_v23, %v3530_v37  ;;  %v3969_v30 = vpop.permute.xlu1 %3968  ;;  %v2856_v17 = vpop.f32.mrf.mxu2  ;;  %v3531_v23 = vmax.f32 %v3521_v12, 0.0 }
 0x252   : > { %v2778_v15 = vpop.f32.mrf.mxu1  ;;  %v4000_v10 = vmul.f32 %v3969_v30, %v3940_v2  ;;  %v4106_v30 = vld [vmem:[#allocation2 + $0xb3] sm:$0xff] }
 0x253   : > { %v3802_v38 = vpack.c.bf16 %v3795_v32, %v3794_v21  ;;  %v7333_v36 = vadd.f32 %v2851_v25, %v2778_v15  ;;  %v4204_v21 = vmul.f32 %v7292_v35, %v4144_v34  ;;  %v3797_v15 = vmul.f32 %v3778_v53, %v3737_v63 }
 0x254   : > { %v4008_v20 = vpack.c.bf16 %v4001_v8, %v4000_v10  ;;  %v3933_v35 = vadd.f32 %v3923_v5, %v5859_v29  ;;  %v4126_v28 = vmul.f32 %v4106_v30, %v5854_v19  ;;  %v3513_v10 = vmul.f32 %v3493_v57, %v5854_v19  ;;  %v4108_v57 = vld [vmem:[#allocation2 + $0xc3] sm:$0xff] }
 0x255   : > { %5104 = vmatmul.msk.bf16.gmra.mxu3 %vm383_vm1, %v3802_v38  ;;  %5160 = vmatmul.msk.bf16.vlgmr.msra.gmra.mxu1 %vm383_vm1, %v4212_v48  ;;  %v3590_v48 = vmul.f32 %v3567_v61, %v3530_v37  ;;  %v3932_v38 = vadd.f32 %v3922_v60, %v5859_v29 }
 0x256   : > { %v3943_v12 = vmax.f32 %v3933_v35, 0.0  ;;  %v4136_v8 = vadd.f32 %v4126_v28, %v5859_v29 }
 0x257   : > { %v3037_v56 = vpop.f32.mrf.mxu3  ;;  %v7373_v61 = vpop.permute.xlu2 %4184 }
 0x258   : > { %v7341_v51 = vpop.permute.xlu0 %4174  ;;  %v7344_v25 = vadd.f32 %v3037_v56, %v7256_v52  ;;  %v3942_v56 = vmax.f32 %v3932_v38, 0.0 }
 0x259   : > { %v7347_v24 = vpop.permute.xlu1 %4179  ;;  %v2858_v42 = vpop.f32.mrf.mxu2 }
 0x25a   : > { %v2780_v40 = vpop.f32.mrf.mxu1 }
 0x25b   : > { %v7354_v52 = vadd.f32 %v2853_v22, %v2780_v40  ;;  %v4205_v22 = vmul.f32 %v7251_v50, %v4145_v1 }
 0x25d   : > { %v4213_v39 = vpack.c.bf16 %v4205_v22, %v4204_v21 }
 0x25e   : > { %5133 = vmatmul.msk.bf16.gmra.mxu0 %vm383_vm1, %v4008_v20 }
 0x25f   : > { %v3039_v32 = vpop.f32.mrf.mxu3 }
 0x260   : > { %v3572_v47 = vpop.permute.xlu0 %3571  ;;  %v7362_v33 = vadd.f32 %v3039_v32, %v7273_v4  ;;  %v4127_v4 = vmul.f32 %v4107_v14, %v5854_v19  ;;  %v3699_v32 = vld [vmem:[#allocation2 + $0xd9] sm:$0xff] }
 0x261   : > { %v3591_v46 = vmul.f32 %v3572_v47, %v3531_v23  ;;  %v3773_v3 = vpop.permute.xlu1 %3772 }
 0x262   : > { %v3796_v2 = vmul.f32 %v3773_v3, %v3531_v23  ;;  %v2783_v43 = vpop.f32.mrf.mxu1  ;;  %v4137_v11 = vadd.f32 %v4127_v4, %v5859_v29  ;;  %v4146_v23 = vmax.f32 %v4136_v8, 0.0  ;;  %v3904_v4 = vld [vmem:[#allocation2 + $0xd2] sm:$0xff]  ;;  %v4128_v8 = vmul.f32 %v4108_v57, %v5854_v19 }
 0x263   : > { %v3597_v27 = vpack.c.bf16 %v3591_v46, %v3590_v48  ;;  %v7371_v37 = vadd.f32 %v2856_v17, %v2783_v43  ;;  %v3523_v17 = vadd.f32 %v3513_v10, %v5859_v29  ;;  %v3582_v46 = vpop.permute.xlu2 %3581 }
 0x264   : > { %v3803_v50 = vpack.c.bf16 %v3797_v15, %v3796_v2  ;;  %v4147_v60 = vmax.f32 %v4137_v11, 0.0  ;;  %v4206_v48 = vmul.f32 %v7341_v51, %v4146_v23  ;;  %v2861_v15 = vpop.f32.mrf.mxu2  ;;  %v4109_v2 = vld [vmem:[#allocation2 + $0xcb] sm:$0xff]  ;;  %v3924_v11 = vmul.f32 %v3904_v4, %v5854_v19 }
 0x265   : > { %5076 = vmatmul.msk.bf16.gmra.mxu2 %vm383_vm1, %v3597_v27  ;;  %5161 = vmatmul.msk.bf16.gmra.mxu1 %vm383_vm1, %v4213_v39  ;;  %v3533_v22 = vmax.f32 %v3523_v17, 0.0  ;;  %v4138_v17 = vadd.f32 %v4128_v8, %v5859_v29 }
 0x266   : > { %5105 = vmatmul.msk.bf16.gmra.mxu3 %vm383_vm1, %v3803_v50  ;;  %v4207_v3 = vmul.f32 %v7347_v24, %v4147_v60  ;;  %v3905_v50 = vld [vmem:[#allocation2 + $0xda] sm:$0xff] }
 0x267   : > { %v3042_v34 = vpop.f32.mrf.mxu3  ;;  %v3925_v54 = vmul.f32 %v3905_v50, %v5854_v19 }
 0x268   : > { %v3979_v53 = vpop.permute.xlu0 %3978  ;;  %v3064_v40 = vadd.f32 %v3042_v34, %v7299_v45  ;;  %v3719_v45 = vmul.f32 %v3699_v32, %v5854_v19  ;;  %v4214_v51 = vpack.c.bf16 %v4207_v3, %v4206_v48 }
 0x269   : > { %v4002_v41 = vmul.f32 %v3979_v53, %v3942_v56  ;;  %v3984_v20 = vpop.permute.xlu1 %3983  ;;  %v4129_v56 = vmul.f32 %v4109_v2, %v5854_v19  ;;  %v3935_v60 = vadd.f32 %v3925_v54, %v5859_v29 }
 0x26a   : > { %v4003_v1 = vmul.f32 %v3984_v20, %v3943_v12  ;;  %v2785_v5 = vpop.f32.mrf.mxu1  ;;  %v3729_v43 = vadd.f32 %v3719_v45, %v5859_v29 }
 0x26b   : > { %v3243_v21 = vpop.f32.mrf.mxu0  ;;  %v7383_v14 = vadd.f32 %v2858_v42, %v2785_v5  ;;  %v4139_v34 = vadd.f32 %v4129_v56, %v5859_v29  ;;  %v3945_v2 = vmax.f32 %v3935_v60, 0.0 }
 0x26c   : > { %v4009_v30 = vpack.c.bf16 %v4003_v1, %v4002_v41  ;;  %v7386_v47 = vadd.f32 %v3243_v21, %v7344_v25  ;;  %v3593_v25 = vmul.f32 %v3582_v46, %v3533_v22  ;;  %v2863_v5 = vpop.f32.mrf.mxu2 }
 0x26d   : > { %v4149_v32 = vmax.f32 %v4139_v34, 0.0 }
 0x26e   : > { %5134 = vmatmul.msk.bf16.gmra.mxu0 %vm383_vm1, %v4009_v30 }
 0x26f   : > { %v3044_v38 = vpop.f32.mrf.mxu3 }
 0x270   : > { %v4190_v35 = vpop.permute.xlu0 %4189  ;;  %v3065_v39 = vadd.f32 %v3044_v38, %v7318_v18  ;;  %v4148_v38 = vmax.f32 %v4138_v17, 0.0 }
 0x271   : > { %v3577_v28 = vpop.permute.xlu1 %3576 }
 0x272   : > { %v3592_v27 = vmul.f32 %v3737_v63, %v3577_v28  ;;  %v2788_v24 = vpop.f32.mrf.mxu1  ;;  %v3739_v63 = vmax.f32 %v3729_v43, 0.0  ;;  %v4209_v28 = vmul.f32 %v4190_v35, %v4149_v32 }
 0x273   : > { %v3245_v10 = vpop.f32.mrf.mxu0  ;;  %v7397_v12 = vadd.f32 %v2861_v15, %v2788_v24 }
 0x274   : > { %v3598_v42 = vpack.c.bf16 %v3593_v25, %v3592_v27  ;;  %v3269_v18 = vadd.f32 %v3245_v10, %v7362_v33  ;;  %v3934_v33 = vadd.f32 %v3924_v11, %v5859_v29  ;;  %v4110_v25 = vld [vmem:[#allocation2 + $0xd3] sm:$0xff]  ;;  %v4208_v27 = vmul.f32 %v7373_v61, %v4148_v38 }
 0x275   : > { %5162 = vmatmul.msk.bf16.gmra.mxu1 %vm383_vm1, %v4214_v51  ;;  %v4111_v51 = vld [vmem:[#allocation2 + $0xdb] sm:$0xff] }
 0x276   : > { %5077 = vmatmul.msk.bf16.gmra.mxu2 %vm383_vm1, %v3598_v42  ;;  %v3944_v15 = vmax.f32 %v3934_v33, 0.0  ;;  %v4215_v56 = vpack.c.bf16 %v4209_v28, %v4208_v27  ;;  %v4131_v35 = vmul.f32 %v4111_v51, %v5854_v19 }
 0x277   : > { %v3047_v53 = vpop.f32.mrf.mxu3 }
 0x278   : > { %v3783_v41 = vpop.permute.xlu0 %3782  ;;  %v3066_v20 = vadd.f32 %v3047_v53, %v7333_v36  ;;  %v3989_v36 = vpop.permute.xlu2 %3988 }
 0x279   : > { %v3798_v1 = vmul.f32 %v3783_v41, %v3533_v22  ;;  %v3788_v23 = vpop.permute.xlu1 %3787  ;;  %v4004_v43 = vmul.f32 %v3989_v36, %v3944_v15 }
 0x27a   : > { %v3799_v21 = vmul.f32 %v3788_v23, %v3739_v63  ;;  %v2790_v30 = vpop.f32.mrf.mxu1  ;;  %v4141_v63 = vadd.f32 %v4131_v35, %v5859_v29 }
 0x27b   : > { %v3248_v45 = vpop.f32.mrf.mxu0  ;;  %v2864_v46 = vadd.f32 %v2863_v5, %v2790_v30 }
 0x27c   : > { %v3804_v48 = vpack.c.bf16 %v3799_v21, %v3798_v1  ;;  %v3270_v3 = vadd.f32 %v3248_v45, %v3064_v40  ;;  %v4130_v40 = vmul.f32 %v4110_v25, %v5854_v19 }
 0x27e   : > { %5106 = vmatmul.msk.bf16.gmra.mxu3 %vm383_vm1, %v3804_v48 }
 0x27f   : > { %v3049_v57 = vpop.f32.mrf.mxu3 }
 0x280   : > { %v3994_v22 = vpop.permute.xlu0 %3993  ;;  %v3067_v4 = vadd.f32 %v3049_v57, %v7354_v52  ;;  %v4140_v52 = vadd.f32 %v4130_v40, %v5859_v29  ;;  %v4200_v1 = vpop.permute.xlu2 %4199 }
 0x281   : > { %v4005_v50 = vmul.f32 %v3994_v22, %v3945_v2  ;;  %v4195_v17 = vpop.permute.xlu1 %4194 }
 0x282   : > { %v3449_v42 = vpop.f32.mrf.mxu1  ;;  %v4150_v34 = vmax.f32 %v4140_v52, 0.0 }
 0x283   : > { %v4010_v24 = vpack.c.bf16 %v4005_v50, %v4004_v43  ;;  %v3250_v10 = vpop.f32.mrf.mxu0  ;;  %v3474_v11 = vadd.f32 %v3449_v42, %v7386_v47  ;;  %v4151_v47 = vmax.f32 %v4141_v63, 0.0 }
 0x284   : > { %v3271_v8 = vadd.f32 %v3250_v10, %v3065_v39  ;;  %v4210_v19 = vmul.f32 %v4195_v17, %v4150_v34 }
 0x285   : > { %5135 = vmatmul.msk.bf16.gmra.mxu0 %vm383_vm1, %v4010_v24  ;;  %5163 = vmatmul.msk.bf16.gmra.mxu1 %vm383_vm1, %v4215_v56  ;;  %v4211_v5 = vmul.f32 %v4200_v1, %v4151_v47 }
 0x287   : > { %v3052_v61 = vpop.f32.mrf.mxu3  ;;  %v4216_v21 = vpack.c.bf16 %v4211_v5, %v4210_v19 }
 0x288   : > { %v3068_v54 = vadd.f32 %v3052_v61, %v7371_v37 }
 0x28a   : > { %v3451_v41 = vpop.f32.mrf.mxu1 }
 0x28b   : > { %v3253_v53 = vpop.f32.mrf.mxu0  ;;  %v3475_v33 = vadd.f32 %v3451_v41, %v3269_v18 }
 0x28c   : > { %v3272_v39 = vadd.f32 %v3253_v53, %v3066_v20 }
 0x28f   : > { %v3054_v23 = vpop.f32.mrf.mxu3 }
 0x290   : > { %v3069_v60 = vadd.f32 %v3054_v23, %v7383_v14 }
 0x292   : > { %v3454_v30 = vpop.f32.mrf.mxu1 }
 0x293   : > { %v3255_v32 = vpop.f32.mrf.mxu0  ;;  %v3476_v37 = vadd.f32 %v3454_v30, %v3270_v3 }
 0x294   : > { %v3273_v45 = vadd.f32 %v3255_v32, %v3067_v4 }
 0x295   : > { %5164 = vmatmul.msk.bf16.gmra.mxu1 %vm383_vm1, %v4216_v21  ;;  %v5273_v21 = vld [vmem:[#allocation2 + $0x88] sm:$0xff] }
 0x297   : > { %v3057_v29 = vpop.f32.mrf.mxu3 }
 0x298   : > { %v3070_v48 = vadd.f32 %v3057_v29, %v7397_v12 }
 0x29a   : > { %v3456_v20 = vpop.f32.mrf.mxu1 }
 0x29b   : > { %v3258_v38 = vpop.f32.mrf.mxu0  ;;  %v3477_v15 = vadd.f32 %v3456_v20, %v3271_v8 }
 0x29c   : > { %v3274_v18 = vadd.f32 %v3258_v38, %v3068_v54 }
 0x29f   : > { %v3059_v2 = vpop.f32.mrf.mxu3 }
 0x2a0   : > { %v3071_v36 = vadd.f32 %v3059_v2, %v2864_v46 }
 0x2a2   : > { %v3459_v57 = vpop.f32.mrf.mxu1 }
 0x2a3   : > { %v3260_v28 = vpop.f32.mrf.mxu0  ;;  %v3478_v22 = vadd.f32 %v3459_v57, %v3272_v39 }
 0x2a4   : > { %v3275_v14 = vadd.f32 %v3260_v28, %v3069_v60 }
 0x2a8   : > { %v3655_v12 = vpop.f32.mrf.mxu2 }
 0x2a9   : > { %v3861_v10 = vpop.f32.mrf.mxu3  ;;  %v3680_v63 = vadd.f32 %v3655_v12, %v3474_v11 }
 0x2aa   : > { %v3461_v27 = vpop.f32.mrf.mxu1 }
 0x2ab   : > { %v3263_v25 = vpop.f32.mrf.mxu0  ;;  %v7424_v4 = vadd.f32 %v3461_v27, %v3273_v45  ;;  %v3886_v41 = vadd.f32 %v3861_v10, %v3680_v63 }
 0x2ac   : > { %v3276_v43 = vadd.f32 %v3263_v25, %v3070_v48 }
 0x2b0   : > { %v3657_v35 = vpop.f32.mrf.mxu2 }
 0x2b1   : > { %v3863_v52 = vpop.f32.mrf.mxu3  ;;  %v3681_v19 = vadd.f32 %v3657_v35, %v3475_v33 }
 0x2b2   : > { %v3464_v50 = vpop.f32.mrf.mxu1 }
 0x2b3   : > { %v3265_v3 = vpop.f32.mrf.mxu0  ;;  %v7426_v56 = vadd.f32 %v3464_v50, %v3274_v18  ;;  %v3887_v5 = vadd.f32 %v3863_v52, %v3681_v19 }
 0x2b4   : > { %v3277_v51 = vadd.f32 %v3265_v3, %v3071_v36  ;;  %v5274_v36 = vld [vmem:[#allocation2 + $0x90] sm:$0xff] }
 0x2b9   : > { %v3660_v53 = vpop.f32.mrf.mxu2 }
 0x2ba   : > { %v3466_v24 = vpop.f32.mrf.mxu1  ;;  %v3682_v20 = vadd.f32 %v3660_v53, %v3476_v37 }
 0x2bb   : > { %v7428_v40 = vadd.f32 %v3466_v24, %v3275_v14  ;;  %v4067_v46 = vpop.f32.mrf.mxu0 }
 0x2bc   : > { %v4092_v39 = vadd.f32 %v4067_v46, %v3886_v41 }
 0x2c1   : > { %v3866_v17 = vpop.f32.mrf.mxu3  ;;  %v3662_v30 = vpop.f32.mrf.mxu2 }
 0x2c2   : > { %v3469_v42 = vpop.f32.mrf.mxu1  ;;  %v3888_v2 = vadd.f32 %v3866_v17, %v3682_v20  ;;  %v3683_v27 = vadd.f32 %v3662_v30, %v3477_v15 }
 0x2c3   : > { %v7430_v8 = vadd.f32 %v3469_v42, %v3276_v43  ;;  %v4069_v61 = vpop.f32.mrf.mxu0 }
 0x2c4   : > { %v4093_v45 = vadd.f32 %v4069_v61, %v3887_v5  ;;  %v5276_v61 = vld [vmem:[#allocation2 + $0xa0] sm:$0xff] }
 0x2c9   : > { %v3868_v11 = vpop.f32.mrf.mxu3 }
 0x2ca   : > { %v3471_v54 = vpop.f32.mrf.mxu1  ;;  %v3889_v50 = vadd.f32 %v3868_v11, %v3683_v27 }
 0x2cb   : > { %v7432_v34 = vadd.f32 %v3471_v54, %v3277_v51  ;;  %v4072_v47 = vpop.f32.mrf.mxu0  ;;  %v5275_v51 = vld [vmem:[#allocation2 + $0x98] sm:$0xff] }
 0x2cc   : > { %v4094_v57 = vadd.f32 %v4072_v47, %v3888_v2 }
 0x2d1   : > { %v3665_v28 = vpop.f32.mrf.mxu2 }
 0x2d2   : > { %v4273_v1 = vpop.f32.mrf.mxu1  ;;  %v3684_v10 = vadd.f32 %v3665_v28, %v3478_v22 }
 0x2d3   : > { %v4298_v23 = vadd.f32 %v4273_v1, %v4092_v39  ;;  %v4074_v38 = vpop.f32.mrf.mxu0  ;;  %v5277_v1 = vld [vmem:[#allocation2 + $0xa8] sm:$0xff] }
 0x2d4   : > { %v4095_v37 = vadd.f32 %v4074_v38, %v3889_v50 }
 0x2d5   : > { %v4308_v60 = vmul.f32 %v4298_v23, %v6131_v6 }
 0x2d7   : > { %v4318_v32 = vadd.f32 %v5273_v21, %v4308_v60 }
 0x2d8   : > { %v3871_v6 = vpop.f32.mrf.mxu3 }
 0x2d9   : > { %4328 = vst.msk [vmem:[#allocation2 + $0x88] sm:$0xff] %vm383_vm1, %v4318_v32  ;;  %v3890_v35 = vadd.f32 %v3871_v6, %v3684_v10 }
 0x2da   : > { %v4275_v29 = vpop.f32.mrf.mxu1 }
 0x2db   : > { %v4299_v48 = vadd.f32 %v4275_v29, %v4093_v45  ;;  %v4077_v3 = vpop.f32.mrf.mxu0 }
 0x2dc   : > { %v4096_v63 = vadd.f32 %v4077_v3, %v3890_v35 }
 0x2dd   : > { %v4309_v18 = vmul.f32 %v4299_v48, %v6067_v59  ;;  %v3667_v59 = vpop.f32.mrf.mxu2 }
 0x2de   : > { %v3685_v41 = vadd.f32 %v3667_v59, %v7424_v4  ;;  %v5278_v4 = vld [vmem:[#allocation2 + $0xb0] sm:$0xff] }
 0x2df   : > { %v4319_v33 = vadd.f32 %v5274_v36, %v4309_v18 }
 0x2e0   : > { %v3873_v42 = vpop.f32.mrf.mxu3 }
 0x2e1   : > { %4329 = vst.msk [vmem:[#allocation2 + $0x90] sm:$0xff] %vm383_vm1, %v4319_v33  ;;  %v3891_v39 = vadd.f32 %v3873_v42, %v3685_v41 }
 0x2e2   : > { %v4278_v14 = vpop.f32.mrf.mxu1 }
 0x2e3   : > { %v4300_v25 = vadd.f32 %v4278_v14, %v4094_v57  ;;  %v4079_v15 = vpop.f32.mrf.mxu0 }
 0x2e4   : > { %v4097_v23 = vadd.f32 %v4079_v15, %v3891_v39 }
 0x2e5   : > { %v4310_v43 = vmul.f32 %v4300_v25, %v6157_v9 }
 0x2e7   : > { %v4320_v12 = vadd.f32 %v5275_v51, %v4310_v43 }
 0x2e8   : > { %v3670_v9 = vpop.f32.mrf.mxu2 }
 0x2e9   : > { %4330 = vst.msk [vmem:[#allocation2 + $0x98] sm:$0xff] %vm383_vm1, %v4320_v12  ;;  %v3876_v22 = vpop.f32.mrf.mxu3 }
 0x2ea   : > { %v4280_v24 = vpop.f32.mrf.mxu1 }
 0x2eb   : > { %v4301_v46 = vadd.f32 %v4280_v24, %v4095_v37  ;;  %v4082_v60 = vpop.f32.mrf.mxu0 }
 0x2ed   : > { %v4311_v52 = vmul.f32 %v4301_v46, %v6159_v0  ;;  %v3686_v0 = vadd.f32 %v3670_v9, %v7426_v56 }
 0x2ef   : > { %v4321_v54 = vadd.f32 %v5276_v61, %v4311_v52  ;;  %v3892_v30 = vadd.f32 %v3876_v22, %v3686_v0 }
 0x2f0   : > { %v3672_v32 = vpop.f32.mrf.mxu2 }
 0x2f1   : > { %4331 = vst.msk [vmem:[#allocation2 + $0xa0] sm:$0xff] %vm383_vm1, %v4321_v54  ;;  %v3878_v29 = vpop.f32.mrf.mxu3  ;;  %v4098_v48 = vadd.f32 %v4082_v60, %v3892_v30 }
 0x2f2   : > { %v4283_v53 = vpop.f32.mrf.mxu1 }
 0x2f3   : > { %v4302_v17 = vadd.f32 %v4283_v53, %v4096_v63  ;;  %v4084_v56 = vpop.f32.mrf.mxu0 }
 0x2f5   : > { %v4312_v47 = vmul.f32 %v4302_v17, %v6082_v58  ;;  %v3687_v58 = vadd.f32 %v3672_v32, %v7428_v40 }
 0x2f7   : > { %v4322_v19 = vadd.f32 %v5277_v1, %v4312_v47  ;;  %v3893_v18 = vadd.f32 %v3878_v29, %v3687_v58 }
 0x2f9   : > { %4332 = vst.msk [vmem:[#allocation2 + $0xa8] sm:$0xff] %vm383_vm1, %v4322_v19  ;;  %v3675_v36 = vpop.f32.mrf.mxu2  ;;  %v4099_v57 = vadd.f32 %v4084_v56, %v3893_v18 }
 0x2fa   : > { %v4285_v5 = vpop.f32.mrf.mxu1  ;;  %v3688_v6 = vadd.f32 %v3675_v36, %v7430_v8 }
 0x2fb   : > { %v4303_v21 = vadd.f32 %v4285_v5, %v4097_v23 }
 0x2fd   : > { %v4313_v45 = vmul.f32 %v4303_v21, %v7823_v49 }
 0x2ff   : > { %v4323_v11 = vadd.f32 %v5278_v4, %v4313_v45 }
 0x301   : > { %4333 = vst.msk [vmem:[#allocation2 + $0xb0] sm:$0xff] %vm383_vm1, %v4323_v11  ;;  %v3881_v28 = vpop.f32.mrf.mxu3  ;;  %v3677_v3 = vpop.f32.mrf.mxu2 }
 0x302   : > { %v4288_v38 = vpop.f32.mrf.mxu1  ;;  %v4087_v40 = vpop.f32.mrf.mxu0  ;;  %v3894_v25 = vadd.f32 %v3881_v28, %v3688_v6  ;;  %v3689_v51 = vadd.f32 %v3677_v3, %v7432_v34 }
 0x303   : > { %v4304_v20 = vadd.f32 %v4288_v38, %v4098_v48 }
 0x304   : > { %v4100_v50 = vadd.f32 %v4087_v40, %v3894_v25 }
 0x305   : > { %v4314_v2 = vmul.f32 %v4304_v20, %v7829_v55 }
 0x307   : > { %v4324_v33 = vadd.f32 %v4314_v2, %v7180_v13 }
 0x309   : > { %4334 = vst.msk [vmem:[#allocation2 + $0xb8] sm:$0xff] %vm383_vm1, %v4324_v33  ;;  %v3883_v55 = vpop.f32.mrf.mxu3 }
 0x30a   : > { %v4290_v49 = vpop.f32.mrf.mxu1  ;;  %v3895_v37 = vadd.f32 %v3883_v55, %v3689_v51  ;;  %v4089_v8 = vpop.f32.mrf.mxu0 }
 0x30b   : > { %v4305_v14 = vadd.f32 %v4290_v49, %v4099_v57 }
 0x30c   : > { %v4101_v10 = vadd.f32 %v4089_v8, %v3895_v37 }
 0x30d   : > { %v4315_v27 = vmul.f32 %v4305_v14, %v7833_v44 }
 0x30f   : > { %v4325_v43 = vadd.f32 %v4315_v27, %v7172_v31 }
 0x311   : > { %4335 = vst.msk [vmem:[#allocation2 + $0xc0] sm:$0xff] %vm383_vm1, %v4325_v43 }
 0x312   : > { %v4293_v13 = vpop.f32.mrf.mxu1 }
 0x313   : > { %v4306_v12 = vadd.f32 %v4293_v13, %v4100_v50 }
 0x315   : > { %v4316_v59 = vmul.f32 %v4306_v12, %v7837_v62 }
 0x317   : > { %v4326_v24 = vadd.f32 %v4316_v59, %v7230_v7 }
 0x319   : > { %4336 = vst.msk [vmem:[#allocation2 + $0xc8] sm:$0xff] %vm383_vm1, %v4326_v24 }
 0x31a   : > { %v4295_v44 = vpop.f32.mrf.mxu1 }
 0x31b   : > { %v4307_v31 = vadd.f32 %v4295_v44, %v4101_v10 }
 0x31d   : > { %v4317_v46 = vmul.f32 %v4307_v31, %v7838_v26  ;;  %4341 = sbr.rel (%p5165_p5) target bundleno = 864 (0x360), region = 48 }
 0x31f   : > { %v4327_v42 = vadd.f32 %v4317_v46, %v7232_v16 }
 0x321   : > { %4337 = vst.msk [vmem:[#allocation2 + $0xd0] sm:$0xff] %vm383_vm1, %v4327_v42 }
 0x322   : > { %v4342_v34 = vld [vmem:[#allocation2] sm:$0xff]  ;;  %v4343_v35 = vld [vmem:[#allocation2 + $0x8] sm:$0xff]  ;;  %v4344_v62 = vld [vmem:[#allocation2 + $0x10] sm:$0xff]  ;;  %vm4482_vm5 = vcmask 516096  }
 0x323   : > { %4372 = vst.msk [vmem:[%s7778_s5] sm:$0xff] %vm383_vm1, %v4342_v34  ;;  %v7469_v7 = vsel %vm383_vm1, %v4342_v34, 0.0  ;;  %v4484_v52 = vmul.f32 %v4342_v34, %v4342_v34  ;;  %v7472_v26 = vsel %vm383_vm1, %v4343_v35, 0.0  ;;  %v4485_v16 = vmul.f32 %v4343_v35, %v4343_v35  ;;  %v4345_v61 = vld [vmem:[#allocation2 + $0x18] sm:$0xff]  ;;  %v4346_v54 = vld [vmem:[#allocation2 + $0x20] sm:$0xff]  ;;  %v4347_v15 = vld [vmem:[#allocation2 + $0x28] sm:$0xff] }
 0x324   : > { %4373 = vst.msk [vmem:[%s7778_s5 + $0x8] sm:$0xff] %vm383_vm1, %v4343_v35  ;;  %v7479_v63 = vsel %vm383_vm1, %v4344_v62, 0.0  ;;  %v4486_v9 = vmul.f32 %v4344_v62, %v4344_v62  ;;  %v7482_v53 = vsel %vm383_vm1, %v4345_v61, 0.0  ;;  %v4487_v41 = vmul.f32 %v4345_v61, %v4345_v61  ;;  %v4348_v17 = vld [vmem:[#allocation2 + $0x30] sm:$0xff]  ;;  %v4349_v19 = vld [vmem:[#allocation2 + $0x38] sm:$0xff]  ;;  %v4350_v23 = vld [vmem:[#allocation2 + $0x40] sm:$0xff] }
 0x325   : > { %v7485_v39 = vsel %vm383_vm1, %v4484_v52, 0.0  ;;  %v7488_v47 = vsel %vm383_vm1, %v4485_v16, 0.0  ;;  %4374 = vst.msk [vmem:[%s7778_s5 + $0x10] sm:$0xff] %vm383_vm1, %v4344_v62  ;;  %v7495_v22 = vsel %vm383_vm1, %v4346_v54, 0.0  ;;  %v4488_v1 = vmul.f32 %v4346_v54, %v4346_v54  ;;  %v4351_v32 = vld [vmem:[#allocation2 + $0x48] sm:$0xff]  ;;  %v4352_v29 = vld [vmem:[#allocation2 + $0x50] sm:$0xff] }
 0x326   : > { %v7498_v0 = vsel %vm383_vm1, %v4486_v9, 0.0  ;;  %4375 = vst.msk [vmem:[%s7778_s5 + $0x18] sm:$0xff] %vm383_vm1, %v4345_v61  ;;  %v7505_v60 = vsel %vm383_vm1, %v4487_v41, 0.0  ;;  %v7508_v5 = vsel %vm383_vm1, %v4347_v15, 0.0  ;;  %v4489_v21 = vmul.f32 %v4347_v15, %v4347_v15  ;;  %v4353_v56 = vld [vmem:[#allocation2 + $0x58] sm:$0xff]  ;;  %v4354_v18 = vld [vmem:[#allocation2 + $0x60] sm:$0xff] }
 0x327   : > { %4376 = vst.msk [vmem:[%s7778_s5 + $0x20] sm:$0xff] %vm383_vm1, %v4346_v54  ;;  %v7515_v30 = vsel %vm383_vm1, %v4488_v1, 0.0  ;;  %v7518_v45 = vsel %vm383_vm1, %v4348_v17, 0.0  ;;  %v4490_v4 = vmul.f32 %v4348_v17, %v4348_v17  ;;  %v7521_v11 = vsel %vm383_vm1, %v4349_v19, 0.0  ;;  %v4355_v57 = vld [vmem:[#allocation2 + $0x68] sm:$0xff]  ;;  %v4356_v25 = vld [vmem:[#allocation2 + $0x70] sm:$0xff] }
 0x328   : > { %4377 = vst.msk [vmem:[%s7778_s5 + $0x28] sm:$0xff] %vm383_vm1, %v4347_v15  ;;  %v7528_v48 = vsel %vm383_vm1, %v4489_v21, 0.0  ;;  %v4491_v58 = vmul.f32 %v4349_v19, %v4349_v19  ;;  %v7531_v38 = vsel %vm383_vm1, %v4350_v23, 0.0  ;;  %v4492_v20 = vmul.f32 %v4350_v23, %v4350_v23  ;;  %v4357_v55 = vld [vmem:[#allocation2 + $0x78] sm:$0xff]  ;;  %v4358_v59 = vld [vmem:[#allocation2 + $0x80] sm:$0xff]  ;;  %v4359_v31 = vld [vmem:[#allocation2 + $0x88] sm:$0xff] }
 0x329   : > { %4378 = vst.msk [vmem:[%s7778_s5 + $0x30] sm:$0xff] %vm383_vm1, %v4348_v17  ;;  %v7538_v2 = vsel %vm383_vm1, %v4490_v4, 0.0  ;;  %v7541_v36 = vsel %vm383_vm1, %v4351_v32, 0.0  ;;  %v4493_v33 = vmul.f32 %v4351_v32, %v4351_v32  ;;  %v7544_v28 = vsel %vm383_vm1, %v4352_v29, 0.0  ;;  %v4360_v41 = vld [vmem:[#allocation2 + $0x90] sm:$0xff] }
 0x32a   : > { %4379 = vst.msk [vmem:[%s7778_s5 + $0x38] sm:$0xff] %vm383_vm1, %v4349_v19  ;;  %v7551_v49 = vsel %vm383_vm1, %v4491_v58, 0.0  ;;  %v7554_v6 = vsel %vm383_vm1, %v4492_v20, 0.0  ;;  %v4494_v14 = vmul.f32 %v4352_v29, %v4352_v29  ;;  %v7557_v40 = vsel %vm383_vm1, %v4353_v56, 0.0 }
 0x32b   : > { %4380 = vst.msk [vmem:[%s7778_s5 + $0x40] sm:$0xff] %vm383_vm1, %v4350_v23  ;;  %v7564_v27 = vsel %vm383_vm1, %v4493_v33, 0.0  ;;  %v4495_v43 = vmul.f32 %v4353_v56, %v4353_v56  ;;  %v7567_v3 = vsel %vm383_vm1, %v4354_v18, 0.0  ;;  %v4496_v50 = vmul.f32 %v4354_v18, %v4354_v18  ;;  %v4361_v23 = vld [vmem:[#allocation2 + $0x98] sm:$0xff] }
 0x32c   : > { %4381 = vst.msk [vmem:[%s7778_s5 + $0x48] sm:$0xff] %vm383_vm1, %v4351_v32  ;;  %v7574_v13 = vsel %vm383_vm1, %v4494_v14, 0.0  ;;  %v7577_v51 = vsel %vm383_vm1, %v4355_v57, 0.0  ;;  %v4497_v12 = vmul.f32 %v4355_v57, %v4355_v57  ;;  %v7580_v37 = vsel %vm383_vm1, %v4356_v25, 0.0 }
 0x32d   : > { %4382 = vst.msk [vmem:[%s7778_s5 + $0x50] sm:$0xff] %vm383_vm1, %v4352_v29  ;;  %v7587_v8 = vsel %vm383_vm1, %v4495_v43, 0.0  ;;  %v7590_v24 = vsel %vm383_vm1, %v4496_v50, 0.0  ;;  %v4498_v10 = vmul.f32 %v4356_v25, %v4356_v25  ;;  %v4403_v44 = vsel %vm383_vm1, %v4357_v55, 0.0 }
 0x32e   : > { %4383 = vst.msk [vmem:[%s7778_s5 + $0x58] sm:$0xff] %vm383_vm1, %v4353_v56  ;;  %v7598_v46 = vsel %vm383_vm1, %v4497_v12, 0.0  ;;  %v4404_v42 = vadd.f32 %v4403_v44, %v7469_v7  ;;  %v4499_v34 = vmul.f32 %v4357_v55, %v4357_v55  ;;  %v4406_v35 = vsel %vm383_vm1, %v4358_v59, 0.0 }
 0x32f   : > { %4384 = vst.msk [vmem:[%s7778_s5 + $0x60] sm:$0xff] %vm383_vm1, %v4354_v18  ;;  %v7607_v62 = vsel %vm383_vm1, %v4498_v10, 0.0  ;;  %v4407_v52 = vadd.f32 %v4406_v35, %v7472_v26  ;;  %v4500_v16 = vmul.f32 %v4358_v59, %v4358_v59  ;;  %v4409_v61 = vsel %vm383_vm1, %v4359_v31, 0.0  ;;  %v4364_v35 = vld [vmem:[#allocation2 + $0xb0] sm:$0xff] }
 0x330   : > { %4385 = vst.msk [vmem:[%s7778_s5 + $0x68] sm:$0xff] %vm383_vm1, %v4355_v57  ;;  %v4447_v7 = vsel %vm383_vm1, %v4404_v42, 0.0  ;;  %v4515_v54 = vsel %vm383_vm1, %v4499_v34, 0.0  ;;  %v4410_v15 = vadd.f32 %v4409_v61, %v7479_v63  ;;  %v4501_v9 = vmul.f32 %v4359_v31, %v4359_v31  ;;  %v4362_v57 = vld [vmem:[#allocation2 + $0xa0] sm:$0xff] }
 0x331   : > { %4386 = vst.msk [vmem:[%s7778_s5 + $0x70] sm:$0xff] %vm383_vm1, %v4356_v25  ;;  %v4516_v26 = vadd.f32 %v4515_v54, %v7485_v39  ;;  %v4448_v17 = vsel %vm383_vm1, %v4407_v52, 0.0  ;;  %v4518_v1 = vsel %vm383_vm1, %v4500_v16, 0.0  ;;  %v4412_v19 = vsel %vm383_vm1, %v4360_v41, 0.0 }
 0x332   : > { %4387 = vst.msk [vmem:[%s7778_s5 + $0x78] sm:$0xff] %vm383_vm1, %v4357_v55  ;;  %v4449_v63 = vadd.f32 %v4448_v17, %v4447_v7  ;;  %v4519_v21 = vadd.f32 %v4518_v1, %v7488_v47  ;;  %v4450_v32 = vsel %vm383_vm1, %v4410_v15, 0.0  ;;  %v4521_v4 = vsel %vm383_vm1, %v4501_v9, 0.0 }
 0x333   : > { %v4559_v39 = vsel %vm383_vm1, %v4516_v26, 0.0  ;;  %4388 = vst.msk [vmem:[%s7778_s5 + $0x80] sm:$0xff] %vm383_vm1, %v4358_v59  ;;  %v4522_v29 = vadd.f32 %v4521_v4, %v7498_v0  ;;  %v4413_v58 = vadd.f32 %v4412_v19, %v7482_v53  ;;  %v4502_v20 = vmul.f32 %v4360_v41, %v4360_v41  ;;  %v4366_v26 = vld [vmem:[#allocation2 + $0xc0] sm:$0xff]  ;;  %v4368_v4 = vld [vmem:[#allocation2 + $0xd0] sm:$0xff] }
 0x334   : > { %v4560_v56 = vsel %vm383_vm1, %v4519_v21, 0.0  ;;  %4389 = vst.msk [vmem:[%s7778_s5 + $0x88] sm:$0xff] %vm383_vm1, %v4359_v31  ;;  %v4451_v47 = vadd.f32 %v4450_v32, %v4449_v63  ;;  %v4415_v18 = vsel %vm383_vm1, %v4361_v23, 0.0  ;;  %v4503_v33 = vmul.f32 %v4361_v23, %v4361_v23  ;;  %v4363_v31 = vld [vmem:[#allocation2 + $0xa8] sm:$0xff] }
 0x335   : > { %v4561_v14 = vadd.f32 %v4560_v56, %v4559_v39  ;;  %v4562_v25 = vsel %vm383_vm1, %v4522_v29, 0.0  ;;  %4390 = vst.msk [vmem:[%s7778_s5 + $0x90] sm:$0xff] %vm383_vm1, %v4360_v41  ;;  %v4452_v53 = vsel %vm383_vm1, %v4413_v58, 0.0  ;;  %v4524_v0 = vsel %vm383_vm1, %v4502_v20, 0.0  ;;  %v4369_v56 = vld [vmem:[#allocation2 + $0xd8] sm:$0xff] }
 0x336   : > { %v4453_v43 = vadd.f32 %v4452_v53, %v4451_v47  ;;  %v4525_v50 = vadd.f32 %v4524_v0, %v7505_v60  ;;  %4391 = vst.msk [vmem:[%s7778_s5 + $0x98] sm:$0xff] %vm383_vm1, %v4361_v23  ;;  %v4416_v55 = vadd.f32 %v4415_v18, %v7495_v22  ;;  %v4527_v12 = vsel %vm383_vm1, %v4503_v33, 0.0 }
 0x337   : > { %v4563_v59 = vadd.f32 %v4562_v25, %v4561_v14  ;;  %v4528_v10 = vadd.f32 %v4527_v12, %v7515_v30  ;;  %4392 = vst.msk [vmem:[%s7778_s5 + $0xa0] sm:$0xff] %vm383_vm1, %v4362_v57  ;;  %v4418_v44 = vsel %vm383_vm1, %v4362_v57, 0.0  ;;  %v4504_v60 = vmul.f32 %v4362_v57, %v4362_v57 }
 0x338   : > { %v4564_v42 = vsel %vm383_vm1, %v4525_v50, 0.0  ;;  %v4454_v34 = vsel %vm383_vm1, %v4416_v55, 0.0  ;;  %v4419_v22 = vadd.f32 %v4418_v44, %v7508_v5  ;;  %4393 = vst.msk [vmem:[%s7778_s5 + $0xa8] sm:$0xff] %vm383_vm1, %v4363_v31  ;;  %v4421_v30 = vsel %vm383_vm1, %v4363_v31, 0.0  ;;  %v4365_v5 = vld [vmem:[#allocation2 + $0xb8] sm:$0xff] }
 0x339   : > { %v4565_v52 = vadd.f32 %v4564_v42, %v4563_v59  ;;  %v4455_v16 = vadd.f32 %v4454_v34, %v4453_v43  ;;  %v4566_v61 = vsel %vm383_vm1, %v4528_v10, 0.0  ;;  %v4530_v7 = vsel %vm383_vm1, %v4504_v60, 0.0  ;;  %4394 = vst.msk [vmem:[%s7778_s5 + $0xb0] sm:$0xff] %vm383_vm1, %v4364_v35 }
 0x33a   : > { %v4456_v54 = vsel %vm383_vm1, %v4419_v22, 0.0  ;;  %v4531_v15 = vadd.f32 %v4530_v7, %v7528_v48  ;;  %v4422_v9 = vadd.f32 %v4421_v30, %v7518_v45  ;;  %v4505_v41 = vmul.f32 %v4363_v31, %v4363_v31  ;;  %4395 = vst.msk [vmem:[%s7778_s5 + $0xb8] sm:$0xff] %vm383_vm1, %v4365_v5  ;;  %v4367_v48 = vld [vmem:[#allocation2 + $0xc8] sm:$0xff] }
 0x33b   : > { %v4567_v17 = vadd.f32 %v4566_v61, %v4565_v52  ;;  %v4457_v1 = vadd.f32 %v4456_v54, %v4455_v16  ;;  %v4424_v19 = vsel %vm383_vm1, %v4364_v35, 0.0  ;;  %v4506_v23 = vmul.f32 %v4364_v35, %v4364_v35  ;;  %4396 = vst.msk [vmem:[%s7778_s5 + $0xc0] sm:$0xff] %vm383_vm1, %v4366_v26 }
 0x33c   : > { %v4568_v45 = vsel %vm383_vm1, %v4531_v15, 0.0  ;;  %v4458_v63 = vsel %vm383_vm1, %v4422_v9, 0.0  ;;  %v4533_v21 = vsel %vm383_vm1, %v4505_v41, 0.0  ;;  %v4425_v32 = vadd.f32 %v4424_v19, %v7521_v11  ;;  %4397 = vst.msk [vmem:[%s7778_s5 + $0xc8] sm:$0xff] %vm383_vm1, %v4367_v48 }
 0x33d   : > { %v4569_v39 = vadd.f32 %v4568_v45, %v4567_v17  ;;  %v4459_v29 = vadd.f32 %v4458_v63, %v4457_v1  ;;  %v4534_v58 = vadd.f32 %v4533_v21, %v7538_v2  ;;  %v4536_v20 = vsel %vm383_vm1, %v4506_v23, 0.0  ;;  %4398 = vst.msk [vmem:[%s7778_s5 + $0xd0] sm:$0xff] %vm383_vm1, %v4368_v4  ;;  %v4370_v2 = vld [vmem:[#allocation2 + $0xe0] sm:$0xff] }
 0x33e   : > { %v4460_v11 = vsel %vm383_vm1, %v4425_v32, 0.0  ;;  %v4537_v47 = vadd.f32 %v4536_v20, %v7551_v49  ;;  %v4427_v18 = vsel %vm383_vm1, %v4365_v5, 0.0  ;;  %v4507_v33 = vmul.f32 %v4365_v5, %v4365_v5  ;;  %4399 = vst.msk [vmem:[%s7778_s5 + $0xd8] sm:$0xff] %vm383_vm1, %v4369_v56  ;;  %v4371_v49 = vld [vmem:[#allocation2 + $0xe8] sm:$0xff] }
 0x33f   : > { %v4570_v57 = vsel %vm383_vm1, %v4534_v58, 0.0  ;;  %v4461_v14 = vadd.f32 %v4460_v11, %v4459_v29  ;;  %v4428_v25 = vadd.f32 %v4427_v18, %v7531_v38  ;;  %v4430_v53 = vsel %vm383_vm1, %v4366_v26, 0.0  ;;  %4400 = vst.msk [vmem:[%s7778_s5 + $0xe0] sm:$0xff] %vm383_vm1, %v4370_v2 }
 0x340   : > { %v4571_v0 = vadd.f32 %v4570_v57, %v4569_v39  ;;  %v4572_v43 = vsel %vm383_vm1, %v4537_v47, 0.0  ;;  %v4539_v50 = vsel %vm383_vm1, %v4507_v33, 0.0  ;;  %v4431_v55 = vadd.f32 %v4430_v53, %v7541_v36  ;;  %4401 = vst.msk [vmem:[%s7778_s5 + $0xe8] sm:$0xff] %vm383_vm1, %v4371_v49 }
 0x341   : > { %v4462_v38 = vsel %vm383_vm1, %v4428_v25, 0.0  ;;  %v4540_v12 = vadd.f32 %v4539_v50, %v7554_v6  ;;  %v4508_v59 = vmul.f32 %v4366_v26, %v4366_v26  ;;  %v4433_v10 = vsel %vm383_vm1, %v4367_v48, 0.0 }
 0x342   : > { %v4573_v44 = vadd.f32 %v4572_v43, %v4571_v0  ;;  %v4463_v60 = vadd.f32 %v4462_v38, %v4461_v14  ;;  %v4464_v31 = vsel %vm383_vm1, %v4431_v55, 0.0  ;;  %v4434_v42 = vadd.f32 %v4433_v10, %v7544_v28 }
 0x343   : > { %v4574_v36 = vsel %vm383_vm1, %v4540_v12, 0.0  ;;  %v4542_v34 = vsel %vm383_vm1, %v4508_v59, 0.0  ;;  %v4509_v22 = vmul.f32 %v4367_v48, %v4367_v48  ;;  %v4436_v30 = vsel %vm383_vm1, %v4368_v4, 0.0 }
 0x344   : > { %v4575_v35 = vadd.f32 %v4574_v36, %v4573_v44  ;;  %v4465_v52 = vadd.f32 %v4464_v31, %v4463_v60  ;;  %v4543_v6 = vadd.f32 %v4542_v34, %v7564_v27  ;;  %v4466_v16 = vsel %vm383_vm1, %v4434_v42, 0.0 }
 0x345   : > { %v4545_v61 = vsel %vm383_vm1, %v4509_v22, 0.0  ;;  %v4437_v7 = vadd.f32 %v4436_v30, %v7557_v40  ;;  %v4510_v5 = vmul.f32 %v4368_v4, %v4368_v4  ;;  %v4439_v28 = vsel %vm383_vm1, %v4369_v56, 0.0 }
 0x346   : > { %v4576_v54 = vsel %vm383_vm1, %v4543_v6, 0.0  ;;  %v4467_v15 = vadd.f32 %v4466_v16, %v4465_v52  ;;  %v4546_v9 = vadd.f32 %v4545_v61, %v7574_v13  ;;  %v4440_v41 = vadd.f32 %v4439_v28, %v7567_v3 }
 0x347   : > { %v4577_v26 = vadd.f32 %v4576_v54, %v4575_v35  ;;  %v4468_v17 = vsel %vm383_vm1, %v4437_v7, 0.0  ;;  %v4548_v27 = vsel %vm383_vm1, %v4510_v5, 0.0  ;;  %v4511_v1 = vmul.f32 %v4369_v56, %v4369_v56 }
 0x348   : > { %v4578_v19 = vsel %vm383_vm1, %v4546_v9, 0.0  ;;  %v4469_v23 = vadd.f32 %v4468_v17, %v4467_v15  ;;  %v4549_v40 = vadd.f32 %v4548_v27, %v7587_v8  ;;  %v4470_v48 = vsel %vm383_vm1, %v4440_v41, 0.0 }
 0x349   : > { %v4579_v45 = vadd.f32 %v4578_v19, %v4577_v26  ;;  %v4551_v63 = vsel %vm383_vm1, %v4511_v1, 0.0  ;;  %v4442_v13 = vsel %vm383_vm1, %v4370_v2, 0.0  ;;  %v4512_v21 = vmul.f32 %v4370_v2, %v4370_v2 }
 0x34a   : > { %v4580_v3 = vsel %vm383_vm1, %v4549_v40, 0.0  ;;  %v4471_v32 = vadd.f32 %v4470_v48, %v4469_v23  ;;  %v4552_v4 = vadd.f32 %v4551_v63, %v7590_v24  ;;  %v4443_v39 = vadd.f32 %v4442_v13, %v7577_v51 }
 0x34b   : > { %v4581_v29 = vadd.f32 %v4580_v3, %v4579_v45  ;;  %v4554_v58 = vsel %vm383_vm1, %v4512_v21, 0.0  ;;  %v4445_v8 = vsel %vm383_vm1, %v4371_v49, 0.0  ;;  %v4513_v20 = vmul.f32 %v4371_v49, %v4371_v49 }
 0x34c   : > { %v4582_v56 = vsel %vm383_vm1, %v4552_v4, 0.0  ;;  %v4472_v11 = vsel %vm383_vm1, %v4443_v39, 0.0  ;;  %v4555_v47 = vadd.f32 %v4554_v58, %v7598_v46  ;;  %v4446_v18 = vadd.f32 %v4445_v8, %v7580_v37 }
 0x34d   : > { %v4583_v33 = vadd.f32 %v4582_v56, %v4581_v29  ;;  %v4473_v2 = vadd.f32 %v4472_v11, %v4471_v32  ;;  %v4557_v24 = vsel %vm383_vm1, %v4513_v20, 0.0 }
 0x34e   : > { %v4584_v51 = vsel %vm383_vm1, %v4555_v47, 0.0  ;;  %v4474_v57 = vsel %vm383_vm1, %v4446_v18, 0.0  ;;  %v4558_v14 = vadd.f32 %v4557_v24, %v7607_v62 }
 0x34f   : > { %v4585_v25 = vadd.f32 %v4584_v51, %v4583_v33  ;;  %v4475_v53 = vadd.f32 %v4474_v57, %v4473_v2 }
 0x350   : > { %v4586_v49 = vsel %vm383_vm1, %v4558_v14, 0.0 }
 0x351   : > { %v4587_v0 = vadd.f32 %v4586_v49, %v4585_v25  ;;  %v4476_v43 = vrot.slane %v4475_v53, 4 }
 0x353   : > { %v4477_v50 = vadd.f32 %v4476_v43, %v4475_v53  ;;  %v4588_v46 = vrot.slane %v4587_v0, 4 }
 0x355   : > { %v4478_v55 = vrot.slane %v4477_v50, 2  ;;  %v4589_v37 = vadd.f32 %v4588_v46, %v4587_v0 }
 0x357   : > { %v4479_v38 = vadd.f32 %v4478_v55, %v4477_v50  ;;  %v4590_v12 = vrot.slane %v4589_v37, 2 }
 0x359   : > { %v4480_v59 = vrot.slane %v4479_v38, 1  ;;  %v4591_v10 = vadd.f32 %v4590_v12, %v4589_v37 }
 0x35b   : > { %v4481_v44 = vadd.f32 %v4480_v59, %v4479_v38  ;;  %v4592_v60 = vrot.slane %v4591_v10, 1 }
 0x35d   : > { %4483 = vst.msk [vmem:[%s7779_s6] sm:$0x1] %vm4482_vm5, %v4481_v44  ;;  %v4593_v62 = vadd.f32 %v4592_v60, %v4591_v10 }
 0x35f   : > { %4594 = vst.msk [vmem:[%s7780_s7] sm:$0x1] %vm4482_vm5, %v4593_v62 }
 0x360 PF: > { %s18_s24 = sadd.s32 1, %s5285_s24  }
 0x361   : > { %p15_p6 = scmp.ge.s32.totalorder %s18_s24, 4  }
 0x363   :  { %17 = sbr.rel (!%p15_p6) target bundleno = 1 (0x1), region = 105 }

</bundles_post_ra>
